<compile_context>
chip_gen: v5e
topology: v5e:2x2
jax: 0.10.0
libtpu: 0.0.40
codegen_flags: <defaults>
</compile_context>

<pallas_src>
import jax
import jax.numpy as jnp
from jax.experimental import pallas as pl
from jax.experimental.pallas import tpu as pltpu


def _encoder_kernel(x_ref, w_ih_ref, b_ref, w_blk_hbm, w_out_hbm, b_out_ref,
                    noise_ref, out_ref,
                    xp_f_scr, xp_b_scr, w_blk_scr, w_out_scr, sem):
    # Static shapes: x (T*B, 5), w_ih (2, 5, 4H), b (2, 1, 4H),
    # w_blk (2H, 8H) bf16 [HBM], w_out (2H, 2*Nz) [HBM], b_out (1, 2*Nz),
    # noise (B, Nz), out (B, 3*Nz).
    B, Nz = noise_ref.shape
    TB = x_ref.shape[0]
    T = TB // B
    H = w_blk_scr.shape[0] // 2

    # ---- Kick off weight DMAs first so they hide behind the x-projection
    # and the first (h == 0) timestep. ----
    cp_w_blk = pltpu.make_async_copy(w_blk_hbm, w_blk_scr, sem.at[0])
    cp_w_out = pltpu.make_async_copy(w_out_hbm, w_out_scr, sem.at[1])
    cp_w_blk.start()
    cp_w_out.start()

    # ---- Hoisted, gate-fused input projection (off the serial h-chain). ----
    # One (T*B, 5) @ (5, 4H) MXU pass per direction; fused bias added here.
    x_all = x_ref[...]                                              # (T*B, 5)
    xp_f_scr[...] = (jnp.dot(x_all, w_ih_ref[0],
                             preferred_element_type=jnp.float32) + b_ref[0])
    xp_b_scr[...] = (jnp.dot(x_all, w_ih_ref[1],
                             preferred_element_type=jnp.float32) + b_ref[1])

    def apply_gates(pre, c):
        # PyTorch gate order i|f|g|o — 128-lane-aligned static slices. f32 math.
        i = jax.nn.sigmoid(pre[:, 0:H])
        f = jax.nn.sigmoid(pre[:, H:2 * H])
        g = jnp.tanh(pre[:, 2 * H:3 * H])
        o = jax.nn.sigmoid(pre[:, 3 * H:4 * H])
        c_new = f * c + i * g
        h_new = o * jnp.tanh(c_new)
        return h_new, c_new

    zeros = jnp.zeros((B, H), jnp.float32)
    c_f = zeros
    c_b = zeros

    # ---- Timestep 0: h == 0, so the recurrent matmul is skipped; this runs
    # while the w_blk DMA is still in flight. ----
    h_f, c_f = apply_gates(xp_f_scr[pl.ds(0, B), :], c_f)
    h_b, c_b = apply_gates(xp_b_scr[pl.ds((T - 1) * B, B), :], c_b)
    hcat = jnp.concatenate([h_f, h_b], axis=1)                      # (B, 2H) f32

    cp_w_blk.wait()
    w_blk = w_blk_scr[...]                                          # (2H, 8H) bf16

    # ---- Statically unrolled recurrence (T is a small static int). ----
    # One direction-fused K=2H bf16 MXU push per step; state stays f32.
    for t in range(1, T):
        pre = jnp.dot(hcat.astype(jnp.bfloat16), w_blk,
                      preferred_element_type=jnp.float32)           # (B, 8H) f32
        pre_f = pre[:, 0:4 * H] + xp_f_scr[pl.ds(t * B, B), :]
        pre_b = pre[:, 4 * H:8 * H] + xp_b_scr[pl.ds((T - 1 - t) * B, B), :]
        h_f, c_f = apply_gates(pre_f, c_f)
        h_b, c_b = apply_gates(pre_b, c_b)
        hcat = jnp.concatenate([h_f, h_b], axis=1)

    # ---- Fused fc_mu / fc_sigma epilogue: one K=2H dot, f32. ----
    cp_w_out.wait()
    proj = (jnp.dot(hcat, w_out_scr[...],
                    preferred_element_type=jnp.float32) + b_out_ref[...])   # (B, 2*Nz)
    mu = proj[:, 0:Nz]
    sigma_hat = proj[:, Nz:2 * Nz]
    z = mu + jnp.exp(sigma_hat * 0.5) * noise_ref[...]

    # Single lane-dense output slab: [mu | sigma_hat | z].
    out_ref[:, 0:2 * Nz] = proj
    out_ref[:, 2 * Nz:3 * Nz] = z


def encoder_rnn_forward(x, params, noise):
    """x: (T, B, 5) float32 (time-major, like nn.LSTM). Returns (z, mu, sigma_hat)."""
    T, B, D_in = x.shape
    w_ih, w_hh, b = params["w_ih"], params["w_hh"], params["b"]
    w_out, b_out = params["w_out"], params["b_out"]
    H = w_hh.shape[1]
    Nz = noise.shape[-1]

    # Layout plumbing only: sublane-dense 2-D slab for one fused x-projection
    # matmul per direction.
    x2d = x.reshape(T * B, D_in)

    # Direction-fused block-diagonal recurrent weight (bf16 for the MXU and to
    # halve its DMA bytes): [h_f|h_b] @ [[W_f, 0], [0, W_b]] -> [pre_f|pre_b].
    zblk = jnp.zeros((H, 4 * H), jnp.float32)
    w_blk = jnp.concatenate(
        [jnp.concatenate([w_hh[0], zblk], axis=1),
         jnp.concatenate([zblk, w_hh[1]], axis=1)], axis=0).astype(jnp.bfloat16)

    def full(arr):
        return pl.BlockSpec(arr.shape, lambda i, _nd=arr.ndim: (0,) * _nd)

    grid_spec = pltpu.PrefetchScalarGridSpec(
        num_scalar_prefetch=0,
        grid=(1,),                       # whole recurrence in ONE grid invocation
        in_specs=[
            full(x2d),                   # x, flattened to (T*B, 5)
            full(w_ih), full(b),
            pl.BlockSpec(memory_space=pl.ANY),   # w_blk: manual, overlapped DMA
            pl.BlockSpec(memory_space=pl.ANY),   # w_out: manual, overlapped DMA
            full(b_out),
            full(noise),
        ],
        out_specs=pl.BlockSpec((B, 3 * Nz), lambda i: (0, 0)),   # [mu|sigma_hat|z]
        scratch_shapes=[
            pltpu.VMEM((T * B, 4 * H), jnp.float32),   # hoisted x-projection, fwd
            pltpu.VMEM((T * B, 4 * H), jnp.float32),   # hoisted x-projection, bwd
            pltpu.VMEM((2 * H, 8 * H), jnp.bfloat16),  # w_blk landing buffer
            pltpu.VMEM((2 * H, 2 * Nz), jnp.float32),  # w_out landing buffer
            pltpu.SemaphoreType.DMA((2,)),
        ],
    )

    out = pl.pallas_call(
        _encoder_kernel,
        out_shape=jax.ShapeDtypeStruct((B, 3 * Nz), jnp.float32),
        grid_spec=grid_spec,
        compiler_params=pltpu.CompilerParams(
            dimension_semantics=("arbitrary",)),
    )(x2d, w_ih, b, w_blk, w_out, b_out, noise)

    mu = out[:, 0:Nz]
    sigma_hat = out[:, Nz:2 * Nz]
    z = out[:, 2 * Nz:3 * Nz]
    return z, mu, sigma_hat


def _reference_forward(x, params, noise):
    """Pure-JAX f32 reference of the same forward pass (correctness check)."""
    w_ih, w_hh, b = params["w_ih"], params["w_hh"], params["b"]
    w_out, b_out = params["w_out"], params["b_out"]
    T, B, _ = x.shape
    H = w_hh.shape[1]
    Nz = noise.shape[-1]

    def run_dir(x_seq, d):
        def step(carry, x_t):
            h, c = carry
            pre = x_t @ w_ih[d] + h @ w_hh[d] + b[d]
            i = jax.nn.sigmoid(pre[:, 0:H])
            f = jax.nn.sigmoid(pre[:, H:2 * H])
            g = jnp.tanh(pre[:, 2 * H:3 * H])
            o = jax.nn.sigmoid(pre[:, 3 * H:4 * H])
            c = f * c + i * g
            h = o * jnp.tanh(c)
            return (h, c), None
        init = (jnp.zeros((B, H), jnp.float32), jnp.zeros((B, H), jnp.float32))
        (h, _), _ = jax.lax.scan(step, init, x_seq)
        return h

    h_f = run_dir(x, 0)
    h_b = run_dir(x[::-1], 1)
    proj = h_f @ w_out[:H] + h_b @ w_out[H:] + b_out
    mu = proj[:, :Nz]
    sigma_hat = proj[:, Nz:]
    z = mu + jnp.exp(sigma_hat / 2.0) * noise
    return z, mu, sigma_hat


def init_params(key, enc_hidden_size, Nz, input_size=5):
    """Synthetic parameters in the fused layout (PyTorch-equivalent semantics)."""
    H = enc_hidden_size
    ks = jax.random.split(key, 8)
    scale = 1.0 / jnp.sqrt(jnp.float32(H))
    u = lambda k, shape: jax.random.uniform(k, shape, jnp.float32, -scale, scale)
    # Bidirectional LSTM: gates fused along lanes in PyTorch order [i|f|g|o],
    # pre-transposed for x @ W (from weight_ih_l0{,_reverse}: (4H, 5) etc.).
    w_ih = u(ks[0], (2, input_size, 4 * H))
    w_hh = u(ks[1], (2, H, 4 * H))
    b = u(ks[2], (2, 1, 4 * H)) + u(ks[3], (2, 1, 4 * H))    # bias_ih + bias_hh
    # fc_mu / fc_sigma (each Linear(2H -> Nz)) fused along lanes, stored
    # transposed for hidden_cat @ W.
    w_out = jnp.concatenate([u(ks[4], (2 * H, Nz)), u(ks[6], (2 * H, Nz))], axis=1)
    b_out = jnp.concatenate([u(ks[5], (1, Nz)), u(ks[7], (1, Nz))], axis=1)
    return dict(w_ih=w_ih, w_hh=w_hh, b=b, w_out=w_out, b_out=b_out)


if __name__ == "__main__":
    # Small hyperparameters consistent with the module (SketchRNN-style hp):
    # enc_hidden_size / Nz = 128 so every gate / output slice is lane-tile
    # aligned; batch = 8 so per-timestep rows are sublane aligned.
    T, B = 8, 8                 # seq_len, batch
    enc_hidden_size = 128       # hp.enc_hidden_size
    Nz = 128                    # hp.Nz

    key = jax.random.PRNGKey(0)
    k_x, k_p, k_n = jax.random.split(key, 3)

    x = jax.random.normal(k_x, (T, B, 5), dtype=jnp.float32)       # inputs.float()
    params = init_params(k_p, enc_hidden_size, Nz)
    noise = jax.random.normal(k_n, (B, Nz), dtype=jnp.float32)     # N ~ Normal(0, 1)

    z, mu, sigma_hat = encoder_rnn_forward(x, params, noise)
    jax.block_until_ready((z, mu, sigma_hat))

    # Correctness check against a pure-JAX f32 reference (tolerances loosened
    # for the bf16-operand recurrent matmuls; state/gate math stays f32).
    z_r, mu_r, sh_r = _reference_forward(x, params, noise)
    assert z.shape == (B, Nz) and mu.shape == (B, Nz) and sigma_hat.shape == (B, Nz)
    assert jnp.allclose(mu, mu_r, atol=3e-2, rtol=3e-2)
    assert jnp.allclose(sigma_hat, sh_r, atol=3e-2, rtol=3e-2)
    assert jnp.allclose(z, z_r, atol=3e-2, rtol=3e-2)

    print("KERNEL_OK")
</pallas_src>

<mosaic_0001>
module attributes {stable_mosaic.version = 11 : i64} {
  func.func @_encoder_kernel(%arg0: i32, %arg1: memref<64x5xf32, #tpu.memory_space<vmem>>, %arg2: memref<2x5x512xf32, #tpu.memory_space<vmem>>, %arg3: memref<2x1x512xf32, #tpu.memory_space<vmem>>, %arg4: memref<256x1024xbf16, #tpu.memory_space<any>>, %arg5: memref<256x256xf32, #tpu.memory_space<any>>, %arg6: memref<1x256xf32, #tpu.memory_space<vmem>>, %arg7: memref<8x128xf32, #tpu.memory_space<vmem>>, %arg8: memref<8x384xf32, #tpu.memory_space<vmem>>, %arg9: memref<64x512xf32, #tpu.memory_space<vmem>>, %arg10: memref<64x512xf32, #tpu.memory_space<vmem>>, %arg11: memref<256x1024xbf16, #tpu.memory_space<vmem>>, %arg12: memref<256x256xf32, #tpu.memory_space<vmem>>, %arg13: memref<2x!tpu.dma_semaphore, #tpu.memory_space<semaphore_mem>>) attributes {dimension_semantics = [#tpu.dimension_semantics<arbitrary>], iteration_bounds = array<i64: 1>, scalar_prefetch = 0 : i64, scratch_operands = 5 : i64, tpu.core_type = #tpu.core_type<tc>, window_params = [{pipeline_mode = #tpu.pipeline_mode<synchronous>, transform_indices = @transform_0, window_bounds = array<i64: 64, 5>}, {pipeline_mode = #tpu.pipeline_mode<synchronous>, transform_indices = @transform_1, window_bounds = array<i64: 2, 5, 512>}, {pipeline_mode = #tpu.pipeline_mode<synchronous>, transform_indices = @transform_2, window_bounds = array<i64: 2, 1, 512>}, {}, {}, {pipeline_mode = #tpu.pipeline_mode<synchronous>, transform_indices = @transform_5, window_bounds = array<i64: 1, 256>}, {pipeline_mode = #tpu.pipeline_mode<synchronous>, transform_indices = @transform_6, window_bounds = array<i64: 8, 128>}, {pipeline_mode = #tpu.pipeline_mode<synchronous>, transform_indices = @transform_7, window_bounds = array<i64: 8, 384>}]} {
    %c0_i32 = arith.constant 0 : i32
    %0 = tpu.memref_slice %arg13[%c0_i32] : memref<2x!tpu.dma_semaphore, #tpu.memory_space<semaphore_mem>> -> memref<1x!tpu.dma_semaphore, #tpu.memory_space<semaphore_mem>>
    %1 = tpu.memref_squeeze %0 : memref<1x!tpu.dma_semaphore, #tpu.memory_space<semaphore_mem>> -> memref<!tpu.dma_semaphore, #tpu.memory_space<semaphore_mem>>
    tpu.enqueue_dma source(%arg4 : memref<256x1024xbf16, #tpu.memory_space<any>>) target(%arg11 : memref<256x1024xbf16, #tpu.memory_space<vmem>>) target_semaphore(%1 : memref<!tpu.dma_semaphore, #tpu.memory_space<semaphore_mem>>)
    %c1_i32 = arith.constant 1 : i32
    %2 = tpu.memref_slice %arg13[%c1_i32] : memref<2x!tpu.dma_semaphore, #tpu.memory_space<semaphore_mem>> -> memref<1x!tpu.dma_semaphore, #tpu.memory_space<semaphore_mem>>
    %3 = tpu.memref_squeeze %2 : memref<1x!tpu.dma_semaphore, #tpu.memory_space<semaphore_mem>> -> memref<!tpu.dma_semaphore, #tpu.memory_space<semaphore_mem>>
    tpu.enqueue_dma source(%arg5 : memref<256x256xf32, #tpu.memory_space<any>>) target(%arg12 : memref<256x256xf32, #tpu.memory_space<vmem>>) target_semaphore(%3 : memref<!tpu.dma_semaphore, #tpu.memory_space<semaphore_mem>>)
    %c0 = arith.constant 0 : index
    %c0_0 = arith.constant 0 : index
    %4 = vector.load %arg1[%c0, %c0_0] : memref<64x5xf32, #tpu.memory_space<vmem>>, vector<64x5xf32>
    %c0_1 = arith.constant 0 : index
    %c0_2 = arith.constant 0 : index
    %c0_3 = arith.constant 0 : index
    %5 = vector.load %arg2[%c0_1, %c0_2, %c0_3] : memref<2x5x512xf32, #tpu.memory_space<vmem>>, vector<1x5x512xf32>
    %6 = vector.shape_cast %5 : vector<1x5x512xf32> to vector<5x512xf32>
    %cst = arith.constant dense<0.000000e+00> : vector<64x512xf32>
    %7 = tpu.matmul %4, %6, %cst {dimension_numbers = #tpu.dot_dimension_numbers<[1], [0], [0], [1], [0, 0, 1, 1], [], []>} : vector<64x5xf32>, vector<5x512xf32>, vector<64x512xf32> -> vector<64x512xf32>
    %c0_4 = arith.constant 0 : index
    %c0_5 = arith.constant 0 : index
    %c0_6 = arith.constant 0 : index
    %8 = vector.load %arg3[%c0_4, %c0_5, %c0_6] : memref<2x1x512xf32, #tpu.memory_space<vmem>>, vector<1x1x512xf32>
    %9 = vector.shape_cast %8 : vector<1x1x512xf32> to vector<1x512xf32>
    %10 = vector.broadcast %9 : vector<1x512xf32> to vector<64x512xf32>
    %11 = arith.addf %7, %10 : vector<64x512xf32>
    %c0_7 = arith.constant 0 : index
    %c0_8 = arith.constant 0 : index
    %12 = vector.load %arg9[%c0_7, %c0_8] : memref<64x512xf32, #tpu.memory_space<vmem>>, vector<64x512xf32>
    tpu.vector_store %arg9[%c0_7, %c0_8], %11 {strides = array<i32>} : memref<64x512xf32, #tpu.memory_space<vmem>>, vector<64x512xf32>,
    %c1 = arith.constant 1 : index
    %c0_9 = arith.constant 0 : index
    %c0_10 = arith.constant 0 : index
    %13 = vector.load %arg2[%c1, %c0_9, %c0_10] : memref<2x5x512xf32, #tpu.memory_space<vmem>>, vector<1x5x512xf32>
    %14 = vector.shape_cast %13 : vector<1x5x512xf32> to vector<5x512xf32>
    %cst_11 = arith.constant dense<0.000000e+00> : vector<64x512xf32>
    %15 = tpu.matmul %4, %14, %cst_11 {dimension_numbers = #tpu.dot_dimension_numbers<[1], [0], [0], [1], [0, 0, 1, 1], [], []>} : vector<64x5xf32>, vector<5x512xf32>, vector<64x512xf32> -> vector<64x512xf32>
    %c1_12 = arith.constant 1 : index
    %c0_13 = arith.constant 0 : index
    %c0_14 = arith.constant 0 : index
    %16 = vector.load %arg3[%c1_12, %c0_13, %c0_14] : memref<2x1x512xf32, #tpu.memory_space<vmem>>, vector<1x1x512xf32>
    %17 = vector.shape_cast %16 : vector<1x1x512xf32> to vector<1x512xf32>
    %18 = vector.broadcast %17 : vector<1x512xf32> to vector<64x512xf32>
    %19 = arith.addf %15, %18 : vector<64x512xf32>
    %c0_15 = arith.constant 0 : index
    %c0_16 = arith.constant 0 : index
    %20 = vector.load %arg10[%c0_15, %c0_16] : memref<64x512xf32, #tpu.memory_space<vmem>>, vector<64x512xf32>
    tpu.vector_store %arg10[%c0_15, %c0_16], %19 {strides = array<i32>} : memref<64x512xf32, #tpu.memory_space<vmem>>, vector<64x512xf32>,
    %cst_17 = arith.constant 0.000000e+00 : f32
    %21 = vector.broadcast %cst_17 : f32 to vector<8x128xf32>
    %c0_18 = arith.constant 0 : index
    %c0_19 = arith.constant 0 : index
    %22 = vector.load %arg9[%c0_18, %c0_19] : memref<64x512xf32, #tpu.memory_space<vmem>>, vector<8x512xf32>
    %23 = vector.extract_strided_slice %22 {offsets = [0, 0], sizes = [8, 128], strides = [1, 1]} : vector<8x512xf32> to vector<8x128xf32>
    %24 = arith.negf %23 : vector<8x128xf32>
    %25 = math.exp %24 : vector<8x128xf32>
    %cst_20 = arith.constant 1.000000e+00 : f32
    %26 = vector.broadcast %cst_20 : f32 to vector<8x128xf32>
    %27 = arith.addf %26, %25 : vector<8x128xf32>
    %28 = arith.divf %26, %27 : vector<8x128xf32>
    %29 = vector.extract_strided_slice %22 {offsets = [0, 128], sizes = [8, 128], strides = [1, 1]} : vector<8x512xf32> to vector<8x128xf32>
    %30 = arith.negf %29 : vector<8x128xf32>
    %31 = math.exp %30 : vector<8x128xf32>
    %cst_21 = arith.constant 1.000000e+00 : f32
    %32 = vector.broadcast %cst_21 : f32 to vector<8x128xf32>
    %33 = arith.addf %32, %31 : vector<8x128xf32>
    %34 = arith.divf %32, %33 : vector<8x128xf32>
    %35 = vector.extract_strided_slice %22 {offsets = [0, 256], sizes = [8, 128], strides = [1, 1]} : vector<8x512xf32> to vector<8x128xf32>
    %36 = math.tanh %35 : vector<8x128xf32>
    %37 = vector.extract_strided_slice %22 {offsets = [0, 384], sizes = [8, 128], strides = [1, 1]} : vector<8x512xf32> to vector<8x128xf32>
    %38 = arith.negf %37 : vector<8x128xf32>
    %39 = math.exp %38 : vector<8x128xf32>
    %cst_22 = arith.constant 1.000000e+00 : f32
    %40 = vector.broadcast %cst_22 : f32 to vector<8x128xf32>
    %41 = arith.addf %40, %39 : vector<8x128xf32>
    %42 = arith.divf %40, %41 : vector<8x128xf32>
    %43 = arith.mulf %34, %21 : vector<8x128xf32>
    %44 = arith.mulf %28, %36 : vector<8x128xf32>
    %45 = arith.addf %43, %44 : vector<8x128xf32>
    %46 = math.tanh %45 : vector<8x128xf32>
    %47 = arith.mulf %42, %46 : vector<8x128xf32>
    %c56 = arith.constant 56 : index
    %c0_23 = arith.constant 0 : index
    %48 = vector.load %arg10[%c56, %c0_23] : memref<64x512xf32, #tpu.memory_space<vmem>>, vector<8x512xf32>
    %49 = vector.extract_strided_slice %48 {offsets = [0, 0], sizes = [8, 128], strides = [1, 1]} : vector<8x512xf32> to vector<8x128xf32>
    %50 = arith.negf %49 : vector<8x128xf32>
    %51 = math.exp %50 : vector<8x128xf32>
    %cst_24 = arith.constant 1.000000e+00 : f32
    %52 = vector.broadcast %cst_24 : f32 to vector<8x128xf32>
    %53 = arith.addf %52, %51 : vector<8x128xf32>
    %54 = arith.divf %52, %53 : vector<8x128xf32>
    %55 = vector.extract_strided_slice %48 {offsets = [0, 128], sizes = [8, 128], strides = [1, 1]} : vector<8x512xf32> to vector<8x128xf32>
    %56 = arith.negf %55 : vector<8x128xf32>
    %57 = math.exp %56 : vector<8x128xf32>
    %cst_25 = arith.constant 1.000000e+00 : f32
    %58 = vector.broadcast %cst_25 : f32 to vector<8x128xf32>
    %59 = arith.addf %58, %57 : vector<8x128xf32>
    %60 = arith.divf %58, %59 : vector<8x128xf32>
    %61 = vector.extract_strided_slice %48 {offsets = [0, 256], sizes = [8, 128], strides = [1, 1]} : vector<8x512xf32> to vector<8x128xf32>
    %62 = math.tanh %61 : vector<8x128xf32>
    %63 = vector.extract_strided_slice %48 {offsets = [0, 384], sizes = [8, 128], strides = [1, 1]} : vector<8x512xf32> to vector<8x128xf32>
    %64 = arith.negf %63 : vector<8x128xf32>
    %65 = math.exp %64 : vector<8x128xf32>
    %cst_26 = arith.constant 1.000000e+00 : f32
    %66 = vector.broadcast %cst_26 : f32 to vector<8x128xf32>
    %67 = arith.addf %66, %65 : vector<8x128xf32>
    %68 = arith.divf %66, %67 : vector<8x128xf32>
    %69 = arith.mulf %60, %21 : vector<8x128xf32>
    %70 = arith.mulf %54, %62 : vector<8x128xf32>
    %71 = arith.addf %69, %70 : vector<8x128xf32>
    %72 = math.tanh %71 : vector<8x128xf32>
    %73 = arith.mulf %68, %72 : vector<8x128xf32>
    %74 = tpu.concatenate %47, %73 in 1 : vector<8x128xf32>, vector<8x128xf32> -> vector<8x256xf32>
    %c0_i32_27 = arith.constant 0 : i32
    %75 = tpu.memref_slice %arg13[%c0_i32_27] : memref<2x!tpu.dma_semaphore, #tpu.memory_space<semaphore_mem>> -> memref<1x!tpu.dma_semaphore, #tpu.memory_space<semaphore_mem>>
    %76 = tpu.memref_squeeze %75 : memref<1x!tpu.dma_semaphore, #tpu.memory_space<semaphore_mem>> -> memref<!tpu.dma_semaphore, #tpu.memory_space<semaphore_mem>>
    tpu.wait_dma2 semaphore(%76 : memref<!tpu.dma_semaphore, #tpu.memory_space<semaphore_mem>>) src(%arg4 : memref<256x1024xbf16, #tpu.memory_space<any>>) dst(%arg11 : memref<256x1024xbf16, #tpu.memory_space<vmem>>)
    %c0_28 = arith.constant 0 : index
    %c0_29 = arith.constant 0 : index
    %77 = vector.load %arg11[%c0_28, %c0_29] : memref<256x1024xbf16, #tpu.memory_space<vmem>>, vector<256x1024xbf16>
    %78 = arith.truncf %74 : vector<8x256xf32> to vector<8x256xbf16>
    %cst_30 = arith.constant dense<0.000000e+00> : vector<8x1024xf32>
    %79 = tpu.matmul %78, %77, %cst_30 {dimension_numbers = #tpu.dot_dimension_numbers<[1], [0], [0], [1], [0, 0, 1, 1], [], []>} : vector<8x256xbf16>, vector<256x1024xbf16>, vector<8x1024xf32> -> vector<8x1024xf32>
    %80 = vector.extract_strided_slice %79 {offsets = [0, 0], sizes = [8, 512], strides = [1, 1]} : vector<8x1024xf32> to vector<8x512xf32>
    %c8 = arith.constant 8 : index
    %c0_31 = arith.constant 0 : index
    %81 = vector.load %arg9[%c8, %c0_31] : memref<64x512xf32, #tpu.memory_space<vmem>>, vector<8x512xf32>
    %82 = arith.addf %80, %81 : vector<8x512xf32>
    %83 = vector.extract_strided_slice %79 {offsets = [0, 512], sizes = [8, 512], strides = [1, 1]} : vector<8x1024xf32> to vector<8x512xf32>
    %c48 = arith.constant 48 : index
    %c0_32 = arith.constant 0 : index
    %84 = vector.load %arg10[%c48, %c0_32] : memref<64x512xf32, #tpu.memory_space<vmem>>, vector<8x512xf32>
    %85 = arith.addf %83, %84 : vector<8x512xf32>
    %86 = vector.extract_strided_slice %82 {offsets = [0, 0], sizes = [8, 128], strides = [1, 1]} : vector<8x512xf32> to vector<8x128xf32>
    %87 = arith.negf %86 : vector<8x128xf32>
    %88 = math.exp %87 : vector<8x128xf32>
    %cst_33 = arith.constant 1.000000e+00 : f32
    %89 = vector.broadcast %cst_33 : f32 to vector<8x128xf32>
    %90 = arith.addf %89, %88 : vector<8x128xf32>
    %91 = arith.divf %89, %90 : vector<8x128xf32>
    %92 = vector.extract_strided_slice %82 {offsets = [0, 128], sizes = [8, 128], strides = [1, 1]} : vector<8x512xf32> to vector<8x128xf32>
    %93 = arith.negf %92 : vector<8x128xf32>
    %94 = math.exp %93 : vector<8x128xf32>
    %cst_34 = arith.constant 1.000000e+00 : f32
    %95 = vector.broadcast %cst_34 : f32 to vector<8x128xf32>
    %96 = arith.addf %95, %94 : vector<8x128xf32>
    %97 = arith.divf %95, %96 : vector<8x128xf32>
    %98 = vector.extract_strided_slice %82 {offsets = [0, 256], sizes = [8, 128], strides = [1, 1]} : vector<8x512xf32> to vector<8x128xf32>
    %99 = math.tanh %98 : vector<8x128xf32>
    %100 = vector.extract_strided_slice %82 {offsets = [0, 384], sizes = [8, 128], strides = [1, 1]} : vector<8x512xf32> to vector<8x128xf32>
    %101 = arith.negf %100 : vector<8x128xf32>
    %102 = math.exp %101 : vector<8x128xf32>
    %cst_35 = arith.constant 1.000000e+00 : f32
    %103 = vector.broadcast %cst_35 : f32 to vector<8x128xf32>
    %104 = arith.addf %103, %102 : vector<8x128xf32>
    %105 = arith.divf %103, %104 : vector<8x128xf32>
    %106 = arith.mulf %97, %45 : vector<8x128xf32>
    %107 = arith.mulf %91, %99 : vector<8x128xf32>
    %108 = arith.addf %106, %107 : vector<8x128xf32>
    %109 = math.tanh %108 : vector<8x128xf32>
    %110 = arith.mulf %105, %109 : vector<8x128xf32>
    %111 = vector.extract_strided_slice %85 {offsets = [0, 0], sizes = [8, 128], strides = [1, 1]} : vector<8x512xf32> to vector<8x128xf32>
    %112 = arith.negf %111 : vector<8x128xf32>
    %113 = math.exp %112 : vector<8x128xf32>
    %cst_36 = arith.constant 1.000000e+00 : f32
    %114 = vector.broadcast %cst_36 : f32 to vector<8x128xf32>
    %115 = arith.addf %114, %113 : vector<8x128xf32>
    %116 = arith.divf %114, %115 : vector<8x128xf32>
    %117 = vector.extract_strided_slice %85 {offsets = [0, 128], sizes = [8, 128], strides = [1, 1]} : vector<8x512xf32> to vector<8x128xf32>
    %118 = arith.negf %117 : vector<8x128xf32>
    %119 = math.exp %118 : vector<8x128xf32>
    %cst_37 = arith.constant 1.000000e+00 : f32
    %120 = vector.broadcast %cst_37 : f32 to vector<8x128xf32>
    %121 = arith.addf %120, %119 : vector<8x128xf32>
    %122 = arith.divf %120, %121 : vector<8x128xf32>
    %123 = vector.extract_strided_slice %85 {offsets = [0, 256], sizes = [8, 128], strides = [1, 1]} : vector<8x512xf32> to vector<8x128xf32>
    %124 = math.tanh %123 : vector<8x128xf32>
    %125 = vector.extract_strided_slice %85 {offsets = [0, 384], sizes = [8, 128], strides = [1, 1]} : vector<8x512xf32> to vector<8x128xf32>
    %126 = arith.negf %125 : vector<8x128xf32>
    %127 = math.exp %126 : vector<8x128xf32>
    %cst_38 = arith.constant 1.000000e+00 : f32
    %128 = vector.broadcast %cst_38 : f32 to vector<8x128xf32>
    %129 = arith.addf %128, %127 : vector<8x128xf32>
    %130 = arith.divf %128, %129 : vector<8x128xf32>
    %131 = arith.mulf %122, %71 : vector<8x128xf32>
    %132 = arith.mulf %116, %124 : vector<8x128xf32>
    %133 = arith.addf %131, %132 : vector<8x128xf32>
    %134 = math.tanh %133 : vector<8x128xf32>
    %135 = arith.mulf %130, %134 : vector<8x128xf32>
    %136 = tpu.concatenate %110, %135 in 1 : vector<8x128xf32>, vector<8x128xf32> -> vector<8x256xf32>
    %137 = arith.truncf %136 : vector<8x256xf32> to vector<8x256xbf16>
    %cst_39 = arith.constant dense<0.000000e+00> : vector<8x1024xf32>
    %138 = tpu.matmul %137, %77, %cst_39 {dimension_numbers = #tpu.dot_dimension_numbers<[1], [0], [0], [1], [0, 0, 1, 1], [], []>} : vector<8x256xbf16>, vector<256x1024xbf16>, vector<8x1024xf32> -> vector<8x1024xf32>
    %139 = vector.extract_strided_slice %138 {offsets = [0, 0], sizes = [8, 512], strides = [1, 1]} : vector<8x1024xf32> to vector<8x512xf32>
    %c16 = arith.constant 16 : index
    %c0_40 = arith.constant 0 : index
    %140 = vector.load %arg9[%c16, %c0_40] : memref<64x512xf32, #tpu.memory_space<vmem>>, vector<8x512xf32>
    %141 = arith.addf %139, %140 : vector<8x512xf32>
    %142 = vector.extract_strided_slice %138 {offsets = [0, 512], sizes = [8, 512], strides = [1, 1]} : vector<8x1024xf32> to vector<8x512xf32>
    %c40 = arith.constant 40 : index
    %c0_41 = arith.constant 0 : index
    %143 = vector.load %arg10[%c40, %c0_41] : memref<64x512xf32, #tpu.memory_space<vmem>>, vector<8x512xf32>
    %144 = arith.addf %142, %143 : vector<8x512xf32>
    %145 = vector.extract_strided_slice %141 {offsets = [0, 0], sizes = [8, 128], strides = [1, 1]} : vector<8x512xf32> to vector<8x128xf32>
    %146 = arith.negf %145 : vector<8x128xf32>
    %147 = math.exp %146 : vector<8x128xf32>
    %cst_42 = arith.constant 1.000000e+00 : f32
    %148 = vector.broadcast %cst_42 : f32 to vector<8x128xf32>
    %149 = arith.addf %148, %147 : vector<8x128xf32>
    %150 = arith.divf %148, %149 : vector<8x128xf32>
    %151 = vector.extract_strided_slice %141 {offsets = [0, 128], sizes = [8, 128], strides = [1, 1]} : vector<8x512xf32> to vector<8x128xf32>
    %152 = arith.negf %151 : vector<8x128xf32>
    %153 = math.exp %152 : vector<8x128xf32>
    %cst_43 = arith.constant 1.000000e+00 : f32
    %154 = vector.broadcast %cst_43 : f32 to vector<8x128xf32>
    %155 = arith.addf %154, %153 : vector<8x128xf32>
    %156 = arith.divf %154, %155 : vector<8x128xf32>
    %157 = vector.extract_strided_slice %141 {offsets = [0, 256], sizes = [8, 128], strides = [1, 1]} : vector<8x512xf32> to vector<8x128xf32>
    %158 = math.tanh %157 : vector<8x128xf32>
    %159 = vector.extract_strided_slice %141 {offsets = [0, 384], sizes = [8, 128], strides = [1, 1]} : vector<8x512xf32> to vector<8x128xf32>
    %160 = arith.negf %159 : vector<8x128xf32>
    %161 = math.exp %160 : vector<8x128xf32>
    %cst_44 = arith.constant 1.000000e+00 : f32
    %162 = vector.broadcast %cst_44 : f32 to vector<8x128xf32>
    %163 = arith.addf %162, %161 : vector<8x128xf32>
    %164 = arith.divf %162, %163 : vector<8x128xf32>
    %165 = arith.mulf %156, %108 : vector<8x128xf32>
    %166 = arith.mulf %150, %158 : vector<8x128xf32>
    %167 = arith.addf %165, %166 : vector<8x128xf32>
    %168 = math.tanh %167 : vector<8x128xf32>
    %169 = arith.mulf %164, %168 : vector<8x128xf32>
    %170 = vector.extract_strided_slice %144 {offsets = [0, 0], sizes = [8, 128], strides = [1, 1]} : vector<8x512xf32> to vector<8x128xf32>
    %171 = arith.negf %170 : vector<8x128xf32>
    %172 = math.exp %171 : vector<8x128xf32>
    %cst_45 = arith.constant 1.000000e+00 : f32
    %173 = vector.broadcast %cst_45 : f32 to vector<8x128xf32>
    %174 = arith.addf %173, %172 : vector<8x128xf32>
    %175 = arith.divf %173, %174 : vector<8x128xf32>
    %176 = vector.extract_strided_slice %144 {offsets = [0, 128], sizes = [8, 128], strides = [1, 1]} : vector<8x512xf32> to vector<8x128xf32>
    %177 = arith.negf %176 : vector<8x128xf32>
    %178 = math.exp %177 : vector<8x128xf32>
    %cst_46 = arith.constant 1.000000e+00 : f32
    %179 = vector.broadcast %cst_46 : f32 to vector<8x128xf32>
    %180 = arith.addf %179, %178 : vector<8x128xf32>
    %181 = arith.divf %179, %180 : vector<8x128xf32>
    %182 = vector.extract_strided_slice %144 {offsets = [0, 256], sizes = [8, 128], strides = [1, 1]} : vector<8x512xf32> to vector<8x128xf32>
    %183 = math.tanh %182 : vector<8x128xf32>
    %184 = vector.extract_strided_slice %144 {offsets = [0, 384], sizes = [8, 128], strides = [1, 1]} : vector<8x512xf32> to vector<8x128xf32>
    %185 = arith.negf %184 : vector<8x128xf32>
    %186 = math.exp %185 : vector<8x128xf32>
    %cst_47 = arith.constant 1.000000e+00 : f32
    %187 = vector.broadcast %cst_47 : f32 to vector<8x128xf32>
    %188 = arith.addf %187, %186 : vector<8x128xf32>
    %189 = arith.divf %187, %188 : vector<8x128xf32>
    %190 = arith.mulf %181, %133 : vector<8x128xf32>
    %191 = arith.mulf %175, %183 : vector<8x128xf32>
    %192 = arith.addf %190, %191 : vector<8x128xf32>
    %193 = math.tanh %192 : vector<8x128xf32>
    %194 = arith.mulf %189, %193 : vector<8x128xf32>
    %195 = tpu.concatenate %169, %194 in 1 : vector<8x128xf32>, vector<8x128xf32> -> vector<8x256xf32>
    %196 = arith.truncf %195 : vector<8x256xf32> to vector<8x256xbf16>
    %cst_48 = arith.constant dense<0.000000e+00> : vector<8x1024xf32>
    %197 = tpu.matmul %196, %77, %cst_48 {dimension_numbers = #tpu.dot_dimension_numbers<[1], [0], [0], [1], [0, 0, 1, 1], [], []>} : vector<8x256xbf16>, vector<256x1024xbf16>, vector<8x1024xf32> -> vector<8x1024xf32>
    %198 = vector.extract_strided_slice %197 {offsets = [0, 0], sizes = [8, 512], strides = [1, 1]} : vector<8x1024xf32> to vector<8x512xf32>
    %c24 = arith.constant 24 : index
    %c0_49 = arith.constant 0 : index
    %199 = vector.load %arg9[%c24, %c0_49] : memref<64x512xf32, #tpu.memory_space<vmem>>, vector<8x512xf32>
    %200 = arith.addf %198, %199 : vector<8x512xf32>
    %201 = vector.extract_strided_slice %197 {offsets = [0, 512], sizes = [8, 512], strides = [1, 1]} : vector<8x1024xf32> to vector<8x512xf32>
    %c32 = arith.constant 32 : index
    %c0_50 = arith.constant 0 : index
    %202 = vector.load %arg10[%c32, %c0_50] : memref<64x512xf32, #tpu.memory_space<vmem>>, vector<8x512xf32>
    %203 = arith.addf %201, %202 : vector<8x512xf32>
    %204 = vector.extract_strided_slice %200 {offsets = [0, 0], sizes = [8, 128], strides = [1, 1]} : vector<8x512xf32> to vector<8x128xf32>
    %205 = arith.negf %204 : vector<8x128xf32>
    %206 = math.exp %205 : vector<8x128xf32>
    %cst_51 = arith.constant 1.000000e+00 : f32
    %207 = vector.broadcast %cst_51 : f32 to vector<8x128xf32>
    %208 = arith.addf %207, %206 : vector<8x128xf32>
    %209 = arith.divf %207, %208 : vector<8x128xf32>
    %210 = vector.extract_strided_slice %200 {offsets = [0, 128], sizes = [8, 128], strides = [1, 1]} : vector<8x512xf32> to vector<8x128xf32>
    %211 = arith.negf %210 : vector<8x128xf32>
    %212 = math.exp %211 : vector<8x128xf32>
    %cst_52 = arith.constant 1.000000e+00 : f32
    %213 = vector.broadcast %cst_52 : f32 to vector<8x128xf32>
    %214 = arith.addf %213, %212 : vector<8x128xf32>
    %215 = arith.divf %213, %214 : vector<8x128xf32>
    %216 = vector.extract_strided_slice %200 {offsets = [0, 256], sizes = [8, 128], strides = [1, 1]} : vector<8x512xf32> to vector<8x128xf32>
    %217 = math.tanh %216 : vector<8x128xf32>
    %218 = vector.extract_strided_slice %200 {offsets = [0, 384], sizes = [8, 128], strides = [1, 1]} : vector<8x512xf32> to vector<8x128xf32>
    %219 = arith.negf %218 : vector<8x128xf32>
    %220 = math.exp %219 : vector<8x128xf32>
    %cst_53 = arith.constant 1.000000e+00 : f32
    %221 = vector.broadcast %cst_53 : f32 to vector<8x128xf32>
    %222 = arith.addf %221, %220 : vector<8x128xf32>
    %223 = arith.divf %221, %222 : vector<8x128xf32>
    %224 = arith.mulf %215, %167 : vector<8x128xf32>
    %225 = arith.mulf %209, %217 : vector<8x128xf32>
    %226 = arith.addf %224, %225 : vector<8x128xf32>
    %227 = math.tanh %226 : vector<8x128xf32>
    %228 = arith.mulf %223, %227 : vector<8x128xf32>
    %229 = vector.extract_strided_slice %203 {offsets = [0, 0], sizes = [8, 128], strides = [1, 1]} : vector<8x512xf32> to vector<8x128xf32>
    %230 = arith.negf %229 : vector<8x128xf32>
    %231 = math.exp %230 : vector<8x128xf32>
    %cst_54 = arith.constant 1.000000e+00 : f32
    %232 = vector.broadcast %cst_54 : f32 to vector<8x128xf32>
    %233 = arith.addf %232, %231 : vector<8x128xf32>
    %234 = arith.divf %232, %233 : vector<8x128xf32>
    %235 = vector.extract_strided_slice %203 {offsets = [0, 128], sizes = [8, 128], strides = [1, 1]} : vector<8x512xf32> to vector<8x128xf32>
    %236 = arith.negf %235 : vector<8x128xf32>
    %237 = math.exp %236 : vector<8x128xf32>
    %cst_55 = arith.constant 1.000000e+00 : f32
    %238 = vector.broadcast %cst_55 : f32 to vector<8x128xf32>
    %239 = arith.addf %238, %237 : vector<8x128xf32>
    %240 = arith.divf %238, %239 : vector<8x128xf32>
    %241 = vector.extract_strided_slice %203 {offsets = [0, 256], sizes = [8, 128], strides = [1, 1]} : vector<8x512xf32> to vector<8x128xf32>
    %242 = math.tanh %241 : vector<8x128xf32>
    %243 = vector.extract_strided_slice %203 {offsets = [0, 384], sizes = [8, 128], strides = [1, 1]} : vector<8x512xf32> to vector<8x128xf32>
    %244 = arith.negf %243 : vector<8x128xf32>
    %245 = math.exp %244 : vector<8x128xf32>
    %cst_56 = arith.constant 1.000000e+00 : f32
    %246 = vector.broadcast %cst_56 : f32 to vector<8x128xf32>
    %247 = arith.addf %246, %245 : vector<8x128xf32>
    %248 = arith.divf %246, %247 : vector<8x128xf32>
    %249 = arith.mulf %240, %192 : vector<8x128xf32>
    %250 = arith.mulf %234, %242 : vector<8x128xf32>
    %251 = arith.addf %249, %250 : vector<8x128xf32>
    %252 = math.tanh %251 : vector<8x128xf32>
    %253 = arith.mulf %248, %252 : vector<8x128xf32>
    %254 = tpu.concatenate %228, %253 in 1 : vector<8x128xf32>, vector<8x128xf32> -> vector<8x256xf32>
    %255 = arith.truncf %254 : vector<8x256xf32> to vector<8x256xbf16>
    %cst_57 = arith.constant dense<0.000000e+00> : vector<8x1024xf32>
    %256 = tpu.matmul %255, %77, %cst_57 {dimension_numbers = #tpu.dot_dimension_numbers<[1], [0], [0], [1], [0, 0, 1, 1], [], []>} : vector<8x256xbf16>, vector<256x1024xbf16>, vector<8x1024xf32> -> vector<8x1024xf32>
    %257 = vector.extract_strided_slice %256 {offsets = [0, 0], sizes = [8, 512], strides = [1, 1]} : vector<8x1024xf32> to vector<8x512xf32>
    %c32_58 = arith.constant 32 : index
    %c0_59 = arith.constant 0 : index
    %258 = vector.load %arg9[%c32_58, %c0_59] : memref<64x512xf32, #tpu.memory_space<vmem>>, vector<8x512xf32>
    %259 = arith.addf %257, %258 : vector<8x512xf32>
    %260 = vector.extract_strided_slice %256 {offsets = [0, 512], sizes = [8, 512], strides = [1, 1]} : vector<8x1024xf32> to vector<8x512xf32>
    %c24_60 = arith.constant 24 : index
    %c0_61 = arith.constant 0 : index
    %261 = vector.load %arg10[%c24_60, %c0_61] : memref<64x512xf32, #tpu.memory_space<vmem>>, vector<8x512xf32>
    %262 = arith.addf %260, %261 : vector<8x512xf32>
    %263 = vector.extract_strided_slice %259 {offsets = [0, 0], sizes = [8, 128], strides = [1, 1]} : vector<8x512xf32> to vector<8x128xf32>
    %264 = arith.negf %263 : vector<8x128xf32>
    %265 = math.exp %264 : vector<8x128xf32>
    %cst_62 = arith.constant 1.000000e+00 : f32
    %266 = vector.broadcast %cst_62 : f32 to vector<8x128xf32>
    %267 = arith.addf %266, %265 : vector<8x128xf32>
    %268 = arith.divf %266, %267 : vector<8x128xf32>
    %269 = vector.extract_strided_slice %259 {offsets = [0, 128], sizes = [8, 128], strides = [1, 1]} : vector<8x512xf32> to vector<8x128xf32>
    %270 = arith.negf %269 : vector<8x128xf32>
    %271 = math.exp %270 : vector<8x128xf32>
    %cst_63 = arith.constant 1.000000e+00 : f32
    %272 = vector.broadcast %cst_63 : f32 to vector<8x128xf32>
    %273 = arith.addf %272, %271 : vector<8x128xf32>
    %274 = arith.divf %272, %273 : vector<8x128xf32>
    %275 = vector.extract_strided_slice %259 {offsets = [0, 256], sizes = [8, 128], strides = [1, 1]} : vector<8x512xf32> to vector<8x128xf32>
    %276 = math.tanh %275 : vector<8x128xf32>
    %277 = vector.extract_strided_slice %259 {offsets = [0, 384], sizes = [8, 128], strides = [1, 1]} : vector<8x512xf32> to vector<8x128xf32>
    %278 = arith.negf %277 : vector<8x128xf32>
    %279 = math.exp %278 : vector<8x128xf32>
    %cst_64 = arith.constant 1.000000e+00 : f32
    %280 = vector.broadcast %cst_64 : f32 to vector<8x128xf32>
    %281 = arith.addf %280, %279 : vector<8x128xf32>
    %282 = arith.divf %280, %281 : vector<8x128xf32>
    %283 = arith.mulf %274, %226 : vector<8x128xf32>
    %284 = arith.mulf %268, %276 : vector<8x128xf32>
    %285 = arith.addf %283, %284 : vector<8x128xf32>
    %286 = math.tanh %285 : vector<8x128xf32>
    %287 = arith.mulf %282, %286 : vector<8x128xf32>
    %288 = vector.extract_strided_slice %262 {offsets = [0, 0], sizes = [8, 128], strides = [1, 1]} : vector<8x512xf32> to vector<8x128xf32>
    %289 = arith.negf %288 : vector<8x128xf32>
    %290 = math.exp %289 : vector<8x128xf32>
    %cst_65 = arith.constant 1.000000e+00 : f32
    %291 = vector.broadcast %cst_65 : f32 to vector<8x128xf32>
    %292 = arith.addf %291, %290 : vector<8x128xf32>
    %293 = arith.divf %291, %292 : vector<8x128xf32>
    %294 = vector.extract_strided_slice %262 {offsets = [0, 128], sizes = [8, 128], strides = [1, 1]} : vector<8x512xf32> to vector<8x128xf32>
    %295 = arith.negf %294 : vector<8x128xf32>
    %296 = math.exp %295 : vector<8x128xf32>
    %cst_66 = arith.constant 1.000000e+00 : f32
    %297 = vector.broadcast %cst_66 : f32 to vector<8x128xf32>
    %298 = arith.addf %297, %296 : vector<8x128xf32>
    %299 = arith.divf %297, %298 : vector<8x128xf32>
    %300 = vector.extract_strided_slice %262 {offsets = [0, 256], sizes = [8, 128], strides = [1, 1]} : vector<8x512xf32> to vector<8x128xf32>
    %301 = math.tanh %300 : vector<8x128xf32>
    %302 = vector.extract_strided_slice %262 {offsets = [0, 384], sizes = [8, 128], strides = [1, 1]} : vector<8x512xf32> to vector<8x128xf32>
    %303 = arith.negf %302 : vector<8x128xf32>
    %304 = math.exp %303 : vector<8x128xf32>
    %cst_67 = arith.constant 1.000000e+00 : f32
    %305 = vector.broadcast %cst_67 : f32 to vector<8x128xf32>
    %306 = arith.addf %305, %304 : vector<8x128xf32>
    %307 = arith.divf %305, %306 : vector<8x128xf32>
    %308 = arith.mulf %299, %251 : vector<8x128xf32>
    %309 = arith.mulf %293, %301 : vector<8x128xf32>
    %310 = arith.addf %308, %309 : vector<8x128xf32>
    %311 = math.tanh %310 : vector<8x128xf32>
    %312 = arith.mulf %307, %311 : vector<8x128xf32>
    %313 = tpu.concatenate %287, %312 in 1 : vector<8x128xf32>, vector<8x128xf32> -> vector<8x256xf32>
    %314 = arith.truncf %313 : vector<8x256xf32> to vector<8x256xbf16>
    %cst_68 = arith.constant dense<0.000000e+00> : vector<8x1024xf32>
    %315 = tpu.matmul %314, %77, %cst_68 {dimension_numbers = #tpu.dot_dimension_numbers<[1], [0], [0], [1], [0, 0, 1, 1], [], []>} : vector<8x256xbf16>, vector<256x1024xbf16>, vector<8x1024xf32> -> vector<8x1024xf32>
    %316 = vector.extract_strided_slice %315 {offsets = [0, 0], sizes = [8, 512], strides = [1, 1]} : vector<8x1024xf32> to vector<8x512xf32>
    %c40_69 = arith.constant 40 : index
    %c0_70 = arith.constant 0 : index
    %317 = vector.load %arg9[%c40_69, %c0_70] : memref<64x512xf32, #tpu.memory_space<vmem>>, vector<8x512xf32>
    %318 = arith.addf %316, %317 : vector<8x512xf32>
    %319 = vector.extract_strided_slice %315 {offsets = [0, 512], sizes = [8, 512], strides = [1, 1]} : vector<8x1024xf32> to vector<8x512xf32>
    %c16_71 = arith.constant 16 : index
    %c0_72 = arith.constant 0 : index
    %320 = vector.load %arg10[%c16_71, %c0_72] : memref<64x512xf32, #tpu.memory_space<vmem>>, vector<8x512xf32>
    %321 = arith.addf %319, %320 : vector<8x512xf32>
    %322 = vector.extract_strided_slice %318 {offsets = [0, 0], sizes = [8, 128], strides = [1, 1]} : vector<8x512xf32> to vector<8x128xf32>
    %323 = arith.negf %322 : vector<8x128xf32>
    %324 = math.exp %323 : vector<8x128xf32>
    %cst_73 = arith.constant 1.000000e+00 : f32
    %325 = vector.broadcast %cst_73 : f32 to vector<8x128xf32>
    %326 = arith.addf %325, %324 : vector<8x128xf32>
    %327 = arith.divf %325, %326 : vector<8x128xf32>
    %328 = vector.extract_strided_slice %318 {offsets = [0, 128], sizes = [8, 128], strides = [1, 1]} : vector<8x512xf32> to vector<8x128xf32>
    %329 = arith.negf %328 : vector<8x128xf32>
    %330 = math.exp %329 : vector<8x128xf32>
    %cst_74 = arith.constant 1.000000e+00 : f32
    %331 = vector.broadcast %cst_74 : f32 to vector<8x128xf32>
    %332 = arith.addf %331, %330 : vector<8x128xf32>
    %333 = arith.divf %331, %332 : vector<8x128xf32>
    %334 = vector.extract_strided_slice %318 {offsets = [0, 256], sizes = [8, 128], strides = [1, 1]} : vector<8x512xf32> to vector<8x128xf32>
    %335 = math.tanh %334 : vector<8x128xf32>
    %336 = vector.extract_strided_slice %318 {offsets = [0, 384], sizes = [8, 128], strides = [1, 1]} : vector<8x512xf32> to vector<8x128xf32>
    %337 = arith.negf %336 : vector<8x128xf32>
    %338 = math.exp %337 : vector<8x128xf32>
    %cst_75 = arith.constant 1.000000e+00 : f32
    %339 = vector.broadcast %cst_75 : f32 to vector<8x128xf32>
    %340 = arith.addf %339, %338 : vector<8x128xf32>
    %341 = arith.divf %339, %340 : vector<8x128xf32>
    %342 = arith.mulf %333, %285 : vector<8x128xf32>
    %343 = arith.mulf %327, %335 : vector<8x128xf32>
    %344 = arith.addf %342, %343 : vector<8x128xf32>
    %345 = math.tanh %344 : vector<8x128xf32>
    %346 = arith.mulf %341, %345 : vector<8x128xf32>
    %347 = vector.extract_strided_slice %321 {offsets = [0, 0], sizes = [8, 128], strides = [1, 1]} : vector<8x512xf32> to vector<8x128xf32>
    %348 = arith.negf %347 : vector<8x128xf32>
    %349 = math.exp %348 : vector<8x128xf32>
    %cst_76 = arith.constant 1.000000e+00 : f32
    %350 = vector.broadcast %cst_76 : f32 to vector<8x128xf32>
    %351 = arith.addf %350, %349 : vector<8x128xf32>
    %352 = arith.divf %350, %351 : vector<8x128xf32>
    %353 = vector.extract_strided_slice %321 {offsets = [0, 128], sizes = [8, 128], strides = [1, 1]} : vector<8x512xf32> to vector<8x128xf32>
    %354 = arith.negf %353 : vector<8x128xf32>
    %355 = math.exp %354 : vector<8x128xf32>
    %cst_77 = arith.constant 1.000000e+00 : f32
    %356 = vector.broadcast %cst_77 : f32 to vector<8x128xf32>
    %357 = arith.addf %356, %355 : vector<8x128xf32>
    %358 = arith.divf %356, %357 : vector<8x128xf32>
    %359 = vector.extract_strided_slice %321 {offsets = [0, 256], sizes = [8, 128], strides = [1, 1]} : vector<8x512xf32> to vector<8x128xf32>
    %360 = math.tanh %359 : vector<8x128xf32>
    %361 = vector.extract_strided_slice %321 {offsets = [0, 384], sizes = [8, 128], strides = [1, 1]} : vector<8x512xf32> to vector<8x128xf32>
    %362 = arith.negf %361 : vector<8x128xf32>
    %363 = math.exp %362 : vector<8x128xf32>
    %cst_78 = arith.constant 1.000000e+00 : f32
    %364 = vector.broadcast %cst_78 : f32 to vector<8x128xf32>
    %365 = arith.addf %364, %363 : vector<8x128xf32>
    %366 = arith.divf %364, %365 : vector<8x128xf32>
    %367 = arith.mulf %358, %310 : vector<8x128xf32>
    %368 = arith.mulf %352, %360 : vector<8x128xf32>
    %369 = arith.addf %367, %368 : vector<8x128xf32>
    %370 = math.tanh %369 : vector<8x128xf32>
    %371 = arith.mulf %366, %370 : vector<8x128xf32>
    %372 = tpu.concatenate %346, %371 in 1 : vector<8x128xf32>, vector<8x128xf32> -> vector<8x256xf32>
    %373 = arith.truncf %372 : vector<8x256xf32> to vector<8x256xbf16>
    %cst_79 = arith.constant dense<0.000000e+00> : vector<8x1024xf32>
    %374 = tpu.matmul %373, %77, %cst_79 {dimension_numbers = #tpu.dot_dimension_numbers<[1], [0], [0], [1], [0, 0, 1, 1], [], []>} : vector<8x256xbf16>, vector<256x1024xbf16>, vector<8x1024xf32> -> vector<8x1024xf32>
    %375 = vector.extract_strided_slice %374 {offsets = [0, 0], sizes = [8, 512], strides = [1, 1]} : vector<8x1024xf32> to vector<8x512xf32>
    %c48_80 = arith.constant 48 : index
    %c0_81 = arith.constant 0 : index
    %376 = vector.load %arg9[%c48_80, %c0_81] : memref<64x512xf32, #tpu.memory_space<vmem>>, vector<8x512xf32>
    %377 = arith.addf %375, %376 : vector<8x512xf32>
    %378 = vector.extract_strided_slice %374 {offsets = [0, 512], sizes = [8, 512], strides = [1, 1]} : vector<8x1024xf32> to vector<8x512xf32>
    %c8_82 = arith.constant 8 : index
    %c0_83 = arith.constant 0 : index
    %379 = vector.load %arg10[%c8_82, %c0_83] : memref<64x512xf32, #tpu.memory_space<vmem>>, vector<8x512xf32>
    %380 = arith.addf %378, %379 : vector<8x512xf32>
    %381 = vector.extract_strided_slice %377 {offsets = [0, 0], sizes = [8, 128], strides = [1, 1]} : vector<8x512xf32> to vector<8x128xf32>
    %382 = arith.negf %381 : vector<8x128xf32>
    %383 = math.exp %382 : vector<8x128xf32>
    %cst_84 = arith.constant 1.000000e+00 : f32
    %384 = vector.broadcast %cst_84 : f32 to vector<8x128xf32>
    %385 = arith.addf %384, %383 : vector<8x128xf32>
    %386 = arith.divf %384, %385 : vector<8x128xf32>
    %387 = vector.extract_strided_slice %377 {offsets = [0, 128], sizes = [8, 128], strides = [1, 1]} : vector<8x512xf32> to vector<8x128xf32>
    %388 = arith.negf %387 : vector<8x128xf32>
    %389 = math.exp %388 : vector<8x128xf32>
    %cst_85 = arith.constant 1.000000e+00 : f32
    %390 = vector.broadcast %cst_85 : f32 to vector<8x128xf32>
    %391 = arith.addf %390, %389 : vector<8x128xf32>
    %392 = arith.divf %390, %391 : vector<8x128xf32>
    %393 = vector.extract_strided_slice %377 {offsets = [0, 256], sizes = [8, 128], strides = [1, 1]} : vector<8x512xf32> to vector<8x128xf32>
    %394 = math.tanh %393 : vector<8x128xf32>
    %395 = vector.extract_strided_slice %377 {offsets = [0, 384], sizes = [8, 128], strides = [1, 1]} : vector<8x512xf32> to vector<8x128xf32>
    %396 = arith.negf %395 : vector<8x128xf32>
    %397 = math.exp %396 : vector<8x128xf32>
    %cst_86 = arith.constant 1.000000e+00 : f32
    %398 = vector.broadcast %cst_86 : f32 to vector<8x128xf32>
    %399 = arith.addf %398, %397 : vector<8x128xf32>
    %400 = arith.divf %398, %399 : vector<8x128xf32>
    %401 = arith.mulf %392, %344 : vector<8x128xf32>
    %402 = arith.mulf %386, %394 : vector<8x128xf32>
    %403 = arith.addf %401, %402 : vector<8x128xf32>
    %404 = math.tanh %403 : vector<8x128xf32>
    %405 = arith.mulf %400, %404 : vector<8x128xf32>
    %406 = vector.extract_strided_slice %380 {offsets = [0, 0], sizes = [8, 128], strides = [1, 1]} : vector<8x512xf32> to vector<8x128xf32>
    %407 = arith.negf %406 : vector<8x128xf32>
    %408 = math.exp %407 : vector<8x128xf32>
    %cst_87 = arith.constant 1.000000e+00 : f32
    %409 = vector.broadcast %cst_87 : f32 to vector<8x128xf32>
    %410 = arith.addf %409, %408 : vector<8x128xf32>
    %411 = arith.divf %409, %410 : vector<8x128xf32>
    %412 = vector.extract_strided_slice %380 {offsets = [0, 128], sizes = [8, 128], strides = [1, 1]} : vector<8x512xf32> to vector<8x128xf32>
    %413 = arith.negf %412 : vector<8x128xf32>
    %414 = math.exp %413 : vector<8x128xf32>
    %cst_88 = arith.constant 1.000000e+00 : f32
    %415 = vector.broadcast %cst_88 : f32 to vector<8x128xf32>
    %416 = arith.addf %415, %414 : vector<8x128xf32>
    %417 = arith.divf %415, %416 : vector<8x128xf32>
    %418 = vector.extract_strided_slice %380 {offsets = [0, 256], sizes = [8, 128], strides = [1, 1]} : vector<8x512xf32> to vector<8x128xf32>
    %419 = math.tanh %418 : vector<8x128xf32>
    %420 = vector.extract_strided_slice %380 {offsets = [0, 384], sizes = [8, 128], strides = [1, 1]} : vector<8x512xf32> to vector<8x128xf32>
    %421 = arith.negf %420 : vector<8x128xf32>
    %422 = math.exp %421 : vector<8x128xf32>
    %cst_89 = arith.constant 1.000000e+00 : f32
    %423 = vector.broadcast %cst_89 : f32 to vector<8x128xf32>
    %424 = arith.addf %423, %422 : vector<8x128xf32>
    %425 = arith.divf %423, %424 : vector<8x128xf32>
    %426 = arith.mulf %417, %369 : vector<8x128xf32>
    %427 = arith.mulf %411, %419 : vector<8x128xf32>
    %428 = arith.addf %426, %427 : vector<8x128xf32>
    %429 = math.tanh %428 : vector<8x128xf32>
    %430 = arith.mulf %425, %429 : vector<8x128xf32>
    %431 = tpu.concatenate %405, %430 in 1 : vector<8x128xf32>, vector<8x128xf32> -> vector<8x256xf32>
    %432 = arith.truncf %431 : vector<8x256xf32> to vector<8x256xbf16>
    %cst_90 = arith.constant dense<0.000000e+00> : vector<8x1024xf32>
    %433 = tpu.matmul %432, %77, %cst_90 {dimension_numbers = #tpu.dot_dimension_numbers<[1], [0], [0], [1], [0, 0, 1, 1], [], []>} : vector<8x256xbf16>, vector<256x1024xbf16>, vector<8x1024xf32> -> vector<8x1024xf32>
    %434 = vector.extract_strided_slice %433 {offsets = [0, 0], sizes = [8, 512], strides = [1, 1]} : vector<8x1024xf32> to vector<8x512xf32>
    %c56_91 = arith.constant 56 : index
    %c0_92 = arith.constant 0 : index
    %435 = vector.load %arg9[%c56_91, %c0_92] : memref<64x512xf32, #tpu.memory_space<vmem>>, vector<8x512xf32>
    %436 = arith.addf %434, %435 : vector<8x512xf32>
    %437 = vector.extract_strided_slice %433 {offsets = [0, 512], sizes = [8, 512], strides = [1, 1]} : vector<8x1024xf32> to vector<8x512xf32>
    %c0_93 = arith.constant 0 : index
    %c0_94 = arith.constant 0 : index
    %438 = vector.load %arg10[%c0_93, %c0_94] : memref<64x512xf32, #tpu.memory_space<vmem>>, vector<8x512xf32>
    %439 = arith.addf %437, %438 : vector<8x512xf32>
    %440 = vector.extract_strided_slice %436 {offsets = [0, 0], sizes = [8, 128], strides = [1, 1]} : vector<8x512xf32> to vector<8x128xf32>
    %441 = arith.negf %440 : vector<8x128xf32>
    %442 = math.exp %441 : vector<8x128xf32>
    %cst_95 = arith.constant 1.000000e+00 : f32
    %443 = vector.broadcast %cst_95 : f32 to vector<8x128xf32>
    %444 = arith.addf %443, %442 : vector<8x128xf32>
    %445 = arith.divf %443, %444 : vector<8x128xf32>
    %446 = vector.extract_strided_slice %436 {offsets = [0, 128], sizes = [8, 128], strides = [1, 1]} : vector<8x512xf32> to vector<8x128xf32>
    %447 = arith.negf %446 : vector<8x128xf32>
    %448 = math.exp %447 : vector<8x128xf32>
    %cst_96 = arith.constant 1.000000e+00 : f32
    %449 = vector.broadcast %cst_96 : f32 to vector<8x128xf32>
    %450 = arith.addf %449, %448 : vector<8x128xf32>
    %451 = arith.divf %449, %450 : vector<8x128xf32>
    %452 = vector.extract_strided_slice %436 {offsets = [0, 256], sizes = [8, 128], strides = [1, 1]} : vector<8x512xf32> to vector<8x128xf32>
    %453 = math.tanh %452 : vector<8x128xf32>
    %454 = vector.extract_strided_slice %436 {offsets = [0, 384], sizes = [8, 128], strides = [1, 1]} : vector<8x512xf32> to vector<8x128xf32>
    %455 = arith.negf %454 : vector<8x128xf32>
    %456 = math.exp %455 : vector<8x128xf32>
    %cst_97 = arith.constant 1.000000e+00 : f32
    %457 = vector.broadcast %cst_97 : f32 to vector<8x128xf32>
    %458 = arith.addf %457, %456 : vector<8x128xf32>
    %459 = arith.divf %457, %458 : vector<8x128xf32>
    %460 = arith.mulf %451, %403 : vector<8x128xf32>
    %461 = arith.mulf %445, %453 : vector<8x128xf32>
    %462 = arith.addf %460, %461 : vector<8x128xf32>
    %463 = math.tanh %462 : vector<8x128xf32>
    %464 = arith.mulf %459, %463 : vector<8x128xf32>
    %465 = vector.extract_strided_slice %439 {offsets = [0, 0], sizes = [8, 128], strides = [1, 1]} : vector<8x512xf32> to vector<8x128xf32>
    %466 = arith.negf %465 : vector<8x128xf32>
    %467 = math.exp %466 : vector<8x128xf32>
    %cst_98 = arith.constant 1.000000e+00 : f32
    %468 = vector.broadcast %cst_98 : f32 to vector<8x128xf32>
    %469 = arith.addf %468, %467 : vector<8x128xf32>
    %470 = arith.divf %468, %469 : vector<8x128xf32>
    %471 = vector.extract_strided_slice %439 {offsets = [0, 128], sizes = [8, 128], strides = [1, 1]} : vector<8x512xf32> to vector<8x128xf32>
    %472 = arith.negf %471 : vector<8x128xf32>
    %473 = math.exp %472 : vector<8x128xf32>
    %cst_99 = arith.constant 1.000000e+00 : f32
    %474 = vector.broadcast %cst_99 : f32 to vector<8x128xf32>
    %475 = arith.addf %474, %473 : vector<8x128xf32>
    %476 = arith.divf %474, %475 : vector<8x128xf32>
    %477 = vector.extract_strided_slice %439 {offsets = [0, 256], sizes = [8, 128], strides = [1, 1]} : vector<8x512xf32> to vector<8x128xf32>
    %478 = math.tanh %477 : vector<8x128xf32>
    %479 = vector.extract_strided_slice %439 {offsets = [0, 384], sizes = [8, 128], strides = [1, 1]} : vector<8x512xf32> to vector<8x128xf32>
    %480 = arith.negf %479 : vector<8x128xf32>
    %481 = math.exp %480 : vector<8x128xf32>
    %cst_100 = arith.constant 1.000000e+00 : f32
    %482 = vector.broadcast %cst_100 : f32 to vector<8x128xf32>
    %483 = arith.addf %482, %481 : vector<8x128xf32>
    %484 = arith.divf %482, %483 : vector<8x128xf32>
    %485 = arith.mulf %476, %428 : vector<8x128xf32>
    %486 = arith.mulf %470, %478 : vector<8x128xf32>
    %487 = arith.addf %485, %486 : vector<8x128xf32>
    %488 = math.tanh %487 : vector<8x128xf32>
    %489 = arith.mulf %484, %488 : vector<8x128xf32>
    %490 = tpu.concatenate %464, %489 in 1 : vector<8x128xf32>, vector<8x128xf32> -> vector<8x256xf32>
    %c1_i32_101 = arith.constant 1 : i32
    %491 = tpu.memref_slice %arg13[%c1_i32_101] : memref<2x!tpu.dma_semaphore, #tpu.memory_space<semaphore_mem>> -> memref<1x!tpu.dma_semaphore, #tpu.memory_space<semaphore_mem>>
    %492 = tpu.memref_squeeze %491 : memref<1x!tpu.dma_semaphore, #tpu.memory_space<semaphore_mem>> -> memref<!tpu.dma_semaphore, #tpu.memory_space<semaphore_mem>>
    tpu.wait_dma2 semaphore(%492 : memref<!tpu.dma_semaphore, #tpu.memory_space<semaphore_mem>>) src(%arg5 : memref<256x256xf32, #tpu.memory_space<any>>) dst(%arg12 : memref<256x256xf32, #tpu.memory_space<vmem>>)
    %c0_102 = arith.constant 0 : index
    %c0_103 = arith.constant 0 : index
    %493 = vector.load %arg12[%c0_102, %c0_103] : memref<256x256xf32, #tpu.memory_space<vmem>>, vector<256x256xf32>
    %cst_104 = arith.constant dense<0.000000e+00> : vector<8x256xf32>
    %494 = tpu.matmul %490, %493, %cst_104 {dimension_numbers = #tpu.dot_dimension_numbers<[1], [0], [0], [1], [0, 0, 1, 1], [], []>} : vector<8x256xf32>, vector<256x256xf32>, vector<8x256xf32> -> vector<8x256xf32>
    %c0_105 = arith.constant 0 : index
    %c0_106 = arith.constant 0 : index
    %495 = vector.load %arg6[%c0_105, %c0_106] : memref<1x256xf32, #tpu.memory_space<vmem>>, vector<1x256xf32>
    %496 = vector.broadcast %495 : vector<1x256xf32> to vector<8x256xf32>
    %497 = arith.addf %494, %496 : vector<8x256xf32>
    %498 = vector.extract_strided_slice %497 {offsets = [0, 0], sizes = [8, 128], strides = [1, 1]} : vector<8x256xf32> to vector<8x128xf32>
    %499 = vector.extract_strided_slice %497 {offsets = [0, 128], sizes = [8, 128], strides = [1, 1]} : vector<8x256xf32> to vector<8x128xf32>
    %cst_107 = arith.constant 5.000000e-01 : f32
    %500 = vector.broadcast %cst_107 : f32 to vector<8x128xf32>
    %501 = arith.mulf %499, %500 : vector<8x128xf32>
    %502 = math.exp %501 : vector<8x128xf32>
    %c0_108 = arith.constant 0 : index
    %c0_109 = arith.constant 0 : index
    %503 = vector.load %arg7[%c0_108, %c0_109] : memref<8x128xf32, #tpu.memory_space<vmem>>, vector<8x128xf32>
    %504 = arith.mulf %502, %503 : vector<8x128xf32>
    %505 = arith.addf %498, %504 : vector<8x128xf32>
    %c0_110 = arith.constant 0 : index
    %c0_111 = arith.constant 0 : index
    %506 = vector.load %arg8[%c0_110, %c0_111] : memref<8x384xf32, #tpu.memory_space<vmem>>, vector<8x256xf32>
    tpu.vector_store %arg8[%c0_110, %c0_111], %497 {strides = array<i32>} : memref<8x384xf32, #tpu.memory_space<vmem>>, vector<8x256xf32>,
    %c0_112 = arith.constant 0 : index
    %c256 = arith.constant 256 : index
    %507 = vector.load %arg8[%c0_112, %c256] : memref<8x384xf32, #tpu.memory_space<vmem>>, vector<8x128xf32>
    tpu.vector_store %arg8[%c0_112, %c256], %505 {strides = array<i32>} : memref<8x384xf32, #tpu.memory_space<vmem>>, vector<8x128xf32>,
    return
  }
  func.func @transform_0(%arg0: i32) -> (i32, i32) {
    %c0_i32 = arith.constant 0 : i32
    %c0_i32_0 = arith.constant 0 : i32
    %c0_i32_1 = arith.constant 0 : i32
    return %c0_i32, %c0_i32_0 : i32, i32
  }
  func.func @transform_1(%arg0: i32) -> (i32, i32, i32) {
    %c0_i32 = arith.constant 0 : i32
    %c0_i32_0 = arith.constant 0 : i32
    %c0_i32_1 = arith.constant 0 : i32
    %c0_i32_2 = arith.constant 0 : i32
    return %c0_i32, %c0_i32_0, %c0_i32_1 : i32, i32, i32
  }
  func.func @transform_2(%arg0: i32) -> (i32, i32, i32) {
    %c0_i32 = arith.constant 0 : i32
    %c0_i32_0 = arith.constant 0 : i32
    %c0_i32_1 = arith.constant 0 : i32
    %c0_i32_2 = arith.constant 0 : i32
    return %c0_i32, %c0_i32_0, %c0_i32_1 : i32, i32, i32
  }
  func.func @transform_5(%arg0: i32) -> (i32, i32) {
    %c0_i32 = arith.constant 0 : i32
    %c0_i32_0 = arith.constant 0 : i32
    %c0_i32_1 = arith.constant 0 : i32
    return %c0_i32, %c0_i32_0 : i32, i32
  }
  func.func @transform_6(%arg0: i32) -> (i32, i32) {
    %c0_i32 = arith.constant 0 : i32
    %c0_i32_0 = arith.constant 0 : i32
    %c0_i32_1 = arith.constant 0 : i32
    return %c0_i32, %c0_i32_0 : i32, i32
  }
  func.func @transform_7(%arg0: i32) -> (i32, i32) {
    %c0_i32 = arith.constant 0 : i32
    %c0_i32_0 = arith.constant 0 : i32
    %c0_i32_1 = arith.constant 0 : i32
    return %c0_i32, %c0_i32_0 : i32, i32
  }
}

</mosaic_0001>

<bundles_post_ra>
// kernel: tpu_custom_call.1
= control target key start
LH: loop header
LB: loop body
LE: loop exit
PB: predicated region body
PF: predicated region fallthrough
CT: control target
= control target key end

     0   :  { %vm97_vm0 = vcmask 1044480   ;;  %vm72_vm1 = vcmask 39936   ;;  %s7165_s0 = inlined_call_operand.vmem [shape: f32[64,5], index: 0, kind: input, shape index: {}]   ;;  %s7166_s1 = inlined_call_operand.vmem [shape: f32[2,5,512], index: 1, kind: input, shape index: {}]   ;;  %s7167_s2 = inlined_call_operand.vmem [shape: f32[2,1,512], index: 2, kind: input, shape index: {}]   ;;  %s7168_s3 = inlined_call_operand.hbm [shape: bf16[256,1024], index: 3, kind: input, shape index: {}]   ;;  %s7169_s4 = inlined_call_operand.hbm [shape: f32[256,256], index: 4, kind: input, shape index: {}]   ;;  %s7170_s5 = inlined_call_operand.vmem [shape: f32[1,256], index: 5, kind: input, shape index: {}]   ;;  %s7171_s6 = inlined_call_operand.vmem [shape: f32[8,128], index: 6, kind: input, shape index: {}]   ;;  %s7172_s7 = inlined_call_operand.hbm [shape: f32[8,384], index: 7, kind: output, shape index: {}]  }
   0x1   :  { %v58_v0 = vld [vmem:[%s7166_s1] sm:$0x1f]  ;;  %v59_v1 = vld [vmem:[%s7166_s1 + $0x8] sm:$0x1f]  ;;  %v61_v3 = vld [vmem:[%s7166_s1 + $0x18] sm:$0x1f] }
   0x2   :  { %v50_v2 = vld [vmem:[%s7165_s0] sm:$0xff]  ;;  %4092 = vmatpush.msk.msra.mxu0 %vm97_vm0, %v58_v0  ;;  %4101 = vmatpush.msk.msra.mxu1 %vm97_vm0, %v59_v1  ;;  %v4129_v5 = vld [vmem:[%s7166_s1 + $0x28] sm:$0x1f]  ;;  %v4131_v6 = vld [vmem:[%s7166_s1 + $0x38] sm:$0x1f] }
   0x3   :  { %v4128_v4 = vld [vmem:[%s7166_s1 + $0x20] sm:$0x1f]  ;;  %4119 = vmatpush.msk.msra.mxu3 %vm97_vm0, %v61_v3  ;;  %4093 = vmatmul.msk.f32.vlgmr.msra.gmra.mxu0 %vm72_vm1, %v50_v2  ;;  %v60_v7 = vld [vmem:[%s7166_s1 + $0x10] sm:$0x1f] }
   0x4   :  { %4102 = vmatmul.msk.f32.vlgmr.msra.gmra.mxu1 %vm72_vm1, %v50_v2  ;;  %4120 = vmatmul.msk.f32.vlgmr.msra.gmra.mxu3 %vm72_vm1, %v50_v2  ;;  %v4130_v8 = vld [vmem:[%s7166_s1 + $0x30] sm:$0x1f] }
   0x5   :  { %4133 = vmatpush.msk.msrb.mxu0 %vm97_vm0, %v4128_v4  ;;  %4142 = vmatpush.msk.msrb.mxu1 %vm97_vm0, %v4129_v5 }
   0x6   :  { %12 = vsyncpa [#allocation8], 0  ;;  %4160 = vmatpush.msk.msrb.mxu3 %vm97_vm0, %v4131_v6  ;;  %4110 = vmatpush.msk.msra.mxu2 %vm97_vm0, %v60_v7  ;;  %v51_v9 = vld [vmem:[%s7165_s0 + $0x8] sm:$0xff]  ;;  %v52_v10 = vld [vmem:[%s7165_s0 + $0x10] sm:$0xff]  ;;  %s30_s12 = sshll.u32 %s7168_s3, 4  ;;  %s5198_s13 = smov [#allocation4]   ;;  %s31_s12 = int_to_ptr.hbm [resolvable:$true] %s30_s12 }
   0x7   :  { %4111 = vmatmul.msk.f32.vlgmr.msra.gmra.mxu2 %vm72_vm1, %v50_v2  ;;  %v53_v11 = vld [vmem:[%s7165_s0 + $0x18] sm:$0xff]  ;;  %v54_v12 = vld [vmem:[%s7165_s0 + $0x20] sm:$0xff]  ;;  %v55_v13 = vld [vmem:[%s7165_s0 + $0x28] sm:$0xff]  ;;  %s32_s14 = sshll.u32 %s5198_s13, 4  ;;  %s44_s16 = sshll.u32 %s7169_s4, 4  ;;  %s33_s14 = int_to_ptr.vmem [resolvable:$true] %s32_s14  ;;  %s45_s16 = int_to_ptr.hbm [resolvable:$true] %s44_s16 }
   0x8   :  { %4151 = vmatpush.msk.msrb.mxu2 %vm97_vm0, %v4130_v8  ;;  %v56_v14 = vld [vmem:[%s7165_s0 + $0x30] sm:$0xff]  ;;  %v57_v15 = vld [vmem:[%s7165_s0 + $0x38] sm:$0xff]  ;;  %v62_v16 = vld [vmem:[%s7167_s2] sm:$0xf]  ;;  %35 = dma.hbm_to_vmem [thread:$0]  %s31_s12, 16384, %s33_s14, [#allocation6] }
   0x9   :  { %v5363_v17 = vperm.slane %v62_v16, 0  ;;  %v5365_v18 = vperm.slane %v62_v16, 1  ;;  %v5370_v25 = vperm.slane %v62_v16, 3  ;;  %v5379_v38 = vperm.slane %v62_v16, 2  ;;  %s5199_s17 = smov [#allocation5]  }
   0xa   :  { %s46_s18 = sshll.u32 %s5199_s17, 4  ;;  %s47_s18 = int_to_ptr.vmem [resolvable:$true] %s46_s18 }
   0xb   :  { %4094 = vmatmul.msk.f32.gmra.mxu0 %vm72_vm1, %v51_v9  ;;  %49 = dma.hbm_to_vmem [thread:$0]  %s45_s16, 8192, %s47_s18, [#allocation6 + $0x1] }
   0xc   :  { %4103 = vmatmul.msk.f32.gmra.mxu1 %vm72_vm1, %v51_v9  ;;  %4121 = vmatmul.msk.f32.gmra.mxu3 %vm72_vm1, %v51_v9 }
   0xf   :  { %4112 = vmatmul.msk.f32.gmra.mxu2 %vm72_vm1, %v51_v9 }
  0x13   :  { %4095 = vmatmul.msk.f32.gmra.mxu0 %vm72_vm1, %v52_v10 }
  0x14   :  { %4104 = vmatmul.msk.f32.gmra.mxu1 %vm72_vm1, %v52_v10  ;;  %4122 = vmatmul.msk.f32.gmra.mxu3 %vm72_vm1, %v52_v10 }
  0x17   :  { %4113 = vmatmul.msk.f32.gmra.mxu2 %vm72_vm1, %v52_v10 }
  0x1b   :  { %4096 = vmatmul.msk.f32.gmra.mxu0 %vm72_vm1, %v53_v11 }
  0x1c   :  { %4105 = vmatmul.msk.f32.gmra.mxu1 %vm72_vm1, %v53_v11  ;;  %4123 = vmatmul.msk.f32.gmra.mxu3 %vm72_vm1, %v53_v11 }
  0x1f   :  { %4114 = vmatmul.msk.f32.gmra.mxu2 %vm72_vm1, %v53_v11 }
  0x23   :  { %4097 = vmatmul.msk.f32.gmra.mxu0 %vm72_vm1, %v54_v12 }
  0x24   :  { %4106 = vmatmul.msk.f32.gmra.mxu1 %vm72_vm1, %v54_v12  ;;  %4124 = vmatmul.msk.f32.gmra.mxu3 %vm72_vm1, %v54_v12 }
  0x27   :  { %4115 = vmatmul.msk.f32.gmra.mxu2 %vm72_vm1, %v54_v12 }
  0x2b   :  { %4098 = vmatmul.msk.f32.gmra.mxu0 %vm72_vm1, %v55_v13 }
  0x2c   :  { %4107 = vmatmul.msk.f32.gmra.mxu1 %vm72_vm1, %v55_v13  ;;  %4125 = vmatmul.msk.f32.gmra.mxu3 %vm72_vm1, %v55_v13 }
  0x2f   :  { %4116 = vmatmul.msk.f32.gmra.mxu2 %vm72_vm1, %v55_v13 }
  0x33   :  { %4099 = vmatmul.msk.f32.gmra.mxu0 %vm72_vm1, %v56_v14 }
  0x34   :  { %4108 = vmatmul.msk.f32.gmra.mxu1 %vm72_vm1, %v56_v14  ;;  %4126 = vmatmul.msk.f32.gmra.mxu3 %vm72_vm1, %v56_v14 }
  0x37   :  { %4117 = vmatmul.msk.f32.gmra.mxu2 %vm72_vm1, %v56_v14 }
  0x3b   :  { %4100 = vmatmul.msk.f32.gmra.mxu0 %vm72_vm1, %v57_v15 }
  0x3c   :  { %4109 = vmatmul.msk.f32.gmra.mxu1 %vm72_vm1, %v57_v15  ;;  %4127 = vmatmul.msk.f32.gmra.mxu3 %vm72_vm1, %v57_v15 }
  0x3f   :  { %4118 = vmatmul.msk.f32.gmra.mxu2 %vm72_vm1, %v57_v15 }
  0x43   :  { %4134 = vmatmul.msk.f32.vlgmr.msrb.gmra.mxu0 %vm72_vm1, %v50_v2 }
  0x44   :  { %4143 = vmatmul.msk.f32.vlgmr.msrb.gmra.mxu1 %vm72_vm1, %v50_v2  ;;  %4161 = vmatmul.msk.f32.vlgmr.msrb.gmra.mxu3 %vm72_vm1, %v50_v2 }
  0x47   :  { %4152 = vmatmul.msk.f32.vlgmr.msrb.gmra.mxu2 %vm72_vm1, %v50_v2 }
  0x4b   :  { %4135 = vmatmul.msk.f32.gmra.mxu0 %vm72_vm1, %v51_v9 }
  0x4c   :  { %4144 = vmatmul.msk.f32.gmra.mxu1 %vm72_vm1, %v51_v9  ;;  %4162 = vmatmul.msk.f32.gmra.mxu3 %vm72_vm1, %v51_v9 }
  0x4f   :  { %4153 = vmatmul.msk.f32.gmra.mxu2 %vm72_vm1, %v51_v9 }
  0x53   :  { %4136 = vmatmul.msk.f32.gmra.mxu0 %vm72_vm1, %v52_v10 }
  0x54   :  { %4145 = vmatmul.msk.f32.gmra.mxu1 %vm72_vm1, %v52_v10  ;;  %4163 = vmatmul.msk.f32.gmra.mxu3 %vm72_vm1, %v52_v10 }
  0x57   :  { %4154 = vmatmul.msk.f32.gmra.mxu2 %vm72_vm1, %v52_v10 }
  0x5b   :  { %4137 = vmatmul.msk.f32.gmra.mxu0 %vm72_vm1, %v53_v11 }
  0x5c   :  { %4146 = vmatmul.msk.f32.gmra.mxu1 %vm72_vm1, %v53_v11  ;;  %4164 = vmatmul.msk.f32.gmra.mxu3 %vm72_vm1, %v53_v11 }
  0x5f   :  { %4155 = vmatmul.msk.f32.gmra.mxu2 %vm72_vm1, %v53_v11 }
  0x63   :  { %4138 = vmatmul.msk.f32.gmra.mxu0 %vm72_vm1, %v54_v12 }
  0x64   :  { %4147 = vmatmul.msk.f32.gmra.mxu1 %vm72_vm1, %v54_v12  ;;  %4165 = vmatmul.msk.f32.gmra.mxu3 %vm72_vm1, %v54_v12 }
  0x67   :  { %4156 = vmatmul.msk.f32.gmra.mxu2 %vm72_vm1, %v54_v12 }
  0x6b   :  { %4139 = vmatmul.msk.f32.gmra.mxu0 %vm72_vm1, %v55_v13 }
  0x6c   :  { %4148 = vmatmul.msk.f32.gmra.mxu1 %vm72_vm1, %v55_v13  ;;  %4166 = vmatmul.msk.f32.gmra.mxu3 %vm72_vm1, %v55_v13 }
  0x6f   :  { %4157 = vmatmul.msk.f32.gmra.mxu2 %vm72_vm1, %v55_v13 }
  0x73   :  { %4140 = vmatmul.msk.f32.gmra.mxu0 %vm72_vm1, %v56_v14 }
  0x74   :  { %4149 = vmatmul.msk.f32.gmra.mxu1 %vm72_vm1, %v56_v14  ;;  %4167 = vmatmul.msk.f32.gmra.mxu3 %vm72_vm1, %v56_v14 }
  0x77   :  { %4158 = vmatmul.msk.f32.gmra.mxu2 %vm72_vm1, %v56_v14 }
  0x7b   :  { %4141 = vmatmul.msk.f32.gmra.mxu0 %vm72_vm1, %v57_v15 }
  0x7c   :  { %4150 = vmatmul.msk.f32.gmra.mxu1 %vm72_vm1, %v57_v15  ;;  %4168 = vmatmul.msk.f32.gmra.mxu3 %vm72_vm1, %v57_v15 }
  0x7f   :  { %4159 = vmatmul.msk.f32.gmra.mxu2 %vm72_vm1, %v57_v15 }
  0x80   :  { %v127_v19 = vpop.f32.mrf.mxu0 }
  0x81   :  { %v128_v20 = vadd.f32 %v127_v19, %v5363_v17  ;;  %v168_v21 = vpop.f32.mrf.mxu1 }
  0x82   :  { %v169_v22 = vadd.f32 %v168_v21, %v5365_v18 }
  0x83   :  { %v4169_v23 = vmul.f32 -1.442695, %v128_v20 }
  0x84   :  { %v4170_v24 = vmul.f32 -1.442695, %v169_v22 }
  0x85   :  { %4862 = vpow2.f32 %v4169_v23 }
  0x86   :  { %4864 = vpow2.f32 %v4170_v24 }
  0x87   :  { %v250_v26 = vpop.f32.mrf.mxu3 }
  0x88   :  { %v251_v27 = vadd.f32 %v250_v26, %v5370_v25  ;;  %v130_v28 = vpop.f32.mrf.mxu0 }
  0x89   :  { %v5374_v29 = vadd.f32 %v130_v28, %v5363_v17  ;;  %v171_v30 = vpop.f32.mrf.mxu1 }
  0x8a   :  { %v4171_v31 = vmul.f32 -1.442695, %v251_v27  ;;  %v5377_v32 = vadd.f32 %v171_v30, %v5365_v18  ;;  %v209_v33 = vpop.f32.mrf.mxu2 }
  0x8b   :  { %7436 = vst [vmem:[#allocation18_spill] sm:$0xff] %v5374_v29  ;;  %v4863_v34 = vpop.eup %4862  ;;  %v210_v46 = vadd.f32 %v209_v33, %v5379_v38 }
  0x8c   :  { %7437 = vst [vmem:[#allocation19_spill] sm:$0xff] %v5377_v32  ;;  %v4865_v35 = vpop.eup %4864  ;;  %v537_v36 = vadd.f32 1.0, %v4863_v34  ;;  %4866 = vpow2.f32 %v4171_v31 }
  0x8d   :  { %v556_v37 = vadd.f32 1.0, %v4865_v35 }
  0x8e   :  { %4868 = vrcp.f32 %v537_v36  ;;  %v547_v57 = vand.u32 2147483647, %v537_v36  ;;  %v549_v58 = vand.u32 2147483648, %v537_v36  ;;  %vm543_vm4 = vweird.f32 %v537_v36 }
  0x8f   :  { %4870 = vrcp.f32 %v556_v37  ;;  %v253_v39 = vpop.f32.mrf.mxu3  ;;  %v568_v61 = vand.u32 2147483648, %v556_v37  ;;  %v566_v2 = vand.u32 2147483647, %v556_v37  ;;  %vm562_vm5 = vweird.f32 %v556_v37 }
  0x90   :  { %v5382_v40 = vadd.f32 %v253_v39, %v5370_v25  ;;  %v133_v41 = vpop.f32.mrf.mxu0  ;;  %v550_v10 = vor.u32 1.1754944e-38, %v549_v58  ;;  %vm548_vm7 = vcmp.eq.f32.partialorder %v547_v57, 8.507059e+37 }
  0x91   :  { %v5385_v42 = vadd.f32 %v133_v41, %v5363_v17  ;;  %v174_v43 = vpop.f32.mrf.mxu1  ;;  %v569_v12 = vor.u32 1.1754944e-38, %v568_v61  ;;  %vm567_vm9 = vcmp.eq.f32.partialorder %v566_v2, 8.507059e+37 }
  0x92   :  { %7438 = vst [vmem:[#allocation20_spill] sm:$0xff] %v5382_v40  ;;  %v4867_v44 = vpop.eup %4866  ;;  %v5388_v45 = vadd.f32 %v174_v43, %v5365_v18  ;;  %v212_v47 = vpop.f32.mrf.mxu2 }
  0x93   :  { %7439 = vst [vmem:[#allocation21_spill] sm:$0xff] %v5385_v42  ;;  %v5391_v48 = vadd.f32 1.0, %v4867_v44  ;;  %v5394_v49 = vadd.f32 %v212_v47, %v5379_v38 }
  0x94   :  { %7440 = vst [vmem:[#allocation22_spill] sm:$0xff] %v5388_v45  ;;  %v4869_v50 = vpop.eup %4868 }
  0x95   :  { %7441 = vst [vmem:[#allocation23_spill] sm:$0xff] %v5394_v49  ;;  %v4871_v51 = vpop.eup %4870  ;;  %v539_v52 = vmul.f32 %v4869_v50, %v537_v36  ;;  %4872 = vrcp.f32 %v5391_v48  ;;  %vm544_vm2 = vweird.f32 %v4869_v50  ;;  %v588_v36 = vand.u32 2147483648, %v5391_v48 }
  0x96   :  { %v558_v53 = vmul.f32 %v4871_v51, %v556_v37  ;;  %4874 = vtanh.f32 %v210_v46  ;;  %vm563_vm3 = vweird.f32 %v4871_v51  ;;  %vm545_vm6 = vmor %vm543_vm4, %vm544_vm2  ;;  %vm582_vm11 = vweird.f32 %v5391_v48 }
  0x97   :  { %v540_v54 = vsub.f32 1.0, %v539_v52  ;;  %v256_v55 = vpop.f32.mrf.mxu3  ;;  %vm564_vm8 = vmor %vm562_vm5, %vm563_vm3  ;;  %v586_v37 = vand.u32 2147483647, %v5391_v48  ;;  %v589_v43 = vor.u32 1.1754944e-38, %v588_v36 }
  0x98   :  { %v559_v56 = vsub.f32 1.0, %v558_v53  ;;  %v5398_v59 = vadd.f32 %v256_v55, %v5370_v25  ;;  %v136_v60 = vpop.f32.mrf.mxu0 }
  0x99   :  { %v541_v62 = vmul.f32 %v4869_v50, %v540_v54  ;;  %v5401_v63 = vadd.f32 %v136_v60, %v5363_v17  ;;  %v177_v0 = vpop.f32.mrf.mxu1  ;;  %vm587_vm13 = vcmp.eq.f32.partialorder %v586_v37, 8.507059e+37 }
  0x9a   :  { %7442 = vst [vmem:[#allocation24_spill] sm:$0xff] %v5398_v59  ;;  %v560_v1 = vmul.f32 %v4871_v51, %v559_v56  ;;  %v5404_v3 = vadd.f32 %v177_v0, %v5365_v18  ;;  %v215_v4 = vpop.f32.mrf.mxu2 }
  0x9b   :  { %7443 = vst [vmem:[#allocation25_spill] sm:$0xff] %v5401_v63  ;;  %v4873_v5 = vpop.eup %4872  ;;  %v542_v6 = vadd.f32 %v4869_v50, %v541_v62  ;;  %v5407_v7 = vadd.f32 %v215_v4, %v5379_v38 }
  0x9c   :  { %7444 = vst [vmem:[#allocation26_spill] sm:$0xff] %v5404_v3  ;;  %v4875_v8 = vpop.eup %4874  ;;  %v578_v9 = vmul.f32 %v4873_v5, %v5391_v48  ;;  %v561_v11 = vadd.f32 %v4871_v51, %v560_v1  ;;  %vm583_vm10 = vweird.f32 %v4873_v5 }
  0x9d   :  { %7445 = vst [vmem:[#allocation27_spill] sm:$0xff] %v5407_v7  ;;  %v546_v13 = vsel %vm545_vm6, %v4869_v50, %v542_v6  ;;  %vm584_vm12 = vmor %vm582_vm11, %vm583_vm10 }
  0x9e   :  { %v579_v14 = vsub.f32 1.0, %v578_v9  ;;  %v551_v15 = vsel %vm548_vm7, %v550_v10, %v546_v13  ;;  %v565_v16 = vsel %vm564_vm8, %v4871_v51, %v561_v11  ;;  %v4132_v10 = vld [vmem:[%s7167_s2 + $0x4] sm:$0xf] }
  0x9f   :  { %v570_v19 = vsel %vm567_vm9, %v569_v12, %v565_v16  ;;  %v593_v20 = vmul.f32 %v4875_v8, %v551_v15  ;;  %v259_v21 = vpop.f32.mrf.mxu3  ;;  %v5477_v13 = vperm.slane %v4132_v10, 0 }
  0xa0   :  { %v580_v22 = vmul.f32 %v4873_v5, %v579_v14  ;;  %v592_v23 = vmul.f32 0.0, %v570_v19  ;;  %v5413_v24 = vadd.f32 %v259_v21, %v5370_v25  ;;  %v139_v26 = vpop.f32.mrf.mxu0  ;;  %v5479_v14 = vperm.slane %v4132_v10, 1 }
  0xa1   :  { %v5416_v27 = vadd.f32 %v139_v26, %v5363_v17  ;;  %v180_v28 = vpop.f32.mrf.mxu1 }
  0xa2   :  { %7446 = vst [vmem:[#allocation28_spill] sm:$0xff] %v5413_v24  ;;  %v5421_v30 = vadd.f32 %v593_v20, %v592_v23  ;;  %v5424_v31 = vadd.f32 %v180_v28, %v5365_v18  ;;  %v218_v33 = vpop.f32.mrf.mxu2  ;;  %v581_v34 = vadd.f32 %v4873_v5, %v580_v22  ;;  %v5493_v23 = vperm.slane %v4132_v10, 3 }
  0xa3   :  { %7447 = vst [vmem:[#allocation29_spill] sm:$0xff] %v5416_v27  ;;  %v5427_v35 = vadd.f32 %v218_v33, %v5379_v38  ;;  %v5495_v28 = vperm.slane %v4132_v10, 2 }
  0xa4   :  { %7448 = vst [vmem:[#allocation30_spill] sm:$0xff] %v5421_v30  ;;  %4876 = vtanh.f32 %v5421_v30  ;;  %v585_v39 = vsel %vm584_vm12, %v4873_v5, %v581_v34 }
  0xa5   :  { %7449 = vst [vmem:[#allocation31_spill] sm:$0xff] %v5424_v31  ;;  %v590_v48 = vsel %vm587_vm13, %v589_v43, %v585_v39 }
  0xa6   :  { %7450 = vst [vmem:[#allocation32_spill] sm:$0xff] %v5427_v35 }
  0xa7   :  { %v262_v41 = vpop.f32.mrf.mxu3 }
  0xa8   :  { %v5437_v44 = vadd.f32 %v262_v41, %v5370_v25  ;;  %v142_v46 = vpop.f32.mrf.mxu0 }
  0xa9   :  { %v5440_v47 = vadd.f32 %v142_v46, %v5363_v17  ;;  %v183_v50 = vpop.f32.mrf.mxu1 }
  0xaa   :  { %7451 = vst [vmem:[#allocation33_spill] sm:$0xff] %v5437_v44  ;;  %v4877_v51 = vpop.eup %4876  ;;  %v5443_v52 = vadd.f32 %v183_v50, %v5365_v18  ;;  %v221_v53 = vpop.f32.mrf.mxu2 }
  0xab   :  { %7452 = vst [vmem:[#allocation34_spill] sm:$0xff] %v5440_v47  ;;  %v5445_v54 = vmul.f32 %v4877_v51, %v590_v48  ;;  %v5448_v55 = vadd.f32 %v221_v53, %v5379_v38 }
  0xac   :  { %7453 = vst [vmem:[#allocation35_spill] sm:$0xff] %v5443_v52 }
  0xad   :  { %7454 = vst [vmem:[#allocation36_spill] sm:$0xff] %v5448_v55 }
  0xaf   :  { %v265_v56 = vpop.f32.mrf.mxu3 }
  0xb0   :  { %v5451_v57 = vadd.f32 %v265_v56, %v5370_v25  ;;  %v145_v58 = vpop.f32.mrf.mxu0 }
  0xb1   :  { %v5454_v60 = vadd.f32 %v145_v58, %v5363_v17  ;;  %v186_v61 = vpop.f32.mrf.mxu1 }
  0xb2   :  { %7455 = vst [vmem:[#allocation37_spill] sm:$0xff] %v5451_v57  ;;  %v5457_v62 = vadd.f32 %v186_v61, %v5365_v18  ;;  %v224_v0 = vpop.f32.mrf.mxu2 }
  0xb3   :  { %7456 = vst [vmem:[#allocation38_spill] sm:$0xff] %v5454_v60  ;;  %v5460_v1 = vadd.f32 %v224_v0, %v5379_v38 }
  0xb4   :  { %7457 = vst [vmem:[#allocation39_spill] sm:$0xff] %v5457_v62 }
  0xb5   :  { %7458 = vst [vmem:[#allocation40_spill] sm:$0xff] %v5460_v1 }
  0xb7   :  { %v268_v2 = vpop.f32.mrf.mxu3 }
  0xb8   :  { %v5463_v4 = vadd.f32 %v268_v2, %v5370_v25  ;;  %v148_v5 = vpop.f32.mrf.mxu0 }
  0xb9   :  { %v5466_v6 = vadd.f32 %v148_v5, %v5363_v17  ;;  %v189_v8 = vpop.f32.mrf.mxu1 }
  0xba   :  { %7459 = vst [vmem:[#allocation41_spill] sm:$0xff] %v5463_v4  ;;  %v5469_v9 = vadd.f32 %v189_v8, %v5365_v18  ;;  %v227_v11 = vpop.f32.mrf.mxu2 }
  0xbb   :  { %7460 = vst [vmem:[#allocation42_spill] sm:$0xff] %v5466_v6  ;;  %v5475_v12 = vadd.f32 %v227_v11, %v5379_v38 }
  0xbc   :  { %7461 = vst [vmem:[#allocation43_spill] sm:$0xff] %v5469_v9 }
  0xbd   :  { %7462 = vst [vmem:[#allocation44_spill] sm:$0xff] %v5475_v12 }
  0xbf   :  { %v271_v15 = vpop.f32.mrf.mxu3 }
  0xc0   :  { %v5482_v17 = vadd.f32 %v271_v15, %v5370_v25  ;;  %v351_v16 = vpop.f32.mrf.mxu0 }
  0xc1   :  { %v5485_v18 = vadd.f32 %v351_v16, %v5477_v13  ;;  %v392_v19 = vpop.f32.mrf.mxu1 }
  0xc2   :  { %7463 = vst [vmem:[#allocation45_spill] sm:$0xff] %v5482_v17  ;;  %v5488_v20 = vadd.f32 %v392_v19, %v5479_v14  ;;  %v230_v21 = vpop.f32.mrf.mxu2 }
  0xc3   :  { %7464 = vst [vmem:[#allocation46_spill] sm:$0xff] %v5485_v18  ;;  %v5491_v22 = vadd.f32 %v230_v21, %v5379_v38 }
  0xc4   :  { %7465 = vst [vmem:[#allocation47_spill] sm:$0xff] %v5488_v20 }
  0xc5   :  { %7466 = vst [vmem:[#allocation48_spill] sm:$0xff] %v5491_v22 }
  0xc7   :  { %v474_v26 = vpop.f32.mrf.mxu3 }
  0xc8   :  { %v5498_v25 = vadd.f32 %v474_v26, %v5493_v23  ;;  %v354_v33 = vpop.f32.mrf.mxu0 }
  0xc9   :  { %v5501_v34 = vadd.f32 %v354_v33, %v5477_v13  ;;  %v395_v36 = vpop.f32.mrf.mxu1 }
  0xca   :  { %7467 = vst [vmem:[#allocation49_spill] sm:$0xff] %v5498_v25  ;;  %v5504_v37 = vadd.f32 %v395_v36, %v5479_v14  ;;  %v433_v39 = vpop.f32.mrf.mxu2 }
  0xcb   :  { %7468 = vst [vmem:[#allocation50_spill] sm:$0xff] %v5501_v34  ;;  %v5507_v38 = vadd.f32 %v433_v39, %v5495_v28 }
  0xcc   :  { %7469 = vst [vmem:[#allocation51_spill] sm:$0xff] %v5504_v37 }
  0xcd   :  { %7470 = vst [vmem:[#allocation52_spill] sm:$0xff] %v5507_v38 }
  0xcf   :  { %v477_v41 = vpop.f32.mrf.mxu3 }
  0xd0   :  { %v5510_v43 = vadd.f32 %v477_v41, %v5493_v23  ;;  %v357_v46 = vpop.f32.mrf.mxu0 }
  0xd1   :  { %v5513_v50 = vadd.f32 %v357_v46, %v5477_v13  ;;  %v398_v51 = vpop.f32.mrf.mxu1 }
  0xd2   :  { %7471 = vst [vmem:[#allocation53_spill] sm:$0xff] %v5510_v43  ;;  %v5516_v48 = vadd.f32 %v398_v51, %v5479_v14  ;;  %v436_v53 = vpop.f32.mrf.mxu2 }
  0xd3   :  { %7472 = vst [vmem:[#allocation54_spill] sm:$0xff] %v5513_v50  ;;  %v5519_v56 = vadd.f32 %v436_v53, %v5495_v28 }
  0xd4   :  { %7473 = vst [vmem:[#allocation55_spill] sm:$0xff] %v5516_v48 }
  0xd5   :  { %7474 = vst [vmem:[#allocation56_spill] sm:$0xff] %v5519_v56 }
  0xd7   :  { %v480_v58 = vpop.f32.mrf.mxu3 }
  0xd8   :  { %v5522_v61 = vadd.f32 %v480_v58, %v5493_v23  ;;  %v360_v0 = vpop.f32.mrf.mxu0 }
  0xd9   :  { %v5525_v2 = vadd.f32 %v360_v0, %v5477_v13  ;;  %v401_v5 = vpop.f32.mrf.mxu1 }
  0xda   :  { %7475 = vst [vmem:[#allocation57_spill] sm:$0xff] %v5522_v61  ;;  %v5528_v8 = vadd.f32 %v401_v5, %v5479_v14  ;;  %v439_v10 = vpop.f32.mrf.mxu2 }
  0xdb   :  { %7476 = vst [vmem:[#allocation58_spill] sm:$0xff] %v5525_v2  ;;  %v5531_v11 = vadd.f32 %v439_v10, %v5495_v28 }
  0xdc   :  { %7477 = vst [vmem:[#allocation59_spill] sm:$0xff] %v5528_v8 }
  0xdd   :  { %7478 = vst [vmem:[#allocation60_spill] sm:$0xff] %v5531_v11 }
  0xdf   :  { %v483_v15 = vpop.f32.mrf.mxu3 }
  0xe0   :  { %v5534_v16 = vadd.f32 %v483_v15, %v5493_v23  ;;  %v363_v19 = vpop.f32.mrf.mxu0 }
  0xe1   :  { %v5537_v21 = vadd.f32 %v363_v19, %v5477_v13  ;;  %v404_v26 = vpop.f32.mrf.mxu1 }
  0xe2   :  { %7479 = vst [vmem:[#allocation61_spill] sm:$0xff] %v5534_v16  ;;  %v5540_v33 = vadd.f32 %v404_v26, %v5479_v14  ;;  %v442_v36 = vpop.f32.mrf.mxu2 }
  0xe3   :  { %7480 = vst [vmem:[#allocation62_spill] sm:$0xff] %v5537_v21  ;;  %v5543_v39 = vadd.f32 %v442_v36, %v5495_v28 }
  0xe4   :  { %7481 = vst [vmem:[#allocation63_spill] sm:$0xff] %v5540_v33 }
  0xe5   :  { %7482 = vst [vmem:[#allocation64_spill] sm:$0xff] %v5543_v39 }
  0xe7   :  { %v486_v41 = vpop.f32.mrf.mxu3 }
  0xe8   :  { %v5546_v46 = vadd.f32 %v486_v41, %v5493_v23  ;;  %v366_v51 = vpop.f32.mrf.mxu0 }
  0xe9   :  { %v5549_v53 = vadd.f32 %v366_v51, %v5477_v13  ;;  %v407_v58 = vpop.f32.mrf.mxu1 }
  0xea   :  { %7483 = vst [vmem:[#allocation65_spill] sm:$0xff] %v5546_v46  ;;  %v5552_v0 = vadd.f32 %v407_v58, %v5479_v14  ;;  %v445_v5 = vpop.f32.mrf.mxu2 }
  0xeb   :  { %7484 = vst [vmem:[#allocation66_spill] sm:$0xff] %v5549_v53  ;;  %v5555_v10 = vadd.f32 %v445_v5, %v5495_v28 }
  0xec   :  { %7485 = vst [vmem:[#allocation67_spill] sm:$0xff] %v5552_v0 }
  0xed   :  { %7486 = vst [vmem:[#allocation68_spill] sm:$0xff] %v5555_v10 }
  0xef   :  { %v489_v15 = vpop.f32.mrf.mxu3 }
  0xf0   :  { %v5558_v19 = vadd.f32 %v489_v15, %v5493_v23  ;;  %v369_v26 = vpop.f32.mrf.mxu0 }
  0xf1   :  { %v5561_v36 = vadd.f32 %v369_v26, %v5477_v13  ;;  %v410_v41 = vpop.f32.mrf.mxu1 }
  0xf2   :  { %7487 = vst [vmem:[#allocation69_spill] sm:$0xff] %v5558_v19  ;;  %v5564_v51 = vadd.f32 %v410_v41, %v5479_v14  ;;  %v448_v38 = vpop.f32.mrf.mxu2 }
  0xf3   :  { %7488 = vst [vmem:[#allocation70_spill] sm:$0xff] %v5561_v36  ;;  %v5567_v58 = vadd.f32 %v448_v38, %v5495_v28 }
  0xf4   :  { %7489 = vst [vmem:[#allocation71_spill] sm:$0xff] %v5564_v51 }
  0xf5   :  { %7490 = vst [vmem:[#allocation72_spill] sm:$0xff] %v5567_v58 }
  0xf7   :  { %v492_v25 = vpop.f32.mrf.mxu3 }
  0xf8   :  { %v5570_v5 = vadd.f32 %v492_v25, %v5493_v23  ;;  %v372_v20 = vpop.f32.mrf.mxu0 }
  0xf9   :  { %v373_v15 = vadd.f32 %v372_v20, %v5477_v13  ;;  %v413_v18 = vpop.f32.mrf.mxu1 }
  0xfa   :  { %7491 = vst [vmem:[#allocation73_spill] sm:$0xff] %v5570_v5  ;;  %v414_v17 = vadd.f32 %v413_v18, %v5479_v14  ;;  %v451_v26 = vpop.f32.mrf.mxu2 }
  0xfb   :  { %v4172_v22 = vmul.f32 -1.442695, %v373_v15  ;;  %v5575_v9 = vadd.f32 %v451_v26, %v5495_v28 }
  0xfc   :  { %v4173_v41 = vmul.f32 -1.442695, %v414_v17 }
  0xfd   :  { %7492 = vst [vmem:[#allocation74_spill] sm:$0xff] %v5575_v9  ;;  %4878 = vpow2.f32 %v4172_v22 }
  0xfe   :  { %4880 = vpow2.f32 %v4173_v41 }
  0xff   :  { %v495_v38 = vpop.f32.mrf.mxu3 }
 0x100   :  { %v496_v6 = vadd.f32 %v495_v38, %v5493_v23 }
 0x102   :  { %v4174_v56 = vmul.f32 -1.442695, %v496_v6  ;;  %v454_v14 = vpop.f32.mrf.mxu2 }
 0x103   :  { %v4879_v25 = vpop.eup %4878  ;;  %v455_v20 = vadd.f32 %v454_v14, %v5495_v28 }
 0x104   :  { %v4881_v43 = vpop.eup %4880  ;;  %v604_v37 = vadd.f32 1.0, %v4879_v25  ;;  %4882 = vpow2.f32 %v4174_v56 }
 0x105   :  { %v623_v13 = vadd.f32 1.0, %v4881_v43 }
 0x106   :  { %4884 = vrcp.f32 %v604_v37  ;;  %v616_v38 = vand.u32 2147483648, %v604_v37  ;;  %v614_v43 = vand.u32 2147483647, %v604_v37  ;;  %vm610_vm0 = vweird.f32 %v604_v37 }
 0x107   :  { %4886 = vrcp.f32 %v623_v13  ;;  %v635_v34 = vand.u32 2147483648, %v623_v13  ;;  %v633_v12 = vand.u32 2147483647, %v623_v13  ;;  %vm629_vm1 = vweird.f32 %v623_v13 }
 0x108   :  { %vm615_vm3 = vcmp.eq.f32.partialorder %v614_v43, 8.507059e+37 }
 0x109   :  { %vm634_vm5 = vcmp.eq.f32.partialorder %v633_v12, 8.507059e+37 }
 0x10a   :  { %v4883_v18 = vpop.eup %4882 }
 0x10b   :  { %v643_v15 = vadd.f32 1.0, %v4883_v18  ;;  %v617_v18 = vor.u32 1.1754944e-38, %v616_v38 }
 0x10c   :  { %v4885_v26 = vpop.eup %4884 }
 0x10d   :  { %v4887_v17 = vpop.eup %4886  ;;  %v606_v22 = vmul.f32 %v4885_v26, %v604_v37  ;;  %4888 = vrcp.f32 %v643_v15  ;;  %vm611_vm14 = vweird.f32 %v4885_v26  ;;  %vm649_vm7 = vweird.f32 %v643_v15 }
 0x10e   :  { %v625_v41 = vmul.f32 %v4887_v17, %v623_v13  ;;  %4890 = vtanh.f32 %v455_v20  ;;  %vm630_vm15 = vweird.f32 %v4887_v17  ;;  %vm612_vm2 = vmor %vm610_vm0, %vm611_vm14  ;;  %v636_v20 = vor.u32 1.1754944e-38, %v635_v34 }
 0x10f   :  { %v607_v23 = vsub.f32 1.0, %v606_v22  ;;  %vm631_vm4 = vmor %vm629_vm1, %vm630_vm15  ;;  %v655_v13 = vand.u32 2147483648, %v643_v15  ;;  %v653_v34 = vand.u32 2147483647, %v643_v15 }
 0x110   :  { %v626_v6 = vsub.f32 1.0, %v625_v41 }
 0x111   :  { %v608_v25 = vmul.f32 %v4885_v26, %v607_v23  ;;  %vm654_vm9 = vcmp.eq.f32.partialorder %v653_v34, 8.507059e+37 }
 0x112   :  { %v627_v56 = vmul.f32 %v4887_v17, %v626_v6 }
 0x113   :  { %v4889_v4 = vpop.eup %4888  ;;  %v609_v62 = vadd.f32 %v4885_v26, %v608_v25 }
 0x114   :  { %v4891_v28 = vpop.eup %4890  ;;  %v645_v14 = vmul.f32 %v4889_v4, %v643_v15  ;;  %v628_v60 = vadd.f32 %v4887_v17, %v627_v56  ;;  %vm650_vm6 = vweird.f32 %v4889_v4 }
 0x115   :  { %v613_v22 = vsel %vm612_vm2, %v4885_v26, %v609_v62  ;;  %vm651_vm8 = vmor %vm649_vm7, %vm650_vm6  ;;  %v656_v26 = vor.u32 1.1754944e-38, %v655_v13 }
 0x116   :  { %v646_v41 = vsub.f32 1.0, %v645_v14  ;;  %v618_v23 = vsel %vm615_vm3, %v617_v18, %v613_v22  ;;  %v632_v11 = vsel %vm631_vm4, %v4887_v17, %v628_v60 }
 0x117   :  { %v637_v6 = vsel %vm634_vm5, %v636_v20, %v632_v11  ;;  %v660_v61 = vmul.f32 %v4891_v28, %v618_v23 }
 0x118   :  { %v647_v48 = vmul.f32 %v4889_v4, %v646_v41  ;;  %v659_v50 = vmul.f32 0.0, %v637_v6 }
 0x11a   :  { %v5579_v25 = vadd.f32 %v660_v61, %v659_v50  ;;  %v648_v37 = vadd.f32 %v4889_v4, %v647_v48 }
 0x11c   :  { %7493 = vst [vmem:[#allocation75_spill] sm:$0xff] %v5579_v25  ;;  %4892 = vtanh.f32 %v5579_v25  ;;  %v652_v62 = vsel %vm651_vm8, %v4889_v4, %v648_v37 }
 0x11d   :  { %v657_v60 = vsel %vm654_vm9, %v656_v26, %v652_v62 }
 0x122   :  { %v4893_v38 = vpop.eup %4892 }
 0x123   :  { %v5582_v12 = vmul.f32 %v4893_v38, %v657_v60 }
 0x124   :  { %5192 = dma.done.wait [#allocation6], 16384 }
 0x125   :  { %5193 = vsyncadd [#allocation6], 4294950912  ;;  %v4401_v11 = vld [vmem:[#allocation4 + $0x1c0] sm:$0xf]  ;;  %v4787_v43 = vld [vmem:[#allocation4 + $0x1c4] sm:$0xf] }
 0x126   :  { %v4791_v50 = vld [vmem:[#allocation4 + $0x1dc] sm:$0xf0]  ;;  %v4403_v56 = vld [vmem:[#allocation4 + $0x1e0] sm:$0xf0]  ;;  %v4409_v3 = vld [vmem:[#allocation4 + $0x1c8] sm:$0xf] }
 0x127   :  { %v4657_v61 = vld [vmem:[#allocation4 + $0x3c0] sm:$0xf]  ;;  %v5584_v48 = vor.u32 %v4791_v50, %v4401_v11  ;;  %v5588_v15 = vor.u32 %v4787_v43, %v4403_v56  ;;  %v4851_v4 = vld [vmem:[#allocation4 + $0x3c4] sm:$0xf]  ;;  %v4792_v63 = vld [vmem:[#allocation4 + $0x1e4] sm:$0xf0] }
 0x128   :  { %v4855_v17 = vld [vmem:[#allocation4 + $0x3dc] sm:$0xf0]  ;;  %v4659_v14 = vld [vmem:[#allocation4 + $0x3e0] sm:$0xf0]  ;;  %v4665_v19 = vld [vmem:[#allocation4 + $0x3c8] sm:$0xf]  ;;  %v5676_v59 = vor.u32 %v4792_v63, %v4409_v3 }
 0x129   :  { %7494 = vst [vmem:[#allocation76_spill] sm:$0xff] %v5584_v48  ;;  %v5586_v28 = vor.u32 %v4855_v17, %v4657_v61  ;;  %v4369_v18 = vld [vmem:[#allocation4 + $0x180] sm:$0xf]  ;;  %1438 = vmatpush.bf16.msra.mxu0 %v5584_v48  ;;  %v5591_v20 = vor.u32 %v4851_v4, %v4659_v14  ;;  %1464 = vmatpush.bf16.msra.mxu2 %v5588_v15  ;;  %v4779_v13 = vld [vmem:[#allocation4 + $0x184] sm:$0xf] }
 0x12a   :  { %7496 = vst [vmem:[#allocation78_spill] sm:$0xff] %v5588_v15  ;;  %v4783_v22 = vld [vmem:[#allocation4 + $0x19c] sm:$0xf0]  ;;  %v4371_v34 = vld [vmem:[#allocation4 + $0x1a0] sm:$0xf0] }
 0x12b   :  { %7495 = vst [vmem:[#allocation77_spill] sm:$0xff] %v5586_v28  ;;  %v4625_v41 = vld [vmem:[#allocation4 + $0x380] sm:$0xf]  ;;  %1451 = vmatpush.bf16.msra.mxu1 %v5586_v28  ;;  %v5595_v6 = vor.u32 %v4783_v22, %v4369_v18  ;;  %v4843_v62 = vld [vmem:[#allocation4 + $0x384] sm:$0xf]  ;;  %1477 = vmatpush.bf16.msra.mxu3 %v5591_v20  ;;  %v5600_v26 = vor.u32 %v4779_v13, %v4371_v34 }
 0x12c   :  { %7497 = vst [vmem:[#allocation79_spill] sm:$0xff] %v5591_v20  ;;  %v4847_v23 = vld [vmem:[#allocation4 + $0x39c] sm:$0xf0]  ;;  %v4627_v38 = vld [vmem:[#allocation4 + $0x3a0] sm:$0xf0] }
 0x12d   :  { %7498 = vst [vmem:[#allocation80_spill] sm:$0xff] %v5595_v6  ;;  %v5597_v37 = vor.u32 %v4847_v23, %v4625_v41  ;;  %v4337_v60 = vld [vmem:[#allocation4 + $0x140] sm:$0xf]  ;;  %v5602_v50 = vor.u32 %v4843_v62, %v4627_v38  ;;  %v4771_v43 = vld [vmem:[#allocation4 + $0x144] sm:$0xf]  ;;  %1439 = vmatpush.bf16.msra.mxu0 %v5595_v6  ;;  %1465 = vmatpush.bf16.msra.mxu2 %v5600_v26 }
 0x12e   :  { %7500 = vst [vmem:[#allocation82_spill] sm:$0xff] %v5600_v26  ;;  %v4775_v11 = vld [vmem:[#allocation4 + $0x15c] sm:$0xf0]  ;;  %v4339_v4 = vld [vmem:[#allocation4 + $0x160] sm:$0xf0] }
 0x12f   :  { %7499 = vst [vmem:[#allocation81_spill] sm:$0xff] %v5597_v37  ;;  %v4593_v61 = vld [vmem:[#allocation4 + $0x340] sm:$0xf]  ;;  %v5605_v56 = vor.u32 %v4775_v11, %v4337_v60  ;;  %v4835_v14 = vld [vmem:[#allocation4 + $0x344] sm:$0xf]  ;;  %1452 = vmatpush.bf16.msra.mxu1 %v5597_v37  ;;  %v5611_v41 = vor.u32 %v4771_v43, %v4339_v4  ;;  %1478 = vmatpush.bf16.msra.mxu3 %v5602_v50 }
 0x130   :  { %7501 = vst [vmem:[#allocation83_spill] sm:$0xff] %v5602_v50  ;;  %v4839_v17 = vld [vmem:[#allocation4 + $0x35c] sm:$0xf0]  ;;  %v4595_v18 = vld [vmem:[#allocation4 + $0x360] sm:$0xf0] }
 0x131   :  { %7502 = vst [vmem:[#allocation84_spill] sm:$0xff] %v5605_v56  ;;  %v5609_v22 = vor.u32 %v4839_v17, %v4593_v61  ;;  %v4305_v23 = vld [vmem:[#allocation4 + $0x100] sm:$0xf]  ;;  %v5614_v62 = vor.u32 %v4835_v14, %v4595_v18  ;;  %v4763_v60 = vld [vmem:[#allocation4 + $0x104] sm:$0xf]  ;;  %1440 = vmatpush.bf16.msra.mxu0 %v5605_v56  ;;  %1466 = vmatpush.bf16.msra.mxu2 %v5611_v41 }
 0x132   :  { %7504 = vst [vmem:[#allocation86_spill] sm:$0xff] %v5611_v41  ;;  %v4767_v13 = vld [vmem:[#allocation4 + $0x11c] sm:$0xf0]  ;;  %v4307_v11 = vld [vmem:[#allocation4 + $0x120] sm:$0xf0] }
 0x133   :  { %7503 = vst [vmem:[#allocation85_spill] sm:$0xff] %v5609_v22  ;;  %v4561_v34 = vld [vmem:[#allocation4 + $0x300] sm:$0xf]  ;;  %v4827_v1 = vld [vmem:[#allocation4 + $0x304] sm:$0xf]  ;;  %v5617_v52 = vor.u32 %v4767_v13, %v4305_v23  ;;  %1453 = vmatpush.bf16.msra.mxu1 %v5609_v22  ;;  %v5623_v17 = vor.u32 %v4763_v60, %v4307_v11  ;;  %1479 = vmatpush.bf16.msra.mxu3 %v5614_v62 }
 0x134   :  { %7505 = vst [vmem:[#allocation87_spill] sm:$0xff] %v5614_v62  ;;  %v4831_v38 = vld [vmem:[#allocation4 + $0x31c] sm:$0xf0]  ;;  %v4563_v57 = vld [vmem:[#allocation4 + $0x320] sm:$0xf0] }
 0x135   :  { %7506 = vst [vmem:[#allocation88_spill] sm:$0xff] %v5617_v52  ;;  %v5621_v61 = vor.u32 %v4831_v38, %v4561_v34  ;;  %v4273_v43 = vld [vmem:[#allocation4 + $0xc0] sm:$0xf]  ;;  %v5626_v18 = vor.u32 %v4827_v1, %v4563_v57  ;;  %v4755_v39 = vld [vmem:[#allocation4 + $0xc4] sm:$0xf]  ;;  %1441 = vmatpush.bf16.msra.mxu0 %v5617_v52  ;;  %1467 = vmatpush.bf16.msra.mxu2 %v5623_v17 }
 0x136   :  { %7508 = vst [vmem:[#allocation90_spill] sm:$0xff] %v5623_v17  ;;  %v4759_v4 = vld [vmem:[#allocation4 + $0xdc] sm:$0xf0]  ;;  %v4275_v16 = vld [vmem:[#allocation4 + $0xe0] sm:$0xf0] }
 0x137   :  { %7507 = vst [vmem:[#allocation89_spill] sm:$0xff] %v5621_v61  ;;  %v4529_v14 = vld [vmem:[#allocation4 + $0x2c0] sm:$0xf]  ;;  %v4819_v23 = vld [vmem:[#allocation4 + $0x2c4] sm:$0xf]  ;;  %v5629_v8 = vor.u32 %v4759_v4, %v4273_v43  ;;  %1454 = vmatpush.bf16.msra.mxu1 %v5621_v61  ;;  %v5635_v38 = vor.u32 %v4755_v39, %v4275_v16  ;;  %1480 = vmatpush.bf16.msra.mxu3 %v5626_v18 }
 0x138   :  { %7509 = vst [vmem:[#allocation91_spill] sm:$0xff] %v5626_v18  ;;  %v4823_v47 = vld [vmem:[#allocation4 + $0x2dc] sm:$0xf0]  ;;  %v4531_v13 = vld [vmem:[#allocation4 + $0x2e0] sm:$0xf0] }
 0x139   :  { %7510 = vst [vmem:[#allocation92_spill] sm:$0xff] %v5629_v8  ;;  %v5633_v34 = vor.u32 %v4823_v47, %v4529_v14  ;;  %v4241_v60 = vld [vmem:[#allocation4 + $0x80] sm:$0xf]  ;;  %v5638_v11 = vor.u32 %v4819_v23, %v4531_v13  ;;  %v4747_v55 = vld [vmem:[#allocation4 + $0x84] sm:$0xf]  ;;  %1442 = vmatpush.bf16.msra.mxu0 %v5629_v8  ;;  %1468 = vmatpush.bf16.msra.mxu2 %v5635_v38 }
 0x13a   :  { %7512 = vst [vmem:[#allocation94_spill] sm:$0xff] %v5635_v38  ;;  %v4751_v57 = vld [vmem:[#allocation4 + $0x9c] sm:$0xf0]  ;;  %v4243_v44 = vld [vmem:[#allocation4 + $0xa0] sm:$0xf0] }
 0x13b   :  { %7511 = vst [vmem:[#allocation93_spill] sm:$0xff] %v5633_v34  ;;  %v4497_v1 = vld [vmem:[#allocation4 + $0x280] sm:$0xf]  ;;  %v4811_v43 = vld [vmem:[#allocation4 + $0x284] sm:$0xf]  ;;  %v5641_v31 = vor.u32 %v4751_v57, %v4241_v60  ;;  %1455 = vmatpush.bf16.msra.mxu1 %v5633_v34  ;;  %v5647_v16 = vor.u32 %v4747_v55, %v4243_v44  ;;  %1481 = vmatpush.bf16.msra.mxu3 %v5638_v11 }
 0x13c   :  { %7513 = vst [vmem:[#allocation95_spill] sm:$0xff] %v5638_v11  ;;  %v4815_v2 = vld [vmem:[#allocation4 + $0x29c] sm:$0xf0]  ;;  %v4499_v4 = vld [vmem:[#allocation4 + $0x2a0] sm:$0xf0] }
 0x13d   :  { %7514 = vst [vmem:[#allocation96_spill] sm:$0xff] %v5641_v31  ;;  %v5645_v47 = vor.u32 %v4815_v2, %v4497_v1  ;;  %v4209_v39 = vld [vmem:[#allocation4 + $0x40] sm:$0xf]  ;;  %v5650_v13 = vor.u32 %v4811_v43, %v4499_v4  ;;  %v4739_v10 = vld [vmem:[#allocation4 + $0x44] sm:$0xf]  ;;  %1443 = vmatpush.bf16.msra.mxu0 %v5641_v31  ;;  %1469 = vmatpush.bf16.msra.mxu2 %v5647_v16 }
 0x13e   :  { %7516 = vst [vmem:[#allocation98_spill] sm:$0xff] %v5647_v16  ;;  %v4743_v14 = vld [vmem:[#allocation4 + $0x5c] sm:$0xf0]  ;;  %v4211_v46 = vld [vmem:[#allocation4 + $0x60] sm:$0xf0] }
 0x13f   :  { %7515 = vst [vmem:[#allocation97_spill] sm:$0xff] %v5645_v47  ;;  %v4465_v23 = vld [vmem:[#allocation4 + $0x240] sm:$0xf]  ;;  %v4803_v60 = vld [vmem:[#allocation4 + $0x244] sm:$0xf]  ;;  %v5653_v33 = vor.u32 %v4743_v14, %v4209_v39  ;;  %1456 = vmatpush.bf16.msra.mxu1 %v5645_v47  ;;  %v5659_v55 = vor.u32 %v4739_v10, %v4211_v46  ;;  %1482 = vmatpush.bf16.msra.mxu3 %v5650_v13 }
 0x140   :  { %7517 = vst [vmem:[#allocation99_spill] sm:$0xff] %v5650_v13  ;;  %v4807_v27 = vld [vmem:[#allocation4 + $0x25c] sm:$0xf0]  ;;  %v4467_v57 = vld [vmem:[#allocation4 + $0x260] sm:$0xf0] }
 0x141   :  { %7518 = vst [vmem:[#allocation100_spill] sm:$0xff] %v5653_v33  ;;  %v4177_v2 = vld [vmem:[#allocation4] sm:$0xf]  ;;  %v5657_v44 = vor.u32 %v4807_v27, %v4465_v23  ;;  %v4731_v21 = vld [vmem:[#allocation4 + $0x4] sm:$0xf]  ;;  %v5662_v35 = vor.u32 %v4803_v60, %v4467_v57  ;;  %1444 = vmatpush.bf16.msra.mxu0 %v5653_v33  ;;  %1470 = vmatpush.bf16.msra.mxu2 %v5659_v55 }
 0x142   :  { %v4735_v1 = vld [vmem:[#allocation4 + $0x1c] sm:$0xf0]  ;;  %7520 = vst [vmem:[#allocation102_spill] sm:$0xff] %v5659_v55  ;;  %v4179_v24 = vld [vmem:[#allocation4 + $0x20] sm:$0xf0] }
 0x143   :  { %7519 = vst [vmem:[#allocation101_spill] sm:$0xff] %v5657_v44  ;;  %v4433_v43 = vld [vmem:[#allocation4 + $0x200] sm:$0xf]  ;;  %v4795_v39 = vld [vmem:[#allocation4 + $0x204] sm:$0xf]  ;;  %v5665_v58 = vor.u32 %v4735_v1, %v4177_v2  ;;  %1457 = vmatpush.bf16.msra.mxu1 %v5657_v44  ;;  %v5671_v60 = vor.u32 %v4731_v21, %v4179_v24  ;;  %1483 = vmatpush.bf16.msra.mxu3 %v5662_v35 }
 0x144   :  { %v4799_v4 = vld [vmem:[#allocation4 + $0x21c] sm:$0xf0]  ;;  %7521 = vst [vmem:[#allocation103_spill] sm:$0xff] %v5662_v35  ;;  %v4435_v14 = vld [vmem:[#allocation4 + $0x220] sm:$0xf0] }
 0x145   :  { %7522 = vst [vmem:[#allocation104_spill] sm:$0xff] %v5665_v58  ;;  %v4856_v27 = vld [vmem:[#allocation4 + $0x3e4] sm:$0xf0]  ;;  %v4788_v46 = vld [vmem:[#allocation4 + $0x1cc] sm:$0xf]  ;;  %v5669_v23 = vor.u32 %v4799_v4, %v4433_v43  ;;  %v5674_v53 = vor.u32 %v4795_v39, %v4435_v14  ;;  %1445 = vmatpush.bf16.msra.mxu0 %v5665_v58  ;;  %v5687_v39 = vpack.c.bf16 %v5445_v54, %v5445_v54 }
 0x146   :  { %v4411_v10 = vld [vmem:[#allocation4 + $0x1e8] sm:$0xf0]  ;;  %7524 = vst [vmem:[#allocation106_spill] sm:$0xff] %v5671_v60  ;;  %v5678_v2 = vor.u32 %v4856_v27, %v4665_v19  ;;  %v4377_v7 = vld [vmem:[#allocation4 + $0x188] sm:$0xf]  ;;  %1471 = vmatpush.bf16.msra.mxu2 %v5671_v60  ;;  %v5693_v19 = vpack.c.bf16 %v5582_v12, %v5582_v12 }
 0x147   :  { %7523 = vst [vmem:[#allocation105_spill] sm:$0xff] %v5669_v23  ;;  %v4852_v57 = vld [vmem:[#allocation4 + $0x3cc] sm:$0xf]  ;;  %v5680_v1 = vor.u32 %v4788_v46, %v4411_v10  ;;  %v4784_v45 = vld [vmem:[#allocation4 + $0x1a4] sm:$0xf0]  ;;  %1458 = vmatpush.bf16.msra.mxu1 %v5669_v23  ;;  %1484 = vmatpush.bf16.msra.mxu3 %v5674_v53 }
 0x148   :  { %v4667_v0 = vld [vmem:[#allocation4 + $0x3e8] sm:$0xf0]  ;;  %7525 = vst [vmem:[#allocation107_spill] sm:$0xff] %v5674_v53  ;;  %v4633_v42 = vld [vmem:[#allocation4 + $0x388] sm:$0xf]  ;;  %1446 = vmatmul.bf16.vlgmr.msra.gmra.mxu0 %v5687_v39 }
 0x149   :  { %7526 = vst [vmem:[#allocation108_spill] sm:$0xff] %v5676_v59  ;;  %v5683_v43 = vor.u32 %v4852_v57, %v4667_v0  ;;  %v4848_v24 = vld [vmem:[#allocation4 + $0x3a4] sm:$0xf0]  ;;  %v4780_v21 = vld [vmem:[#allocation4 + $0x18c] sm:$0xf]  ;;  %1490 = vmatpush.bf16.msrb.mxu0 %v5676_v59  ;;  %v5697_v0 = vor.u32 %v4784_v45, %v4377_v7  ;;  %1472 = vmatmul.bf16.vlgmr.msra.gmra.mxu2 %v5687_v39 }
 0x14a   :  { %7527 = vst [vmem:[#allocation109_spill] sm:$0xff] %v5678_v2  ;;  %v4379_v4 = vld [vmem:[#allocation4 + $0x1a8] sm:$0xf0]  ;;  %1516 = vmatpush.bf16.msrb.mxu2 %v5680_v1  ;;  %v5701_v54 = vor.u32 %v4848_v24, %v4633_v42  ;;  %v4345_v27 = vld [vmem:[#allocation4 + $0x148] sm:$0xf]  ;;  %1485 = vmatmul.bf16.vlgmr.msra.gmra.mxu3 %v5693_v19 }
 0x14b   :  { %7528 = vst [vmem:[#allocation110_spill] sm:$0xff] %v5680_v1  ;;  %v4844_v63 = vld [vmem:[#allocation4 + $0x38c] sm:$0xf]  ;;  %1503 = vmatpush.bf16.msrb.mxu1 %v5678_v2  ;;  %v5703_v14 = vor.u32 %v4780_v21, %v4379_v4  ;;  %v4776_v46 = vld [vmem:[#allocation4 + $0x164] sm:$0xf0]  ;;  %1529 = vmatpush.bf16.msrb.mxu3 %v5683_v43 }
 0x14c   :  { %7529 = vst [vmem:[#allocation111_spill] sm:$0xff] %v5683_v43  ;;  %v4635_v3 = vld [vmem:[#allocation4 + $0x3a8] sm:$0xf0]  ;;  %v4601_v10 = vld [vmem:[#allocation4 + $0x348] sm:$0xf]  ;;  %v5712_v42 = vor.u32 %v4776_v46, %v4345_v27  ;;  %1459 = vmatmul.bf16.vlgmr.msra.gmra.mxu1 %v5693_v19 }
 0x14d   :  { %7530 = vst [vmem:[#allocation112_spill] sm:$0xff] %v5697_v0  ;;  %v5706_v12 = vor.u32 %v4844_v63, %v4635_v3  ;;  %v4840_v57 = vld [vmem:[#allocation4 + $0x364] sm:$0xf0]  ;;  %v4772_v25 = vld [vmem:[#allocation4 + $0x14c] sm:$0xf]  ;;  %1491 = vmatpush.bf16.msrb.mxu0 %v5697_v0 }
 0x14e   :  { %7531 = vst [vmem:[#allocation113_spill] sm:$0xff] %v5701_v54  ;;  %v4347_v9 = vld [vmem:[#allocation4 + $0x168] sm:$0xf0]  ;;  %1517 = vmatpush.bf16.msrb.mxu2 %v5703_v14  ;;  %v5717_v24 = vor.u32 %v4840_v57, %v4601_v10  ;;  %v4313_v4 = vld [vmem:[#allocation4 + $0x108] sm:$0xf] }
 0x14f   :  { %7532 = vst [vmem:[#allocation114_spill] sm:$0xff] %v5703_v14  ;;  %v4836_v45 = vld [vmem:[#allocation4 + $0x34c] sm:$0xf]  ;;  %1504 = vmatpush.bf16.msrb.mxu1 %v5701_v54  ;;  %v5719_v21 = vor.u32 %v4772_v25, %v4347_v9  ;;  %v4768_v63 = vld [vmem:[#allocation4 + $0x124] sm:$0xf0]  ;;  %1530 = vmatpush.bf16.msrb.mxu3 %v5706_v12 }
 0x150   :  { %7533 = vst [vmem:[#allocation115_spill] sm:$0xff] %v5706_v12  ;;  %v4603_v7 = vld [vmem:[#allocation4 + $0x368] sm:$0xf0]  ;;  %v4569_v3 = vld [vmem:[#allocation4 + $0x308] sm:$0xf]  ;;  %v5725_v49 = vor.u32 %v4768_v63, %v4313_v4 }
 0x151   :  { %7534 = vst [vmem:[#allocation116_spill] sm:$0xff] %v5712_v42  ;;  %v5722_v5 = vor.u32 %v4836_v45, %v4603_v7  ;;  %v4832_v51 = vld [vmem:[#allocation4 + $0x324] sm:$0xf0]  ;;  %v4764_v27 = vld [vmem:[#allocation4 + $0x10c] sm:$0xf]  ;;  %1492 = vmatpush.bf16.msrb.mxu0 %v5712_v42 }
 0x152   :  { %7535 = vst [vmem:[#allocation117_spill] sm:$0xff] %v5717_v24  ;;  %v4315_v46 = vld [vmem:[#allocation4 + $0x128] sm:$0xf0]  ;;  %1518 = vmatpush.bf16.msrb.mxu2 %v5719_v21  ;;  %v5729_v9 = vor.u32 %v4832_v51, %v4569_v3  ;;  %v4281_v10 = vld [vmem:[#allocation4 + $0xc8] sm:$0xf] }
 0x153   :  { %7536 = vst [vmem:[#allocation118_spill] sm:$0xff] %v5719_v21  ;;  %v4828_v36 = vld [vmem:[#allocation4 + $0x30c] sm:$0xf]  ;;  %1505 = vmatpush.bf16.msrb.mxu1 %v5717_v24  ;;  %v5731_v25 = vor.u32 %v4764_v27, %v4315_v46  ;;  %v4760_v57 = vld [vmem:[#allocation4 + $0xe4] sm:$0xf0]  ;;  %1531 = vmatpush.bf16.msrb.mxu3 %v5722_v5 }
 0x154   :  { %7537 = vst [vmem:[#allocation119_spill] sm:$0xff] %v5722_v5  ;;  %v4571_v30 = vld [vmem:[#allocation4 + $0x328] sm:$0xf0]  ;;  %v4537_v45 = vld [vmem:[#allocation4 + $0x2c8] sm:$0xf]  ;;  %v5737_v24 = vor.u32 %v4760_v57, %v4281_v10 }
 0x155   :  { %7538 = vst [vmem:[#allocation120_spill] sm:$0xff] %v5725_v49  ;;  %v5734_v7 = vor.u32 %v4828_v36, %v4571_v30  ;;  %v4824_v40 = vld [vmem:[#allocation4 + $0x2e4] sm:$0xf0]  ;;  %v4756_v32 = vld [vmem:[#allocation4 + $0xcc] sm:$0xf]  ;;  %1493 = vmatpush.bf16.msrb.mxu0 %v5725_v49 }
 0x156   :  { %7539 = vst [vmem:[#allocation121_spill] sm:$0xff] %v5729_v9  ;;  %v4283_v29 = vld [vmem:[#allocation4 + $0xe8] sm:$0xf0]  ;;  %1519 = vmatpush.bf16.msrb.mxu2 %v5731_v25  ;;  %v5741_v51 = vor.u32 %v4824_v40, %v4537_v45  ;;  %v4249_v27 = vld [vmem:[#allocation4 + $0x88] sm:$0xf] }
 0x157   :  { %7540 = vst [vmem:[#allocation122_spill] sm:$0xff] %v5731_v25  ;;  %v4820_v4 = vld [vmem:[#allocation4 + $0x2cc] sm:$0xf]  ;;  %1506 = vmatpush.bf16.msrb.mxu1 %v5729_v9  ;;  %v5743_v3 = vor.u32 %v4756_v32, %v4283_v29  ;;  %v4752_v30 = vld [vmem:[#allocation4 + $0xa4] sm:$0xf0]  ;;  %1532 = vmatpush.bf16.msrb.mxu3 %v5734_v7 }
 0x158   :  { %7541 = vst [vmem:[#allocation123_spill] sm:$0xff] %v5734_v7  ;;  %v4539_v63 = vld [vmem:[#allocation4 + $0x2e8] sm:$0xf0]  ;;  %v4505_v36 = vld [vmem:[#allocation4 + $0x288] sm:$0xf]  ;;  %v5749_v9 = vor.u32 %v4752_v30, %v4249_v27 }
 0x159   :  { %7542 = vst [vmem:[#allocation124_spill] sm:$0xff] %v5737_v24  ;;  %v5746_v46 = vor.u32 %v4820_v4, %v4539_v63  ;;  %v4816_v5 = vld [vmem:[#allocation4 + $0x2a4] sm:$0xf0]  ;;  %v4748_v21 = vld [vmem:[#allocation4 + $0x8c] sm:$0xf]  ;;  %1494 = vmatpush.bf16.msrb.mxu0 %v5737_v24 }
 0x15a   :  { %7543 = vst [vmem:[#allocation125_spill] sm:$0xff] %v5741_v51  ;;  %v4251_v49 = vld [vmem:[#allocation4 + $0xa8] sm:$0xf0]  ;;  %1520 = vmatpush.bf16.msrb.mxu2 %v5743_v3  ;;  %v5753_v29 = vor.u32 %v4816_v5, %v4505_v36  ;;  %v4217_v40 = vld [vmem:[#allocation4 + $0x48] sm:$0xf] }
 0x15b   :  { %7544 = vst [vmem:[#allocation126_spill] sm:$0xff] %v5743_v3  ;;  %v4812_v10 = vld [vmem:[#allocation4 + $0x28c] sm:$0xf]  ;;  %1507 = vmatpush.bf16.msrb.mxu1 %v5741_v51  ;;  %v5755_v32 = vor.u32 %v4748_v21, %v4251_v49  ;;  %v4744_v45 = vld [vmem:[#allocation4 + $0x64] sm:$0xf0]  ;;  %1533 = vmatpush.bf16.msrb.mxu3 %v5746_v46 }
 0x15c   :  { %7545 = vst [vmem:[#allocation127_spill] sm:$0xff] %v5746_v46  ;;  %v4507_v57 = vld [vmem:[#allocation4 + $0x2a8] sm:$0xf0]  ;;  %v4473_v4 = vld [vmem:[#allocation4 + $0x248] sm:$0xf]  ;;  %v5761_v51 = vor.u32 %v4744_v45, %v4217_v40 }
 0x15d   :  { %7546 = vst [vmem:[#allocation128_spill] sm:$0xff] %v5749_v9  ;;  %v5758_v63 = vor.u32 %v4812_v10, %v4507_v57  ;;  %v4808_v7 = vld [vmem:[#allocation4 + $0x264] sm:$0xf0]  ;;  %v4740_v25 = vld [vmem:[#allocation4 + $0x4c] sm:$0xf]  ;;  %1495 = vmatpush.bf16.msrb.mxu0 %v5749_v9 }
 0x15e   :  { %7547 = vst [vmem:[#allocation129_spill] sm:$0xff] %v5753_v29  ;;  %v4219_v24 = vld [vmem:[#allocation4 + $0x68] sm:$0xf0]  ;;  %v4185_v5 = vld [vmem:[#allocation4 + $0x8] sm:$0xf]  ;;  %1521 = vmatpush.bf16.msrb.mxu2 %v5755_v32  ;;  %v5765_v49 = vor.u32 %v4808_v7, %v4473_v4 }
 0x15f   :  { %7548 = vst [vmem:[#allocation130_spill] sm:$0xff] %v5755_v32  ;;  %v4804_v27 = vld [vmem:[#allocation4 + $0x24c] sm:$0xf]  ;;  %v4736_v36 = vld [vmem:[#allocation4 + $0x24] sm:$0xf0]  ;;  %1508 = vmatpush.bf16.msrb.mxu1 %v5753_v29  ;;  %v5767_v21 = vor.u32 %v4740_v25, %v4219_v24  ;;  %1534 = vmatpush.bf16.msrb.mxu3 %v5758_v63 }
 0x160   :  { %7549 = vst [vmem:[#allocation131_spill] sm:$0xff] %v5758_v63  ;;  %v4475_v30 = vld [vmem:[#allocation4 + $0x268] sm:$0xf0]  ;;  %v4441_v10 = vld [vmem:[#allocation4 + $0x208] sm:$0xf]  ;;  %v5773_v29 = vor.u32 %v4736_v36, %v4185_v5 }
 0x161   :  { %7550 = vst [vmem:[#allocation132_spill] sm:$0xff] %v5761_v51  ;;  %v4800_v57 = vld [vmem:[#allocation4 + $0x224] sm:$0xf0]  ;;  %v4732_v46 = vld [vmem:[#allocation4 + $0xc] sm:$0xf]  ;;  %v5770_v3 = vor.u32 %v4804_v27, %v4475_v30  ;;  %1496 = vmatpush.bf16.msrb.mxu0 %v5761_v51 }
 0x162   :  { %7551 = vst [vmem:[#allocation133_spill] sm:$0xff] %v5765_v49  ;;  %v4187_v9 = vld [vmem:[#allocation4 + $0x28] sm:$0xf0]  ;;  %v4417_v12 = vld [vmem:[#allocation4 + $0x1d0] sm:$0xf]  ;;  %1522 = vmatpush.bf16.msrb.mxu2 %v5767_v21  ;;  %v5777_v4 = vor.u32 %v4800_v57, %v4441_v10 }
 0x163   :  { %7552 = vst [vmem:[#allocation134_spill] sm:$0xff] %v5767_v21  ;;  %v4796_v40 = vld [vmem:[#allocation4 + $0x20c] sm:$0xf]  ;;  %v4793_v42 = vld [vmem:[#allocation4 + $0x1ec] sm:$0xf0]  ;;  %1509 = vmatpush.bf16.msrb.mxu1 %v5765_v49  ;;  %v5779_v27 = vor.u32 %v4732_v46, %v4187_v9  ;;  %1535 = vmatpush.bf16.msrb.mxu3 %v5770_v3 }
 0x164   :  { %7553 = vst [vmem:[#allocation135_spill] sm:$0xff] %v5770_v3  ;;  %v4443_v45 = vld [vmem:[#allocation4 + $0x228] sm:$0xf0]  ;;  %v4673_v54 = vld [vmem:[#allocation4 + $0x3d0] sm:$0xf]  ;;  %v5784_v51 = vor.u32 %v4793_v42, %v4417_v12 }
 0x165   :  { %7554 = vst [vmem:[#allocation136_spill] sm:$0xff] %v5773_v29  ;;  %v4857_v7 = vld [vmem:[#allocation4 + $0x3ec] sm:$0xf0]  ;;  %v4789_v24 = vld [vmem:[#allocation4 + $0x1d4] sm:$0xf]  ;;  %v5782_v32 = vor.u32 %v4796_v40, %v4443_v45  ;;  %1497 = vmatpush.bf16.msrb.mxu0 %v5773_v29 }
 0x166   :  { %v4419_v25 = vld [vmem:[#allocation4 + $0x1f0] sm:$0xf0]  ;;  %7555 = vst [vmem:[#allocation137_spill] sm:$0xff] %v5777_v4  ;;  %v5786_v5 = vor.u32 %v4857_v7, %v4673_v54  ;;  %v4385_v14 = vld [vmem:[#allocation4 + $0x190] sm:$0xf]  ;;  %1523 = vmatpush.bf16.msrb.mxu2 %v5779_v27 }
 0x167   :  { %7556 = vst [vmem:[#allocation138_spill] sm:$0xff] %v5779_v27  ;;  %v4853_v30 = vld [vmem:[#allocation4 + $0x3d4] sm:$0xf]  ;;  %v5788_v36 = vor.u32 %v4789_v24, %v4419_v25  ;;  %v4785_v49 = vld [vmem:[#allocation4 + $0x1ac] sm:$0xf0]  ;;  %1510 = vmatpush.bf16.msrb.mxu1 %v5777_v4  ;;  %1536 = vmatpush.bf16.msrb.mxu3 %v5782_v32 }
 0x168   :  { %v4675_v63 = vld [vmem:[#allocation4 + $0x3f0] sm:$0xf0]  ;;  %7557 = vst [vmem:[#allocation139_spill] sm:$0xff] %v5782_v32  ;;  %v4641_v43 = vld [vmem:[#allocation4 + $0x390] sm:$0xf]  ;;  %v5797_v54 = vor.u32 %v4785_v49, %v4385_v14  ;;  %1498 = vmatmul.bf16.vlgmr.msrb.gmra.mxu0 %v5687_v39 }
 0x169   :  { %7558 = vst [vmem:[#allocation140_spill] sm:$0xff] %v5784_v51  ;;  %v5791_v10 = vor.u32 %v4853_v30, %v4675_v63  ;;  %v4849_v9 = vld [vmem:[#allocation4 + $0x3ac] sm:$0xf0]  ;;  %v4781_v46 = vld [vmem:[#allocation4 + $0x194] sm:$0xf]  ;;  %1542 = vmatpush.bf16.msra.mxu0 %v5784_v51  ;;  %1524 = vmatmul.bf16.vlgmr.msrb.gmra.mxu2 %v5687_v39 }
 0x16a   :  { %7559 = vst [vmem:[#allocation141_spill] sm:$0xff] %v5786_v5  ;;  %v4387_v57 = vld [vmem:[#allocation4 + $0x1b0] sm:$0xf0]  ;;  %1568 = vmatpush.bf16.msra.mxu2 %v5788_v36  ;;  %v5801_v63 = vor.u32 %v4849_v9, %v4641_v43  ;;  %v4353_v45 = vld [vmem:[#allocation4 + $0x150] sm:$0xf]  ;;  %1537 = vmatmul.bf16.vlgmr.msrb.gmra.mxu3 %v5693_v19 }
 0x16b   :  { %7560 = vst [vmem:[#allocation142_spill] sm:$0xff] %v5788_v36  ;;  %v4845_v12 = vld [vmem:[#allocation4 + $0x394] sm:$0xf]  ;;  %1555 = vmatpush.bf16.msra.mxu1 %v5786_v5  ;;  %v5803_v40 = vor.u32 %v4781_v46, %v4387_v57  ;;  %v4777_v7 = vld [vmem:[#allocation4 + $0x16c] sm:$0xf0]  ;;  %1581 = vmatpush.bf16.msra.mxu3 %v5791_v10 }
 0x16c   :  { %7561 = vst [vmem:[#allocation143_spill] sm:$0xff] %v5791_v10  ;;  %v4643_v42 = vld [vmem:[#allocation4 + $0x3b0] sm:$0xf0]  ;;  %v4609_v24 = vld [vmem:[#allocation4 + $0x350] sm:$0xf]  ;;  %v5812_v43 = vor.u32 %v4777_v7, %v4353_v45  ;;  %1511 = vmatmul.bf16.vlgmr.msrb.gmra.mxu1 %v5693_v19 }
 0x16d   :  { %7562 = vst [vmem:[#allocation144_spill] sm:$0xff] %v5797_v54  ;;  %v5807_v25 = vor.u32 %v4845_v12, %v4643_v42  ;;  %v4841_v30 = vld [vmem:[#allocation4 + $0x36c] sm:$0xf0]  ;;  %v4773_v14 = vld [vmem:[#allocation4 + $0x154] sm:$0xf]  ;;  %1543 = vmatpush.bf16.msra.mxu0 %v5797_v54 }
 0x16e   :  { %7563 = vst [vmem:[#allocation145_spill] sm:$0xff] %v5801_v63  ;;  %v4355_v49 = vld [vmem:[#allocation4 + $0x170] sm:$0xf0]  ;;  %1569 = vmatpush.bf16.msra.mxu2 %v5803_v40  ;;  %v5817_v9 = vor.u32 %v4841_v30, %v4609_v24  ;;  %v4321_v57 = vld [vmem:[#allocation4 + $0x110] sm:$0xf] }
 0x16f   :  { %7564 = vst [vmem:[#allocation146_spill] sm:$0xff] %v5803_v40  ;;  %v4837_v5 = vld [vmem:[#allocation4 + $0x354] sm:$0xf]  ;;  %1556 = vmatpush.bf16.msra.mxu1 %v5801_v63  ;;  %v5819_v46 = vor.u32 %v4773_v14, %v4355_v49  ;;  %v4769_v12 = vld [vmem:[#allocation4 + $0x12c] sm:$0xf0]  ;;  %1582 = vmatpush.bf16.msra.mxu3 %v5807_v25 }
 0x170   :  { %7565 = vst [vmem:[#allocation147_spill] sm:$0xff] %v5807_v25  ;;  %v4611_v36 = vld [vmem:[#allocation4 + $0x370] sm:$0xf0]  ;;  %v4577_v42 = vld [vmem:[#allocation4 + $0x310] sm:$0xf]  ;;  %v5825_v63 = vor.u32 %v4769_v12, %v4321_v57 }
 0x171   :  { %7566 = vst [vmem:[#allocation148_spill] sm:$0xff] %v5812_v43  ;;  %v5822_v10 = vor.u32 %v4837_v5, %v4611_v36  ;;  %v4833_v54 = vld [vmem:[#allocation4 + $0x32c] sm:$0xf0]  ;;  %v4765_v45 = vld [vmem:[#allocation4 + $0x114] sm:$0xf]  ;;  %1544 = vmatpush.bf16.msra.mxu0 %v5812_v43 }
 0x172   :  { %7567 = vst [vmem:[#allocation149_spill] sm:$0xff] %v5817_v9  ;;  %v4323_v7 = vld [vmem:[#allocation4 + $0x130] sm:$0xf0]  ;;  %1570 = vmatpush.bf16.msra.mxu2 %v5819_v46  ;;  %v5829_v24 = vor.u32 %v4833_v54, %v4577_v42  ;;  %v4289_v14 = vld [vmem:[#allocation4 + $0xd0] sm:$0xf] }
 0x173   :  { %7568 = vst [vmem:[#allocation150_spill] sm:$0xff] %v5819_v46  ;;  %v4829_v51 = vld [vmem:[#allocation4 + $0x314] sm:$0xf]  ;;  %1557 = vmatpush.bf16.msra.mxu1 %v5817_v9  ;;  %v5831_v30 = vor.u32 %v4765_v45, %v4323_v7  ;;  %v4761_v5 = vld [vmem:[#allocation4 + $0xec] sm:$0xf0]  ;;  %1583 = vmatpush.bf16.msra.mxu3 %v5822_v10 }
 0x174   :  { %7569 = vst [vmem:[#allocation151_spill] sm:$0xff] %v5822_v10  ;;  %v4579_v32 = vld [vmem:[#allocation4 + $0x330] sm:$0xf0]  ;;  %v4545_v36 = vld [vmem:[#allocation4 + $0x2d0] sm:$0xf]  ;;  %v5837_v9 = vor.u32 %v4761_v5, %v4289_v14 }
 0x175   :  { %7570 = vst [vmem:[#allocation152_spill] sm:$0xff] %v5825_v63  ;;  %v5834_v49 = vor.u32 %v4829_v51, %v4579_v32  ;;  %v4825_v25 = vld [vmem:[#allocation4 + $0x2ec] sm:$0xf0]  ;;  %v4757_v40 = vld [vmem:[#allocation4 + $0xd4] sm:$0xf]  ;;  %1545 = vmatpush.bf16.msra.mxu0 %v5825_v63 }
 0x176   :  { %7571 = vst [vmem:[#allocation153_spill] sm:$0xff] %v5829_v24  ;;  %v4291_v43 = vld [vmem:[#allocation4 + $0xf0] sm:$0xf0]  ;;  %1571 = vmatpush.bf16.msra.mxu2 %v5831_v30  ;;  %v5841_v54 = vor.u32 %v4825_v25, %v4545_v36  ;;  %v4257_v45 = vld [vmem:[#allocation4 + $0x90] sm:$0xf] }
 0x177   :  { %7572 = vst [vmem:[#allocation154_spill] sm:$0xff] %v5831_v30  ;;  %v4821_v57 = vld [vmem:[#allocation4 + $0x2d4] sm:$0xf]  ;;  %1558 = vmatpush.bf16.msra.mxu1 %v5829_v24  ;;  %v5843_v42 = vor.u32 %v4757_v40, %v4291_v43  ;;  %v4753_v51 = vld [vmem:[#allocation4 + $0xac] sm:$0xf0]  ;;  %1584 = vmatpush.bf16.msra.mxu3 %v5834_v49 }
 0x178   :  { %7573 = vst [vmem:[#allocation155_spill] sm:$0xff] %v5834_v49  ;;  %v4547_v12 = vld [vmem:[#allocation4 + $0x2f0] sm:$0xf0]  ;;  %v4513_v32 = vld [vmem:[#allocation4 + $0x290] sm:$0xf]  ;;  %v5849_v24 = vor.u32 %v4753_v51, %v4257_v45 }
 0x179   :  { %7574 = vst [vmem:[#allocation156_spill] sm:$0xff] %v5837_v9  ;;  %v5846_v7 = vor.u32 %v4821_v57, %v4547_v12  ;;  %v4817_v10 = vld [vmem:[#allocation4 + $0x2ac] sm:$0xf0]  ;;  %v4749_v46 = vld [vmem:[#allocation4 + $0x94] sm:$0xf]  ;;  %1546 = vmatpush.bf16.msra.mxu0 %v5837_v9 }
 0x17a   :  { %7575 = vst [vmem:[#allocation157_spill] sm:$0xff] %v5841_v54  ;;  %v4259_v63 = vld [vmem:[#allocation4 + $0xb0] sm:$0xf0]  ;;  %1572 = vmatpush.bf16.msra.mxu2 %v5843_v42  ;;  %v5853_v40 = vor.u32 %v4817_v10, %v4513_v32  ;;  %v4225_v43 = vld [vmem:[#allocation4 + $0x50] sm:$0xf] }
 0x17b   :  { %7576 = vst [vmem:[#allocation158_spill] sm:$0xff] %v5843_v42  ;;  %v4813_v14 = vld [vmem:[#allocation4 + $0x294] sm:$0xf]  ;;  %1559 = vmatpush.bf16.msra.mxu1 %v5841_v54  ;;  %v5855_v25 = vor.u32 %v4749_v46, %v4259_v63  ;;  %v4745_v36 = vld [vmem:[#allocation4 + $0x6c] sm:$0xf0]  ;;  %1585 = vmatpush.bf16.msra.mxu3 %v5846_v7 }
 0x17c   :  { %7577 = vst [vmem:[#allocation159_spill] sm:$0xff] %v5846_v7  ;;  %v4515_v5 = vld [vmem:[#allocation4 + $0x2b0] sm:$0xf0]  ;;  %v4481_v57 = vld [vmem:[#allocation4 + $0x250] sm:$0xf]  ;;  %v5861_v54 = vor.u32 %v4745_v36, %v4225_v43 }
 0x17d   :  { %7578 = vst [vmem:[#allocation160_spill] sm:$0xff] %v5849_v24  ;;  %v5858_v12 = vor.u32 %v4813_v14, %v4515_v5  ;;  %v4809_v49 = vld [vmem:[#allocation4 + $0x26c] sm:$0xf0]  ;;  %v4741_v30 = vld [vmem:[#allocation4 + $0x54] sm:$0xf]  ;;  %1547 = vmatpush.bf16.msra.mxu0 %v5849_v24 }
 0x17e   :  { %7579 = vst [vmem:[#allocation161_spill] sm:$0xff] %v5853_v40  ;;  %v4227_v9 = vld [vmem:[#allocation4 + $0x70] sm:$0xf0]  ;;  %v4193_v10 = vld [vmem:[#allocation4 + $0x10] sm:$0xf]  ;;  %1573 = vmatpush.bf16.msra.mxu2 %v5855_v25  ;;  %v5865_v63 = vor.u32 %v4809_v49, %v4481_v57 }
 0x17f   :  { %7580 = vst [vmem:[#allocation162_spill] sm:$0xff] %v5855_v25  ;;  %v4805_v45 = vld [vmem:[#allocation4 + $0x254] sm:$0xf]  ;;  %v4737_v32 = vld [vmem:[#allocation4 + $0x2c] sm:$0xf0]  ;;  %1560 = vmatpush.bf16.msra.mxu1 %v5853_v40  ;;  %v5867_v46 = vor.u32 %v4741_v30, %v4227_v9  ;;  %1586 = vmatpush.bf16.msra.mxu3 %v5858_v12 }
 0x180   :  { %7581 = vst [vmem:[#allocation163_spill] sm:$0xff] %v5858_v12  ;;  %v4483_v51 = vld [vmem:[#allocation4 + $0x270] sm:$0xf0]  ;;  %v4449_v14 = vld [vmem:[#allocation4 + $0x210] sm:$0xf]  ;;  %v5873_v40 = vor.u32 %v4737_v32, %v4193_v10 }
 0x181   :  { %7582 = vst [vmem:[#allocation164_spill] sm:$0xff] %v5861_v54  ;;  %v4801_v5 = vld [vmem:[#allocation4 + $0x22c] sm:$0xf0]  ;;  %v4733_v7 = vld [vmem:[#allocation4 + $0x14] sm:$0xf]  ;;  %v5870_v42 = vor.u32 %v4805_v45, %v4483_v51  ;;  %1548 = vmatpush.bf16.msra.mxu0 %v5861_v54 }
 0x182   :  { %7583 = vst [vmem:[#allocation165_spill] sm:$0xff] %v5865_v63  ;;  %v4195_v24 = vld [vmem:[#allocation4 + $0x30] sm:$0xf0]  ;;  %v4425_v4 = vld [vmem:[#allocation4 + $0x1d8] sm:$0xf]  ;;  %1574 = vmatpush.bf16.msra.mxu2 %v5867_v46  ;;  %v5877_v57 = vor.u32 %v4801_v5, %v4449_v14 }
 0x183   :  { %7584 = vst [vmem:[#allocation166_spill] sm:$0xff] %v5870_v42  ;;  %v4797_v43 = vld [vmem:[#allocation4 + $0x214] sm:$0xf]  ;;  %v4794_v27 = vld [vmem:[#allocation4 + $0x1f4] sm:$0xf0]  ;;  %1561 = vmatpush.bf16.msra.mxu1 %v5865_v63  ;;  %v5879_v45 = vor.u32 %v4733_v7, %v4195_v24  ;;  %1587 = vmatpush.bf16.msra.mxu3 %v5870_v42 }
 0x184   :  { %v4451_v36 = vld [vmem:[#allocation4 + $0x230] sm:$0xf0]  ;;  %v4681_v3 = vld [vmem:[#allocation4 + $0x3d8] sm:$0xf]  ;;  %v4790_v9 = vld [vmem:[#allocation4 + $0x1dc] sm:$0xf]  ;;  %v5884_v54 = vor.u32 %v4794_v27, %v4425_v4 }
 0x185   :  { %v4858_v49 = vld [vmem:[#allocation4 + $0x3f4] sm:$0xf0]  ;;  %v4427_v30 = vld [vmem:[#allocation4 + $0x1f8] sm:$0xf0]  ;;  %7585 = vst [vmem:[#allocation167_spill] sm:$0xff] %v5877_v57  ;;  %v5882_v25 = vor.u32 %v4797_v43, %v4451_v36  ;;  %1549 = vmatpush.bf16.msra.mxu0 %v5873_v40 }
 0x186   :  { %v4854_v51 = vld [vmem:[#allocation4 + $0x3dc] sm:$0xf]  ;;  %v5886_v10 = vor.u32 %v4858_v49, %v4681_v3  ;;  %v5888_v32 = vor.u32 %v4790_v9, %v4427_v30  ;;  %v4393_v29 = vld [vmem:[#allocation4 + $0x198] sm:$0xf]  ;;  %1575 = vmatpush.bf16.msra.mxu2 %v5879_v45 }
 0x187   :  { %v4683_v12 = vld [vmem:[#allocation4 + $0x3f8] sm:$0xf0]  ;;  %7586 = vst [vmem:[#allocation168_spill] sm:$0xff] %v5882_v25  ;;  %v4786_v63 = vld [vmem:[#allocation4 + $0x1b4] sm:$0xf0]  ;;  %1562 = vmatpush.bf16.msra.mxu1 %v5877_v57  ;;  %1588 = vmatpush.bf16.msra.mxu3 %v5882_v25 }
 0x188   :  { %7587 = vst [vmem:[#allocation169_spill] sm:$0xff] %v5886_v10  ;;  %v4649_v21 = vld [vmem:[#allocation4 + $0x398] sm:$0xf]  ;;  %v5891_v14 = vor.u32 %v4854_v51, %v4683_v12  ;;  %v4782_v7 = vld [vmem:[#allocation4 + $0x19c] sm:$0xf]  ;;  %v5897_v3 = vor.u32 %v4786_v63, %v4393_v29  ;;  %1550 = vmatmul.bf16.vlgmr.msra.gmra.mxu0 %v5687_v39 }
 0x189   :  { %v4850_v24 = vld [vmem:[#allocation4 + $0x3b4] sm:$0xf0]  ;;  %v4395_v5 = vld [vmem:[#allocation4 + $0x1b8] sm:$0xf0]  ;;  %1594 = vmatpush.bf16.msrb.mxu0 %v5884_v54  ;;  %1576 = vmatmul.bf16.vlgmr.msra.gmra.mxu2 %v5687_v39 }
 0x18a   :  { %7588 = vst [vmem:[#allocation170_spill] sm:$0xff] %v5891_v14  ;;  %v4846_v4 = vld [vmem:[#allocation4 + $0x39c] sm:$0xf]  ;;  %1620 = vmatpush.bf16.msrb.mxu2 %v5888_v32  ;;  %v5901_v12 = vor.u32 %v4850_v24, %v4649_v21  ;;  %v5903_v43 = vor.u32 %v4782_v7, %v4395_v5  ;;  %v4361_v36 = vld [vmem:[#allocation4 + $0x158] sm:$0xf]  ;;  %1589 = vmatmul.bf16.vlgmr.msra.gmra.mxu3 %v5693_v19 }
 0x18b   :  { %v4651_v27 = vld [vmem:[#allocation4 + $0x3b8] sm:$0xf0]  ;;  %7589 = vst [vmem:[#allocation171_spill] sm:$0xff] %v5897_v3  ;;  %1607 = vmatpush.bf16.msrb.mxu1 %v5886_v10  ;;  %v4778_v49 = vld [vmem:[#allocation4 + $0x174] sm:$0xf0]  ;;  %1633 = vmatpush.bf16.msrb.mxu3 %v5891_v14 }
 0x18c   :  { %7590 = vst [vmem:[#allocation172_spill] sm:$0xff] %v5901_v12  ;;  %v4617_v9 = vld [vmem:[#allocation4 + $0x358] sm:$0xf]  ;;  %v5907_v30 = vor.u32 %v4846_v4, %v4651_v27  ;;  %v4774_v29 = vld [vmem:[#allocation4 + $0x15c] sm:$0xf]  ;;  %v5912_v21 = vor.u32 %v4778_v49, %v4361_v36  ;;  %1563 = vmatmul.bf16.vlgmr.msra.gmra.mxu1 %v5693_v19 }
 0x18d   :  { %7591 = vst [vmem:[#allocation173_spill] sm:$0xff] %v5903_v43  ;;  %v4842_v51 = vld [vmem:[#allocation4 + $0x374] sm:$0xf0]  ;;  %v4363_v63 = vld [vmem:[#allocation4 + $0x178] sm:$0xf0]  ;;  %1595 = vmatpush.bf16.msrb.mxu0 %v5897_v3 }
 0x18e   :  { %7592 = vst [vmem:[#allocation174_spill] sm:$0xff] %v5907_v30  ;;  %v4838_v10 = vld [vmem:[#allocation4 + $0x35c] sm:$0xf]  ;;  %1621 = vmatpush.bf16.msrb.mxu2 %v5903_v43  ;;  %v5917_v24 = vor.u32 %v4842_v51, %v4617_v9  ;;  %v5919_v7 = vor.u32 %v4774_v29, %v4363_v63  ;;  %v4329_v5 = vld [vmem:[#allocation4 + $0x118] sm:$0xf] }
 0x18f   :  { %v4619_v25 = vld [vmem:[#allocation4 + $0x378] sm:$0xf0]  ;;  %7593 = vst [vmem:[#allocation175_spill] sm:$0xff] %v5912_v21  ;;  %1608 = vmatpush.bf16.msrb.mxu1 %v5901_v12  ;;  %v4770_v4 = vld [vmem:[#allocation4 + $0x134] sm:$0xf0]  ;;  %1634 = vmatpush.bf16.msrb.mxu3 %v5907_v30 }
 0x190   :  { %7594 = vst [vmem:[#allocation176_spill] sm:$0xff] %v5917_v24  ;;  %v4585_v27 = vld [vmem:[#allocation4 + $0x318] sm:$0xf]  ;;  %v5922_v14 = vor.u32 %v4838_v10, %v4619_v25  ;;  %v4766_v36 = vld [vmem:[#allocation4 + $0x11c] sm:$0xf]  ;;  %v5925_v12 = vor.u32 %v4770_v4, %v4329_v5 }
 0x191   :  { %7595 = vst [vmem:[#allocation177_spill] sm:$0xff] %v5919_v7  ;;  %v4834_v57 = vld [vmem:[#allocation4 + $0x334] sm:$0xf0]  ;;  %v4331_v49 = vld [vmem:[#allocation4 + $0x138] sm:$0xf0]  ;;  %1596 = vmatpush.bf16.msrb.mxu0 %v5912_v21 }
 0x192   :  { %7596 = vst [vmem:[#allocation178_spill] sm:$0xff] %v5922_v14  ;;  %v4830_v42 = vld [vmem:[#allocation4 + $0x31c] sm:$0xf]  ;;  %1622 = vmatpush.bf16.msrb.mxu2 %v5919_v7  ;;  %v5929_v9 = vor.u32 %v4834_v57, %v4585_v27  ;;  %v5931_v51 = vor.u32 %v4766_v36, %v4331_v49  ;;  %v4297_v29 = vld [vmem:[#allocation4 + $0xd8] sm:$0xf] }
 0x193   :  { %v4587_v3 = vld [vmem:[#allocation4 + $0x338] sm:$0xf0]  ;;  %7597 = vst [vmem:[#allocation179_spill] sm:$0xff] %v5925_v12  ;;  %1609 = vmatpush.bf16.msrb.mxu1 %v5917_v24  ;;  %v4762_v25 = vld [vmem:[#allocation4 + $0xf4] sm:$0xf0]  ;;  %1635 = vmatpush.bf16.msrb.mxu3 %v5922_v14 }
 0x194   :  { %7598 = vst [vmem:[#allocation180_spill] sm:$0xff] %v5929_v9  ;;  %v4553_v10 = vld [vmem:[#allocation4 + $0x2d8] sm:$0xf]  ;;  %v5934_v63 = vor.u32 %v4830_v42, %v4587_v3  ;;  %v4758_v43 = vld [vmem:[#allocation4 + $0xdc] sm:$0xf]  ;;  %v5937_v24 = vor.u32 %v4762_v25, %v4297_v29 }
 0x195   :  { %7599 = vst [vmem:[#allocation181_spill] sm:$0xff] %v5931_v51  ;;  %v4826_v30 = vld [vmem:[#allocation4 + $0x2f4] sm:$0xf0]  ;;  %v4299_v21 = vld [vmem:[#allocation4 + $0xf8] sm:$0xf0]  ;;  %1597 = vmatpush.bf16.msrb.mxu0 %v5925_v12 }
 0x196   :  { %7600 = vst [vmem:[#allocation182_spill] sm:$0xff] %v5934_v63  ;;  %v4822_v5 = vld [vmem:[#allocation4 + $0x2dc] sm:$0xf]  ;;  %1623 = vmatpush.bf16.msrb.mxu2 %v5931_v51  ;;  %v5941_v57 = vor.u32 %v4826_v30, %v4553_v10  ;;  %v5943_v27 = vor.u32 %v4758_v43, %v4299_v21  ;;  %v4265_v36 = vld [vmem:[#allocation4 + $0x98] sm:$0xf] }
 0x197   :  { %v4555_v4 = vld [vmem:[#allocation4 + $0x2f8] sm:$0xf0]  ;;  %7601 = vst [vmem:[#allocation183_spill] sm:$0xff] %v5937_v24  ;;  %1610 = vmatpush.bf16.msrb.mxu1 %v5929_v9  ;;  %v4754_v42 = vld [vmem:[#allocation4 + $0xb4] sm:$0xf0]  ;;  %1636 = vmatpush.bf16.msrb.mxu3 %v5934_v63 }
 0x198   :  { %7602 = vst [vmem:[#allocation184_spill] sm:$0xff] %v5941_v57  ;;  %v4521_v3 = vld [vmem:[#allocation4 + $0x298] sm:$0xf]  ;;  %v5946_v49 = vor.u32 %v4822_v5, %v4555_v4  ;;  %v4750_v7 = vld [vmem:[#allocation4 + $0x9c] sm:$0xf]  ;;  %v5949_v9 = vor.u32 %v4754_v42, %v4265_v36 }
 0x199   :  { %7603 = vst [vmem:[#allocation185_spill] sm:$0xff] %v5943_v27  ;;  %v4818_v14 = vld [vmem:[#allocation4 + $0x2b4] sm:$0xf0]  ;;  %v4267_v12 = vld [vmem:[#allocation4 + $0xb8] sm:$0xf0]  ;;  %1598 = vmatpush.bf16.msrb.mxu0 %v5937_v24 }
 0x19a   :  { %7604 = vst [vmem:[#allocation186_spill] sm:$0xff] %v5946_v49  ;;  %v4814_v29 = vld [vmem:[#allocation4 + $0x29c] sm:$0xf]  ;;  %1624 = vmatpush.bf16.msrb.mxu2 %v5943_v27  ;;  %v5953_v43 = vor.u32 %v4818_v14, %v4521_v3  ;;  %v5955_v30 = vor.u32 %v4750_v7, %v4267_v12  ;;  %v4233_v21 = vld [vmem:[#allocation4 + $0x58] sm:$0xf] }
 0x19b   :  { %v4523_v25 = vld [vmem:[#allocation4 + $0x2b8] sm:$0xf0]  ;;  %7605 = vst [vmem:[#allocation187_spill] sm:$0xff] %v5949_v9  ;;  %1611 = vmatpush.bf16.msrb.mxu1 %v5941_v57  ;;  %v4746_v10 = vld [vmem:[#allocation4 + $0x74] sm:$0xf0]  ;;  %1637 = vmatpush.bf16.msrb.mxu3 %v5946_v49 }
 0x19c   :  { %7606 = vst [vmem:[#allocation188_spill] sm:$0xff] %v5953_v43  ;;  %v4489_v5 = vld [vmem:[#allocation4 + $0x258] sm:$0xf]  ;;  %v5958_v4 = vor.u32 %v4814_v29, %v4523_v25  ;;  %v4742_v51 = vld [vmem:[#allocation4 + $0x5c] sm:$0xf]  ;;  %v5961_v57 = vor.u32 %v4746_v10, %v4233_v21 }
 0x19d   :  { %v4810_v63 = vld [vmem:[#allocation4 + $0x274] sm:$0xf0]  ;;  %v4235_v24 = vld [vmem:[#allocation4 + $0x78] sm:$0xf0]  ;;  %1599 = vmatpush.bf16.msrb.mxu0 %v5949_v9 }
 0x19e   :  { %7607 = vst [vmem:[#allocation189_spill] sm:$0xff] %v5958_v4  ;;  %v4806_v36 = vld [vmem:[#allocation4 + $0x25c] sm:$0xf]  ;;  %1625 = vmatpush.bf16.msrb.mxu2 %v5955_v30  ;;  %v5965_v14 = vor.u32 %v4810_v63, %v4489_v5  ;;  %v5967_v12 = vor.u32 %v4742_v51, %v4235_v24  ;;  %v4201_v7 = vld [vmem:[#allocation4 + $0x18] sm:$0xf] }
 0x19f   :  { %v4491_v42 = vld [vmem:[#allocation4 + $0x278] sm:$0xf0]  ;;  %7608 = vst [vmem:[#allocation190_spill] sm:$0xff] %v5961_v57  ;;  %1612 = vmatpush.bf16.msrb.mxu1 %v5953_v43  ;;  %v4738_v3 = vld [vmem:[#allocation4 + $0x34] sm:$0xf0]  ;;  %1638 = vmatpush.bf16.msrb.mxu3 %v5958_v4 }
 0x1a0   :  { %7609 = vst [vmem:[#allocation191_spill] sm:$0xff] %v5965_v14  ;;  %v4457_v29 = vld [vmem:[#allocation4 + $0x218] sm:$0xf]  ;;  %v5970_v25 = vor.u32 %v4806_v36, %v4491_v42  ;;  %v4734_v27 = vld [vmem:[#allocation4 + $0x1c] sm:$0xf]  ;;  %v5973_v43 = vor.u32 %v4738_v3, %v4201_v7  ;;  %v7622_v3 = vld [vmem:[#allocation117_spill] sm:$0xff] }
 0x1a1   :  { %7610 = vst [vmem:[#allocation192_spill] sm:$0xff] %v5967_v12  ;;  %v4802_v49 = vld [vmem:[#allocation4 + $0x234] sm:$0xf0]  ;;  %v4203_v9 = vld [vmem:[#allocation4 + $0x38] sm:$0xf0]  ;;  %1600 = vmatpush.bf16.msrb.mxu0 %v5961_v57 }
 0x1a2   :  { %7611 = vst [vmem:[#allocation193_spill] sm:$0xff] %v5970_v25  ;;  %v4798_v21 = vld [vmem:[#allocation4 + $0x21c] sm:$0xf]  ;;  %1626 = vmatpush.bf16.msrb.mxu2 %v5967_v12  ;;  %v5977_v24 = vor.u32 %v4802_v49, %v4457_v29  ;;  %v5979_v51 = vor.u32 %v4734_v27, %v4203_v9  ;;  %v7618_v9 = vld [vmem:[#allocation113_spill] sm:$0xff]  ;;  %v7619_v27 = vld [vmem:[#allocation116_spill] sm:$0xff] }
 0x1a3   :  { %v4459_v10 = vld [vmem:[#allocation4 + $0x238] sm:$0xf0]  ;;  %7612 = vst [vmem:[#allocation194_spill] sm:$0xff] %v5973_v43  ;;  %1613 = vmatpush.bf16.msrb.mxu1 %v5965_v14  ;;  %1639 = vmatpush.bf16.msrb.mxu3 %v5970_v25  ;;  %v7620_v49 = vld [vmem:[#allocation115_spill] sm:$0xff]  ;;  %v7623_v29 = vld [vmem:[#allocation120_spill] sm:$0xff] }
 0x1a4   :  { %7613 = vst [vmem:[#allocation195_spill] sm:$0xff] %v5977_v24  ;;  %v5982_v63 = vor.u32 %v4798_v21, %v4459_v10  ;;  %v7621_v36 = vld [vmem:[#allocation118_spill] sm:$0xff]  ;;  %v7624_v21 = vld [vmem:[#allocation119_spill] sm:$0xff] }
 0x1a5   :  { %7614 = vst [vmem:[#allocation196_spill] sm:$0xff] %v5979_v51  ;;  %1601 = vmatpush.bf16.msrb.mxu0 %v5973_v43  ;;  %v7625_v10 = vld [vmem:[#allocation18_spill] sm:$0xff] }
 0x1a6   :  { %7615 = vst [vmem:[#allocation197_spill] sm:$0xff] %v5982_v63  ;;  %1627 = vmatpush.bf16.msrb.mxu2 %v5979_v51 }
 0x1a7   :  { %1614 = vmatpush.bf16.msrb.mxu1 %v5977_v24  ;;  %1640 = vmatpush.bf16.msrb.mxu3 %v5982_v63  ;;  %v7646_v63 = vld [vmem:[#allocation20_spill] sm:$0xff] }
 0x1a8   :  { %1602 = vmatmul.bf16.vlgmr.msrb.gmra.mxu0 %v5687_v39 }
 0x1a9   :  { %1790 = vmatpush.bf16.msra.mxu0 %v5584_v48  ;;  %1628 = vmatmul.bf16.vlgmr.msrb.gmra.mxu2 %v5687_v39  ;;  %v7616_v39 = vld [vmem:[#allocation111_spill] sm:$0xff] }
 0x1aa   :  { %1816 = vmatpush.bf16.msra.mxu2 %v5588_v15  ;;  %1615 = vmatmul.bf16.vlgmr.msrb.gmra.mxu1 %v5693_v19 }
 0x1ab   :  { %1641 = vmatmul.bf16.vlgmr.msrb.gmra.mxu3 %v5693_v19  ;;  %1803 = vmatpush.bf16.msra.mxu1 %v5586_v28  ;;  %v7617_v19 = vld [vmem:[#allocation114_spill] sm:$0xff] }
 0x1ac   :  { %1829 = vmatpush.bf16.msra.mxu3 %v5591_v20 }
 0x1ad   :  { %1791 = vmatpush.bf16.msra.mxu0 %v5595_v6 }
 0x1ae   :  { %1817 = vmatpush.bf16.msra.mxu2 %v5600_v26 }
 0x1af   :  { %1804 = vmatpush.bf16.msra.mxu1 %v5597_v37 }
 0x1b0   :  { %1830 = vmatpush.bf16.msra.mxu3 %v5602_v50 }
 0x1b1   :  { %1792 = vmatpush.bf16.msra.mxu0 %v5605_v56 }
 0x1b2   :  { %1818 = vmatpush.bf16.msra.mxu2 %v5611_v41 }
 0x1b3   :  { %1805 = vmatpush.bf16.msra.mxu1 %v5609_v22 }
 0x1b4   :  { %1831 = vmatpush.bf16.msra.mxu3 %v5614_v62 }
 0x1b5   :  { %1793 = vmatpush.bf16.msra.mxu0 %v5617_v52 }
 0x1b6   :  { %1819 = vmatpush.bf16.msra.mxu2 %v5623_v17 }
 0x1b7   :  { %1806 = vmatpush.bf16.msra.mxu1 %v5621_v61 }
 0x1b8   :  { %1832 = vmatpush.bf16.msra.mxu3 %v5626_v18 }
 0x1b9   :  { %1794 = vmatpush.bf16.msra.mxu0 %v5629_v8 }
 0x1ba   :  { %1820 = vmatpush.bf16.msra.mxu2 %v5635_v38 }
 0x1bb   :  { %1807 = vmatpush.bf16.msra.mxu1 %v5633_v34  ;;  %v7637_v34 = vld [vmem:[#allocation132_spill] sm:$0xff] }
 0x1bc   :  { %1833 = vmatpush.bf16.msra.mxu3 %v5638_v11  ;;  %v7633_v11 = vld [vmem:[#allocation128_spill] sm:$0xff] }
 0x1bd   :  { %1795 = vmatpush.bf16.msra.mxu0 %v5641_v31 }
 0x1be   :  { %1821 = vmatpush.bf16.msra.mxu2 %v5647_v16 }
 0x1bf   :  { %1808 = vmatpush.bf16.msra.mxu1 %v5645_v47 }
 0x1c0   :  { %1834 = vmatpush.bf16.msra.mxu3 %v5650_v13  ;;  %v7629_v13 = vld [vmem:[#allocation123_spill] sm:$0xff] }
 0x1c1   :  { %1796 = vmatpush.bf16.msra.mxu0 %v5653_v33 }
 0x1c2   :  { %1822 = vmatpush.bf16.msra.mxu2 %v5659_v55 }
 0x1c3   :  { %1809 = vmatpush.bf16.msra.mxu1 %v5657_v44  ;;  %v7628_v44 = vld [vmem:[#allocation124_spill] sm:$0xff] }
 0x1c4   :  { %1835 = vmatpush.bf16.msra.mxu3 %v5662_v35  ;;  %v7627_v35 = vld [vmem:[#allocation121_spill] sm:$0xff] }
 0x1c5   :  { %1797 = vmatpush.bf16.msra.mxu0 %v5665_v58  ;;  %v1447_v5 = vpop.f32.mrf.mxu0 }
 0x1c6   :  { %1823 = vmatpush.bf16.msra.mxu2 %v5671_v60 }
 0x1c7   :  { %1810 = vmatpush.bf16.msra.mxu1 %v5669_v23 }
 0x1c8   :  { %1836 = vmatpush.bf16.msra.mxu3 %v5674_v53 }
 0x1c9   :  { %1842 = vmatpush.bf16.msrb.mxu0 %v5676_v59  ;;  %v1460_v42 = vpop.f32.mrf.mxu1 }
 0x1ca   :  { %1868 = vmatpush.bf16.msrb.mxu2 %v5680_v1  ;;  %v1461_v7 = vadd.f32 %v1460_v42, %v1447_v5  ;;  %v7630_v42 = vld [vmem:[#allocation126_spill] sm:$0xff] }
 0x1cb   :  { %1855 = vmatpush.bf16.msrb.mxu1 %v5678_v2  ;;  %v7626_v2 = vld [vmem:[#allocation122_spill] sm:$0xff] }
 0x1cc   :  { %1881 = vmatpush.bf16.msrb.mxu3 %v7616_v39  ;;  %v1650_v39 = vadd.f32 %v1461_v7, %v7625_v10  ;;  %v7632_v7 = vld [vmem:[#allocation125_spill] sm:$0xff] }
 0x1cd   :  { %1843 = vmatpush.bf16.msrb.mxu0 %v5697_v0  ;;  %v1486_v53 = vpop.f32.mrf.mxu3  ;;  %v1449_v5 = vpop.f32.mrf.mxu0 }
 0x1ce   :  { %1869 = vmatpush.bf16.msrb.mxu2 %v7617_v19  ;;  %v4687_v23 = vmul.f32 -1.442695, %v1650_v39  ;;  %v7634_v39 = vld [vmem:[#allocation127_spill] sm:$0xff] }
 0x1cf   :  { %1856 = vmatpush.bf16.msrb.mxu1 %v7618_v9  ;;  %v1473_v9 = vpop.f32.mrf.mxu2 }
 0x1d0   :  { %1882 = vmatpush.bf16.msrb.mxu3 %v7620_v49  ;;  %v1487_v49 = vadd.f32 %v1486_v53, %v1473_v9  ;;  %4894 = vpow2.f32 %v4687_v23  ;;  %v7639_v23 = vld [vmem:[#allocation134_spill] sm:$0xff] }
 0x1d1   :  { %1844 = vmatpush.bf16.msrb.mxu0 %v7619_v27 }
 0x1d2   :  { %1870 = vmatpush.bf16.msrb.mxu2 %v7621_v36 }
 0x1d3   :  { %1857 = vmatpush.bf16.msrb.mxu1 %v7622_v3  ;;  %v7631_v3 = vld [vmem:[#allocation19_spill] sm:$0xff] }
 0x1d4   :  { %1883 = vmatpush.bf16.msrb.mxu3 %v7624_v21  ;;  %v1651_v47 = vadd.f32 %v1487_v49, %v7631_v3  ;;  %v1462_v21 = vpop.f32.mrf.mxu1  ;;  %v7638_v49 = vld [vmem:[#allocation131_spill] sm:$0xff] }
 0x1d5   :  { %1845 = vmatpush.bf16.msrb.mxu0 %v7623_v29  ;;  %v1488_v9 = vpop.f32.mrf.mxu3 }
 0x1d6   :  { %1871 = vmatpush.bf16.msrb.mxu2 %v7626_v2  ;;  %v4688_v10 = vmul.f32 -1.442695, %v1651_v47  ;;  %v4895_v5 = vpop.eup %4894  ;;  %v7640_v47 = vld [vmem:[#allocation133_spill] sm:$0xff] }
 0x1d7   :  { %1858 = vmatpush.bf16.msrb.mxu1 %v7627_v35  ;;  %v7635_v35 = vld [vmem:[#allocation130_spill] sm:$0xff]  ;;  %v1475_v53 = vpop.f32.mrf.mxu2  ;;  %v1665_v3 = vadd.f32 1.0, %v4895_v5  ;;  %v7644_v9 = vld [vmem:[#allocation137_spill] sm:$0xff] }
 0x1d8   :  { %1884 = vmatpush.bf16.msrb.mxu3 %v7629_v13  ;;  %4896 = vpow2.f32 %v4688_v10  ;;  %v7636_v13 = vld [vmem:[#allocation129_spill] sm:$0xff]  ;;  %v7643_v53 = vld [vmem:[#allocation138_spill] sm:$0xff] }
 0x1d9   :  { %1846 = vmatpush.bf16.msrb.mxu0 %v7628_v44  ;;  %4898 = vrcp.f32 %v1665_v3  ;;  %vm1671_vm10 = vweird.f32 %v1665_v3 }
 0x1da   :  { %1872 = vmatpush.bf16.msrb.mxu2 %v7630_v42 }
 0x1db   :  { %1859 = vmatpush.bf16.msrb.mxu1 %v7632_v7  ;;  %v7641_v7 = vld [vmem:[#allocation136_spill] sm:$0xff] }
 0x1dc   :  { %1885 = vmatpush.bf16.msrb.mxu3 %v7634_v39  ;;  %v7642_v39 = vld [vmem:[#allocation135_spill] sm:$0xff] }
 0x1dd   :  { %1847 = vmatpush.bf16.msrb.mxu0 %v7633_v11 }
 0x1de   :  { %1873 = vmatpush.bf16.msrb.mxu2 %v7635_v35  ;;  %v4897_v21 = vpop.eup %4896 }
 0x1df   :  { %1860 = vmatpush.bf16.msrb.mxu1 %v7636_v13  ;;  %v1684_v10 = vadd.f32 1.0, %v4897_v21  ;;  %v7645_v13 = vld [vmem:[#allocation139_spill] sm:$0xff] }
 0x1e0   :  { %1886 = vmatpush.bf16.msrb.mxu3 %v7638_v49  ;;  %v4899_v49 = vpop.eup %4898 }
 0x1e1   :  { %1848 = vmatpush.bf16.msrb.mxu0 %v7637_v34  ;;  %4900 = vrcp.f32 %v1684_v10  ;;  %vm1672_vm11 = vweird.f32 %v4899_v49  ;;  %vm1690_vm12 = vweird.f32 %v1684_v10 }
 0x1e2   :  { %1874 = vmatpush.bf16.msrb.mxu2 %v7639_v23  ;;  %v1696_v23 = vand.u32 2147483648, %v1684_v10  ;;  %vm6060_vm14 = vmor %vm1671_vm10, %vm1672_vm11 }
 0x1e3   :  { %1861 = vmatpush.bf16.msrb.mxu1 %v7640_v47  ;;  %v1667_v47 = vmul.f32 %v4899_v49, %v1665_v3 }
 0x1e4   :  { %1887 = vmatpush.bf16.msrb.mxu3 %v7642_v39 }
 0x1e5   :  { %1849 = vmatpush.bf16.msrb.mxu0 %v7641_v7  ;;  %v1499_v61 = vpop.f32.mrf.mxu0  ;;  %v1668_v37 = vsub.f32 1.0, %v1667_v47 }
 0x1e6   :  { %1875 = vmatpush.bf16.msrb.mxu2 %v7643_v53 }
 0x1e7   :  { %1862 = vmatpush.bf16.msrb.mxu1 %v7644_v9  ;;  %v4901_v18 = vpop.eup %4900  ;;  %v1669_v7 = vmul.f32 %v4899_v49, %v1668_v37 }
 0x1e8   :  { %1888 = vmatpush.bf16.msrb.mxu3 %v7645_v13  ;;  %v1686_v62 = vmul.f32 %v4901_v18, %v1684_v10  ;;  %v7647_v13 = vld [vmem:[#allocation23_spill] sm:$0xff]  ;;  %vm1691_vm13 = vweird.f32 %v4901_v18 }
 0x1e9   :  { %v1512_v5 = vpop.f32.mrf.mxu1  ;;  %v1670_v34 = vadd.f32 %v4899_v49, %v1669_v7  ;;  %vm1692_vm15 = vmor %vm1690_vm12, %vm1691_vm13 }
 0x1ea   :  { %v1687_v50 = vsub.f32 1.0, %v1686_v62  ;;  %v1513_v21 = vadd.f32 %v1512_v5, %v1499_v61  ;;  %v1677_v62 = vand.u32 2147483648, %v1665_v3  ;;  %v1697_v61 = vor.u32 1.1754944e-38, %v1696_v23 }
 0x1ec   :  { %v1525_v22 = vpop.f32.mrf.mxu2  ;;  %v1688_v9 = vmul.f32 %v4901_v18, %v1687_v50  ;;  %v1652_v14 = vadd.f32 %v1513_v21, %v7647_v13  ;;  %v1694_v50 = vand.u32 2147483647, %v1684_v10  ;;  %v1678_v13 = vor.u32 1.1754944e-38, %v1677_v62 }
 0x1ed   :  { %v1538_v20 = vpop.f32.mrf.mxu3  ;;  %v1501_v28 = vpop.f32.mrf.mxu0 }
 0x1ee   :  { %v1539_v39 = vadd.f32 %v1538_v20, %v1525_v22  ;;  %v1675_v28 = vand.u32 2147483647, %v1665_v3  ;;  %v1689_v22 = vadd.f32 %v4901_v18, %v1688_v9  ;;  %vm1695_vm1 = vcmp.eq.f32.partialorder %v1694_v50, 8.507059e+37  ;;  %v7650_v3 = vld [vmem:[#allocation30_spill] sm:$0xff] }
 0x1ef   :  { %v7652_v50 = vld [vmem:[#allocation70_spill] sm:$0xff] }
 0x1f0   :  { %v1653_v24 = vadd.f32 %v1539_v39, %v7646_v63  ;;  %vm1676_vm0 = vcmp.eq.f32.partialorder %v1675_v28, 8.507059e+37 }
 0x1f1   :  { %v1514_v53 = vpop.f32.mrf.mxu1 }
 0x1f2   :  { %v4689_v25 = vmul.f32 -1.442695, %v1653_v24  ;;  %v1674_v24 = vsel %vm6060_vm14, %v4899_v49, %v1670_v34 }
 0x1f3   :  { %v1679_v53 = vsel %vm1676_vm0, %v1678_v13, %v1674_v24 }
 0x1f4   :  { %4902 = vpow2.f32 %v4689_v25  ;;  %v1527_v47 = vpop.f32.mrf.mxu2  ;;  %v1693_v25 = vsel %vm1692_vm15, %v4901_v18, %v1689_v22 }
 0x1f5   :  { %v1540_v37 = vpop.f32.mrf.mxu3  ;;  %4904 = vtanh.f32 %v1652_v14  ;;  %v1698_v5 = vsel %vm1695_vm1, %v1697_v61, %v1693_v25 }
 0x1f6   :  { %v1720_v9 = vmul.f32 %v1698_v5, %v7650_v3 }
 0x1fa   :  { %v4903_v63 = vpop.eup %4902 }
 0x1fb   :  { %v1704_v7 = vadd.f32 1.0, %v4903_v63  ;;  %v4905_v39 = vpop.eup %4904 }
 0x1fc   :  { %v1721_v10 = vmul.f32 %v4905_v39, %v1679_v53 }
 0x1fd   :  { %4906 = vrcp.f32 %v1704_v7  ;;  %v1716_v23 = vand.u32 2147483648, %v1704_v7  ;;  %vm1710_vm2 = vweird.f32 %v1704_v7  ;;  %v1714_v18 = vand.u32 2147483647, %v1704_v7 }
 0x1fe   :  { %v6067_v47 = vadd.f32 %v1721_v10, %v1720_v9  ;;  %v7653_v9 = vld [vmem:[#allocation71_spill] sm:$0xff] }
 0x1ff   :  { %v1717_v22 = vor.u32 1.1754944e-38, %v1716_v23  ;;  %vm1715_vm5 = vcmp.eq.f32.partialorder %v1714_v18, 8.507059e+37  ;;  %v7654_v18 = vld [vmem:[#allocation140_spill] sm:$0xff] }
 0x200   :  { %7651 = vst [vmem:[#allocation18_spill] sm:$0xff] %v6067_v47  ;;  %4908 = vtanh.f32 %v6067_v47 }
 0x203   :  { %v4907_v21 = vpop.eup %4906 }
 0x204   :  { %v1706_v14 = vmul.f32 %v4907_v21, %v1704_v7  ;;  %vm1711_vm3 = vweird.f32 %v4907_v21 }
 0x205   :  { %v1551_v62 = vpop.f32.mrf.mxu0  ;;  %vm1712_vm4 = vmor %vm1710_vm2, %vm1711_vm3 }
 0x206   :  { %v1707_v20 = vsub.f32 1.0, %v1706_v14  ;;  %v4909_v53 = vpop.eup %4908 }
 0x208   :  { %v1708_v28 = vmul.f32 %v4907_v21, %v1707_v20 }
 0x209   :  { %v1564_v34 = vpop.f32.mrf.mxu1 }
 0x20a   :  { %v1565_v49 = vadd.f32 %v1564_v34, %v1551_v62  ;;  %v1709_v61 = vadd.f32 %v4907_v21, %v1708_v28  ;;  %v7656_v28 = vld [vmem:[#allocation144_spill] sm:$0xff] }
 0x20c   :  { %v1658_v37 = vadd.f32 %v1565_v49, %v7652_v50  ;;  %v1577_v13 = vpop.f32.mrf.mxu2  ;;  %v1713_v63 = vsel %vm1712_vm4, %v4907_v21, %v1709_v61  ;;  %v7655_v21 = vld [vmem:[#allocation142_spill] sm:$0xff] }
 0x20d   :  { %v1590_v24 = vpop.f32.mrf.mxu3  ;;  %v1718_v5 = vsel %vm1715_vm5, %v1717_v22, %v1713_v63  ;;  %v1553_v3 = vpop.f32.mrf.mxu0  ;;  %v7657_v22 = vld [vmem:[#allocation146_spill] sm:$0xff] }
 0x20e   :  { %v4690_v25 = vmul.f32 -1.442695, %v1658_v37  ;;  %v1591_v39 = vadd.f32 %v1590_v24, %v1577_v13  ;;  %v1724_v7 = vmul.f32 %v4909_v53, %v1718_v5  ;;  %v7658_v13 = vld [vmem:[#allocation148_spill] sm:$0xff]  ;;  %v7659_v24 = vld [vmem:[#allocation150_spill] sm:$0xff] }
 0x20f   :  { %v7661_v63 = vld [vmem:[#allocation154_spill] sm:$0xff]  ;;  %v7662_v3 = vld [vmem:[#allocation156_spill] sm:$0xff] }
 0x210   :  { %v1659_v10 = vadd.f32 %v1591_v39, %v7653_v9  ;;  %4910 = vpow2.f32 %v4690_v25  ;;  %v6072_v62 = vpack.c.bf16 %v1724_v7, %v1724_v7  ;;  %v7660_v25 = vld [vmem:[#allocation152_spill] sm:$0xff]  ;;  %v7663_v7 = vld [vmem:[#allocation158_spill] sm:$0xff] }
 0x211   :  { %v1566_v14 = vpop.f32.mrf.mxu1 }
 0x212   :  { %v4691_v23 = vmul.f32 -1.442695, %v1659_v10  ;;  %1798 = vmatmul.bf16.vlgmr.msra.gmra.mxu0 %v6072_v62  ;;  %1824 = vmatmul.bf16.vlgmr.msra.gmra.mxu2 %v6072_v62 }
 0x213   :  { %1894 = vmatpush.bf16.msra.mxu0 %v7654_v18  ;;  %1920 = vmatpush.bf16.msra.mxu2 %v7655_v21  ;;  %v7668_v18 = vld [vmem:[#allocation74_spill] sm:$0xff] }
 0x214   :  { %4912 = vpow2.f32 %v4691_v23  ;;  %v1579_v20 = vpop.f32.mrf.mxu2  ;;  %v7664_v23 = vld [vmem:[#allocation160_spill] sm:$0xff] }
 0x215   :  { %v1592_v34 = vpop.f32.mrf.mxu3  ;;  %v7665_v20 = vld [vmem:[#allocation162_spill] sm:$0xff] }
 0x216   :  { %v4911_v49 = vpop.eup %4910 }
 0x217   :  { %1895 = vmatpush.bf16.msra.mxu0 %v7656_v28  ;;  %1921 = vmatpush.bf16.msra.mxu2 %v7657_v22  ;;  %v1728_v37 = vadd.f32 1.0, %v4911_v49  ;;  %v7666_v28 = vld [vmem:[#allocation164_spill] sm:$0xff] }
 0x219   :  { %4914 = vrcp.f32 %v1728_v37  ;;  %vm1734_vm6 = vweird.f32 %v1728_v37 }
 0x21a   :  { %v4913_v50 = vpop.eup %4912 }
 0x21b   :  { %v6080_v61 = vadd.f32 1.0, %v4913_v50  ;;  %1896 = vmatpush.bf16.msra.mxu0 %v7658_v13  ;;  %1922 = vmatpush.bf16.msra.mxu2 %v7659_v24 }
 0x21d   :  { %4916 = vrcp.f32 %v6080_v61  ;;  %vm1753_vm8 = vweird.f32 %v6080_v61 }
 0x21f   :  { %1897 = vmatpush.bf16.msra.mxu0 %v7660_v25  ;;  %1923 = vmatpush.bf16.msra.mxu2 %v7661_v63  ;;  %v4915_v53 = vpop.eup %4914 }
 0x220   :  { %v1730_v10 = vmul.f32 %v4915_v53, %v1728_v37  ;;  %vm1735_vm7 = vweird.f32 %v4915_v53 }
 0x221   :  { %vm6105_vm10 = vmor %vm1734_vm6, %vm1735_vm7 }
 0x222   :  { %1850 = vmatmul.bf16.vlgmr.msrb.gmra.mxu0 %v6072_v62  ;;  %1876 = vmatmul.bf16.vlgmr.msrb.gmra.mxu2 %v6072_v62  ;;  %v1731_v49 = vsub.f32 1.0, %v1730_v10  ;;  %v7673_v10 = vld [vmem:[#allocation171_spill] sm:$0xff] }
 0x223   :  { %1898 = vmatpush.bf16.msra.mxu0 %v7662_v3  ;;  %1924 = vmatpush.bf16.msra.mxu2 %v7663_v7  ;;  %v4917_v9 = vpop.eup %4916  ;;  %v7667_v7 = vld [vmem:[#allocation73_spill] sm:$0xff] }
 0x224   :  { %v1749_v14 = vmul.f32 %v4917_v9, %v6080_v61  ;;  %v1732_v21 = vmul.f32 %v4915_v53, %v1731_v49  ;;  %vm1754_vm9 = vweird.f32 %v4917_v9 }
 0x225   :  { %v1603_v39 = vpop.f32.mrf.mxu0  ;;  %vm6112_vm11 = vmor %vm1753_vm8, %vm1754_vm9 }
 0x226   :  { %v1750_v22 = vsub.f32 1.0, %v1749_v14 }
 0x227   :  { %v1616_v5 = vpop.f32.mrf.mxu1  ;;  %1899 = vmatpush.bf16.msra.mxu0 %v7664_v23  ;;  %1925 = vmatpush.bf16.msra.mxu2 %v7665_v20 }
 0x228   :  { %v1617_v25 = vadd.f32 %v1616_v5, %v1603_v39  ;;  %v1751_v4 = vmul.f32 %v4917_v9, %v1750_v22  ;;  %v1738_v39 = vand.u32 2147483647, %v1728_v37  ;;  %v1759_v22 = vand.u32 2147483648, %v6080_v61 }
 0x22a   :  { %v1660_v47 = vadd.f32 %v1617_v25, %v7668_v18  ;;  %v1752_v5 = vadd.f32 %v4917_v9, %v1751_v4  ;;  %vm1739_vm12 = vcmp.eq.f32.partialorder %v1738_v39, 8.507059e+37 }
 0x22b   :  { %1900 = vmatpush.bf16.msra.mxu0 %v7666_v28  ;;  %1926 = vmatpush.bf16.msra.mxu2 %v5867_v46 }
 0x22c   :  { %v1629_v34 = vpop.f32.mrf.mxu2  ;;  %v1756_v4 = vsel %vm6112_vm11, %v4917_v9, %v1752_v5  ;;  %v7680_v5 = vld [vmem:[#allocation183_spill] sm:$0xff] }
 0x22d   :  { %v1605_v63 = vpop.f32.mrf.mxu0 }
 0x22e   :  { %v1642_v50 = vpop.f32.mrf.mxu3  ;;  %v1740_v63 = vand.u32 2147483648, %v1728_v37  ;;  %v7674_v37 = vld [vmem:[#allocation173_spill] sm:$0xff] }
 0x22f   :  { %v1643_v24 = vadd.f32 %v1642_v50, %v1629_v34  ;;  %v1618_v13 = vpop.f32.mrf.mxu1  ;;  %1901 = vmatpush.bf16.msra.mxu0 %v5873_v40  ;;  %1927 = vmatpush.bf16.msra.mxu2 %v5879_v45  ;;  %v7675_v50 = vld [vmem:[#allocation175_spill] sm:$0xff] }
 0x231   :  { %v1661_v3 = vadd.f32 %v1643_v24, %v7667_v7  ;;  %v1733_v24 = vadd.f32 %v4915_v53, %v1732_v21  ;;  %v1741_v7 = vor.u32 1.1754944e-38, %v1740_v63  ;;  %v7676_v63 = vld [vmem:[#allocation177_spill] sm:$0xff] }
 0x232   :  { %1902 = vmatmul.bf16.vlgmr.msra.gmra.mxu0 %v6072_v62  ;;  %1928 = vmatmul.bf16.vlgmr.msra.gmra.mxu2 %v6072_v62 }
 0x233   :  { %v4692_v23 = vmul.f32 -1.442695, %v1661_v3  ;;  %1946 = vmatpush.bf16.msrb.mxu0 %v5884_v54  ;;  %1972 = vmatpush.bf16.msrb.mxu2 %v5888_v32  ;;  %v1757_v3 = vand.u32 2147483647, %v6080_v61  ;;  %v1737_v14 = vsel %vm6105_vm10, %v4915_v53, %v1733_v24  ;;  %v7678_v53 = vld [vmem:[#allocation181_spill] sm:$0xff]  ;;  %v7679_v24 = vld [vmem:[#allocation75_spill] sm:$0xff] }
 0x234   :  { %v1631_v13 = vpop.f32.mrf.mxu2  ;;  %v1742_v49 = vsel %vm1739_vm12, %v1741_v7, %v1737_v14 }
 0x235   :  { %4918 = vpow2.f32 %v4692_v23  ;;  %v1760_v23 = vor.u32 1.1754944e-38, %v1759_v22  ;;  %vm1758_vm13 = vcmp.eq.f32.partialorder %v1757_v3, 8.507059e+37  ;;  %v7681_v3 = vld [vmem:[#allocation185_spill] sm:$0xff] }
 0x236   :  { %v1644_v18 = vpop.f32.mrf.mxu3  ;;  %4920 = vtanh.f32 %v1660_v47 }
 0x237   :  { %1947 = vmatpush.bf16.msrb.mxu0 %v7673_v10  ;;  %1973 = vmatpush.bf16.msrb.mxu2 %v7674_v37  ;;  %v1761_v13 = vsel %vm1758_vm13, %v1760_v23, %v1756_v4  ;;  %v7677_v37 = vld [vmem:[#allocation179_spill] sm:$0xff] }
 0x238   :  { %v1783_v39 = vmul.f32 %v1761_v13, %v7679_v24  ;;  %v7682_v23 = vld [vmem:[#allocation187_spill] sm:$0xff] }
 0x23b   :  { %v4919_v47 = vpop.eup %4918  ;;  %1948 = vmatpush.bf16.msrb.mxu0 %v7675_v50  ;;  %1974 = vmatpush.bf16.msrb.mxu2 %v7676_v63 }
 0x23c   :  { %v1767_v61 = vadd.f32 1.0, %v4919_v47  ;;  %v4921_v34 = vpop.eup %4920 }
 0x23d   :  { %v1784_v18 = vmul.f32 %v4921_v34, %v1742_v49 }
 0x23e   :  { %4922 = vrcp.f32 %v1767_v61  ;;  %v1779_v21 = vand.u32 2147483648, %v1767_v61  ;;  %v1777_v47 = vand.u32 2147483647, %v1767_v61  ;;  %vm1773_vm15 = vweird.f32 %v1767_v61 }
 0x23f   :  { %1949 = vmatpush.bf16.msrb.mxu0 %v7677_v37  ;;  %1975 = vmatpush.bf16.msrb.mxu2 %v7678_v53  ;;  %v6127_v25 = vadd.f32 %v1784_v18, %v1783_v39 }
 0x240   :  { %v1780_v34 = vor.u32 1.1754944e-38, %v1779_v21  ;;  %vm1778_vm1 = vcmp.eq.f32.partialorder %v1777_v47, 8.507059e+37  ;;  %v7687_v21 = vld [vmem:[#allocation149_spill] sm:$0xff]  ;;  %v7690_v47 = vld [vmem:[#allocation155_spill] sm:$0xff] }
 0x241   :  { %4924 = vtanh.f32 %v6127_v25 }
 0x243   :  { %1950 = vmatpush.bf16.msrb.mxu0 %v7680_v5  ;;  %1976 = vmatpush.bf16.msrb.mxu2 %v7681_v3 }
 0x244   :  { %v4923_v22 = vpop.eup %4922 }
 0x245   :  { %v1769_v9 = vmul.f32 %v4923_v22, %v1767_v61  ;;  %vm1774_vm14 = vweird.f32 %v4923_v22  ;;  %v7683_v61 = vld [vmem:[#allocation141_spill] sm:$0xff] }
 0x246   :  { %vm1775_vm0 = vmor %vm1773_vm15, %vm1774_vm14 }
 0x247   :  { %v1770_v7 = vsub.f32 1.0, %v1769_v9  ;;  %1951 = vmatpush.bf16.msrb.mxu0 %v7682_v23  ;;  %1977 = vmatpush.bf16.msrb.mxu2 %v5955_v30  ;;  %v4925_v13 = vpop.eup %4924  ;;  %v7685_v9 = vld [vmem:[#allocation145_spill] sm:$0xff] }
 0x249   :  { %v1771_v14 = vmul.f32 %v4923_v22, %v1770_v7  ;;  %v7686_v7 = vld [vmem:[#allocation147_spill] sm:$0xff] }
 0x24b   :  { %v1772_v4 = vadd.f32 %v4923_v22, %v1771_v14  ;;  %1952 = vmatpush.bf16.msrb.mxu0 %v5961_v57  ;;  %1978 = vmatpush.bf16.msrb.mxu2 %v5967_v12  ;;  %v7688_v14 = vld [vmem:[#allocation151_spill] sm:$0xff] }
 0x24d   :  { %v1776_v49 = vsel %vm1775_vm0, %v4923_v22, %v1772_v4  ;;  %v7684_v22 = vld [vmem:[#allocation143_spill] sm:$0xff]  ;;  %v7691_v4 = vld [vmem:[#allocation157_spill] sm:$0xff] }
 0x24e   :  { %v1781_v18 = vsel %vm1778_vm1, %v1780_v34, %v1776_v49  ;;  %v7692_v34 = vld [vmem:[#allocation159_spill] sm:$0xff]  ;;  %v7693_v49 = vld [vmem:[#allocation161_spill] sm:$0xff] }
 0x24f   :  { %v1787_v24 = vmul.f32 %v4925_v13, %v1781_v18  ;;  %1953 = vmatpush.bf16.msrb.mxu0 %v5973_v43  ;;  %1979 = vmatpush.bf16.msrb.mxu2 %v5979_v51  ;;  %v7694_v13 = vld [vmem:[#allocation163_spill] sm:$0xff]  ;;  %v7695_v18 = vld [vmem:[#allocation165_spill] sm:$0xff] }
 0x251   :  { %v6136_v39 = vpack.c.bf16 %v1787_v24, %v1787_v24  ;;  %v7696_v24 = vld [vmem:[#allocation166_spill] sm:$0xff] }
 0x252   :  { %1954 = vmatmul.bf16.vlgmr.msrb.gmra.mxu0 %v6072_v62  ;;  %1980 = vmatmul.bf16.vlgmr.msrb.gmra.mxu2 %v6072_v62  ;;  %v7689_v62 = vld [vmem:[#allocation153_spill] sm:$0xff] }
 0x253   :  { %2142 = vmatpush.bf16.msra.mxu0 %v5584_v48  ;;  %2168 = vmatpush.bf16.msra.mxu2 %v5588_v15 }
 0x254   :  { %1811 = vmatmul.bf16.vlgmr.msra.gmra.mxu1 %v6136_v39  ;;  %1837 = vmatmul.bf16.vlgmr.msra.gmra.mxu3 %v6136_v39 }
 0x255   :  { %1907 = vmatpush.bf16.msra.mxu1 %v7683_v61  ;;  %1933 = vmatpush.bf16.msra.mxu3 %v7684_v22 }
 0x257   :  { %2143 = vmatpush.bf16.msra.mxu0 %v5595_v6  ;;  %2169 = vmatpush.bf16.msra.mxu2 %v5600_v26 }
 0x259   :  { %1908 = vmatpush.bf16.msra.mxu1 %v7685_v9  ;;  %1934 = vmatpush.bf16.msra.mxu3 %v7686_v7 }
 0x25b   :  { %2144 = vmatpush.bf16.msra.mxu0 %v5605_v56  ;;  %2170 = vmatpush.bf16.msra.mxu2 %v5611_v41 }
 0x25d   :  { %1909 = vmatpush.bf16.msra.mxu1 %v7687_v21  ;;  %1935 = vmatpush.bf16.msra.mxu3 %v7688_v14 }
 0x25f   :  { %2145 = vmatpush.bf16.msra.mxu0 %v5617_v52  ;;  %2171 = vmatpush.bf16.msra.mxu2 %v5623_v17 }
 0x261   :  { %1910 = vmatpush.bf16.msra.mxu1 %v7689_v62  ;;  %1936 = vmatpush.bf16.msra.mxu3 %v7690_v47 }
 0x263   :  { %2146 = vmatpush.bf16.msra.mxu0 %v5629_v8  ;;  %2172 = vmatpush.bf16.msra.mxu2 %v5635_v38  ;;  %v7699_v38 = vld [vmem:[#allocation169_spill] sm:$0xff] }
 0x264   :  { %1863 = vmatmul.bf16.vlgmr.msrb.gmra.mxu1 %v6136_v39  ;;  %1889 = vmatmul.bf16.vlgmr.msrb.gmra.mxu3 %v6136_v39  ;;  %v7749_v8 = vld [vmem:[#allocation137_spill] sm:$0xff] }
 0x265   :  { %1911 = vmatpush.bf16.msra.mxu1 %v7691_v4  ;;  %1937 = vmatpush.bf16.msra.mxu3 %v7692_v34 }
 0x267   :  { %2147 = vmatpush.bf16.msra.mxu0 %v5641_v31  ;;  %2173 = vmatpush.bf16.msra.mxu2 %v5647_v16  ;;  %v7697_v16 = vld [vmem:[#allocation167_spill] sm:$0xff]  ;;  %v7698_v31 = vld [vmem:[#allocation168_spill] sm:$0xff] }
 0x269   :  { %1912 = vmatpush.bf16.msra.mxu1 %v7693_v49  ;;  %1938 = vmatpush.bf16.msra.mxu3 %v7694_v13 }
 0x26b   :  { %2148 = vmatpush.bf16.msra.mxu0 %v5653_v33  ;;  %2174 = vmatpush.bf16.msra.mxu2 %v5659_v55  ;;  %v7700_v33 = vld [vmem:[#allocation170_spill] sm:$0xff]  ;;  %v7705_v55 = vld [vmem:[#allocation180_spill] sm:$0xff] }
 0x26d   :  { %1913 = vmatpush.bf16.msra.mxu1 %v7695_v18  ;;  %1939 = vmatpush.bf16.msra.mxu3 %v7696_v24 }
 0x26f   :  { %2149 = vmatpush.bf16.msra.mxu0 %v5665_v58  ;;  %2175 = vmatpush.bf16.msra.mxu2 %v5671_v60  ;;  %v7701_v60 = vld [vmem:[#allocation172_spill] sm:$0xff]  ;;  %v7704_v58 = vld [vmem:[#allocation178_spill] sm:$0xff] }
 0x271   :  { %1914 = vmatpush.bf16.msra.mxu1 %v7697_v16  ;;  %1940 = vmatpush.bf16.msra.mxu3 %v7698_v31 }
 0x273   :  { %2194 = vmatpush.bf16.msrb.mxu0 %v5676_v59  ;;  %2220 = vmatpush.bf16.msrb.mxu2 %v5680_v1  ;;  %v7702_v59 = vld [vmem:[#allocation174_spill] sm:$0xff]  ;;  %v7703_v1 = vld [vmem:[#allocation176_spill] sm:$0xff] }
 0x274   :  { %1915 = vmatmul.bf16.vlgmr.msra.gmra.mxu1 %v6136_v39  ;;  %1941 = vmatmul.bf16.vlgmr.msra.gmra.mxu3 %v6136_v39 }
 0x275   :  { %1959 = vmatpush.bf16.msrb.mxu1 %v7699_v38  ;;  %1985 = vmatpush.bf16.msrb.mxu3 %v7700_v33 }
 0x277   :  { %2195 = vmatpush.bf16.msrb.mxu0 %v5697_v0  ;;  %2221 = vmatpush.bf16.msrb.mxu2 %v7617_v19  ;;  %v7706_v0 = vld [vmem:[#allocation182_spill] sm:$0xff]  ;;  %v7707_v19 = vld [vmem:[#allocation184_spill] sm:$0xff] }
 0x279   :  { %1960 = vmatpush.bf16.msrb.mxu1 %v7701_v60  ;;  %1986 = vmatpush.bf16.msrb.mxu3 %v7702_v59  ;;  %v7733_v59 = vld [vmem:[#allocation105_spill] sm:$0xff] }
 0x27a   :  { %v7741_v60 = vld [vmem:[#allocation121_spill] sm:$0xff] }
 0x27b   :  { %2196 = vmatpush.bf16.msrb.mxu0 %v7619_v27  ;;  %2222 = vmatpush.bf16.msrb.mxu2 %v7621_v36  ;;  %v7708_v27 = vld [vmem:[#allocation186_spill] sm:$0xff]  ;;  %v7709_v36 = vld [vmem:[#allocation188_spill] sm:$0xff] }
 0x27d   :  { %1961 = vmatpush.bf16.msrb.mxu1 %v7703_v1  ;;  %1987 = vmatpush.bf16.msrb.mxu3 %v7704_v58  ;;  %v7729_v58 = vld [vmem:[#allocation97_spill] sm:$0xff] }
 0x27e   :  { %v7731_v1 = vld [vmem:[#allocation101_spill] sm:$0xff] }
 0x27f   :  { %2197 = vmatpush.bf16.msrb.mxu0 %v7623_v29  ;;  %2223 = vmatpush.bf16.msrb.mxu2 %v7626_v2  ;;  %v7710_v29 = vld [vmem:[#allocation189_spill] sm:$0xff]  ;;  %v7711_v2 = vld [vmem:[#allocation132_spill] sm:$0xff] }
 0x281   :  { %1962 = vmatpush.bf16.msrb.mxu1 %v7705_v55  ;;  %1988 = vmatpush.bf16.msrb.mxu3 %v7706_v0  ;;  %v7712_v55 = vld [vmem:[#allocation134_spill] sm:$0xff]  ;;  %v7713_v0 = vld [vmem:[#allocation191_spill] sm:$0xff] }
 0x283   :  { %2198 = vmatpush.bf16.msrb.mxu0 %v7628_v44  ;;  %2224 = vmatpush.bf16.msrb.mxu2 %v7630_v42  ;;  %v7714_v44 = vld [vmem:[#allocation193_spill] sm:$0xff]  ;;  %v7715_v42 = vld [vmem:[#allocation136_spill] sm:$0xff] }
 0x285   :  { %1963 = vmatpush.bf16.msrb.mxu1 %v7707_v19  ;;  %1989 = vmatpush.bf16.msrb.mxu3 %v7708_v27  ;;  %v7716_v19 = vld [vmem:[#allocation138_spill] sm:$0xff]  ;;  %v7717_v27 = vld [vmem:[#allocation195_spill] sm:$0xff] }
 0x287   :  { %2199 = vmatpush.bf16.msrb.mxu0 %v7633_v11  ;;  %2225 = vmatpush.bf16.msrb.mxu2 %v7635_v35  ;;  %v7718_v11 = vld [vmem:[#allocation197_spill] sm:$0xff] }
 0x288   :  { %v7719_v35 = vld [vmem:[#allocation77_spill] sm:$0xff] }
 0x289   :  { %1964 = vmatpush.bf16.msrb.mxu1 %v7709_v36  ;;  %1990 = vmatpush.bf16.msrb.mxu3 %v7710_v29  ;;  %v7720_v36 = vld [vmem:[#allocation79_spill] sm:$0xff] }
 0x28a   :  { %v7728_v29 = vld [vmem:[#allocation95_spill] sm:$0xff] }
 0x28b   :  { %2200 = vmatpush.bf16.msrb.mxu0 %v7711_v2  ;;  %2226 = vmatpush.bf16.msrb.mxu2 %v7712_v55  ;;  %v7721_v55 = vld [vmem:[#allocation81_spill] sm:$0xff]  ;;  %v7722_v2 = vld [vmem:[#allocation83_spill] sm:$0xff] }
 0x28d   :  { %1965 = vmatpush.bf16.msrb.mxu1 %v7713_v0  ;;  %1991 = vmatpush.bf16.msrb.mxu3 %v7714_v44  ;;  %v7725_v0 = vld [vmem:[#allocation89_spill] sm:$0xff] }
 0x28f   :  { %2201 = vmatpush.bf16.msrb.mxu0 %v7715_v42  ;;  %2227 = vmatpush.bf16.msrb.mxu2 %v7716_v19  ;;  %v1799_v44 = vpop.f32.mrf.mxu0  ;;  %v7723_v42 = vld [vmem:[#allocation85_spill] sm:$0xff]  ;;  %v7724_v19 = vld [vmem:[#allocation87_spill] sm:$0xff] }
 0x291   :  { %1966 = vmatpush.bf16.msrb.mxu1 %v7717_v27  ;;  %1992 = vmatpush.bf16.msrb.mxu3 %v7718_v11  ;;  %v7726_v11 = vld [vmem:[#allocation91_spill] sm:$0xff] }
 0x294   :  { %1967 = vmatmul.bf16.vlgmr.msrb.gmra.mxu1 %v6136_v39  ;;  %1993 = vmatmul.bf16.vlgmr.msrb.gmra.mxu3 %v6136_v39 }
 0x295   :  { %2155 = vmatpush.bf16.msra.mxu1 %v7719_v35  ;;  %2181 = vmatpush.bf16.msra.mxu3 %v7720_v36  ;;  %v1825_v27 = vpop.f32.mrf.mxu2  ;;  %v7727_v36 = vld [vmem:[#allocation93_spill] sm:$0xff] }
 0x297   :  { %v1801_v35 = vpop.f32.mrf.mxu0 }
 0x298   :  { %v7735_v35 = vld [vmem:[#allocation109_spill] sm:$0xff] }
 0x299   :  { %2156 = vmatpush.bf16.msra.mxu1 %v7721_v55  ;;  %2182 = vmatpush.bf16.msra.mxu3 %v7722_v2  ;;  %v7730_v55 = vld [vmem:[#allocation99_spill] sm:$0xff] }
 0x29d   :  { %2157 = vmatpush.bf16.msra.mxu1 %v7723_v42  ;;  %2183 = vmatpush.bf16.msra.mxu3 %v7724_v19  ;;  %v1827_v39 = vpop.f32.mrf.mxu2  ;;  %v7732_v42 = vld [vmem:[#allocation103_spill] sm:$0xff] }
 0x29e   :  { %v7737_v39 = vld [vmem:[#allocation113_spill] sm:$0xff] }
 0x29f   :  { %v1851_v2 = vpop.f32.mrf.mxu0 }
 0x2a1   :  { %2158 = vmatpush.bf16.msra.mxu1 %v7725_v0  ;;  %2184 = vmatpush.bf16.msra.mxu3 %v7726_v11  ;;  %v7734_v0 = vld [vmem:[#allocation107_spill] sm:$0xff]  ;;  %v7739_v11 = vld [vmem:[#allocation117_spill] sm:$0xff] }
 0x2a5   :  { %2159 = vmatpush.bf16.msra.mxu1 %v7727_v36  ;;  %2185 = vmatpush.bf16.msra.mxu3 %v7728_v29  ;;  %v1877_v19 = vpop.f32.mrf.mxu2  ;;  %v7736_v36 = vld [vmem:[#allocation111_spill] sm:$0xff] }
 0x2a7   :  { %v1853_v29 = vpop.f32.mrf.mxu0 }
 0x2a8   :  { %v7744_v29 = vld [vmem:[#allocation127_spill] sm:$0xff] }
 0x2a9   :  { %2160 = vmatpush.bf16.msra.mxu1 %v7729_v58  ;;  %2186 = vmatpush.bf16.msra.mxu3 %v7730_v55  ;;  %v7738_v58 = vld [vmem:[#allocation115_spill] sm:$0xff] }
 0x2ad   :  { %2161 = vmatpush.bf16.msra.mxu1 %v7731_v1  ;;  %2187 = vmatpush.bf16.msra.mxu3 %v7732_v42  ;;  %v1879_v55 = vpop.f32.mrf.mxu2  ;;  %v7740_v1 = vld [vmem:[#allocation119_spill] sm:$0xff] }
 0x2ae   :  { %v7746_v55 = vld [vmem:[#allocation131_spill] sm:$0xff] }
 0x2af   :  { %v6236_v42 = vpop.f32.mrf.mxu0 }
 0x2b1   :  { %2162 = vmatpush.bf16.msra.mxu1 %v7733_v59  ;;  %2188 = vmatpush.bf16.msra.mxu3 %v7734_v0  ;;  %v7742_v59 = vld [vmem:[#allocation123_spill] sm:$0xff] }
 0x2b5   :  { %2207 = vmatpush.bf16.msrb.mxu1 %v7735_v35  ;;  %2233 = vmatpush.bf16.msrb.mxu3 %v7736_v36  ;;  %v6240_v0 = vpop.f32.mrf.mxu2  ;;  %v7743_v35 = vld [vmem:[#allocation125_spill] sm:$0xff] }
 0x2b6   :  { %v7745_v36 = vld [vmem:[#allocation129_spill] sm:$0xff] }
 0x2b9   :  { %2208 = vmatpush.bf16.msrb.mxu1 %v7737_v39  ;;  %2234 = vmatpush.bf16.msrb.mxu3 %v7738_v58  ;;  %v1905_v39 = vpop.f32.mrf.mxu0  ;;  %v7747_v58 = vld [vmem:[#allocation133_spill] sm:$0xff] }
 0x2bd   :  { %2209 = vmatpush.bf16.msrb.mxu1 %v7739_v11  ;;  %2235 = vmatpush.bf16.msrb.mxu3 %v7740_v1  ;;  %v1931_v11 = vpop.f32.mrf.mxu2  ;;  %v7748_v1 = vld [vmem:[#allocation135_spill] sm:$0xff] }
 0x2c1   :  { %2210 = vmatpush.bf16.msrb.mxu1 %v7741_v60  ;;  %2236 = vmatpush.bf16.msrb.mxu3 %v7742_v59  ;;  %v7750_v60 = vld [vmem:[#allocation139_spill] sm:$0xff] }
 0x2c5   :  { %2211 = vmatpush.bf16.msrb.mxu1 %v7743_v35  ;;  %2237 = vmatpush.bf16.msrb.mxu3 %v7744_v29  ;;  %v7751_v35 = vld [vmem:[#allocation21_spill] sm:$0xff] }
 0x2c9   :  { %2212 = vmatpush.bf16.msrb.mxu1 %v7745_v36  ;;  %2238 = vmatpush.bf16.msrb.mxu3 %v7746_v55 }
 0x2cd   :  { %2213 = vmatpush.bf16.msrb.mxu1 %v7747_v58  ;;  %2239 = vmatpush.bf16.msrb.mxu3 %v7748_v1  ;;  %v7752_v58 = vld [vmem:[#allocation22_spill] sm:$0xff] }
 0x2cf   :  { %v6250_v38 = vpop.f32.mrf.mxu0 }
 0x2d1   :  { %2214 = vmatpush.bf16.msrb.mxu1 %v7749_v8  ;;  %2240 = vmatpush.bf16.msrb.mxu3 %v7750_v60  ;;  %v1812_v59 = vpop.f32.mrf.mxu1 }
 0x2d2   :  { %v1813_v33 = vadd.f32 %v1812_v59, %v1799_v44 }
 0x2d4   :  { %v2002_v29 = vadd.f32 %v1813_v33, %v7751_v35 }
 0x2d5   :  { %v6253_v11 = vpop.f32.mrf.mxu2 }
 0x2d6   :  { %v4693_v39 = vmul.f32 -1.442695, %v2002_v29 }
 0x2d7   :  { %v1838_v31 = vpop.f32.mrf.mxu3  ;;  %v1957_v1 = vpop.f32.mrf.mxu0 }
 0x2d8   :  { %4926 = vpow2.f32 %v4693_v39  ;;  %v1839_v36 = vadd.f32 %v1838_v31, %v1825_v27  ;;  %v7753_v31 = vld [vmem:[#allocation27_spill] sm:$0xff] }
 0x2d9   :  { %v1814_v55 = vpop.f32.mrf.mxu1 }
 0x2da   :  { %v2003_v16 = vadd.f32 %v1839_v36, %v7752_v58 }
 0x2dc   :  { %v4694_v17 = vmul.f32 -1.442695, %v2003_v16  ;;  %v7754_v16 = vld [vmem:[#allocation24_spill] sm:$0xff] }
 0x2dd   :  { %v1983_v44 = vpop.f32.mrf.mxu2 }
 0x2de   :  { %v4927_v8 = vpop.eup %4926  ;;  %4928 = vpow2.f32 %v4694_v17 }
 0x2df   :  { %v2017_v60 = vadd.f32 1.0, %v4927_v8  ;;  %v1840_v52 = vpop.f32.mrf.mxu3 }
 0x2e1   :  { %4930 = vrcp.f32 %v2017_v60  ;;  %v1864_v59 = vpop.f32.mrf.mxu1  ;;  %v2029_v17 = vand.u32 2147483648, %v2017_v60  ;;  %v2027_v8 = vand.u32 2147483647, %v2017_v60  ;;  %vm2023_vm3 = vweird.f32 %v2017_v60 }
 0x2e2   :  { %v1865_v24 = vadd.f32 %v1864_v59, %v1851_v2 }
 0x2e3   :  { %vm2028_vm5 = vcmp.eq.f32.partialorder %v2027_v8, 8.507059e+37 }
 0x2e4   :  { %v4929_v33 = vpop.eup %4928  ;;  %v2004_v27 = vadd.f32 %v1865_v24, %v7753_v31  ;;  %v2030_v24 = vor.u32 1.1754944e-38, %v2029_v17 }
 0x2e5   :  { %v2036_v35 = vadd.f32 1.0, %v4929_v33 }
 0x2e7   :  { %v4931_v29 = vpop.eup %4930  ;;  %4932 = vrcp.f32 %v2036_v35  ;;  %v1890_v55 = vpop.f32.mrf.mxu3  ;;  %vm2042_vm7 = vweird.f32 %v2036_v35 }
 0x2e8   :  { %v2019_v39 = vmul.f32 %v4931_v29, %v2017_v60  ;;  %v1891_v18 = vadd.f32 %v1890_v55, %v1877_v19  ;;  %4934 = vtanh.f32 %v2004_v27  ;;  %vm2024_vm2 = vweird.f32 %v4931_v29 }
 0x2e9   :  { %v1866_v58 = vpop.f32.mrf.mxu1  ;;  %vm2025_vm4 = vmor %vm2023_vm3, %vm2024_vm2 }
 0x2ea   :  { %v2020_v1 = vsub.f32 1.0, %v2019_v39  ;;  %v2005_v36 = vadd.f32 %v1891_v18, %v7754_v16  ;;  %v2048_v39 = vand.u32 2147483648, %v2036_v35  ;;  %v2046_v58 = vand.u32 2147483647, %v2036_v35 }
 0x2ec   :  { %v2021_v52 = vmul.f32 %v4931_v29, %v2020_v1  ;;  %v4695_v44 = vmul.f32 -1.442695, %v2005_v36  ;;  %v2049_v17 = vor.u32 1.1754944e-38, %v2048_v39  ;;  %vm2047_vm9 = vcmp.eq.f32.partialorder %v2046_v58, 8.507059e+37 }
 0x2ed   :  { %v4933_v2 = vpop.eup %4932 }
 0x2ee   :  { %v2038_v59 = vmul.f32 %v4933_v2, %v2036_v35  ;;  %v2022_v33 = vadd.f32 %v4931_v29, %v2021_v52  ;;  %4936 = vpow2.f32 %v4695_v44  ;;  %v4935_v55 = vpop.eup %4934  ;;  %vm2043_vm6 = vweird.f32 %v4933_v2  ;;  %v7755_v52 = vld [vmem:[#allocation66_spill] sm:$0xff]  ;;  %v7757_v35 = vld [vmem:[#allocation67_spill] sm:$0xff] }
 0x2ef   :  { %v1892_v31 = vpop.f32.mrf.mxu3  ;;  %vm2044_vm8 = vmor %vm2042_vm7, %vm2043_vm6 }
 0x2f0   :  { %v2039_v41 = vsub.f32 1.0, %v2038_v59  ;;  %v2026_v19 = vsel %vm2025_vm4, %v4931_v29, %v2022_v33  ;;  %v7756_v31 = vld [vmem:[#allocation18_spill] sm:$0xff] }
 0x2f1   :  { %v2031_v18 = vsel %vm2028_vm5, %v2030_v24, %v2026_v19  ;;  %v1916_v27 = vpop.f32.mrf.mxu1 }
 0x2f2   :  { %v2040_v1 = vmul.f32 %v4933_v2, %v2039_v41  ;;  %v2073_v16 = vmul.f32 %v4935_v55, %v2031_v18  ;;  %v1917_v36 = vadd.f32 %v1916_v27, %v6236_v42 }
 0x2f4   :  { %v4937_v56 = vpop.eup %4936  ;;  %v2041_v60 = vadd.f32 %v4933_v2, %v2040_v1  ;;  %v2010_v44 = vadd.f32 %v1917_v36, %v7755_v52 }
 0x2f5   :  { %v2056_v59 = vadd.f32 1.0, %v4937_v56 }
 0x2f6   :  { %v2045_v29 = vsel %vm2044_vm8, %v4933_v2, %v2041_v60  ;;  %v4696_v8 = vmul.f32 -1.442695, %v2010_v44 }
 0x2f7   :  { %v2050_v33 = vsel %vm2047_vm9, %v2049_v17, %v2045_v29  ;;  %4938 = vrcp.f32 %v2056_v59  ;;  %v1942_v24 = vpop.f32.mrf.mxu3  ;;  %v2068_v60 = vand.u32 2147483648, %v2056_v59  ;;  %vm2062_vm11 = vweird.f32 %v2056_v59 }
 0x2f8   :  { %v2072_v41 = vmul.f32 %v2050_v33, %v7756_v31  ;;  %4940 = vpow2.f32 %v4696_v8  ;;  %v1943_v19 = vadd.f32 %v1942_v24, %v6240_v0 }
 0x2f9   :  { %v1918_v42 = vpop.f32.mrf.mxu1  ;;  %v2069_v17 = vor.u32 1.1754944e-38, %v2068_v60 }
 0x2fa   :  { %v6262_v55 = vadd.f32 %v2073_v16, %v2072_v41  ;;  %v2011_v18 = vadd.f32 %v1943_v19, %v7757_v35  ;;  %v2066_v16 = vand.u32 2147483647, %v2056_v59 }
 0x2fc   :  { %v4697_v27 = vmul.f32 -1.442695, %v2011_v18  ;;  %vm2067_vm13 = vcmp.eq.f32.partialorder %v2066_v16, 8.507059e+37  ;;  %v7758_v18 = vld [vmem:[#allocation140_spill] sm:$0xff] }
 0x2fd   :  { %v4939_v1 = vpop.eup %4938 }
 0x2fe   :  { %v4941_v39 = vpop.eup %4940  ;;  %v2058_v56 = vmul.f32 %v4939_v1, %v2056_v59  ;;  %4942 = vpow2.f32 %v4697_v27  ;;  %vm2063_vm10 = vweird.f32 %v4939_v1  ;;  %v7759_v27 = vld [vmem:[#allocation142_spill] sm:$0xff] }
 0x2ff   :  { %v6265_v2 = vadd.f32 1.0, %v4941_v39  ;;  %v1944_v58 = vpop.f32.mrf.mxu3  ;;  %4944 = vtanh.f32 %v6262_v55  ;;  %vm2064_vm12 = vmor %vm2062_vm11, %vm2063_vm10 }
 0x300   :  { %v2059_v36 = vsub.f32 1.0, %v2058_v56 }
 0x301   :  { %4946 = vrcp.f32 %v6265_v2  ;;  %vm2086_vm0 = vweird.f32 %v6265_v2 }
 0x302   :  { %v2060_v0 = vmul.f32 %v4939_v1, %v2059_v36 }
 0x304   :  { %v4943_v52 = vpop.eup %4942  ;;  %v2061_v44 = vadd.f32 %v4939_v1, %v2060_v0  ;;  %v7760_v0 = vld [vmem:[#allocation72_spill] sm:$0xff] }
 0x305   :  { %v2099_v29 = vadd.f32 1.0, %v4943_v52  ;;  %v4945_v8 = vpop.eup %4944  ;;  %v7761_v52 = vld [vmem:[#allocation144_spill] sm:$0xff] }
 0x306   :  { %v2065_v33 = vsel %vm2064_vm12, %v4939_v1, %v2061_v44  ;;  %v7762_v44 = vld [vmem:[#allocation146_spill] sm:$0xff] }
 0x307   :  { %v4947_v24 = vpop.eup %4946  ;;  %v2070_v31 = vsel %vm2067_vm13, %v2069_v17, %v2065_v33  ;;  %4948 = vrcp.f32 %v2099_v29  ;;  %v2111_v60 = vand.u32 2147483648, %v2099_v29  ;;  %v2109_v33 = vand.u32 2147483647, %v2099_v29 }
 0x308   :  { %v2076_v41 = vmul.f32 %v4945_v8, %v2070_v31  ;;  %v2082_v19 = vmul.f32 %v4947_v24, %v6265_v2  ;;  %vm2087_vm14 = vweird.f32 %v4947_v24  ;;  %v2092_v31 = vand.u32 2147483648, %v6265_v2 }
 0x309   :  { %vm2105_vm1 = vweird.f32 %v2099_v29  ;;  %vm6282_vm2 = vmor %vm2086_vm0, %vm2087_vm14  ;;  %vm2110_vm4 = vcmp.eq.f32.partialorder %v2109_v33, 8.507059e+37 }
 0x30a   :  { %v6270_v42 = vpack.c.bf16 %v2076_v41, %v2076_v41  ;;  %v2083_v35 = vsub.f32 1.0, %v2082_v19  ;;  %v2090_v41 = vand.u32 2147483647, %v6265_v2 }
 0x30c   :  { %2150 = vmatmul.bf16.vlgmr.msra.gmra.mxu0 %v6270_v42  ;;  %2176 = vmatmul.bf16.vlgmr.msra.gmra.mxu2 %v6270_v42  ;;  %v2084_v56 = vmul.f32 %v4947_v24, %v2083_v35  ;;  %vm2091_vm5 = vcmp.eq.f32.partialorder %v2090_v41, 8.507059e+37 }
 0x30d   :  { %v4949_v59 = vpop.eup %4948  ;;  %2246 = vmatpush.bf16.msra.mxu0 %v7758_v18  ;;  %2272 = vmatpush.bf16.msra.mxu2 %v7759_v27 }
 0x30e   :  { %v2101_v1 = vmul.f32 %v4949_v59, %v2099_v29  ;;  %vm2106_vm15 = vweird.f32 %v4949_v59  ;;  %v2085_v8 = vadd.f32 %v4947_v24, %v2084_v56  ;;  %v7765_v56 = vld [vmem:[#allocation148_spill] sm:$0xff] }
 0x30f   :  { %vm2107_vm3 = vmor %vm2105_vm1, %vm2106_vm15 }
 0x310   :  { %v2102_v36 = vsub.f32 1.0, %v2101_v1  ;;  %v2112_v1 = vor.u32 1.1754944e-38, %v2111_v60 }
 0x311   :  { %v1968_v39 = vpop.f32.mrf.mxu1  ;;  %2247 = vmatpush.bf16.msra.mxu0 %v7761_v52  ;;  %2273 = vmatpush.bf16.msra.mxu2 %v7762_v44  ;;  %v7767_v52 = vld [vmem:[#allocation69_spill] sm:$0xff] }
 0x312   :  { %v1969_v58 = vadd.f32 %v1968_v39, %v6250_v38  ;;  %v2103_v17 = vmul.f32 %v4949_v59, %v2102_v36  ;;  %v2089_v36 = vsel %vm6282_vm2, %v4947_v24, %v2085_v8  ;;  %v7771_v8 = vld [vmem:[#allocation158_spill] sm:$0xff] }
 0x314   :  { %v2012_v16 = vadd.f32 %v1969_v58, %v7760_v0  ;;  %v2104_v19 = vadd.f32 %v4949_v59, %v2103_v17  ;;  %v7766_v58 = vld [vmem:[#allocation150_spill] sm:$0xff] }
 0x315   :  { %2248 = vmatpush.bf16.msra.mxu0 %v7765_v56  ;;  %2274 = vmatpush.bf16.msra.mxu2 %v7766_v58  ;;  %v7769_v56 = vld [vmem:[#allocation154_spill] sm:$0xff] }
 0x316   :  { %4950 = vtanh.f32 %v2012_v16  ;;  %v2108_v29 = vsel %vm2107_vm3, %v4949_v59, %v2104_v19  ;;  %v2093_v16 = vor.u32 1.1754944e-38, %v2092_v31  ;;  %v7773_v19 = vld [vmem:[#allocation173_spill] sm:$0xff] }
 0x317   :  { %v1994_v35 = vpop.f32.mrf.mxu3  ;;  %v2113_v44 = vsel %vm2110_vm4, %v2112_v1, %v2108_v29 }
 0x318   :  { %v1995_v39 = vadd.f32 %v1994_v35, %v6253_v11  ;;  %v2135_v17 = vmul.f32 %v2113_v44, %v6127_v25  ;;  %v2094_v27 = vsel %vm2091_vm5, %v2093_v16, %v2089_v36  ;;  %v7768_v35 = vld [vmem:[#allocation152_spill] sm:$0xff] }
 0x319   :  { %v1970_v0 = vpop.f32.mrf.mxu1  ;;  %2249 = vmatpush.bf16.msra.mxu0 %v7768_v35  ;;  %2275 = vmatpush.bf16.msra.mxu2 %v7769_v56  ;;  %v7772_v44 = vld [vmem:[#allocation160_spill] sm:$0xff] }
 0x31a   :  { %v2013_v2 = vadd.f32 %v1995_v39, %v7767_v52  ;;  %v7770_v52 = vld [vmem:[#allocation156_spill] sm:$0xff] }
 0x31c   :  { %v4951_v60 = vpop.eup %4950  ;;  %v4698_v11 = vmul.f32 -1.442695, %v2013_v2  ;;  %2202 = vmatmul.bf16.vlgmr.msrb.gmra.mxu0 %v6270_v42  ;;  %2228 = vmatmul.bf16.vlgmr.msrb.gmra.mxu2 %v6270_v42 }
 0x31d   :  { %v2136_v58 = vmul.f32 %v4951_v60, %v2094_v27  ;;  %2250 = vmatpush.bf16.msra.mxu0 %v7770_v52  ;;  %2276 = vmatpush.bf16.msra.mxu2 %v7771_v8  ;;  %v7774_v60 = vld [vmem:[#allocation84_spill] sm:$0xff] }
 0x31e   :  { %4952 = vpow2.f32 %v4698_v11  ;;  %v7775_v11 = vld [vmem:[#allocation86_spill] sm:$0xff] }
 0x31f   :  { %v6296_v24 = vadd.f32 %v2136_v58, %v2135_v17  ;;  %v1996_v59 = vpop.f32.mrf.mxu3 }
 0x320   :  { %v7776_v59 = vld [vmem:[#allocation165_spill] sm:$0xff] }
 0x321   :  { %2251 = vmatpush.bf16.msra.mxu0 %v7772_v44  ;;  %2277 = vmatpush.bf16.msra.mxu2 %v7665_v20 }
 0x324   :  { %v4953_v25 = vpop.eup %4952 }
 0x325   :  { %v2119_v33 = vadd.f32 1.0, %v4953_v25  ;;  %2252 = vmatpush.bf16.msra.mxu0 %v7666_v28  ;;  %2278 = vmatpush.bf16.msra.mxu2 %v5867_v46  ;;  %v7777_v25 = vld [vmem:[#allocation166_spill] sm:$0xff] }
 0x327   :  { %4954 = vrcp.f32 %v2119_v33  ;;  %v2131_v41 = vand.u32 2147483648, %v2119_v33  ;;  %v2129_v39 = vand.u32 2147483647, %v2119_v33  ;;  %vm2125_vm7 = vweird.f32 %v2119_v33 }
 0x328   :  { %4956 = vtanh.f32 %v6296_v24 }
 0x329   :  { %2253 = vmatpush.bf16.msra.mxu0 %v5873_v40  ;;  %2279 = vmatpush.bf16.msra.mxu2 %v5879_v45  ;;  %v2132_v36 = vor.u32 1.1754944e-38, %v2131_v41  ;;  %vm2130_vm9 = vcmp.eq.f32.partialorder %v2129_v39, 8.507059e+37  ;;  %v7783_v41 = vld [vmem:[#allocation170_spill] sm:$0xff] }
 0x32a   :  { %v7785_v39 = vld [vmem:[#allocation94_spill] sm:$0xff] }
 0x32c   :  { %2254 = vmatmul.bf16.vlgmr.msra.gmra.mxu0 %v6270_v42  ;;  %2280 = vmatmul.bf16.vlgmr.msra.gmra.mxu2 %v6270_v42 }
 0x32d   :  { %v4955_v27 = vpop.eup %4954  ;;  %2298 = vmatpush.bf16.msrb.mxu0 %v5884_v54  ;;  %2324 = vmatpush.bf16.msrb.mxu2 %v5888_v32 }
 0x32e   :  { %v2121_v31 = vmul.f32 %v4955_v27, %v2119_v33  ;;  %vm2126_vm6 = vweird.f32 %v4955_v27  ;;  %v4957_v0 = vpop.eup %4956  ;;  %v7778_v33 = vld [vmem:[#allocation88_spill] sm:$0xff] }
 0x32f   :  { %vm2127_vm8 = vmor %vm2125_vm7, %vm2126_vm6 }
 0x330   :  { %v2122_v38 = vsub.f32 1.0, %v2121_v31  ;;  %v7781_v31 = vld [vmem:[#allocation168_spill] sm:$0xff] }
 0x331   :  { %2299 = vmatpush.bf16.msrb.mxu0 %v7673_v10  ;;  %2325 = vmatpush.bf16.msrb.mxu2 %v7773_v19 }
 0x332   :  { %v2123_v1 = vmul.f32 %v4955_v27, %v2122_v38  ;;  %v7782_v38 = vld [vmem:[#allocation169_spill] sm:$0xff] }
 0x334   :  { %v2124_v58 = vadd.f32 %v4955_v27, %v2123_v1  ;;  %v7784_v1 = vld [vmem:[#allocation92_spill] sm:$0xff] }
 0x335   :  { %2300 = vmatpush.bf16.msrb.mxu0 %v7675_v50  ;;  %2326 = vmatpush.bf16.msrb.mxu2 %v7676_v63 }
 0x336   :  { %v2128_v29 = vsel %vm2127_vm8, %v4955_v27, %v2124_v58  ;;  %v7779_v27 = vld [vmem:[#allocation90_spill] sm:$0xff]  ;;  %v7786_v58 = vld [vmem:[#allocation172_spill] sm:$0xff] }
 0x337   :  { %v2133_v16 = vsel %vm2130_vm9, %v2132_v36, %v2128_v29  ;;  %v7787_v36 = vld [vmem:[#allocation174_spill] sm:$0xff]  ;;  %v7788_v29 = vld [vmem:[#allocation96_spill] sm:$0xff] }
 0x338   :  { %v2139_v2 = vmul.f32 %v4957_v0, %v2133_v16  ;;  %v7789_v0 = vld [vmem:[#allocation98_spill] sm:$0xff]  ;;  %v7790_v16 = vld [vmem:[#allocation176_spill] sm:$0xff] }
 0x339   :  { %2301 = vmatpush.bf16.msrb.mxu0 %v7677_v37  ;;  %2327 = vmatpush.bf16.msrb.mxu2 %v7678_v53 }
 0x33a   :  { %v6319_v17 = vpack.c.bf16 %v2139_v2, %v2139_v2  ;;  %v7791_v2 = vld [vmem:[#allocation178_spill] sm:$0xff] }
 0x33c   :  { %2163 = vmatmul.bf16.vlgmr.msra.gmra.mxu1 %v6319_v17  ;;  %2189 = vmatmul.bf16.vlgmr.msra.gmra.mxu3 %v6319_v17 }
 0x33d   :  { %2259 = vmatpush.bf16.msra.mxu1 %v7683_v61  ;;  %2285 = vmatpush.bf16.msra.mxu3 %v7684_v22 }
 0x33e   :  { %2302 = vmatpush.bf16.msrb.mxu0 %v7680_v5  ;;  %2328 = vmatpush.bf16.msrb.mxu2 %v7681_v3 }
 0x341   :  { %2260 = vmatpush.bf16.msra.mxu1 %v7685_v9  ;;  %2286 = vmatpush.bf16.msra.mxu3 %v7686_v7 }
 0x342   :  { %2303 = vmatpush.bf16.msrb.mxu0 %v7682_v23  ;;  %2329 = vmatpush.bf16.msrb.mxu2 %v5955_v30 }
 0x345   :  { %2261 = vmatpush.bf16.msra.mxu1 %v7687_v21  ;;  %2287 = vmatpush.bf16.msra.mxu3 %v7688_v14 }
 0x346   :  { %2304 = vmatpush.bf16.msrb.mxu0 %v5961_v57  ;;  %2330 = vmatpush.bf16.msrb.mxu2 %v5967_v12 }
 0x349   :  { %2262 = vmatpush.bf16.msra.mxu1 %v7689_v62  ;;  %2288 = vmatpush.bf16.msra.mxu3 %v7690_v47 }
 0x34a   :  { %2305 = vmatpush.bf16.msrb.mxu0 %v5973_v43  ;;  %2331 = vmatpush.bf16.msrb.mxu2 %v5979_v51 }
 0x34c   :  { %2215 = vmatmul.bf16.vlgmr.msrb.gmra.mxu1 %v6319_v17  ;;  %2241 = vmatmul.bf16.vlgmr.msrb.gmra.mxu3 %v6319_v17 }
 0x34d   :  { %2263 = vmatpush.bf16.msra.mxu1 %v7691_v4  ;;  %2289 = vmatpush.bf16.msra.mxu3 %v7692_v34 }
 0x34e   :  { %2494 = vmatpush.bf16.msra.mxu0 %v5584_v48  ;;  %2520 = vmatpush.bf16.msra.mxu2 %v5588_v15  ;;  %v7857_v15 = vld [vmem:[#allocation32_spill] sm:$0xff] }
 0x34f   :  { %2306 = vmatmul.bf16.vlgmr.msrb.gmra.mxu0 %v6270_v42  ;;  %2332 = vmatmul.bf16.vlgmr.msrb.gmra.mxu2 %v6270_v42  ;;  %v7780_v42 = vld [vmem:[#allocation167_spill] sm:$0xff] }
 0x351   :  { %2264 = vmatpush.bf16.msra.mxu1 %v7693_v49  ;;  %2290 = vmatpush.bf16.msra.mxu3 %v7694_v13 }
 0x352   :  { %2495 = vmatpush.bf16.msra.mxu0 %v5595_v6  ;;  %2521 = vmatpush.bf16.msra.mxu2 %v5600_v26 }
 0x355   :  { %2265 = vmatpush.bf16.msra.mxu1 %v7776_v59  ;;  %2291 = vmatpush.bf16.msra.mxu3 %v7777_v25  ;;  %v7850_v25 = vld [vmem:[#allocation133_spill] sm:$0xff] }
 0x356   :  { %2496 = vmatpush.bf16.msra.mxu0 %v7774_v60  ;;  %2522 = vmatpush.bf16.msra.mxu2 %v7775_v11  ;;  %v7854_v11 = vld [vmem:[#allocation25_spill] sm:$0xff] }
 0x359   :  { %2266 = vmatpush.bf16.msra.mxu1 %v7780_v42  ;;  %2292 = vmatpush.bf16.msra.mxu3 %v7781_v31  ;;  %v7796_v31 = vld [vmem:[#allocation104_spill] sm:$0xff] }
 0x35a   :  { %2497 = vmatpush.bf16.msra.mxu0 %v7778_v33  ;;  %2523 = vmatpush.bf16.msra.mxu2 %v7779_v27  ;;  %v7842_v27 = vld [vmem:[#allocation117_spill] sm:$0xff] }
 0x35b   :  { %v7846_v33 = vld [vmem:[#allocation125_spill] sm:$0xff] }
 0x35c   :  { %2267 = vmatmul.bf16.vlgmr.msra.gmra.mxu1 %v6319_v17  ;;  %2293 = vmatmul.bf16.vlgmr.msra.gmra.mxu3 %v6319_v17 }
 0x35d   :  { %2311 = vmatpush.bf16.msrb.mxu1 %v7782_v38  ;;  %2337 = vmatpush.bf16.msrb.mxu3 %v7783_v41  ;;  %v7792_v41 = vld [vmem:[#allocation100_spill] sm:$0xff]  ;;  %v7795_v38 = vld [vmem:[#allocation182_spill] sm:$0xff] }
 0x35e   :  { %2498 = vmatpush.bf16.msra.mxu0 %v7784_v1  ;;  %2524 = vmatpush.bf16.msra.mxu2 %v7785_v39  ;;  %v7793_v1 = vld [vmem:[#allocation102_spill] sm:$0xff]  ;;  %v7794_v39 = vld [vmem:[#allocation180_spill] sm:$0xff] }
 0x361   :  { %2312 = vmatpush.bf16.msrb.mxu1 %v7786_v58  ;;  %2338 = vmatpush.bf16.msrb.mxu3 %v7787_v36  ;;  %v7797_v58 = vld [vmem:[#allocation106_spill] sm:$0xff]  ;;  %v7798_v36 = vld [vmem:[#allocation108_spill] sm:$0xff] }
 0x362   :  { %2499 = vmatpush.bf16.msra.mxu0 %v7788_v29  ;;  %2525 = vmatpush.bf16.msra.mxu2 %v7789_v0  ;;  %v7799_v29 = vld [vmem:[#allocation110_spill] sm:$0xff]  ;;  %v7800_v0 = vld [vmem:[#allocation184_spill] sm:$0xff] }
 0x365   :  { %2313 = vmatpush.bf16.msrb.mxu1 %v7790_v16  ;;  %2339 = vmatpush.bf16.msrb.mxu3 %v7791_v2  ;;  %v7801_v16 = vld [vmem:[#allocation186_spill] sm:$0xff]  ;;  %v7802_v2 = vld [vmem:[#allocation112_spill] sm:$0xff] }
 0x366   :  { %2500 = vmatpush.bf16.msra.mxu0 %v7792_v41  ;;  %2526 = vmatpush.bf16.msra.mxu2 %v7793_v1  ;;  %v7803_v41 = vld [vmem:[#allocation114_spill] sm:$0xff]  ;;  %v7804_v1 = vld [vmem:[#allocation188_spill] sm:$0xff] }
 0x369   :  { %2314 = vmatpush.bf16.msrb.mxu1 %v7794_v39  ;;  %2340 = vmatpush.bf16.msrb.mxu3 %v7795_v38  ;;  %v7805_v39 = vld [vmem:[#allocation189_spill] sm:$0xff]  ;;  %v7806_v38 = vld [vmem:[#allocation116_spill] sm:$0xff] }
 0x36a   :  { %2501 = vmatpush.bf16.msra.mxu0 %v7796_v31  ;;  %2527 = vmatpush.bf16.msra.mxu2 %v7797_v58  ;;  %v7807_v31 = vld [vmem:[#allocation118_spill] sm:$0xff]  ;;  %v7808_v58 = vld [vmem:[#allocation191_spill] sm:$0xff] }
 0x36d   :  { %2315 = vmatpush.bf16.msrb.mxu1 %v7800_v0  ;;  %2341 = vmatpush.bf16.msrb.mxu3 %v7801_v16  ;;  %v7811_v0 = vld [vmem:[#allocation122_spill] sm:$0xff]  ;;  %v7812_v16 = vld [vmem:[#allocation195_spill] sm:$0xff] }
 0x36e   :  { %2546 = vmatpush.bf16.msrb.mxu0 %v7798_v36  ;;  %2572 = vmatpush.bf16.msrb.mxu2 %v7799_v29  ;;  %v7809_v36 = vld [vmem:[#allocation193_spill] sm:$0xff]  ;;  %v7810_v29 = vld [vmem:[#allocation120_spill] sm:$0xff] }
 0x371   :  { %2316 = vmatpush.bf16.msrb.mxu1 %v7804_v1  ;;  %2342 = vmatpush.bf16.msrb.mxu3 %v7805_v39  ;;  %v7815_v1 = vld [vmem:[#allocation79_spill] sm:$0xff]  ;;  %v7816_v39 = vld [vmem:[#allocation124_spill] sm:$0xff] }
 0x372   :  { %2547 = vmatpush.bf16.msrb.mxu0 %v7802_v2  ;;  %2573 = vmatpush.bf16.msrb.mxu2 %v7803_v41  ;;  %v7813_v2 = vld [vmem:[#allocation197_spill] sm:$0xff] }
 0x373   :  { %v7814_v41 = vld [vmem:[#allocation77_spill] sm:$0xff] }
 0x375   :  { %2317 = vmatpush.bf16.msrb.mxu1 %v7808_v58  ;;  %2343 = vmatpush.bf16.msrb.mxu3 %v7809_v36  ;;  %v7818_v36 = vld [vmem:[#allocation81_spill] sm:$0xff]  ;;  %v7827_v58 = vld [vmem:[#allocation91_spill] sm:$0xff] }
 0x376   :  { %2548 = vmatpush.bf16.msrb.mxu0 %v7806_v38  ;;  %2574 = vmatpush.bf16.msrb.mxu2 %v7807_v31  ;;  %v7817_v38 = vld [vmem:[#allocation126_spill] sm:$0xff]  ;;  %v7836_v31 = vld [vmem:[#allocation105_spill] sm:$0xff] }
 0x379   :  { %2318 = vmatpush.bf16.msrb.mxu1 %v7812_v16  ;;  %2344 = vmatpush.bf16.msrb.mxu3 %v7813_v2  ;;  %v7821_v16 = vld [vmem:[#allocation130_spill] sm:$0xff]  ;;  %v7822_v2 = vld [vmem:[#allocation85_spill] sm:$0xff] }
 0x37a   :  { %2549 = vmatpush.bf16.msrb.mxu0 %v7810_v29  ;;  %2575 = vmatpush.bf16.msrb.mxu2 %v7811_v0  ;;  %v7819_v29 = vld [vmem:[#allocation83_spill] sm:$0xff]  ;;  %v7820_v0 = vld [vmem:[#allocation128_spill] sm:$0xff] }
 0x37c   :  { %2319 = vmatmul.bf16.vlgmr.msrb.gmra.mxu1 %v6319_v17  ;;  %2345 = vmatmul.bf16.vlgmr.msrb.gmra.mxu3 %v6319_v17  ;;  %v7828_v17 = vld [vmem:[#allocation136_spill] sm:$0xff] }
 0x37d   :  { %2507 = vmatpush.bf16.msra.mxu1 %v7814_v41  ;;  %2533 = vmatpush.bf16.msra.mxu3 %v7815_v1  ;;  %v7823_v41 = vld [vmem:[#allocation87_spill] sm:$0xff]  ;;  %v7824_v1 = vld [vmem:[#allocation132_spill] sm:$0xff] }
 0x37e   :  { %2550 = vmatpush.bf16.msrb.mxu0 %v7816_v39  ;;  %2576 = vmatpush.bf16.msrb.mxu2 %v7817_v38  ;;  %v7825_v39 = vld [vmem:[#allocation134_spill] sm:$0xff]  ;;  %v7826_v38 = vld [vmem:[#allocation89_spill] sm:$0xff] }
 0x381   :  { %2508 = vmatpush.bf16.msra.mxu1 %v7818_v36  ;;  %2534 = vmatpush.bf16.msra.mxu3 %v7819_v29  ;;  %v7829_v36 = vld [vmem:[#allocation138_spill] sm:$0xff]  ;;  %v7830_v29 = vld [vmem:[#allocation93_spill] sm:$0xff] }
 0x382   :  { %2551 = vmatpush.bf16.msrb.mxu0 %v7820_v0  ;;  %2577 = vmatpush.bf16.msrb.mxu2 %v7821_v16  ;;  %v7831_v0 = vld [vmem:[#allocation95_spill] sm:$0xff]  ;;  %v7832_v16 = vld [vmem:[#allocation97_spill] sm:$0xff] }
 0x385   :  { %2509 = vmatpush.bf16.msra.mxu1 %v7822_v2  ;;  %2535 = vmatpush.bf16.msra.mxu3 %v7823_v41  ;;  %v7833_v2 = vld [vmem:[#allocation99_spill] sm:$0xff] }
 0x386   :  { %2552 = vmatpush.bf16.msrb.mxu0 %v7824_v1  ;;  %2578 = vmatpush.bf16.msrb.mxu2 %v7825_v39  ;;  %v7834_v1 = vld [vmem:[#allocation101_spill] sm:$0xff]  ;;  %v7835_v39 = vld [vmem:[#allocation103_spill] sm:$0xff] }
 0x389   :  { %2510 = vmatpush.bf16.msra.mxu1 %v7826_v38  ;;  %2536 = vmatpush.bf16.msra.mxu3 %v7827_v58  ;;  %v2151_v41 = vpop.f32.mrf.mxu0  ;;  %v7837_v58 = vld [vmem:[#allocation107_spill] sm:$0xff] }
 0x38a   :  { %2553 = vmatpush.bf16.msrb.mxu0 %v7828_v17  ;;  %2579 = vmatpush.bf16.msrb.mxu2 %v7829_v36  ;;  %v7838_v36 = vld [vmem:[#allocation109_spill] sm:$0xff] }
 0x38d   :  { %2511 = vmatpush.bf16.msra.mxu1 %v7830_v29  ;;  %2537 = vmatpush.bf16.msra.mxu3 %v7831_v0  ;;  %v7839_v29 = vld [vmem:[#allocation111_spill] sm:$0xff]  ;;  %v7840_v0 = vld [vmem:[#allocation113_spill] sm:$0xff] }
 0x38f   :  { %v2177_v38 = vpop.f32.mrf.mxu2 }
 0x391   :  { %2512 = vmatpush.bf16.msra.mxu1 %v7832_v16  ;;  %2538 = vmatpush.bf16.msra.mxu3 %v7833_v2  ;;  %v2153_v17 = vpop.f32.mrf.mxu0  ;;  %v7841_v16 = vld [vmem:[#allocation115_spill] sm:$0xff] }
 0x395   :  { %2513 = vmatpush.bf16.msra.mxu1 %v7834_v1  ;;  %2539 = vmatpush.bf16.msra.mxu3 %v7835_v39  ;;  %v7843_v1 = vld [vmem:[#allocation119_spill] sm:$0xff]  ;;  %v7844_v39 = vld [vmem:[#allocation121_spill] sm:$0xff] }
 0x397   :  { %v2179_v2 = vpop.f32.mrf.mxu2 }
 0x399   :  { %2514 = vmatpush.bf16.msra.mxu1 %v7836_v31  ;;  %2540 = vmatpush.bf16.msra.mxu3 %v7837_v58  ;;  %v2203_v42 = vpop.f32.mrf.mxu0  ;;  %v7845_v31 = vld [vmem:[#allocation123_spill] sm:$0xff] }
 0x39d   :  { %2559 = vmatpush.bf16.msrb.mxu1 %v7838_v36  ;;  %2585 = vmatpush.bf16.msrb.mxu3 %v7839_v29  ;;  %v7847_v36 = vld [vmem:[#allocation127_spill] sm:$0xff]  ;;  %v7848_v29 = vld [vmem:[#allocation129_spill] sm:$0xff] }
 0x39f   :  { %v2229_v58 = vpop.f32.mrf.mxu2 }
 0x3a1   :  { %2560 = vmatpush.bf16.msrb.mxu1 %v7840_v0  ;;  %2586 = vmatpush.bf16.msrb.mxu3 %v7841_v16  ;;  %v2205_v17 = vpop.f32.mrf.mxu0  ;;  %v7849_v0 = vld [vmem:[#allocation131_spill] sm:$0xff] }
 0x3a5   :  { %2561 = vmatpush.bf16.msrb.mxu1 %v7842_v27  ;;  %2587 = vmatpush.bf16.msrb.mxu3 %v7843_v1  ;;  %v7851_v27 = vld [vmem:[#allocation135_spill] sm:$0xff]  ;;  %v7852_v1 = vld [vmem:[#allocation137_spill] sm:$0xff] }
 0x3a7   :  { %v2231_v2 = vpop.f32.mrf.mxu2 }
 0x3a9   :  { %2562 = vmatpush.bf16.msrb.mxu1 %v7844_v39  ;;  %2588 = vmatpush.bf16.msrb.mxu3 %v7845_v31  ;;  %v2255_v16 = vpop.f32.mrf.mxu0  ;;  %v7853_v39 = vld [vmem:[#allocation139_spill] sm:$0xff] }
 0x3ad   :  { %2563 = vmatpush.bf16.msrb.mxu1 %v7846_v33  ;;  %2589 = vmatpush.bf16.msrb.mxu3 %v7847_v36 }
 0x3af   :  { %v6435_v31 = vpop.f32.mrf.mxu2 }
 0x3b1   :  { %2564 = vmatpush.bf16.msrb.mxu1 %v7848_v29  ;;  %2590 = vmatpush.bf16.msrb.mxu3 %v7849_v0  ;;  %v2257_v17 = vpop.f32.mrf.mxu0 }
 0x3b5   :  { %2565 = vmatpush.bf16.msrb.mxu1 %v7850_v25  ;;  %2591 = vmatpush.bf16.msrb.mxu3 %v7851_v27  ;;  %v7855_v25 = vld [vmem:[#allocation26_spill] sm:$0xff] }
 0x3b7   :  { %v2283_v36 = vpop.f32.mrf.mxu2 }
 0x3b9   :  { %2566 = vmatpush.bf16.msrb.mxu1 %v7852_v1  ;;  %2592 = vmatpush.bf16.msrb.mxu3 %v7853_v39  ;;  %v2164_v33 = vpop.f32.mrf.mxu1 }
 0x3ba   :  { %v2165_v59 = vadd.f32 %v2164_v33, %v2151_v41 }
 0x3bc   :  { %v2354_v29 = vadd.f32 %v2165_v59, %v7854_v11 }
 0x3be   :  { %v4699_v60 = vmul.f32 -1.442695, %v2354_v29 }
 0x3bf   :  { %v2190_v0 = vpop.f32.mrf.mxu3 }
 0x3c0   :  { %4958 = vpow2.f32 %v4699_v60  ;;  %v2191_v2 = vadd.f32 %v2190_v0, %v2177_v38 }
 0x3c1   :  { %v2166_v13 = vpop.f32.mrf.mxu1 }
 0x3c2   :  { %v2355_v49 = vadd.f32 %v2191_v2, %v7855_v25 }
 0x3c4   :  { %v4700_v27 = vmul.f32 -1.442695, %v2355_v49  ;;  %v7856_v49 = vld [vmem:[#allocation28_spill] sm:$0xff] }
 0x3c6   :  { %v4959_v26 = vpop.eup %4958  ;;  %4960 = vpow2.f32 %v4700_v27 }
 0x3c7   :  { %v2369_v1 = vadd.f32 1.0, %v4959_v26  ;;  %v2192_v39 = vpop.f32.mrf.mxu3 }
 0x3c9   :  { %4962 = vrcp.f32 %v2369_v1  ;;  %v2216_v6 = vpop.f32.mrf.mxu1  ;;  %vm2375_vm12 = vweird.f32 %v2369_v1 }
 0x3ca   :  { %v2217_v26 = vadd.f32 %v2216_v6, %v2203_v42  ;;  %v2379_v6 = vand.u32 2147483647, %v2369_v1 }
 0x3cc   :  { %v6439_v17 = vpop.f32.mrf.mxu0  ;;  %v4961_v33 = vpop.eup %4960  ;;  %v2356_v48 = vadd.f32 %v2217_v26, %v7857_v15  ;;  %v7860_v15 = vld [vmem:[#allocation62_spill] sm:$0xff]  ;;  %vm2380_vm1 = vcmp.eq.f32.partialorder %v2379_v6, 8.507059e+37 }
 0x3cd   :  { %v2388_v41 = vadd.f32 1.0, %v4961_v33 }
 0x3cf   :  { %v4963_v36 = vpop.eup %4962  ;;  %4964 = vrcp.f32 %v2388_v41  ;;  %v2242_v11 = vpop.f32.mrf.mxu3  ;;  %v2400_v51 = vand.u32 2147483648, %v2388_v41  ;;  %vm2394_vm13 = vweird.f32 %v2388_v41 }
 0x3d0   :  { %v2371_v59 = vmul.f32 %v4963_v36, %v2369_v1  ;;  %v2243_v60 = vadd.f32 %v2242_v11, %v2229_v58  ;;  %vm2376_vm10 = vweird.f32 %v4963_v36  ;;  %v2381_v58 = vand.u32 2147483648, %v2369_v1 }
 0x3d1   :  { %v2218_v13 = vpop.f32.mrf.mxu1  ;;  %vm6445_vm14 = vmor %vm2375_vm12, %vm2376_vm10 }
 0x3d2   :  { %v6441_v38 = vpop.f32.mrf.mxu2  ;;  %v2372_v25 = vsub.f32 1.0, %v2371_v59  ;;  %v2357_v29 = vadd.f32 %v2243_v60, %v7856_v49  ;;  %v2398_v60 = vand.u32 2147483647, %v2388_v41 }
 0x3d4   :  { %v2309_v27 = vpop.f32.mrf.mxu0  ;;  %v4701_v39 = vmul.f32 -1.442695, %v2357_v29  ;;  %v2373_v2 = vmul.f32 %v4963_v36, %v2372_v25  ;;  %v2401_v29 = vor.u32 1.1754944e-38, %v2400_v51  ;;  %vm2399_vm0 = vcmp.eq.f32.partialorder %v2398_v60, 8.507059e+37  ;;  %v7861_v51 = vld [vmem:[#allocation63_spill] sm:$0xff] }
 0x3d5   :  { %v4965_v0 = vpop.eup %4964 }
 0x3d6   :  { %v2390_v34 = vmul.f32 %v4965_v0, %v2388_v41  ;;  %4966 = vpow2.f32 %v4701_v39  ;;  %v2374_v43 = vadd.f32 %v4963_v36, %v2373_v2  ;;  %vm2395_vm11 = vweird.f32 %v4965_v0 }
 0x3d7   :  { %v2244_v4 = vpop.f32.mrf.mxu3  ;;  %4968 = vtanh.f32 %v2356_v48  ;;  %vm2396_vm15 = vmor %vm2394_vm13, %vm2395_vm11  ;;  %v2382_v39 = vor.u32 1.1754944e-38, %v2381_v58 }
 0x3d8   :  { %v2391_v33 = vsub.f32 1.0, %v2390_v34  ;;  %v2378_v27 = vsel %vm6445_vm14, %v4963_v36, %v2374_v43 }
 0x3d9   :  { %v2268_v13 = vpop.f32.mrf.mxu1  ;;  %v2383_v2 = vsel %vm2380_vm1, %v2382_v39, %v2378_v27 }
 0x3da   :  { %v2335_v11 = vpop.f32.mrf.mxu2  ;;  %v2392_v59 = vmul.f32 %v4965_v0, %v2391_v33  ;;  %v2269_v49 = vadd.f32 %v2268_v13, %v2255_v16 }
 0x3dc   :  { %v4967_v42 = vpop.eup %4966  ;;  %v2393_v4 = vadd.f32 %v4965_v0, %v2392_v59  ;;  %v2362_v34 = vadd.f32 %v2269_v49, %v7860_v15 }
 0x3dd   :  { %v2408_v26 = vadd.f32 1.0, %v4967_v42  ;;  %v4969_v59 = vpop.eup %4968 }
 0x3de   :  { %v2397_v16 = vsel %vm2396_vm15, %v4965_v0, %v2393_v4  ;;  %v4702_v33 = vmul.f32 -1.442695, %v2362_v34  ;;  %v2425_v25 = vmul.f32 %v4969_v59, %v2383_v2 }
 0x3df   :  { %v2402_v1 = vsel %vm2399_vm0, %v2401_v29, %v2397_v16  ;;  %4970 = vrcp.f32 %v2408_v26  ;;  %v2294_v41 = vpop.f32.mrf.mxu3  ;;  %v2420_v42 = vand.u32 2147483648, %v2408_v26  ;;  %vm2414_vm3 = vweird.f32 %v2408_v26 }
 0x3e0   :  { %v2295_v11 = vadd.f32 %v2294_v41, %v6435_v31  ;;  %v2424_v48 = vmul.f32 %v2402_v1, %v6262_v55  ;;  %4972 = vpow2.f32 %v4702_v33  ;;  %v2418_v55 = vand.u32 2147483647, %v2408_v26 }
 0x3e1   :  { %v2270_v13 = vpop.f32.mrf.mxu1  ;;  %v2421_v29 = vor.u32 1.1754944e-38, %v2420_v42  ;;  %v7866_v42 = vld [vmem:[#allocation150_spill] sm:$0xff] }
 0x3e2   :  { %v2363_v49 = vadd.f32 %v2295_v11, %v7861_v51  ;;  %v6455_v0 = vadd.f32 %v2425_v25, %v2424_v48  ;;  %vm2419_vm5 = vcmp.eq.f32.partialorder %v2418_v55, 8.507059e+37  ;;  %v7862_v11 = vld [vmem:[#allocation142_spill] sm:$0xff]  ;;  %v7863_v51 = vld [vmem:[#allocation144_spill] sm:$0xff]  ;;  %v7867_v55 = vld [vmem:[#allocation65_spill] sm:$0xff] }
 0x3e4   :  { %v4703_v43 = vmul.f32 -1.442695, %v2363_v49  ;;  %v7864_v49 = vld [vmem:[#allocation146_spill] sm:$0xff] }
 0x3e5   :  { %v4971_v36 = vpop.eup %4970 }
 0x3e6   :  { %v2410_v58 = vmul.f32 %v4971_v36, %v2408_v26  ;;  %4974 = vpow2.f32 %v4703_v43  ;;  %v4973_v31 = vpop.eup %4972  ;;  %vm2415_vm2 = vweird.f32 %v4971_v36 }
 0x3e7   :  { %v2296_v60 = vpop.f32.mrf.mxu3  ;;  %4976 = vtanh.f32 %v6455_v0  ;;  %vm2416_vm4 = vmor %vm2414_vm3, %vm2415_vm2  ;;  %v6458_v27 = vadd.f32 1.0, %v4973_v31 }
 0x3e8   :  { %v2411_v6 = vsub.f32 1.0, %v2410_v58 }
 0x3e9   :  { %vm2438_vm10 = vweird.f32 %v6458_v27 }
 0x3ea   :  { %v2412_v4 = vmul.f32 %v4971_v36, %v2411_v6  ;;  %v7865_v6 = vld [vmem:[#allocation148_spill] sm:$0xff] }
 0x3ec   :  { %v4975_v15 = vpop.eup %4974  ;;  %v2413_v34 = vadd.f32 %v4971_v36, %v2412_v4 }
 0x3ed   :  { %v2451_v39 = vadd.f32 1.0, %v4975_v15  ;;  %v4977_v1 = vpop.eup %4976 }
 0x3ee   :  { %v2417_v16 = vsel %vm2416_vm4, %v4971_v36, %v2413_v34 }
 0x3ef   :  { %v2422_v41 = vsel %vm2419_vm5, %v2421_v29, %v2417_v16  ;;  %4978 = vrcp.f32 %v2451_v39  ;;  %v7868_v29 = vld [vmem:[#allocation68_spill] sm:$0xff]  ;;  %vm2457_vm7 = vweird.f32 %v2451_v39 }
 0x3f0   :  { %v2428_v2 = vmul.f32 %v4977_v1, %v2422_v41  ;;  %4980 = vrcp.f32 %v6458_v27 }
 0x3f2   :  { %v6461_v33 = vpack.c.bf16 %v2428_v2, %v2428_v2  ;;  %v2463_v2 = vand.u32 2147483648, %v2451_v39 }
 0x3f4   :  { %2502 = vmatmul.bf16.vlgmr.msra.gmra.mxu0 %v6461_v33  ;;  %2528 = vmatmul.bf16.vlgmr.msra.gmra.mxu2 %v6461_v33 }
 0x3f5   :  { %v4979_v26 = vpop.eup %4978  ;;  %2598 = vmatpush.bf16.msra.mxu0 %v7758_v18  ;;  %2624 = vmatpush.bf16.msra.mxu2 %v7862_v11 }
 0x3f6   :  { %v4981_v13 = vpop.eup %4980  ;;  %v2453_v59 = vmul.f32 %v4979_v26, %v2451_v39  ;;  %vm2458_vm6 = vweird.f32 %v4979_v26 }
 0x3f7   :  { %v2434_v25 = vmul.f32 %v4981_v13, %v6458_v27  ;;  %vm2439_vm8 = vweird.f32 %v4981_v13  ;;  %vm6482_vm9 = vmor %vm2457_vm7, %vm2458_vm6 }
 0x3f8   :  { %v2454_v43 = vsub.f32 1.0, %v2453_v59  ;;  %v2461_v59 = vand.u32 2147483647, %v2451_v39  ;;  %vm2440_vm11 = vmor %vm2438_vm10, %vm2439_vm8 }
 0x3f9   :  { %v2320_v48 = vpop.f32.mrf.mxu1  ;;  %2599 = vmatpush.bf16.msra.mxu0 %v7863_v51  ;;  %2625 = vmatpush.bf16.msra.mxu2 %v7864_v49  ;;  %v2435_v31 = vsub.f32 1.0, %v2434_v25 }
 0x3fa   :  { %v2321_v58 = vadd.f32 %v2320_v48, %v6439_v17  ;;  %v2455_v34 = vmul.f32 %v4979_v26, %v2454_v43  ;;  %v2444_v43 = vand.u32 2147483648, %v6458_v27  ;;  %vm2462_vm12 = vcmp.eq.f32.partialorder %v2461_v59, 8.507059e+37 }
 0x3fb   :  { %v2436_v41 = vmul.f32 %v4981_v13, %v2435_v31  ;;  %v2464_v31 = vor.u32 1.1754944e-38, %v2463_v2 }
 0x3fc   :  { %v2364_v16 = vadd.f32 %v2321_v58, %v7868_v29  ;;  %v2456_v17 = vadd.f32 %v4979_v26, %v2455_v34 }
 0x3fd   :  { %2600 = vmatpush.bf16.msra.mxu0 %v7865_v6  ;;  %2626 = vmatpush.bf16.msra.mxu2 %v7866_v42  ;;  %v2437_v48 = vadd.f32 %v4981_v13, %v2436_v41 }
 0x3fe   :  { %v2460_v58 = vsel %vm6482_vm9, %v4979_v26, %v2456_v17 }
 0x3ff   :  { %v2346_v36 = vpop.f32.mrf.mxu3  ;;  %v2441_v39 = vsel %vm2440_vm11, %v4981_v13, %v2437_v48  ;;  %v2465_v34 = vsel %vm2462_vm12, %v2464_v31, %v2460_v58  ;;  %v7872_v31 = vld [vmem:[#allocation196_spill] sm:$0xff] }
 0x400   :  { %v2347_v60 = vadd.f32 %v2346_v36, %v6441_v38  ;;  %v2442_v36 = vand.u32 2147483647, %v6458_v27  ;;  %v2487_v27 = vmul.f32 %v2465_v34, %v6296_v24  ;;  %v7877_v34 = vld [vmem:[#allocation80_spill] sm:$0xff] }
 0x401   :  { %v2322_v4 = vpop.f32.mrf.mxu1  ;;  %2601 = vmatpush.bf16.msra.mxu0 %v7768_v35  ;;  %2627 = vmatpush.bf16.msra.mxu2 %v7769_v56 }
 0x402   :  { %v2365_v15 = vadd.f32 %v2347_v60, %v7867_v55  ;;  %vm2443_vm13 = vcmp.eq.f32.partialorder %v2442_v36, 8.507059e+37 }
 0x404   :  { %v4704_v1 = vmul.f32 -1.442695, %v2365_v15  ;;  %2554 = vmatmul.bf16.vlgmr.msrb.gmra.mxu0 %v6461_v33  ;;  %2580 = vmatmul.bf16.vlgmr.msrb.gmra.mxu2 %v6461_v33  ;;  %v2445_v15 = vor.u32 1.1754944e-38, %v2444_v43 }
 0x405   :  { %2602 = vmatpush.bf16.msra.mxu0 %v7770_v52  ;;  %2628 = vmatpush.bf16.msra.mxu2 %v7771_v8 }
 0x406   :  { %4982 = vpow2.f32 %v4704_v1  ;;  %v2446_v29 = vsel %vm2443_vm13, %v2445_v15, %v2441_v39  ;;  %v7873_v39 = vld [vmem:[#allocation76_spill] sm:$0xff]  ;;  %v7876_v15 = vld [vmem:[#allocation159_spill] sm:$0xff] }
 0x407   :  { %v2348_v38 = vpop.f32.mrf.mxu3  ;;  %4984 = vtanh.f32 %v2364_v16 }
 0x409   :  { %2603 = vmatpush.bf16.msra.mxu0 %v7772_v44  ;;  %2629 = vmatpush.bf16.msra.mxu2 %v7665_v20 }
 0x40c   :  { %v4983_v60 = vpop.eup %4982 }
 0x40d   :  { %v2471_v4 = vadd.f32 1.0, %v4983_v60  ;;  %v4985_v55 = vpop.eup %4984  ;;  %2604 = vmatpush.bf16.msra.mxu0 %v7666_v28  ;;  %2630 = vmatpush.bf16.msra.mxu2 %v5867_v46  ;;  %v7871_v60 = vld [vmem:[#allocation194_spill] sm:$0xff] }
 0x40e   :  { %v2488_v26 = vmul.f32 %v4985_v55, %v2446_v29  ;;  %v7875_v55 = vld [vmem:[#allocation157_spill] sm:$0xff]  ;;  %v7878_v29 = vld [vmem:[#allocation82_spill] sm:$0xff] }
 0x40f   :  { %4986 = vrcp.f32 %v2471_v4  ;;  %v2483_v24 = vand.u32 2147483648, %v2471_v4  ;;  %v2481_v38 = vand.u32 2147483647, %v2471_v4  ;;  %vm2477_vm15 = vweird.f32 %v2471_v4 }
 0x410   :  { %v6498_v16 = vadd.f32 %v2488_v26, %v2487_v27  ;;  %v7879_v27 = vld [vmem:[#allocation161_spill] sm:$0xff]  ;;  %v7880_v26 = vld [vmem:[#allocation163_spill] sm:$0xff] }
 0x411   :  { %2605 = vmatpush.bf16.msra.mxu0 %v5873_v40  ;;  %2631 = vmatpush.bf16.msra.mxu2 %v5879_v45  ;;  %v2484_v48 = vor.u32 1.1754944e-38, %v2483_v24  ;;  %vm2482_vm1 = vcmp.eq.f32.partialorder %v2481_v38, 8.507059e+37  ;;  %v7884_v24 = vld [vmem:[#allocation166_spill] sm:$0xff] }
 0x412   :  { %4988 = vtanh.f32 %v6498_v16  ;;  %v7886_v38 = vld [vmem:[#allocation90_spill] sm:$0xff] }
 0x414   :  { %2606 = vmatmul.bf16.vlgmr.msra.gmra.mxu0 %v6461_v33  ;;  %2632 = vmatmul.bf16.vlgmr.msra.gmra.mxu2 %v6461_v33 }
 0x415   :  { %v4987_v13 = vpop.eup %4986  ;;  %2650 = vmatpush.bf16.msrb.mxu0 %v5884_v54  ;;  %2676 = vmatpush.bf16.msrb.mxu2 %v5888_v32 }
 0x416   :  { %v2473_v1 = vmul.f32 %v4987_v13, %v2471_v4  ;;  %vm2478_vm14 = vweird.f32 %v4987_v13  ;;  %v7874_v4 = vld [vmem:[#allocation78_spill] sm:$0xff] }
 0x417   :  { %vm2479_vm0 = vmor %vm2477_vm15, %vm2478_vm14 }
 0x418   :  { %v2474_v41 = vsub.f32 1.0, %v2473_v1  ;;  %v4989_v25 = vpop.eup %4988  ;;  %v7882_v1 = vld [vmem:[#allocation86_spill] sm:$0xff] }
 0x419   :  { %2651 = vmatpush.bf16.msrb.mxu0 %v7673_v10  ;;  %2677 = vmatpush.bf16.msrb.mxu2 %v7773_v19 }
 0x41a   :  { %v2475_v17 = vmul.f32 %v4987_v13, %v2474_v41  ;;  %v7883_v41 = vld [vmem:[#allocation165_spill] sm:$0xff] }
 0x41c   :  { %v2476_v2 = vadd.f32 %v4987_v13, %v2475_v17  ;;  %v7885_v17 = vld [vmem:[#allocation88_spill] sm:$0xff] }
 0x41d   :  { %2652 = vmatpush.bf16.msrb.mxu0 %v7675_v50  ;;  %2678 = vmatpush.bf16.msrb.mxu2 %v7676_v63 }
 0x41e   :  { %v2480_v59 = vsel %vm2479_vm0, %v4987_v13, %v2476_v2  ;;  %v7881_v13 = vld [vmem:[#allocation84_spill] sm:$0xff] }
 0x41f   :  { %v2485_v43 = vsel %vm2482_vm1, %v2484_v48, %v2480_v59  ;;  %v7888_v2 = vld [vmem:[#allocation168_spill] sm:$0xff]  ;;  %v7889_v48 = vld [vmem:[#allocation169_spill] sm:$0xff]  ;;  %v7890_v59 = vld [vmem:[#allocation170_spill] sm:$0xff] }
 0x420   :  { %v2491_v36 = vmul.f32 %v4989_v25, %v2485_v43  ;;  %v7891_v25 = vld [vmem:[#allocation92_spill] sm:$0xff]  ;;  %v7892_v43 = vld [vmem:[#allocation94_spill] sm:$0xff] }
 0x421   :  { %2653 = vmatpush.bf16.msrb.mxu0 %v7677_v37  ;;  %2679 = vmatpush.bf16.msrb.mxu2 %v7678_v53 }
 0x422   :  { %v6511_v58 = vpack.c.bf16 %v2491_v36, %v2491_v36  ;;  %v7893_v36 = vld [vmem:[#allocation172_spill] sm:$0xff] }
 0x424   :  { %2515 = vmatmul.bf16.vlgmr.msra.gmra.mxu1 %v6511_v58  ;;  %2541 = vmatmul.bf16.vlgmr.msra.gmra.mxu3 %v6511_v58 }
 0x425   :  { %2611 = vmatpush.bf16.msra.mxu1 %v7683_v61  ;;  %2637 = vmatpush.bf16.msra.mxu3 %v7684_v22 }
 0x426   :  { %2654 = vmatpush.bf16.msrb.mxu0 %v7680_v5  ;;  %2680 = vmatpush.bf16.msrb.mxu2 %v7681_v3 }
 0x429   :  { %2612 = vmatpush.bf16.msra.mxu1 %v7685_v9  ;;  %2638 = vmatpush.bf16.msra.mxu3 %v7686_v7 }
 0x42a   :  { %2655 = vmatpush.bf16.msrb.mxu0 %v7682_v23  ;;  %2681 = vmatpush.bf16.msrb.mxu2 %v5955_v30 }
 0x42d   :  { %2613 = vmatpush.bf16.msra.mxu1 %v7687_v21  ;;  %2639 = vmatpush.bf16.msra.mxu3 %v7688_v14 }
 0x42e   :  { %2656 = vmatpush.bf16.msrb.mxu0 %v5961_v57  ;;  %2682 = vmatpush.bf16.msrb.mxu2 %v5967_v12 }
 0x431   :  { %2614 = vmatpush.bf16.msra.mxu1 %v7689_v62  ;;  %2640 = vmatpush.bf16.msra.mxu3 %v7690_v47  ;;  %v7964_v62 = vld [vmem:[#allocation36_spill] sm:$0xff] }
 0x432   :  { %2657 = vmatpush.bf16.msrb.mxu0 %v7871_v60  ;;  %2683 = vmatpush.bf16.msrb.mxu2 %v7872_v31 }
 0x434   :  { %2567 = vmatmul.bf16.vlgmr.msrb.gmra.mxu1 %v6511_v58  ;;  %2593 = vmatmul.bf16.vlgmr.msrb.gmra.mxu3 %v6511_v58 }
 0x435   :  { %2615 = vmatpush.bf16.msra.mxu1 %v7875_v55  ;;  %2641 = vmatpush.bf16.msra.mxu3 %v7876_v15 }
 0x436   :  { %2846 = vmatpush.bf16.msra.mxu0 %v7873_v39  ;;  %2872 = vmatpush.bf16.msra.mxu2 %v7874_v4 }
 0x437   :  { %2658 = vmatmul.bf16.vlgmr.msrb.gmra.mxu0 %v6461_v33  ;;  %2684 = vmatmul.bf16.vlgmr.msrb.gmra.mxu2 %v6461_v33  ;;  %v7887_v33 = vld [vmem:[#allocation167_spill] sm:$0xff] }
 0x439   :  { %2616 = vmatpush.bf16.msra.mxu1 %v7879_v27  ;;  %2642 = vmatpush.bf16.msra.mxu3 %v7880_v26  ;;  %v7953_v26 = vld [vmem:[#allocation125_spill] sm:$0xff] }
 0x43a   :  { %2847 = vmatpush.bf16.msra.mxu0 %v7877_v34  ;;  %2873 = vmatpush.bf16.msra.mxu2 %v7878_v29  ;;  %v7957_v27 = vld [vmem:[#allocation133_spill] sm:$0xff] }
 0x43b   :  { %v7961_v34 = vld [vmem:[#allocation29_spill] sm:$0xff] }
 0x43d   :  { %2617 = vmatpush.bf16.msra.mxu1 %v7883_v41  ;;  %2643 = vmatpush.bf16.msra.mxu3 %v7884_v24  ;;  %v7902_v24 = vld [vmem:[#allocation182_spill] sm:$0xff]  ;;  %v7903_v41 = vld [vmem:[#allocation104_spill] sm:$0xff] }
 0x43e   :  { %2848 = vmatpush.bf16.msra.mxu0 %v7881_v13  ;;  %2874 = vmatpush.bf16.msra.mxu2 %v7882_v1  ;;  %v7949_v13 = vld [vmem:[#allocation117_spill] sm:$0xff] }
 0x441   :  { %2618 = vmatpush.bf16.msra.mxu1 %v7887_v33  ;;  %2644 = vmatpush.bf16.msra.mxu3 %v7888_v2  ;;  %v7896_v33 = vld [vmem:[#allocation98_spill] sm:$0xff]  ;;  %v7897_v2 = vld [vmem:[#allocation176_spill] sm:$0xff] }
 0x442   :  { %2849 = vmatpush.bf16.msra.mxu0 %v7885_v17  ;;  %2875 = vmatpush.bf16.msra.mxu2 %v7886_v38  ;;  %v7894_v17 = vld [vmem:[#allocation174_spill] sm:$0xff]  ;;  %v7895_v38 = vld [vmem:[#allocation96_spill] sm:$0xff] }
 0x444   :  { %2619 = vmatmul.bf16.vlgmr.msra.gmra.mxu1 %v6511_v58  ;;  %2645 = vmatmul.bf16.vlgmr.msra.gmra.mxu3 %v6511_v58 }
 0x445   :  { %2663 = vmatpush.bf16.msrb.mxu1 %v7889_v48  ;;  %2689 = vmatpush.bf16.msrb.mxu3 %v7890_v59  ;;  %v7898_v48 = vld [vmem:[#allocation178_spill] sm:$0xff]  ;;  %v7899_v59 = vld [vmem:[#allocation100_spill] sm:$0xff] }
 0x446   :  { %2850 = vmatpush.bf16.msra.mxu0 %v7891_v25  ;;  %2876 = vmatpush.bf16.msra.mxu2 %v7892_v43  ;;  %v7900_v25 = vld [vmem:[#allocation102_spill] sm:$0xff]  ;;  %v7901_v43 = vld [vmem:[#allocation180_spill] sm:$0xff] }
 0x449   :  { %2664 = vmatpush.bf16.msrb.mxu1 %v7893_v36  ;;  %2690 = vmatpush.bf16.msrb.mxu3 %v7894_v17  ;;  %v7904_v36 = vld [vmem:[#allocation106_spill] sm:$0xff]  ;;  %v7905_v17 = vld [vmem:[#allocation108_spill] sm:$0xff] }
 0x44a   :  { %2851 = vmatpush.bf16.msra.mxu0 %v7895_v38  ;;  %2877 = vmatpush.bf16.msra.mxu2 %v7896_v33  ;;  %v7906_v38 = vld [vmem:[#allocation110_spill] sm:$0xff]  ;;  %v7907_v33 = vld [vmem:[#allocation184_spill] sm:$0xff] }
 0x44d   :  { %2665 = vmatpush.bf16.msrb.mxu1 %v7897_v2  ;;  %2691 = vmatpush.bf16.msrb.mxu3 %v7898_v48  ;;  %v7908_v2 = vld [vmem:[#allocation186_spill] sm:$0xff]  ;;  %v7909_v48 = vld [vmem:[#allocation112_spill] sm:$0xff] }
 0x44e   :  { %2852 = vmatpush.bf16.msra.mxu0 %v7899_v59  ;;  %2878 = vmatpush.bf16.msra.mxu2 %v7900_v25  ;;  %v7910_v59 = vld [vmem:[#allocation114_spill] sm:$0xff]  ;;  %v7911_v25 = vld [vmem:[#allocation188_spill] sm:$0xff] }
 0x451   :  { %2666 = vmatpush.bf16.msrb.mxu1 %v7901_v43  ;;  %2692 = vmatpush.bf16.msrb.mxu3 %v7902_v24  ;;  %v7912_v43 = vld [vmem:[#allocation189_spill] sm:$0xff]  ;;  %v7913_v24 = vld [vmem:[#allocation116_spill] sm:$0xff] }
 0x452   :  { %2853 = vmatpush.bf16.msra.mxu0 %v7903_v41  ;;  %2879 = vmatpush.bf16.msra.mxu2 %v7904_v36  ;;  %v7914_v41 = vld [vmem:[#allocation118_spill] sm:$0xff]  ;;  %v7915_v36 = vld [vmem:[#allocation191_spill] sm:$0xff] }
 0x455   :  { %2667 = vmatpush.bf16.msrb.mxu1 %v7907_v33  ;;  %2693 = vmatpush.bf16.msrb.mxu3 %v7908_v2  ;;  %v7918_v33 = vld [vmem:[#allocation122_spill] sm:$0xff]  ;;  %v7919_v2 = vld [vmem:[#allocation195_spill] sm:$0xff] }
 0x456   :  { %2898 = vmatpush.bf16.msrb.mxu0 %v7905_v17  ;;  %2924 = vmatpush.bf16.msrb.mxu2 %v7906_v38  ;;  %v7916_v17 = vld [vmem:[#allocation193_spill] sm:$0xff]  ;;  %v7917_v38 = vld [vmem:[#allocation120_spill] sm:$0xff] }
 0x459   :  { %2668 = vmatpush.bf16.msrb.mxu1 %v7911_v25  ;;  %2694 = vmatpush.bf16.msrb.mxu3 %v7912_v43  ;;  %v7922_v25 = vld [vmem:[#allocation79_spill] sm:$0xff]  ;;  %v7923_v43 = vld [vmem:[#allocation124_spill] sm:$0xff] }
 0x45a   :  { %2899 = vmatpush.bf16.msrb.mxu0 %v7909_v48  ;;  %2925 = vmatpush.bf16.msrb.mxu2 %v7910_v59  ;;  %v7920_v48 = vld [vmem:[#allocation197_spill] sm:$0xff] }
 0x45b   :  { %v7921_v59 = vld [vmem:[#allocation77_spill] sm:$0xff] }
 0x45d   :  { %2669 = vmatpush.bf16.msrb.mxu1 %v7915_v36  ;;  %2695 = vmatpush.bf16.msrb.mxu3 %v7916_v17  ;;  %v7925_v17 = vld [vmem:[#allocation81_spill] sm:$0xff]  ;;  %v7934_v36 = vld [vmem:[#allocation91_spill] sm:$0xff] }
 0x45e   :  { %2900 = vmatpush.bf16.msrb.mxu0 %v7913_v24  ;;  %2926 = vmatpush.bf16.msrb.mxu2 %v7914_v41  ;;  %v7924_v24 = vld [vmem:[#allocation126_spill] sm:$0xff]  ;;  %v7943_v41 = vld [vmem:[#allocation105_spill] sm:$0xff] }
 0x461   :  { %2670 = vmatpush.bf16.msrb.mxu1 %v7919_v2  ;;  %2696 = vmatpush.bf16.msrb.mxu3 %v7920_v48  ;;  %v7928_v2 = vld [vmem:[#allocation130_spill] sm:$0xff]  ;;  %v7929_v48 = vld [vmem:[#allocation85_spill] sm:$0xff] }
 0x462   :  { %2901 = vmatpush.bf16.msrb.mxu0 %v7917_v38  ;;  %2927 = vmatpush.bf16.msrb.mxu2 %v7918_v33  ;;  %v7926_v38 = vld [vmem:[#allocation83_spill] sm:$0xff]  ;;  %v7927_v33 = vld [vmem:[#allocation128_spill] sm:$0xff] }
 0x464   :  { %2671 = vmatmul.bf16.vlgmr.msrb.gmra.mxu1 %v6511_v58  ;;  %2697 = vmatmul.bf16.vlgmr.msrb.gmra.mxu3 %v6511_v58  ;;  %v7935_v58 = vld [vmem:[#allocation136_spill] sm:$0xff] }
 0x465   :  { %2859 = vmatpush.bf16.msra.mxu1 %v7921_v59  ;;  %2885 = vmatpush.bf16.msra.mxu3 %v7922_v25  ;;  %v7930_v59 = vld [vmem:[#allocation87_spill] sm:$0xff]  ;;  %v7931_v25 = vld [vmem:[#allocation132_spill] sm:$0xff] }
 0x466   :  { %2902 = vmatpush.bf16.msrb.mxu0 %v7923_v43  ;;  %2928 = vmatpush.bf16.msrb.mxu2 %v7924_v24  ;;  %v7932_v43 = vld [vmem:[#allocation134_spill] sm:$0xff]  ;;  %v7933_v24 = vld [vmem:[#allocation89_spill] sm:$0xff] }
 0x469   :  { %2860 = vmatpush.bf16.msra.mxu1 %v7925_v17  ;;  %2886 = vmatpush.bf16.msra.mxu3 %v7926_v38  ;;  %v7936_v17 = vld [vmem:[#allocation138_spill] sm:$0xff]  ;;  %v7937_v38 = vld [vmem:[#allocation93_spill] sm:$0xff] }
 0x46a   :  { %2903 = vmatpush.bf16.msrb.mxu0 %v7927_v33  ;;  %2929 = vmatpush.bf16.msrb.mxu2 %v7928_v2  ;;  %v7938_v33 = vld [vmem:[#allocation95_spill] sm:$0xff]  ;;  %v7939_v2 = vld [vmem:[#allocation97_spill] sm:$0xff] }
 0x46d   :  { %2861 = vmatpush.bf16.msra.mxu1 %v7929_v48  ;;  %2887 = vmatpush.bf16.msra.mxu3 %v7930_v59  ;;  %v7940_v48 = vld [vmem:[#allocation99_spill] sm:$0xff] }
 0x46e   :  { %2904 = vmatpush.bf16.msrb.mxu0 %v7931_v25  ;;  %2930 = vmatpush.bf16.msrb.mxu2 %v7932_v43  ;;  %v7941_v25 = vld [vmem:[#allocation101_spill] sm:$0xff]  ;;  %v7942_v43 = vld [vmem:[#allocation103_spill] sm:$0xff] }
 0x471   :  { %2862 = vmatpush.bf16.msra.mxu1 %v7933_v24  ;;  %2888 = vmatpush.bf16.msra.mxu3 %v7934_v36  ;;  %v2503_v59 = vpop.f32.mrf.mxu0  ;;  %v7944_v36 = vld [vmem:[#allocation107_spill] sm:$0xff] }
 0x472   :  { %2905 = vmatpush.bf16.msrb.mxu0 %v7935_v58  ;;  %2931 = vmatpush.bf16.msrb.mxu2 %v7936_v17  ;;  %v7945_v17 = vld [vmem:[#allocation109_spill] sm:$0xff] }
 0x475   :  { %2863 = vmatpush.bf16.msra.mxu1 %v7937_v38  ;;  %2889 = vmatpush.bf16.msra.mxu3 %v7938_v33  ;;  %v7946_v38 = vld [vmem:[#allocation111_spill] sm:$0xff]  ;;  %v7947_v33 = vld [vmem:[#allocation113_spill] sm:$0xff] }
 0x477   :  { %v2529_v24 = vpop.f32.mrf.mxu2 }
 0x479   :  { %2864 = vmatpush.bf16.msra.mxu1 %v7939_v2  ;;  %2890 = vmatpush.bf16.msra.mxu3 %v7940_v48  ;;  %v2505_v58 = vpop.f32.mrf.mxu0  ;;  %v7948_v2 = vld [vmem:[#allocation115_spill] sm:$0xff] }
 0x47d   :  { %2865 = vmatpush.bf16.msra.mxu1 %v7941_v25  ;;  %2891 = vmatpush.bf16.msra.mxu3 %v7942_v43  ;;  %v7950_v25 = vld [vmem:[#allocation119_spill] sm:$0xff]  ;;  %v7951_v43 = vld [vmem:[#allocation121_spill] sm:$0xff] }
 0x47f   :  { %v2531_v48 = vpop.f32.mrf.mxu2 }
 0x481   :  { %2866 = vmatpush.bf16.msra.mxu1 %v7943_v41  ;;  %2892 = vmatpush.bf16.msra.mxu3 %v7944_v36  ;;  %v2555_v1 = vpop.f32.mrf.mxu0  ;;  %v7952_v41 = vld [vmem:[#allocation123_spill] sm:$0xff] }
 0x485   :  { %2911 = vmatpush.bf16.msrb.mxu1 %v7945_v17  ;;  %2937 = vmatpush.bf16.msrb.mxu3 %v7946_v38  ;;  %v7954_v17 = vld [vmem:[#allocation127_spill] sm:$0xff]  ;;  %v7955_v38 = vld [vmem:[#allocation129_spill] sm:$0xff] }
 0x487   :  { %v2581_v36 = vpop.f32.mrf.mxu2 }
 0x489   :  { %2912 = vmatpush.bf16.msrb.mxu1 %v7947_v33  ;;  %2938 = vmatpush.bf16.msrb.mxu3 %v7948_v2  ;;  %v2557_v58 = vpop.f32.mrf.mxu0  ;;  %v7956_v33 = vld [vmem:[#allocation131_spill] sm:$0xff] }
 0x48d   :  { %2913 = vmatpush.bf16.msrb.mxu1 %v7949_v13  ;;  %2939 = vmatpush.bf16.msrb.mxu3 %v7950_v25  ;;  %v7958_v13 = vld [vmem:[#allocation135_spill] sm:$0xff]  ;;  %v7959_v25 = vld [vmem:[#allocation137_spill] sm:$0xff] }
 0x48f   :  { %v2583_v48 = vpop.f32.mrf.mxu2 }
 0x491   :  { %2914 = vmatpush.bf16.msrb.mxu1 %v7951_v43  ;;  %2940 = vmatpush.bf16.msrb.mxu3 %v7952_v41  ;;  %v2607_v2 = vpop.f32.mrf.mxu0  ;;  %v7960_v43 = vld [vmem:[#allocation139_spill] sm:$0xff] }
 0x495   :  { %2915 = vmatpush.bf16.msrb.mxu1 %v7953_v26  ;;  %2941 = vmatpush.bf16.msrb.mxu3 %v7954_v17 }
 0x497   :  { %v6627_v41 = vpop.f32.mrf.mxu2 }
 0x499   :  { %2916 = vmatpush.bf16.msrb.mxu1 %v7955_v38  ;;  %2942 = vmatpush.bf16.msrb.mxu3 %v7956_v33  ;;  %v2609_v58 = vpop.f32.mrf.mxu0 }
 0x49d   :  { %2917 = vmatpush.bf16.msrb.mxu1 %v7957_v27  ;;  %2943 = vmatpush.bf16.msrb.mxu3 %v7958_v13  ;;  %v7962_v27 = vld [vmem:[#allocation31_spill] sm:$0xff] }
 0x49f   :  { %v2635_v17 = vpop.f32.mrf.mxu2 }
 0x4a1   :  { %2918 = vmatpush.bf16.msrb.mxu1 %v7959_v25  ;;  %2944 = vmatpush.bf16.msrb.mxu3 %v7960_v43  ;;  %v2516_v26 = vpop.f32.mrf.mxu1 }
 0x4a2   :  { %v2517_v29 = vadd.f32 %v2516_v26, %v2503_v59 }
 0x4a4   :  { %v2706_v38 = vadd.f32 %v2517_v29, %v7961_v34 }
 0x4a6   :  { %v4705_v15 = vmul.f32 -1.442695, %v2706_v38 }
 0x4a7   :  { %v2542_v33 = vpop.f32.mrf.mxu3 }
 0x4a8   :  { %4990 = vpow2.f32 %v4705_v15  ;;  %v2543_v48 = vadd.f32 %v2542_v33, %v2529_v24 }
 0x4a9   :  { %v2518_v55 = vpop.f32.mrf.mxu1 }
 0x4aa   :  { %v2707_v4 = vadd.f32 %v2543_v48, %v7962_v27 }
 0x4ac   :  { %v4706_v13 = vmul.f32 -1.442695, %v2707_v4  ;;  %v7963_v4 = vld [vmem:[#allocation33_spill] sm:$0xff] }
 0x4ae   :  { %v4991_v39 = vpop.eup %4990  ;;  %4992 = vpow2.f32 %v4706_v13 }
 0x4af   :  { %v2721_v25 = vadd.f32 1.0, %v4991_v39  ;;  %v2544_v43 = vpop.f32.mrf.mxu3 }
 0x4b1   :  { %4994 = vrcp.f32 %v2721_v25  ;;  %v2568_v31 = vpop.f32.mrf.mxu1  ;;  %vm2727_vm4 = vweird.f32 %v2721_v25 }
 0x4b2   :  { %v2569_v39 = vadd.f32 %v2568_v31, %v2555_v1  ;;  %v2731_v31 = vand.u32 2147483647, %v2721_v25 }
 0x4b4   :  { %v6631_v58 = vpop.f32.mrf.mxu0  ;;  %v4993_v26 = vpop.eup %4992  ;;  %v2708_v12 = vadd.f32 %v2569_v39, %v7964_v62  ;;  %v7967_v62 = vld [vmem:[#allocation58_spill] sm:$0xff]  ;;  %vm2732_vm9 = vcmp.eq.f32.partialorder %v2731_v31, 8.507059e+37 }
 0x4b5   :  { %v2740_v17 = vadd.f32 1.0, %v4993_v26 }
 0x4b7   :  { %v4995_v59 = vpop.eup %4994  ;;  %4996 = vrcp.f32 %v2740_v17  ;;  %v2594_v34 = vpop.f32.mrf.mxu3  ;;  %v2752_v57 = vand.u32 2147483648, %v2740_v17  ;;  %vm2746_vm5 = vweird.f32 %v2740_v17 }
 0x4b8   :  { %v2723_v29 = vmul.f32 %v4995_v59, %v2721_v25  ;;  %v2595_v15 = vadd.f32 %v2594_v34, %v2581_v36  ;;  %vm2728_vm2 = vweird.f32 %v4995_v59  ;;  %v2733_v36 = vand.u32 2147483648, %v2721_v25 }
 0x4b9   :  { %v2570_v55 = vpop.f32.mrf.mxu1  ;;  %vm6637_vm6 = vmor %vm2727_vm4, %vm2728_vm2 }
 0x4ba   :  { %v6633_v24 = vpop.f32.mrf.mxu2  ;;  %v2724_v27 = vsub.f32 1.0, %v2723_v29  ;;  %v2709_v38 = vadd.f32 %v2595_v15, %v7963_v4  ;;  %v2750_v15 = vand.u32 2147483647, %v2740_v17 }
 0x4bc   :  { %v2661_v13 = vpop.f32.mrf.mxu0  ;;  %v4707_v33 = vmul.f32 -1.442695, %v2709_v38  ;;  %v2725_v48 = vmul.f32 %v4995_v59, %v2724_v27  ;;  %v2753_v38 = vor.u32 1.1754944e-38, %v2752_v57  ;;  %vm2751_vm8 = vcmp.eq.f32.partialorder %v2750_v15, 8.507059e+37  ;;  %v7968_v57 = vld [vmem:[#allocation59_spill] sm:$0xff] }
 0x4bd   :  { %v4997_v43 = vpop.eup %4996 }
 0x4be   :  { %v2742_v60 = vmul.f32 %v4997_v43, %v2740_v17  ;;  %4998 = vpow2.f32 %v4707_v33  ;;  %v2726_v14 = vadd.f32 %v4995_v59, %v2725_v48  ;;  %vm2747_vm3 = vweird.f32 %v4997_v43 }
 0x4bf   :  { %v2596_v47 = vpop.f32.mrf.mxu3  ;;  %5000 = vtanh.f32 %v2708_v12  ;;  %vm2748_vm7 = vmor %vm2746_vm5, %vm2747_vm3  ;;  %v2734_v33 = vor.u32 1.1754944e-38, %v2733_v36 }
 0x4c0   :  { %v2743_v26 = vsub.f32 1.0, %v2742_v60  ;;  %v2730_v13 = vsel %vm6637_vm6, %v4995_v59, %v2726_v14 }
 0x4c1   :  { %v2620_v55 = vpop.f32.mrf.mxu1  ;;  %v2735_v48 = vsel %vm2732_vm9, %v2734_v33, %v2730_v13 }
 0x4c2   :  { %v2687_v34 = vpop.f32.mrf.mxu2  ;;  %v2744_v29 = vmul.f32 %v4997_v43, %v2743_v26  ;;  %v2621_v4 = vadd.f32 %v2620_v55, %v2607_v2 }
 0x4c4   :  { %v4999_v1 = vpop.eup %4998  ;;  %v2745_v47 = vadd.f32 %v4997_v43, %v2744_v29  ;;  %v2714_v60 = vadd.f32 %v2621_v4, %v7967_v62 }
 0x4c5   :  { %v2760_v39 = vadd.f32 1.0, %v4999_v1  ;;  %v5001_v29 = vpop.eup %5000 }
 0x4c6   :  { %v2749_v2 = vsel %vm2748_vm7, %v4997_v43, %v2745_v47  ;;  %v4708_v26 = vmul.f32 -1.442695, %v2714_v60  ;;  %v2777_v27 = vmul.f32 %v5001_v29, %v2735_v48 }
 0x4c7   :  { %v2754_v25 = vsel %vm2751_vm8, %v2753_v38, %v2749_v2  ;;  %5002 = vrcp.f32 %v2760_v39  ;;  %v2646_v17 = vpop.f32.mrf.mxu3  ;;  %v2772_v1 = vand.u32 2147483648, %v2760_v39  ;;  %vm2766_vm11 = vweird.f32 %v2760_v39 }
 0x4c8   :  { %v2647_v34 = vadd.f32 %v2646_v17, %v6627_v41  ;;  %v2776_v12 = vmul.f32 %v2754_v25, %v6455_v0  ;;  %5004 = vpow2.f32 %v4708_v26  ;;  %v2770_v0 = vand.u32 2147483647, %v2760_v39 }
 0x4c9   :  { %v2622_v55 = vpop.f32.mrf.mxu1  ;;  %v2773_v38 = vor.u32 1.1754944e-38, %v2772_v1 }
 0x4ca   :  { %v2715_v4 = vadd.f32 %v2647_v34, %v7968_v57  ;;  %v6647_v43 = vadd.f32 %v2777_v27, %v2776_v12  ;;  %vm2771_vm13 = vcmp.eq.f32.partialorder %v2770_v0, 8.507059e+37 }
 0x4cc   :  { %v4709_v14 = vmul.f32 -1.442695, %v2715_v4 }
 0x4cd   :  { %v5003_v59 = vpop.eup %5002 }
 0x4ce   :  { %v2762_v36 = vmul.f32 %v5003_v59, %v2760_v39  ;;  %5006 = vpow2.f32 %v4709_v14  ;;  %v5005_v41 = vpop.eup %5004  ;;  %vm2767_vm10 = vweird.f32 %v5003_v59 }
 0x4cf   :  { %v2648_v15 = vpop.f32.mrf.mxu3  ;;  %5008 = vtanh.f32 %v6647_v43  ;;  %vm2768_vm12 = vmor %vm2766_vm11, %vm2767_vm10  ;;  %v6650_v13 = vadd.f32 1.0, %v5005_v41  ;;  %v7970_v41 = vld [vmem:[#allocation64_spill] sm:$0xff] }
 0x4d0   :  { %v2763_v31 = vsub.f32 1.0, %v2762_v36  ;;  %v7969_v15 = vld [vmem:[#allocation61_spill] sm:$0xff] }
 0x4d1   :  { %vm2790_vm2 = vweird.f32 %v6650_v13 }
 0x4d2   :  { %v2764_v47 = vmul.f32 %v5003_v59, %v2763_v31 }
 0x4d4   :  { %v5007_v62 = vpop.eup %5006  ;;  %v2765_v60 = vadd.f32 %v5003_v59, %v2764_v47 }
 0x4d5   :  { %v2803_v33 = vadd.f32 1.0, %v5007_v62  ;;  %v5009_v25 = vpop.eup %5008 }
 0x4d6   :  { %v2769_v2 = vsel %vm2768_vm12, %v5003_v59, %v2765_v60 }
 0x4d7   :  { %v2774_v17 = vsel %vm2771_vm13, %v2773_v38, %v2769_v2  ;;  %5010 = vrcp.f32 %v2803_v33  ;;  %v2815_v60 = vand.u32 2147483648, %v2803_v33  ;;  %vm2809_vm15 = vweird.f32 %v2803_v33 }
 0x4d8   :  { %v2780_v48 = vmul.f32 %v5009_v25, %v2774_v17  ;;  %5012 = vrcp.f32 %v6650_v13  ;;  %v2813_v2 = vand.u32 2147483647, %v2803_v33  ;;  %v2796_v17 = vand.u32 2147483648, %v6650_v13  ;;  %v7974_v25 = vld [vmem:[#allocation190_spill] sm:$0xff] }
 0x4da   :  { %v6653_v26 = vpack.c.bf16 %v2780_v48, %v2780_v48  ;;  %v2794_v48 = vand.u32 2147483647, %v6650_v13  ;;  %vm2814_vm4 = vcmp.eq.f32.partialorder %v2813_v2, 8.507059e+37  ;;  %v7973_v2 = vld [vmem:[#allocation151_spill] sm:$0xff] }
 0x4dc   :  { %2854 = vmatmul.bf16.vlgmr.msra.gmra.mxu0 %v6653_v26  ;;  %2880 = vmatmul.bf16.vlgmr.msra.gmra.mxu2 %v6653_v26  ;;  %vm2795_vm5 = vcmp.eq.f32.partialorder %v2794_v48, 8.507059e+37  ;;  %v7976_v48 = vld [vmem:[#allocation153_spill] sm:$0xff] }
 0x4dd   :  { %v5011_v39 = vpop.eup %5010  ;;  %2950 = vmatpush.bf16.msra.mxu0 %v7758_v18  ;;  %2976 = vmatpush.bf16.msra.mxu2 %v7862_v11 }
 0x4de   :  { %v5013_v12 = vpop.eup %5012  ;;  %v2805_v55 = vmul.f32 %v5011_v39, %v2803_v33  ;;  %vm2810_vm14 = vweird.f32 %v5011_v39 }
 0x4df   :  { %v2786_v29 = vmul.f32 %v5013_v12, %v6650_v13  ;;  %vm2791_vm0 = vweird.f32 %v5013_v12  ;;  %vm6674_vm1 = vmor %vm2809_vm15, %vm2810_vm14 }
 0x4e0   :  { %v2806_v57 = vsub.f32 1.0, %v2805_v55  ;;  %vm2792_vm3 = vmor %vm2790_vm2, %vm2791_vm0 }
 0x4e1   :  { %v2672_v34 = vpop.f32.mrf.mxu1  ;;  %2951 = vmatpush.bf16.msra.mxu0 %v7863_v51  ;;  %2977 = vmatpush.bf16.msra.mxu2 %v7864_v49  ;;  %v2787_v59 = vsub.f32 1.0, %v2786_v29  ;;  %v2816_v29 = vor.u32 1.1754944e-38, %v2815_v60 }
 0x4e2   :  { %v2673_v27 = vadd.f32 %v2672_v34, %v6631_v58  ;;  %v2807_v1 = vmul.f32 %v5011_v39, %v2806_v57 }
 0x4e3   :  { %v2788_v62 = vmul.f32 %v5013_v12, %v2787_v59 }
 0x4e4   :  { %v2716_v47 = vadd.f32 %v2673_v27, %v7970_v41  ;;  %v2808_v58 = vadd.f32 %v5011_v39, %v2807_v1  ;;  %v2797_v27 = vor.u32 1.1754944e-38, %v2796_v17  ;;  %v7975_v17 = vld [vmem:[#allocation192_spill] sm:$0xff] }
 0x4e5   :  { %2952 = vmatpush.bf16.msra.mxu0 %v7865_v6  ;;  %2978 = vmatpush.bf16.msra.mxu2 %v7866_v42  ;;  %v2789_v38 = vadd.f32 %v5013_v12, %v2788_v62 }
 0x4e6   :  { %v2812_v34 = vsel %vm6674_vm1, %v5011_v39, %v2808_v58 }
 0x4e7   :  { %v2698_v4 = vpop.f32.mrf.mxu3  ;;  %v2793_v33 = vsel %vm2792_vm3, %v5013_v12, %v2789_v38 }
 0x4e8   :  { %v2699_v14 = vadd.f32 %v2698_v4, %v6633_v24  ;;  %v2798_v59 = vsel %vm2795_vm5, %v2797_v27, %v2793_v33  ;;  %v7980_v33 = vld [vmem:[#allocation76_spill] sm:$0xff]  ;;  %v7983_v27 = vld [vmem:[#allocation159_spill] sm:$0xff] }
 0x4e9   :  { %v2674_v36 = vpop.f32.mrf.mxu1  ;;  %2953 = vmatpush.bf16.msra.mxu0 %v7768_v35  ;;  %2979 = vmatpush.bf16.msra.mxu2 %v7769_v56 }
 0x4ea   :  { %v2717_v31 = vadd.f32 %v2699_v14, %v7969_v15  ;;  %v2817_v14 = vsel %vm2814_vm4, %v2816_v29, %v2812_v34  ;;  %v7977_v34 = vld [vmem:[#allocation155_spill] sm:$0xff]  ;;  %v7979_v29 = vld [vmem:[#allocation196_spill] sm:$0xff] }
 0x4eb   :  { %v2839_v13 = vmul.f32 %v2817_v14, %v6498_v16  ;;  %v7984_v14 = vld [vmem:[#allocation80_spill] sm:$0xff] }
 0x4ec   :  { %v4710_v0 = vmul.f32 -1.442695, %v2717_v31  ;;  %2906 = vmatmul.bf16.vlgmr.msrb.gmra.mxu0 %v6653_v26  ;;  %2932 = vmatmul.bf16.vlgmr.msrb.gmra.mxu2 %v6653_v26 }
 0x4ed   :  { %2954 = vmatpush.bf16.msra.mxu0 %v7770_v52  ;;  %2980 = vmatpush.bf16.msra.mxu2 %v7771_v8 }
 0x4ee   :  { %5014 = vpow2.f32 %v4710_v0 }
 0x4ef   :  { %v2700_v24 = vpop.f32.mrf.mxu3  ;;  %5016 = vtanh.f32 %v2716_v47 }
 0x4f1   :  { %2955 = vmatpush.bf16.msra.mxu0 %v7772_v44  ;;  %2981 = vmatpush.bf16.msra.mxu2 %v7665_v20 }
 0x4f4   :  { %v5015_v55 = vpop.eup %5014 }
 0x4f5   :  { %v2823_v57 = vadd.f32 1.0, %v5015_v55  ;;  %v5017_v4 = vpop.eup %5016  ;;  %2956 = vmatpush.bf16.msra.mxu0 %v7666_v28  ;;  %2982 = vmatpush.bf16.msra.mxu2 %v5867_v46  ;;  %v7978_v55 = vld [vmem:[#allocation194_spill] sm:$0xff] }
 0x4f6   :  { %v2840_v39 = vmul.f32 %v5017_v4, %v2798_v59  ;;  %v7982_v4 = vld [vmem:[#allocation157_spill] sm:$0xff]  ;;  %v7985_v59 = vld [vmem:[#allocation82_spill] sm:$0xff] }
 0x4f7   :  { %5018 = vrcp.f32 %v2823_v57  ;;  %v2835_v16 = vand.u32 2147483648, %v2823_v57  ;;  %v2833_v41 = vand.u32 2147483647, %v2823_v57  ;;  %vm2829_vm7 = vweird.f32 %v2823_v57 }
 0x4f8   :  { %v6690_v36 = vadd.f32 %v2840_v39, %v2839_v13  ;;  %v7986_v13 = vld [vmem:[#allocation161_spill] sm:$0xff]  ;;  %v7987_v39 = vld [vmem:[#allocation163_spill] sm:$0xff] }
 0x4f9   :  { %2957 = vmatpush.bf16.msra.mxu0 %v5873_v40  ;;  %2983 = vmatpush.bf16.msra.mxu2 %v5879_v45  ;;  %v2836_v0 = vor.u32 1.1754944e-38, %v2835_v16  ;;  %vm2834_vm9 = vcmp.eq.f32.partialorder %v2833_v41, 8.507059e+37  ;;  %v7991_v16 = vld [vmem:[#allocation166_spill] sm:$0xff] }
 0x4fa   :  { %5020 = vtanh.f32 %v6690_v36  ;;  %v7993_v41 = vld [vmem:[#allocation90_spill] sm:$0xff] }
 0x4fc   :  { %2958 = vmatmul.bf16.vlgmr.msra.gmra.mxu0 %v6653_v26  ;;  %2984 = vmatmul.bf16.vlgmr.msra.gmra.mxu2 %v6653_v26 }
 0x4fd   :  { %v5019_v12 = vpop.eup %5018  ;;  %3002 = vmatpush.bf16.msrb.mxu0 %v5884_v54  ;;  %3028 = vmatpush.bf16.msrb.mxu2 %v5888_v32 }
 0x4fe   :  { %v2825_v15 = vmul.f32 %v5019_v12, %v2823_v57  ;;  %vm2830_vm6 = vweird.f32 %v5019_v12  ;;  %v7981_v57 = vld [vmem:[#allocation78_spill] sm:$0xff] }
 0x4ff   :  { %vm2831_vm8 = vmor %vm2829_vm7, %vm2830_vm6 }
 0x500   :  { %v2826_v31 = vsub.f32 1.0, %v2825_v15  ;;  %v5021_v58 = vpop.eup %5020  ;;  %v7989_v15 = vld [vmem:[#allocation86_spill] sm:$0xff] }
 0x501   :  { %3003 = vmatpush.bf16.msrb.mxu0 %v7673_v10  ;;  %3029 = vmatpush.bf16.msrb.mxu2 %v7773_v19 }
 0x502   :  { %v2827_v1 = vmul.f32 %v5019_v12, %v2826_v31  ;;  %v7990_v31 = vld [vmem:[#allocation165_spill] sm:$0xff] }
 0x504   :  { %v2828_v47 = vadd.f32 %v5019_v12, %v2827_v1  ;;  %v7992_v1 = vld [vmem:[#allocation88_spill] sm:$0xff] }
 0x505   :  { %3004 = vmatpush.bf16.msrb.mxu0 %v7675_v50  ;;  %3030 = vmatpush.bf16.msrb.mxu2 %v7676_v63 }
 0x506   :  { %v2832_v62 = vsel %vm2831_vm8, %v5019_v12, %v2828_v47  ;;  %v7988_v12 = vld [vmem:[#allocation84_spill] sm:$0xff] }
 0x507   :  { %v2837_v24 = vsel %vm2834_vm9, %v2836_v0, %v2832_v62  ;;  %v7995_v47 = vld [vmem:[#allocation168_spill] sm:$0xff]  ;;  %v7996_v0 = vld [vmem:[#allocation169_spill] sm:$0xff]  ;;  %v7997_v62 = vld [vmem:[#allocation170_spill] sm:$0xff] }
 0x508   :  { %v2843_v60 = vmul.f32 %v5021_v58, %v2837_v24  ;;  %v7998_v58 = vld [vmem:[#allocation92_spill] sm:$0xff]  ;;  %v7999_v24 = vld [vmem:[#allocation94_spill] sm:$0xff] }
 0x509   :  { %3005 = vmatpush.bf16.msrb.mxu0 %v7677_v37  ;;  %3031 = vmatpush.bf16.msrb.mxu2 %v7678_v53 }
 0x50a   :  { %v6703_v38 = vpack.c.bf16 %v2843_v60, %v2843_v60  ;;  %v8000_v60 = vld [vmem:[#allocation172_spill] sm:$0xff] }
 0x50c   :  { %2867 = vmatmul.bf16.vlgmr.msra.gmra.mxu1 %v6703_v38  ;;  %2893 = vmatmul.bf16.vlgmr.msra.gmra.mxu3 %v6703_v38 }
 0x50d   :  { %2963 = vmatpush.bf16.msra.mxu1 %v7683_v61  ;;  %2989 = vmatpush.bf16.msra.mxu3 %v7684_v22 }
 0x50e   :  { %3006 = vmatpush.bf16.msrb.mxu0 %v7680_v5  ;;  %3032 = vmatpush.bf16.msrb.mxu2 %v7681_v3 }
 0x511   :  { %2964 = vmatpush.bf16.msra.mxu1 %v7685_v9  ;;  %2990 = vmatpush.bf16.msra.mxu3 %v7686_v7 }
 0x512   :  { %3007 = vmatpush.bf16.msrb.mxu0 %v7682_v23  ;;  %3033 = vmatpush.bf16.msrb.mxu2 %v5955_v30 }
 0x515   :  { %2965 = vmatpush.bf16.msra.mxu1 %v7687_v21  ;;  %2991 = vmatpush.bf16.msra.mxu3 %v7973_v2 }
 0x516   :  { %3008 = vmatpush.bf16.msrb.mxu0 %v7974_v25  ;;  %3034 = vmatpush.bf16.msrb.mxu2 %v7975_v17 }
 0x519   :  { %2966 = vmatpush.bf16.msra.mxu1 %v7976_v48  ;;  %2992 = vmatpush.bf16.msra.mxu3 %v7977_v34  ;;  %v8071_v48 = vld [vmem:[#allocation40_spill] sm:$0xff] }
 0x51a   :  { %3009 = vmatpush.bf16.msrb.mxu0 %v7978_v55  ;;  %3035 = vmatpush.bf16.msrb.mxu2 %v7979_v29 }
 0x51c   :  { %2919 = vmatmul.bf16.vlgmr.msrb.gmra.mxu1 %v6703_v38  ;;  %2945 = vmatmul.bf16.vlgmr.msrb.gmra.mxu3 %v6703_v38 }
 0x51d   :  { %2967 = vmatpush.bf16.msra.mxu1 %v7982_v4  ;;  %2993 = vmatpush.bf16.msra.mxu3 %v7983_v27 }
 0x51e   :  { %3198 = vmatpush.bf16.msra.mxu0 %v7980_v33  ;;  %3224 = vmatpush.bf16.msra.mxu2 %v7981_v57 }
 0x51f   :  { %3010 = vmatmul.bf16.vlgmr.msrb.gmra.mxu0 %v6653_v26  ;;  %3036 = vmatmul.bf16.vlgmr.msrb.gmra.mxu2 %v6653_v26  ;;  %v7994_v26 = vld [vmem:[#allocation167_spill] sm:$0xff] }
 0x521   :  { %2968 = vmatpush.bf16.msra.mxu1 %v7986_v13  ;;  %2994 = vmatpush.bf16.msra.mxu3 %v7987_v39  ;;  %v8060_v39 = vld [vmem:[#allocation125_spill] sm:$0xff] }
 0x522   :  { %3199 = vmatpush.bf16.msra.mxu0 %v7984_v14  ;;  %3225 = vmatpush.bf16.msra.mxu2 %v7985_v59  ;;  %v8064_v13 = vld [vmem:[#allocation133_spill] sm:$0xff]  ;;  %v8068_v14 = vld [vmem:[#allocation34_spill] sm:$0xff] }
 0x525   :  { %2969 = vmatpush.bf16.msra.mxu1 %v7990_v31  ;;  %2995 = vmatpush.bf16.msra.mxu3 %v7991_v16  ;;  %v8009_v16 = vld [vmem:[#allocation182_spill] sm:$0xff]  ;;  %v8010_v31 = vld [vmem:[#allocation104_spill] sm:$0xff] }
 0x526   :  { %3200 = vmatpush.bf16.msra.mxu0 %v7988_v12  ;;  %3226 = vmatpush.bf16.msra.mxu2 %v7989_v15  ;;  %v8056_v12 = vld [vmem:[#allocation117_spill] sm:$0xff] }
 0x529   :  { %2970 = vmatpush.bf16.msra.mxu1 %v7994_v26  ;;  %2996 = vmatpush.bf16.msra.mxu3 %v7995_v47  ;;  %v8003_v26 = vld [vmem:[#allocation98_spill] sm:$0xff]  ;;  %v8004_v47 = vld [vmem:[#allocation176_spill] sm:$0xff] }
 0x52a   :  { %3201 = vmatpush.bf16.msra.mxu0 %v7992_v1  ;;  %3227 = vmatpush.bf16.msra.mxu2 %v7993_v41  ;;  %v8001_v1 = vld [vmem:[#allocation174_spill] sm:$0xff]  ;;  %v8002_v41 = vld [vmem:[#allocation96_spill] sm:$0xff] }
 0x52c   :  { %2971 = vmatmul.bf16.vlgmr.msra.gmra.mxu1 %v6703_v38  ;;  %2997 = vmatmul.bf16.vlgmr.msra.gmra.mxu3 %v6703_v38 }
 0x52d   :  { %3015 = vmatpush.bf16.msrb.mxu1 %v7996_v0  ;;  %3041 = vmatpush.bf16.msrb.mxu3 %v7997_v62  ;;  %v8005_v0 = vld [vmem:[#allocation178_spill] sm:$0xff]  ;;  %v8006_v62 = vld [vmem:[#allocation100_spill] sm:$0xff] }
 0x52e   :  { %3202 = vmatpush.bf16.msra.mxu0 %v7998_v58  ;;  %3228 = vmatpush.bf16.msra.mxu2 %v7999_v24  ;;  %v8007_v58 = vld [vmem:[#allocation102_spill] sm:$0xff]  ;;  %v8008_v24 = vld [vmem:[#allocation180_spill] sm:$0xff] }
 0x531   :  { %3016 = vmatpush.bf16.msrb.mxu1 %v8000_v60  ;;  %3042 = vmatpush.bf16.msrb.mxu3 %v8001_v1  ;;  %v8011_v60 = vld [vmem:[#allocation106_spill] sm:$0xff]  ;;  %v8012_v1 = vld [vmem:[#allocation108_spill] sm:$0xff] }
 0x532   :  { %3203 = vmatpush.bf16.msra.mxu0 %v8002_v41  ;;  %3229 = vmatpush.bf16.msra.mxu2 %v8003_v26  ;;  %v8013_v41 = vld [vmem:[#allocation110_spill] sm:$0xff]  ;;  %v8014_v26 = vld [vmem:[#allocation184_spill] sm:$0xff] }
 0x535   :  { %3017 = vmatpush.bf16.msrb.mxu1 %v8004_v47  ;;  %3043 = vmatpush.bf16.msrb.mxu3 %v8005_v0  ;;  %v8015_v47 = vld [vmem:[#allocation186_spill] sm:$0xff]  ;;  %v8016_v0 = vld [vmem:[#allocation112_spill] sm:$0xff] }
 0x536   :  { %3204 = vmatpush.bf16.msra.mxu0 %v8006_v62  ;;  %3230 = vmatpush.bf16.msra.mxu2 %v8007_v58  ;;  %v8017_v62 = vld [vmem:[#allocation114_spill] sm:$0xff]  ;;  %v8018_v58 = vld [vmem:[#allocation188_spill] sm:$0xff] }
 0x539   :  { %3018 = vmatpush.bf16.msrb.mxu1 %v8008_v24  ;;  %3044 = vmatpush.bf16.msrb.mxu3 %v8009_v16  ;;  %v8019_v24 = vld [vmem:[#allocation189_spill] sm:$0xff]  ;;  %v8020_v16 = vld [vmem:[#allocation116_spill] sm:$0xff] }
 0x53a   :  { %3205 = vmatpush.bf16.msra.mxu0 %v8010_v31  ;;  %3231 = vmatpush.bf16.msra.mxu2 %v8011_v60  ;;  %v8021_v31 = vld [vmem:[#allocation118_spill] sm:$0xff]  ;;  %v8022_v60 = vld [vmem:[#allocation191_spill] sm:$0xff] }
 0x53d   :  { %3019 = vmatpush.bf16.msrb.mxu1 %v8014_v26  ;;  %3045 = vmatpush.bf16.msrb.mxu3 %v8015_v47  ;;  %v8025_v26 = vld [vmem:[#allocation122_spill] sm:$0xff]  ;;  %v8026_v47 = vld [vmem:[#allocation195_spill] sm:$0xff] }
 0x53e   :  { %3250 = vmatpush.bf16.msrb.mxu0 %v8012_v1  ;;  %3276 = vmatpush.bf16.msrb.mxu2 %v8013_v41  ;;  %v8023_v1 = vld [vmem:[#allocation193_spill] sm:$0xff]  ;;  %v8024_v41 = vld [vmem:[#allocation120_spill] sm:$0xff] }
 0x541   :  { %3020 = vmatpush.bf16.msrb.mxu1 %v8018_v58  ;;  %3046 = vmatpush.bf16.msrb.mxu3 %v8019_v24  ;;  %v8029_v58 = vld [vmem:[#allocation79_spill] sm:$0xff]  ;;  %v8030_v24 = vld [vmem:[#allocation124_spill] sm:$0xff] }
 0x542   :  { %3251 = vmatpush.bf16.msrb.mxu0 %v8016_v0  ;;  %3277 = vmatpush.bf16.msrb.mxu2 %v8017_v62  ;;  %v8027_v0 = vld [vmem:[#allocation197_spill] sm:$0xff] }
 0x543   :  { %v8028_v62 = vld [vmem:[#allocation77_spill] sm:$0xff] }
 0x545   :  { %3021 = vmatpush.bf16.msrb.mxu1 %v8022_v60  ;;  %3047 = vmatpush.bf16.msrb.mxu3 %v8023_v1  ;;  %v8032_v1 = vld [vmem:[#allocation81_spill] sm:$0xff]  ;;  %v8041_v60 = vld [vmem:[#allocation91_spill] sm:$0xff] }
 0x546   :  { %3252 = vmatpush.bf16.msrb.mxu0 %v8020_v16  ;;  %3278 = vmatpush.bf16.msrb.mxu2 %v8021_v31  ;;  %v8031_v16 = vld [vmem:[#allocation126_spill] sm:$0xff]  ;;  %v8050_v31 = vld [vmem:[#allocation105_spill] sm:$0xff] }
 0x549   :  { %3022 = vmatpush.bf16.msrb.mxu1 %v8026_v47  ;;  %3048 = vmatpush.bf16.msrb.mxu3 %v8027_v0  ;;  %v8035_v47 = vld [vmem:[#allocation130_spill] sm:$0xff]  ;;  %v8036_v0 = vld [vmem:[#allocation85_spill] sm:$0xff] }
 0x54a   :  { %3253 = vmatpush.bf16.msrb.mxu0 %v8024_v41  ;;  %3279 = vmatpush.bf16.msrb.mxu2 %v8025_v26  ;;  %v8033_v41 = vld [vmem:[#allocation83_spill] sm:$0xff]  ;;  %v8034_v26 = vld [vmem:[#allocation128_spill] sm:$0xff] }
 0x54c   :  { %3023 = vmatmul.bf16.vlgmr.msrb.gmra.mxu1 %v6703_v38  ;;  %3049 = vmatmul.bf16.vlgmr.msrb.gmra.mxu3 %v6703_v38  ;;  %v8042_v38 = vld [vmem:[#allocation136_spill] sm:$0xff] }
 0x54d   :  { %3211 = vmatpush.bf16.msra.mxu1 %v8028_v62  ;;  %3237 = vmatpush.bf16.msra.mxu3 %v8029_v58  ;;  %v8037_v62 = vld [vmem:[#allocation87_spill] sm:$0xff]  ;;  %v8038_v58 = vld [vmem:[#allocation132_spill] sm:$0xff] }
 0x54e   :  { %3254 = vmatpush.bf16.msrb.mxu0 %v8030_v24  ;;  %3280 = vmatpush.bf16.msrb.mxu2 %v8031_v16  ;;  %v8039_v24 = vld [vmem:[#allocation134_spill] sm:$0xff]  ;;  %v8040_v16 = vld [vmem:[#allocation89_spill] sm:$0xff] }
 0x551   :  { %3212 = vmatpush.bf16.msra.mxu1 %v8032_v1  ;;  %3238 = vmatpush.bf16.msra.mxu3 %v8033_v41  ;;  %v8043_v1 = vld [vmem:[#allocation138_spill] sm:$0xff]  ;;  %v8044_v41 = vld [vmem:[#allocation93_spill] sm:$0xff] }
 0x552   :  { %3255 = vmatpush.bf16.msrb.mxu0 %v8034_v26  ;;  %3281 = vmatpush.bf16.msrb.mxu2 %v8035_v47  ;;  %v8045_v26 = vld [vmem:[#allocation95_spill] sm:$0xff]  ;;  %v8046_v47 = vld [vmem:[#allocation97_spill] sm:$0xff] }
 0x555   :  { %3213 = vmatpush.bf16.msra.mxu1 %v8036_v0  ;;  %3239 = vmatpush.bf16.msra.mxu3 %v8037_v62  ;;  %v8047_v0 = vld [vmem:[#allocation99_spill] sm:$0xff] }
 0x556   :  { %3256 = vmatpush.bf16.msrb.mxu0 %v8038_v58  ;;  %3282 = vmatpush.bf16.msrb.mxu2 %v8039_v24  ;;  %v8048_v58 = vld [vmem:[#allocation101_spill] sm:$0xff]  ;;  %v8049_v24 = vld [vmem:[#allocation103_spill] sm:$0xff] }
 0x559   :  { %3214 = vmatpush.bf16.msra.mxu1 %v8040_v16  ;;  %3240 = vmatpush.bf16.msra.mxu3 %v8041_v60  ;;  %v2855_v62 = vpop.f32.mrf.mxu0  ;;  %v8051_v60 = vld [vmem:[#allocation107_spill] sm:$0xff] }
 0x55a   :  { %3257 = vmatpush.bf16.msrb.mxu0 %v8042_v38  ;;  %3283 = vmatpush.bf16.msrb.mxu2 %v8043_v1  ;;  %v8052_v1 = vld [vmem:[#allocation109_spill] sm:$0xff] }
 0x55d   :  { %3215 = vmatpush.bf16.msra.mxu1 %v8044_v41  ;;  %3241 = vmatpush.bf16.msra.mxu3 %v8045_v26  ;;  %v8053_v41 = vld [vmem:[#allocation111_spill] sm:$0xff]  ;;  %v8054_v26 = vld [vmem:[#allocation113_spill] sm:$0xff] }
 0x55f   :  { %v2881_v16 = vpop.f32.mrf.mxu2 }
 0x561   :  { %3216 = vmatpush.bf16.msra.mxu1 %v8046_v47  ;;  %3242 = vmatpush.bf16.msra.mxu3 %v8047_v0  ;;  %v2857_v38 = vpop.f32.mrf.mxu0  ;;  %v8055_v47 = vld [vmem:[#allocation115_spill] sm:$0xff] }
 0x565   :  { %3217 = vmatpush.bf16.msra.mxu1 %v8048_v58  ;;  %3243 = vmatpush.bf16.msra.mxu3 %v8049_v24  ;;  %v8057_v58 = vld [vmem:[#allocation119_spill] sm:$0xff]  ;;  %v8058_v24 = vld [vmem:[#allocation121_spill] sm:$0xff] }
 0x567   :  { %v2883_v0 = vpop.f32.mrf.mxu2 }
 0x569   :  { %3218 = vmatpush.bf16.msra.mxu1 %v8050_v31  ;;  %3244 = vmatpush.bf16.msra.mxu3 %v8051_v60  ;;  %v2907_v15 = vpop.f32.mrf.mxu0  ;;  %v8059_v31 = vld [vmem:[#allocation123_spill] sm:$0xff] }
 0x56d   :  { %3263 = vmatpush.bf16.msrb.mxu1 %v8052_v1  ;;  %3289 = vmatpush.bf16.msrb.mxu3 %v8053_v41  ;;  %v8061_v1 = vld [vmem:[#allocation127_spill] sm:$0xff]  ;;  %v8062_v41 = vld [vmem:[#allocation129_spill] sm:$0xff] }
 0x56f   :  { %v2933_v60 = vpop.f32.mrf.mxu2 }
 0x571   :  { %3264 = vmatpush.bf16.msrb.mxu1 %v8054_v26  ;;  %3290 = vmatpush.bf16.msrb.mxu3 %v8055_v47  ;;  %v2909_v38 = vpop.f32.mrf.mxu0  ;;  %v8063_v26 = vld [vmem:[#allocation131_spill] sm:$0xff] }
 0x575   :  { %3265 = vmatpush.bf16.msrb.mxu1 %v8056_v12  ;;  %3291 = vmatpush.bf16.msrb.mxu3 %v8057_v58  ;;  %v8065_v12 = vld [vmem:[#allocation135_spill] sm:$0xff]  ;;  %v8066_v58 = vld [vmem:[#allocation137_spill] sm:$0xff] }
 0x577   :  { %v2935_v0 = vpop.f32.mrf.mxu2 }
 0x579   :  { %3266 = vmatpush.bf16.msrb.mxu1 %v8058_v24  ;;  %3292 = vmatpush.bf16.msrb.mxu3 %v8059_v31  ;;  %v2959_v47 = vpop.f32.mrf.mxu0  ;;  %v8067_v24 = vld [vmem:[#allocation139_spill] sm:$0xff] }
 0x57d   :  { %3267 = vmatpush.bf16.msrb.mxu1 %v8060_v39  ;;  %3293 = vmatpush.bf16.msrb.mxu3 %v8061_v1 }
 0x57f   :  { %v6819_v31 = vpop.f32.mrf.mxu2 }
 0x581   :  { %3268 = vmatpush.bf16.msrb.mxu1 %v8062_v41  ;;  %3294 = vmatpush.bf16.msrb.mxu3 %v8063_v26  ;;  %v2961_v38 = vpop.f32.mrf.mxu0 }
 0x585   :  { %3269 = vmatpush.bf16.msrb.mxu1 %v8064_v13  ;;  %3295 = vmatpush.bf16.msrb.mxu3 %v8065_v12  ;;  %v8069_v13 = vld [vmem:[#allocation35_spill] sm:$0xff] }
 0x587   :  { %v2987_v1 = vpop.f32.mrf.mxu2 }
 0x589   :  { %3270 = vmatpush.bf16.msrb.mxu1 %v8066_v58  ;;  %3296 = vmatpush.bf16.msrb.mxu3 %v8067_v24  ;;  %v2868_v39 = vpop.f32.mrf.mxu1 }
 0x58a   :  { %v2869_v59 = vadd.f32 %v2868_v39, %v2855_v62 }
 0x58c   :  { %v3058_v41 = vadd.f32 %v2869_v59, %v8068_v14 }
 0x58e   :  { %v4711_v27 = vmul.f32 -1.442695, %v3058_v41 }
 0x58f   :  { %v2894_v26 = vpop.f32.mrf.mxu3 }
 0x590   :  { %5022 = vpow2.f32 %v4711_v27  ;;  %v2895_v0 = vadd.f32 %v2894_v26, %v2881_v16 }
 0x591   :  { %v2870_v4 = vpop.f32.mrf.mxu1 }
 0x592   :  { %v3059_v57 = vadd.f32 %v2895_v0, %v8069_v13 }
 0x594   :  { %v4712_v12 = vmul.f32 -1.442695, %v3059_v57  ;;  %v8070_v57 = vld [vmem:[#allocation37_spill] sm:$0xff] }
 0x596   :  { %v5023_v33 = vpop.eup %5022  ;;  %5024 = vpow2.f32 %v4712_v12 }
 0x597   :  { %v3073_v58 = vadd.f32 1.0, %v5023_v33  ;;  %v2896_v24 = vpop.f32.mrf.mxu3 }
 0x599   :  { %5026 = vrcp.f32 %v3073_v58  ;;  %v2920_v29 = vpop.f32.mrf.mxu1  ;;  %vm3079_vm12 = vweird.f32 %v3073_v58 }
 0x59a   :  { %v2921_v33 = vadd.f32 %v2920_v29, %v2907_v15  ;;  %v3083_v29 = vand.u32 2147483647, %v3073_v58 }
 0x59c   :  { %v6823_v38 = vpop.f32.mrf.mxu0  ;;  %v5025_v39 = vpop.eup %5024  ;;  %v3060_v17 = vadd.f32 %v2921_v33, %v8071_v48  ;;  %v8074_v48 = vld [vmem:[#allocation54_spill] sm:$0xff]  ;;  %vm3084_vm1 = vcmp.eq.f32.partialorder %v3083_v29, 8.507059e+37 }
 0x59d   :  { %v3092_v1 = vadd.f32 1.0, %v5025_v39 }
 0x59f   :  { %v5027_v62 = vpop.eup %5026  ;;  %5028 = vrcp.f32 %v3092_v1  ;;  %v2946_v14 = vpop.f32.mrf.mxu3  ;;  %v3104_v25 = vand.u32 2147483648, %v3092_v1  ;;  %vm3098_vm13 = vweird.f32 %v3092_v1 }
 0x5a0   :  { %v3075_v59 = vmul.f32 %v5027_v62, %v3073_v58  ;;  %v2947_v27 = vadd.f32 %v2946_v14, %v2933_v60  ;;  %vm3080_vm10 = vweird.f32 %v5027_v62  ;;  %v3085_v60 = vand.u32 2147483648, %v3073_v58 }
 0x5a1   :  { %v2922_v4 = vpop.f32.mrf.mxu1  ;;  %vm6829_vm14 = vmor %vm3079_vm12, %vm3080_vm10 }
 0x5a2   :  { %v6825_v16 = vpop.f32.mrf.mxu2  ;;  %v3076_v13 = vsub.f32 1.0, %v3075_v59  ;;  %v3061_v41 = vadd.f32 %v2947_v27, %v8070_v57  ;;  %v3102_v27 = vand.u32 2147483647, %v3092_v1 }
 0x5a4   :  { %v3013_v12 = vpop.f32.mrf.mxu0  ;;  %v4713_v26 = vmul.f32 -1.442695, %v3061_v41  ;;  %v3077_v0 = vmul.f32 %v5027_v62, %v3076_v13  ;;  %v3105_v41 = vor.u32 1.1754944e-38, %v3104_v25  ;;  %vm3103_vm0 = vcmp.eq.f32.partialorder %v3102_v27, 8.507059e+37  ;;  %v8075_v25 = vld [vmem:[#allocation55_spill] sm:$0xff] }
 0x5a5   :  { %v5029_v24 = vpop.eup %5028 }
 0x5a6   :  { %v3094_v55 = vmul.f32 %v5029_v24, %v3092_v1  ;;  %5030 = vpow2.f32 %v4713_v26  ;;  %v3078_v2 = vadd.f32 %v5027_v62, %v3077_v0  ;;  %vm3099_vm11 = vweird.f32 %v5029_v24 }
 0x5a7   :  { %v2948_v34 = vpop.f32.mrf.mxu3  ;;  %5032 = vtanh.f32 %v3060_v17  ;;  %vm3100_vm15 = vmor %vm3098_vm13, %vm3099_vm11  ;;  %v3086_v26 = vor.u32 1.1754944e-38, %v3085_v60 }
 0x5a8   :  { %v3095_v39 = vsub.f32 1.0, %v3094_v55  ;;  %v3082_v12 = vsel %vm6829_vm14, %v5027_v62, %v3078_v2 }
 0x5a9   :  { %v2972_v4 = vpop.f32.mrf.mxu1  ;;  %v3087_v0 = vsel %vm3084_vm1, %v3086_v26, %v3082_v12 }
 0x5aa   :  { %v3039_v14 = vpop.f32.mrf.mxu2  ;;  %v3096_v59 = vmul.f32 %v5029_v24, %v3095_v39  ;;  %v2973_v57 = vadd.f32 %v2972_v4, %v2959_v47 }
 0x5ac   :  { %v5031_v15 = vpop.eup %5030  ;;  %v3097_v34 = vadd.f32 %v5029_v24, %v3096_v59  ;;  %v3066_v55 = vadd.f32 %v2973_v57, %v8074_v48 }
 0x5ad   :  { %v3112_v33 = vadd.f32 1.0, %v5031_v15  ;;  %v5033_v59 = vpop.eup %5032 }
 0x5ae   :  { %v3101_v47 = vsel %vm3100_vm15, %v5029_v24, %v3097_v34  ;;  %v4714_v39 = vmul.f32 -1.442695, %v3066_v55  ;;  %v3129_v13 = vmul.f32 %v5033_v59, %v3087_v0 }
 0x5af   :  { %v3106_v58 = vsel %vm3103_vm0, %v3105_v41, %v3101_v47  ;;  %5034 = vrcp.f32 %v3112_v33  ;;  %v2998_v1 = vpop.f32.mrf.mxu3  ;;  %v3124_v15 = vand.u32 2147483648, %v3112_v33  ;;  %vm3118_vm3 = vweird.f32 %v3112_v33 }
 0x5b0   :  { %v2999_v14 = vadd.f32 %v2998_v1, %v6819_v31  ;;  %v3128_v17 = vmul.f32 %v3106_v58, %v6647_v43  ;;  %5036 = vpow2.f32 %v4714_v39  ;;  %v3122_v43 = vand.u32 2147483647, %v3112_v33 }
 0x5b1   :  { %v2974_v4 = vpop.f32.mrf.mxu1  ;;  %v3125_v41 = vor.u32 1.1754944e-38, %v3124_v15 }
 0x5b2   :  { %v3067_v57 = vadd.f32 %v2999_v14, %v8075_v25  ;;  %v6839_v24 = vadd.f32 %v3129_v13, %v3128_v17  ;;  %vm3123_vm5 = vcmp.eq.f32.partialorder %v3122_v43, 8.507059e+37 }
 0x5b4   :  { %v4715_v2 = vmul.f32 -1.442695, %v3067_v57 }
 0x5b5   :  { %v5035_v62 = vpop.eup %5034 }
 0x5b6   :  { %v3114_v60 = vmul.f32 %v5035_v62, %v3112_v33  ;;  %5038 = vpow2.f32 %v4715_v2  ;;  %v5037_v31 = vpop.eup %5036  ;;  %vm3119_vm2 = vweird.f32 %v5035_v62 }
 0x5b7   :  { %v3000_v27 = vpop.f32.mrf.mxu3  ;;  %5040 = vtanh.f32 %v6839_v24  ;;  %vm3120_vm4 = vmor %vm3118_vm3, %vm3119_vm2  ;;  %v6842_v12 = vadd.f32 1.0, %v5037_v31  ;;  %v8077_v31 = vld [vmem:[#allocation60_spill] sm:$0xff] }
 0x5b8   :  { %v3115_v29 = vsub.f32 1.0, %v3114_v60  ;;  %v8076_v27 = vld [vmem:[#allocation57_spill] sm:$0xff] }
 0x5b9   :  { %vm3142_vm10 = vweird.f32 %v6842_v12 }
 0x5ba   :  { %v3116_v34 = vmul.f32 %v5035_v62, %v3115_v29 }
 0x5bc   :  { %v5039_v48 = vpop.eup %5038  ;;  %v3117_v55 = vadd.f32 %v5035_v62, %v3116_v34 }
 0x5bd   :  { %v3155_v26 = vadd.f32 1.0, %v5039_v48  ;;  %v5041_v58 = vpop.eup %5040 }
 0x5be   :  { %v3121_v47 = vsel %vm3120_vm4, %v5035_v62, %v3117_v55 }
 0x5bf   :  { %v3126_v1 = vsel %vm3123_vm5, %v3125_v41, %v3121_v47  ;;  %5042 = vrcp.f32 %v3155_v26  ;;  %v3167_v55 = vand.u32 2147483648, %v3155_v26  ;;  %vm3161_vm7 = vweird.f32 %v3155_v26 }
 0x5c0   :  { %v3132_v0 = vmul.f32 %v5041_v58, %v3126_v1  ;;  %5044 = vrcp.f32 %v6842_v12  ;;  %v3165_v47 = vand.u32 2147483647, %v3155_v26  ;;  %v3148_v1 = vand.u32 2147483648, %v6842_v12  ;;  %v8081_v58 = vld [vmem:[#allocation190_spill] sm:$0xff] }
 0x5c2   :  { %v6845_v39 = vpack.c.bf16 %v3132_v0, %v3132_v0  ;;  %v3146_v0 = vand.u32 2147483647, %v6842_v12  ;;  %vm3166_vm12 = vcmp.eq.f32.partialorder %v3165_v47, 8.507059e+37  ;;  %v8080_v47 = vld [vmem:[#allocation151_spill] sm:$0xff] }
 0x5c4   :  { %3206 = vmatmul.bf16.vlgmr.msra.gmra.mxu0 %v6845_v39  ;;  %3232 = vmatmul.bf16.vlgmr.msra.gmra.mxu2 %v6845_v39  ;;  %vm3147_vm13 = vcmp.eq.f32.partialorder %v3146_v0, 8.507059e+37  ;;  %v8083_v0 = vld [vmem:[#allocation153_spill] sm:$0xff] }
 0x5c5   :  { %v5043_v33 = vpop.eup %5042  ;;  %3302 = vmatpush.bf16.msra.mxu0 %v7758_v18  ;;  %3328 = vmatpush.bf16.msra.mxu2 %v7862_v11 }
 0x5c6   :  { %v5045_v17 = vpop.eup %5044  ;;  %v3157_v4 = vmul.f32 %v5043_v33, %v3155_v26  ;;  %vm3162_vm6 = vweird.f32 %v5043_v33 }
 0x5c7   :  { %v3138_v59 = vmul.f32 %v5045_v17, %v6842_v12  ;;  %vm3143_vm8 = vweird.f32 %v5045_v17  ;;  %vm6866_vm9 = vmor %vm3161_vm7, %vm3162_vm6 }
 0x5c8   :  { %v3158_v25 = vsub.f32 1.0, %v3157_v4  ;;  %vm3144_vm11 = vmor %vm3142_vm10, %vm3143_vm8 }
 0x5c9   :  { %v3024_v14 = vpop.f32.mrf.mxu1  ;;  %3303 = vmatpush.bf16.msra.mxu0 %v7863_v51  ;;  %3329 = vmatpush.bf16.msra.mxu2 %v7864_v49  ;;  %v3139_v62 = vsub.f32 1.0, %v3138_v59  ;;  %v3168_v59 = vor.u32 1.1754944e-38, %v3167_v55 }
 0x5ca   :  { %v3025_v13 = vadd.f32 %v3024_v14, %v6823_v38  ;;  %v3159_v15 = vmul.f32 %v5043_v33, %v3158_v25 }
 0x5cb   :  { %v3140_v48 = vmul.f32 %v5045_v17, %v3139_v62 }
 0x5cc   :  { %v3068_v34 = vadd.f32 %v3025_v13, %v8077_v31  ;;  %v3160_v38 = vadd.f32 %v5043_v33, %v3159_v15  ;;  %v3149_v13 = vor.u32 1.1754944e-38, %v3148_v1  ;;  %v8082_v1 = vld [vmem:[#allocation192_spill] sm:$0xff] }
 0x5cd   :  { %3304 = vmatpush.bf16.msra.mxu0 %v7865_v6  ;;  %3330 = vmatpush.bf16.msra.mxu2 %v7866_v42  ;;  %v3141_v41 = vadd.f32 %v5045_v17, %v3140_v48 }
 0x5ce   :  { %v3164_v14 = vsel %vm6866_vm9, %v5043_v33, %v3160_v38 }
 0x5cf   :  { %v3050_v57 = vpop.f32.mrf.mxu3  ;;  %v3145_v26 = vsel %vm3144_vm11, %v5045_v17, %v3141_v41 }
 0x5d0   :  { %v3051_v2 = vadd.f32 %v3050_v57, %v6825_v16  ;;  %v3150_v62 = vsel %vm3147_vm13, %v3149_v13, %v3145_v26  ;;  %v8087_v26 = vld [vmem:[#allocation76_spill] sm:$0xff]  ;;  %v8090_v13 = vld [vmem:[#allocation159_spill] sm:$0xff] }
 0x5d1   :  { %v3026_v60 = vpop.f32.mrf.mxu1  ;;  %3305 = vmatpush.bf16.msra.mxu0 %v7768_v35  ;;  %3331 = vmatpush.bf16.msra.mxu2 %v7769_v56 }
 0x5d2   :  { %v3069_v29 = vadd.f32 %v3051_v2, %v8076_v27  ;;  %v3169_v2 = vsel %vm3166_vm12, %v3168_v59, %v3164_v14  ;;  %v8084_v14 = vld [vmem:[#allocation155_spill] sm:$0xff]  ;;  %v8086_v59 = vld [vmem:[#allocation196_spill] sm:$0xff] }
 0x5d3   :  { %v3191_v12 = vmul.f32 %v3169_v2, %v6690_v36  ;;  %v8091_v2 = vld [vmem:[#allocation80_spill] sm:$0xff] }
 0x5d4   :  { %v4716_v43 = vmul.f32 -1.442695, %v3069_v29  ;;  %3258 = vmatmul.bf16.vlgmr.msrb.gmra.mxu0 %v6845_v39  ;;  %3284 = vmatmul.bf16.vlgmr.msrb.gmra.mxu2 %v6845_v39 }
 0x5d5   :  { %3306 = vmatpush.bf16.msra.mxu0 %v7770_v52  ;;  %3332 = vmatpush.bf16.msra.mxu2 %v7771_v8 }
 0x5d6   :  { %5046 = vpow2.f32 %v4716_v43 }
 0x5d7   :  { %v3052_v16 = vpop.f32.mrf.mxu3  ;;  %5048 = vtanh.f32 %v3068_v34 }
 0x5d9   :  { %3307 = vmatpush.bf16.msra.mxu0 %v7772_v44  ;;  %3333 = vmatpush.bf16.msra.mxu2 %v7665_v20 }
 0x5dc   :  { %v5047_v4 = vpop.eup %5046 }
 0x5dd   :  { %v3175_v25 = vadd.f32 1.0, %v5047_v4  ;;  %v5049_v57 = vpop.eup %5048  ;;  %3308 = vmatpush.bf16.msra.mxu0 %v7666_v28  ;;  %3334 = vmatpush.bf16.msra.mxu2 %v5867_v46  ;;  %v8085_v4 = vld [vmem:[#allocation194_spill] sm:$0xff] }
 0x5de   :  { %v3192_v33 = vmul.f32 %v5049_v57, %v3150_v62  ;;  %v8089_v57 = vld [vmem:[#allocation157_spill] sm:$0xff]  ;;  %v8092_v62 = vld [vmem:[#allocation82_spill] sm:$0xff] }
 0x5df   :  { %5050 = vrcp.f32 %v3175_v25  ;;  %v3187_v36 = vand.u32 2147483648, %v3175_v25  ;;  %v3185_v31 = vand.u32 2147483647, %v3175_v25  ;;  %vm3181_vm15 = vweird.f32 %v3175_v25 }
 0x5e0   :  { %v6882_v60 = vadd.f32 %v3192_v33, %v3191_v12  ;;  %v8093_v12 = vld [vmem:[#allocation161_spill] sm:$0xff]  ;;  %v8094_v33 = vld [vmem:[#allocation163_spill] sm:$0xff] }
 0x5e1   :  { %3309 = vmatpush.bf16.msra.mxu0 %v5873_v40  ;;  %3335 = vmatpush.bf16.msra.mxu2 %v5879_v45  ;;  %v3188_v43 = vor.u32 1.1754944e-38, %v3187_v36  ;;  %vm3186_vm1 = vcmp.eq.f32.partialorder %v3185_v31, 8.507059e+37  ;;  %v8098_v36 = vld [vmem:[#allocation166_spill] sm:$0xff] }
 0x5e2   :  { %5052 = vtanh.f32 %v6882_v60  ;;  %v8100_v31 = vld [vmem:[#allocation90_spill] sm:$0xff] }
 0x5e4   :  { %3310 = vmatmul.bf16.vlgmr.msra.gmra.mxu0 %v6845_v39  ;;  %3336 = vmatmul.bf16.vlgmr.msra.gmra.mxu2 %v6845_v39 }
 0x5e5   :  { %v5051_v17 = vpop.eup %5050  ;;  %3354 = vmatpush.bf16.msrb.mxu0 %v5884_v54  ;;  %3380 = vmatpush.bf16.msrb.mxu2 %v5888_v32 }
 0x5e6   :  { %v3177_v27 = vmul.f32 %v5051_v17, %v3175_v25  ;;  %vm3182_vm14 = vweird.f32 %v5051_v17  ;;  %v8088_v25 = vld [vmem:[#allocation78_spill] sm:$0xff] }
 0x5e7   :  { %vm3183_vm0 = vmor %vm3181_vm15, %vm3182_vm14 }
 0x5e8   :  { %v3178_v29 = vsub.f32 1.0, %v3177_v27  ;;  %v5053_v38 = vpop.eup %5052  ;;  %v8096_v27 = vld [vmem:[#allocation86_spill] sm:$0xff] }
 0x5e9   :  { %3355 = vmatpush.bf16.msrb.mxu0 %v7673_v10  ;;  %3381 = vmatpush.bf16.msrb.mxu2 %v7773_v19 }
 0x5ea   :  { %v3179_v15 = vmul.f32 %v5051_v17, %v3178_v29  ;;  %v8097_v29 = vld [vmem:[#allocation165_spill] sm:$0xff] }
 0x5ec   :  { %v3180_v34 = vadd.f32 %v5051_v17, %v3179_v15  ;;  %v8099_v15 = vld [vmem:[#allocation88_spill] sm:$0xff] }
 0x5ed   :  { %3356 = vmatpush.bf16.msrb.mxu0 %v7675_v50  ;;  %3382 = vmatpush.bf16.msrb.mxu2 %v7676_v63 }
 0x5ee   :  { %v3184_v48 = vsel %vm3183_vm0, %v5051_v17, %v3180_v34  ;;  %v8095_v17 = vld [vmem:[#allocation84_spill] sm:$0xff] }
 0x5ef   :  { %v3189_v16 = vsel %vm3186_vm1, %v3188_v43, %v3184_v48  ;;  %v8102_v34 = vld [vmem:[#allocation168_spill] sm:$0xff]  ;;  %v8103_v43 = vld [vmem:[#allocation169_spill] sm:$0xff]  ;;  %v8104_v48 = vld [vmem:[#allocation170_spill] sm:$0xff] }
 0x5f0   :  { %v3195_v55 = vmul.f32 %v5053_v38, %v3189_v16  ;;  %v8105_v38 = vld [vmem:[#allocation92_spill] sm:$0xff]  ;;  %v8106_v16 = vld [vmem:[#allocation94_spill] sm:$0xff] }
 0x5f1   :  { %3357 = vmatpush.bf16.msrb.mxu0 %v7677_v37  ;;  %3383 = vmatpush.bf16.msrb.mxu2 %v7678_v53 }
 0x5f2   :  { %v6895_v41 = vpack.c.bf16 %v3195_v55, %v3195_v55  ;;  %v8107_v55 = vld [vmem:[#allocation172_spill] sm:$0xff] }
 0x5f4   :  { %3219 = vmatmul.bf16.vlgmr.msra.gmra.mxu1 %v6895_v41  ;;  %3245 = vmatmul.bf16.vlgmr.msra.gmra.mxu3 %v6895_v41 }
 0x5f5   :  { %3315 = vmatpush.bf16.msra.mxu1 %v7683_v61  ;;  %3341 = vmatpush.bf16.msra.mxu3 %v7684_v22 }
 0x5f6   :  { %3358 = vmatpush.bf16.msrb.mxu0 %v7680_v5  ;;  %3384 = vmatpush.bf16.msrb.mxu2 %v7681_v3 }
 0x5f9   :  { %3316 = vmatpush.bf16.msra.mxu1 %v7685_v9  ;;  %3342 = vmatpush.bf16.msra.mxu3 %v7686_v7 }
 0x5fa   :  { %3359 = vmatpush.bf16.msrb.mxu0 %v7682_v23  ;;  %3385 = vmatpush.bf16.msrb.mxu2 %v5955_v30 }
 0x5fd   :  { %3317 = vmatpush.bf16.msra.mxu1 %v7687_v21  ;;  %3343 = vmatpush.bf16.msra.mxu3 %v8080_v47 }
 0x5fe   :  { %3360 = vmatpush.bf16.msrb.mxu0 %v8081_v58  ;;  %3386 = vmatpush.bf16.msrb.mxu2 %v8082_v1 }
 0x601   :  { %3318 = vmatpush.bf16.msra.mxu1 %v8083_v0  ;;  %3344 = vmatpush.bf16.msra.mxu3 %v8084_v14  ;;  %v8178_v0 = vld [vmem:[#allocation44_spill] sm:$0xff] }
 0x602   :  { %3361 = vmatpush.bf16.msrb.mxu0 %v8085_v4  ;;  %3387 = vmatpush.bf16.msrb.mxu2 %v8086_v59 }
 0x604   :  { %3271 = vmatmul.bf16.vlgmr.msrb.gmra.mxu1 %v6895_v41  ;;  %3297 = vmatmul.bf16.vlgmr.msrb.gmra.mxu3 %v6895_v41 }
 0x605   :  { %3319 = vmatpush.bf16.msra.mxu1 %v8089_v57  ;;  %3345 = vmatpush.bf16.msra.mxu3 %v8090_v13 }
 0x606   :  { %3550 = vmatpush.bf16.msra.mxu0 %v8087_v26  ;;  %3576 = vmatpush.bf16.msra.mxu2 %v8088_v25  ;;  %v8108_v26 = vld [vmem:[#allocation174_spill] sm:$0xff]  ;;  %v8109_v25 = vld [vmem:[#allocation96_spill] sm:$0xff] }
 0x607   :  { %3362 = vmatmul.bf16.vlgmr.msrb.gmra.mxu0 %v6845_v39  ;;  %3388 = vmatmul.bf16.vlgmr.msrb.gmra.mxu2 %v6845_v39  ;;  %v8101_v39 = vld [vmem:[#allocation167_spill] sm:$0xff] }
 0x609   :  { %3320 = vmatpush.bf16.msra.mxu1 %v8093_v12  ;;  %3346 = vmatpush.bf16.msra.mxu3 %v8094_v33 }
 0x60a   :  { %3551 = vmatpush.bf16.msra.mxu0 %v8091_v2  ;;  %3577 = vmatpush.bf16.msra.mxu2 %v8092_v62  ;;  %v8110_v2 = vld [vmem:[#allocation98_spill] sm:$0xff]  ;;  %v8111_v62 = vld [vmem:[#allocation176_spill] sm:$0xff] }
 0x60d   :  { %3321 = vmatpush.bf16.msra.mxu1 %v8097_v29  ;;  %3347 = vmatpush.bf16.msra.mxu3 %v8098_v36  ;;  %v8175_v29 = vld [vmem:[#allocation38_spill] sm:$0xff] }
 0x60e   :  { %3552 = vmatpush.bf16.msra.mxu0 %v8095_v17  ;;  %3578 = vmatpush.bf16.msra.mxu2 %v8096_v27  ;;  %v8112_v17 = vld [vmem:[#allocation178_spill] sm:$0xff]  ;;  %v8113_v27 = vld [vmem:[#allocation100_spill] sm:$0xff] }
 0x611   :  { %3322 = vmatpush.bf16.msra.mxu1 %v8101_v39  ;;  %3348 = vmatpush.bf16.msra.mxu3 %v8102_v34  ;;  %v8167_v34 = vld [vmem:[#allocation125_spill] sm:$0xff] }
 0x612   :  { %3553 = vmatpush.bf16.msra.mxu0 %v8099_v15  ;;  %3579 = vmatpush.bf16.msra.mxu2 %v8100_v31  ;;  %v8114_v15 = vld [vmem:[#allocation102_spill] sm:$0xff]  ;;  %v8115_v31 = vld [vmem:[#allocation180_spill] sm:$0xff]  ;;  %v8171_v39 = vld [vmem:[#allocation133_spill] sm:$0xff] }
 0x614   :  { %3323 = vmatmul.bf16.vlgmr.msra.gmra.mxu1 %v6895_v41  ;;  %3349 = vmatmul.bf16.vlgmr.msra.gmra.mxu3 %v6895_v41 }
 0x615   :  { %3367 = vmatpush.bf16.msrb.mxu1 %v8103_v43  ;;  %3393 = vmatpush.bf16.msrb.mxu3 %v8104_v48  ;;  %v8163_v43 = vld [vmem:[#allocation117_spill] sm:$0xff] }
 0x616   :  { %3554 = vmatpush.bf16.msra.mxu0 %v8105_v38  ;;  %3580 = vmatpush.bf16.msra.mxu2 %v8106_v16  ;;  %v8116_v38 = vld [vmem:[#allocation182_spill] sm:$0xff]  ;;  %v8117_v16 = vld [vmem:[#allocation104_spill] sm:$0xff] }
 0x619   :  { %3368 = vmatpush.bf16.msrb.mxu1 %v8107_v55  ;;  %3394 = vmatpush.bf16.msrb.mxu3 %v8108_v26  ;;  %v8118_v55 = vld [vmem:[#allocation106_spill] sm:$0xff]  ;;  %v8119_v26 = vld [vmem:[#allocation108_spill] sm:$0xff] }
 0x61a   :  { %3555 = vmatpush.bf16.msra.mxu0 %v8109_v25  ;;  %3581 = vmatpush.bf16.msra.mxu2 %v8110_v2  ;;  %v8120_v25 = vld [vmem:[#allocation110_spill] sm:$0xff]  ;;  %v8121_v2 = vld [vmem:[#allocation184_spill] sm:$0xff] }
 0x61d   :  { %3369 = vmatpush.bf16.msrb.mxu1 %v8111_v62  ;;  %3395 = vmatpush.bf16.msrb.mxu3 %v8112_v17  ;;  %v8122_v62 = vld [vmem:[#allocation186_spill] sm:$0xff]  ;;  %v8123_v17 = vld [vmem:[#allocation112_spill] sm:$0xff] }
 0x61e   :  { %3556 = vmatpush.bf16.msra.mxu0 %v8113_v27  ;;  %3582 = vmatpush.bf16.msra.mxu2 %v8114_v15  ;;  %v8124_v27 = vld [vmem:[#allocation114_spill] sm:$0xff]  ;;  %v8125_v15 = vld [vmem:[#allocation188_spill] sm:$0xff] }
 0x621   :  { %3370 = vmatpush.bf16.msrb.mxu1 %v8115_v31  ;;  %3396 = vmatpush.bf16.msrb.mxu3 %v8116_v38  ;;  %v8126_v31 = vld [vmem:[#allocation189_spill] sm:$0xff]  ;;  %v8127_v38 = vld [vmem:[#allocation116_spill] sm:$0xff] }
 0x622   :  { %3557 = vmatpush.bf16.msra.mxu0 %v8117_v16  ;;  %3583 = vmatpush.bf16.msra.mxu2 %v8118_v55  ;;  %v8128_v16 = vld [vmem:[#allocation118_spill] sm:$0xff]  ;;  %v8129_v55 = vld [vmem:[#allocation191_spill] sm:$0xff] }
 0x625   :  { %3371 = vmatpush.bf16.msrb.mxu1 %v8121_v2  ;;  %3397 = vmatpush.bf16.msrb.mxu3 %v8122_v62  ;;  %v8132_v2 = vld [vmem:[#allocation122_spill] sm:$0xff]  ;;  %v8133_v62 = vld [vmem:[#allocation195_spill] sm:$0xff] }
 0x626   :  { %3602 = vmatpush.bf16.msrb.mxu0 %v8119_v26  ;;  %3628 = vmatpush.bf16.msrb.mxu2 %v8120_v25  ;;  %v8130_v26 = vld [vmem:[#allocation193_spill] sm:$0xff]  ;;  %v8131_v25 = vld [vmem:[#allocation120_spill] sm:$0xff] }
 0x629   :  { %3372 = vmatpush.bf16.msrb.mxu1 %v8125_v15  ;;  %3398 = vmatpush.bf16.msrb.mxu3 %v8126_v31  ;;  %v8136_v15 = vld [vmem:[#allocation79_spill] sm:$0xff]  ;;  %v8137_v31 = vld [vmem:[#allocation124_spill] sm:$0xff] }
 0x62a   :  { %3603 = vmatpush.bf16.msrb.mxu0 %v8123_v17  ;;  %3629 = vmatpush.bf16.msrb.mxu2 %v8124_v27  ;;  %v8134_v17 = vld [vmem:[#allocation197_spill] sm:$0xff] }
 0x62b   :  { %v8135_v27 = vld [vmem:[#allocation77_spill] sm:$0xff] }
 0x62d   :  { %3373 = vmatpush.bf16.msrb.mxu1 %v8129_v55  ;;  %3399 = vmatpush.bf16.msrb.mxu3 %v8130_v26  ;;  %v8148_v26 = vld [vmem:[#allocation91_spill] sm:$0xff]  ;;  %v8157_v55 = vld [vmem:[#allocation105_spill] sm:$0xff] }
 0x62e   :  { %3604 = vmatpush.bf16.msrb.mxu0 %v8127_v38  ;;  %3630 = vmatpush.bf16.msrb.mxu2 %v8128_v16  ;;  %v8138_v38 = vld [vmem:[#allocation126_spill] sm:$0xff]  ;;  %v8139_v16 = vld [vmem:[#allocation81_spill] sm:$0xff] }
 0x631   :  { %3374 = vmatpush.bf16.msrb.mxu1 %v8133_v62  ;;  %3400 = vmatpush.bf16.msrb.mxu3 %v8134_v17  ;;  %v8142_v62 = vld [vmem:[#allocation130_spill] sm:$0xff]  ;;  %v8143_v17 = vld [vmem:[#allocation85_spill] sm:$0xff] }
 0x632   :  { %3605 = vmatpush.bf16.msrb.mxu0 %v8131_v25  ;;  %3631 = vmatpush.bf16.msrb.mxu2 %v8132_v2  ;;  %v8140_v25 = vld [vmem:[#allocation83_spill] sm:$0xff]  ;;  %v8141_v2 = vld [vmem:[#allocation128_spill] sm:$0xff] }
 0x634   :  { %3375 = vmatmul.bf16.vlgmr.msrb.gmra.mxu1 %v6895_v41  ;;  %3401 = vmatmul.bf16.vlgmr.msrb.gmra.mxu3 %v6895_v41  ;;  %v8149_v41 = vld [vmem:[#allocation136_spill] sm:$0xff] }
 0x635   :  { %3563 = vmatpush.bf16.msra.mxu1 %v8135_v27  ;;  %3589 = vmatpush.bf16.msra.mxu3 %v8136_v15  ;;  %v8144_v27 = vld [vmem:[#allocation87_spill] sm:$0xff]  ;;  %v8145_v15 = vld [vmem:[#allocation132_spill] sm:$0xff] }
 0x636   :  { %3606 = vmatpush.bf16.msrb.mxu0 %v8137_v31  ;;  %3632 = vmatpush.bf16.msrb.mxu2 %v8138_v38  ;;  %v8146_v31 = vld [vmem:[#allocation134_spill] sm:$0xff]  ;;  %v8147_v38 = vld [vmem:[#allocation89_spill] sm:$0xff] }
 0x639   :  { %3564 = vmatpush.bf16.msra.mxu1 %v8139_v16  ;;  %3590 = vmatpush.bf16.msra.mxu3 %v8140_v25  ;;  %v8150_v16 = vld [vmem:[#allocation138_spill] sm:$0xff]  ;;  %v8151_v25 = vld [vmem:[#allocation93_spill] sm:$0xff] }
 0x63a   :  { %3607 = vmatpush.bf16.msrb.mxu0 %v8141_v2  ;;  %3633 = vmatpush.bf16.msrb.mxu2 %v8142_v62  ;;  %v8152_v2 = vld [vmem:[#allocation95_spill] sm:$0xff]  ;;  %v8153_v62 = vld [vmem:[#allocation97_spill] sm:$0xff] }
 0x63d   :  { %3565 = vmatpush.bf16.msra.mxu1 %v8143_v17  ;;  %3591 = vmatpush.bf16.msra.mxu3 %v8144_v27  ;;  %v8154_v17 = vld [vmem:[#allocation99_spill] sm:$0xff] }
 0x63e   :  { %3608 = vmatpush.bf16.msrb.mxu0 %v8145_v15  ;;  %3634 = vmatpush.bf16.msrb.mxu2 %v8146_v31  ;;  %v8155_v15 = vld [vmem:[#allocation101_spill] sm:$0xff]  ;;  %v8156_v31 = vld [vmem:[#allocation103_spill] sm:$0xff] }
 0x641   :  { %3566 = vmatpush.bf16.msra.mxu1 %v8147_v38  ;;  %3592 = vmatpush.bf16.msra.mxu3 %v8148_v26  ;;  %v3207_v27 = vpop.f32.mrf.mxu0  ;;  %v8158_v26 = vld [vmem:[#allocation107_spill] sm:$0xff] }
 0x642   :  { %3609 = vmatpush.bf16.msrb.mxu0 %v8149_v41  ;;  %3635 = vmatpush.bf16.msrb.mxu2 %v8150_v16  ;;  %v8159_v16 = vld [vmem:[#allocation109_spill] sm:$0xff] }
 0x645   :  { %3567 = vmatpush.bf16.msra.mxu1 %v8151_v25  ;;  %3593 = vmatpush.bf16.msra.mxu3 %v8152_v2  ;;  %v8160_v25 = vld [vmem:[#allocation111_spill] sm:$0xff]  ;;  %v8161_v2 = vld [vmem:[#allocation113_spill] sm:$0xff] }
 0x647   :  { %v3233_v38 = vpop.f32.mrf.mxu2 }
 0x649   :  { %3568 = vmatpush.bf16.msra.mxu1 %v8153_v62  ;;  %3594 = vmatpush.bf16.msra.mxu3 %v8154_v17  ;;  %v3209_v41 = vpop.f32.mrf.mxu0  ;;  %v8162_v62 = vld [vmem:[#allocation115_spill] sm:$0xff] }
 0x64d   :  { %3569 = vmatpush.bf16.msra.mxu1 %v8155_v15  ;;  %3595 = vmatpush.bf16.msra.mxu3 %v8156_v31  ;;  %v8164_v15 = vld [vmem:[#allocation119_spill] sm:$0xff]  ;;  %v8165_v31 = vld [vmem:[#allocation121_spill] sm:$0xff] }
 0x64f   :  { %v3235_v17 = vpop.f32.mrf.mxu2 }
 0x651   :  { %3570 = vmatpush.bf16.msra.mxu1 %v8157_v55  ;;  %3596 = vmatpush.bf16.msra.mxu3 %v8158_v26  ;;  %v3259_v48 = vpop.f32.mrf.mxu0  ;;  %v8166_v55 = vld [vmem:[#allocation123_spill] sm:$0xff] }
 0x655   :  { %3615 = vmatpush.bf16.msrb.mxu1 %v8159_v16  ;;  %3641 = vmatpush.bf16.msrb.mxu3 %v8160_v25  ;;  %v8168_v16 = vld [vmem:[#allocation127_spill] sm:$0xff]  ;;  %v8169_v25 = vld [vmem:[#allocation129_spill] sm:$0xff] }
 0x657   :  { %v3285_v26 = vpop.f32.mrf.mxu2 }
 0x659   :  { %3616 = vmatpush.bf16.msrb.mxu1 %v8161_v2  ;;  %3642 = vmatpush.bf16.msrb.mxu3 %v8162_v62  ;;  %v3261_v41 = vpop.f32.mrf.mxu0  ;;  %v8170_v2 = vld [vmem:[#allocation131_spill] sm:$0xff] }
 0x65d   :  { %3617 = vmatpush.bf16.msrb.mxu1 %v8163_v43  ;;  %3643 = vmatpush.bf16.msrb.mxu3 %v8164_v15  ;;  %v8172_v43 = vld [vmem:[#allocation135_spill] sm:$0xff]  ;;  %v8173_v15 = vld [vmem:[#allocation137_spill] sm:$0xff] }
 0x65f   :  { %v3287_v62 = vpop.f32.mrf.mxu2 }
 0x661   :  { %3618 = vmatpush.bf16.msrb.mxu1 %v8165_v31  ;;  %3644 = vmatpush.bf16.msrb.mxu3 %v8166_v55  ;;  %v3311_v17 = vpop.f32.mrf.mxu0  ;;  %v8174_v31 = vld [vmem:[#allocation139_spill] sm:$0xff] }
 0x665   :  { %3619 = vmatpush.bf16.msrb.mxu1 %v8167_v34  ;;  %3645 = vmatpush.bf16.msrb.mxu3 %v8168_v16 }
 0x667   :  { %v7011_v55 = vpop.f32.mrf.mxu2 }
 0x669   :  { %3620 = vmatpush.bf16.msrb.mxu1 %v8169_v25  ;;  %3646 = vmatpush.bf16.msrb.mxu3 %v8170_v2  ;;  %v3313_v41 = vpop.f32.mrf.mxu0 }
 0x66d   :  { %3621 = vmatpush.bf16.msrb.mxu1 %v8171_v39  ;;  %3647 = vmatpush.bf16.msrb.mxu3 %v8172_v43  ;;  %v8176_v39 = vld [vmem:[#allocation39_spill] sm:$0xff] }
 0x66f   :  { %v3339_v16 = vpop.f32.mrf.mxu2 }
 0x671   :  { %3622 = vmatpush.bf16.msrb.mxu1 %v8173_v15  ;;  %3648 = vmatpush.bf16.msrb.mxu3 %v8174_v31  ;;  %v3220_v34 = vpop.f32.mrf.mxu1 }
 0x672   :  { %v3221_v36 = vadd.f32 %v3220_v34, %v3207_v27 }
 0x674   :  { %v3410_v25 = vadd.f32 %v3221_v36, %v8175_v29 }
 0x676   :  { %v4717_v33 = vmul.f32 -1.442695, %v3410_v25 }
 0x677   :  { %v3246_v2 = vpop.f32.mrf.mxu3 }
 0x678   :  { %5054 = vpow2.f32 %v4717_v33  ;;  %v3247_v62 = vadd.f32 %v3246_v2, %v3233_v38 }
 0x679   :  { %v3222_v12 = vpop.f32.mrf.mxu1 }
 0x67a   :  { %v3411_v13 = vadd.f32 %v3247_v62, %v8176_v39 }
 0x67c   :  { %v4718_v43 = vmul.f32 -1.442695, %v3411_v13  ;;  %v8177_v13 = vld [vmem:[#allocation41_spill] sm:$0xff] }
 0x67e   :  { %v5055_v57 = vpop.eup %5054  ;;  %5056 = vpow2.f32 %v4718_v43 }
 0x67f   :  { %v3425_v15 = vadd.f32 1.0, %v5055_v57  ;;  %v3248_v31 = vpop.f32.mrf.mxu3 }
 0x681   :  { %5058 = vrcp.f32 %v3425_v15  ;;  %v3272_v59 = vpop.f32.mrf.mxu1  ;;  %vm3431_vm4 = vweird.f32 %v3425_v15 }
 0x682   :  { %v3273_v57 = vadd.f32 %v3272_v59, %v3259_v48  ;;  %v3435_v59 = vand.u32 2147483647, %v3425_v15 }
 0x684   :  { %v7015_v41 = vpop.f32.mrf.mxu0  ;;  %v5057_v27 = vpop.eup %5056  ;;  %v3412_v1 = vadd.f32 %v3273_v57, %v8178_v0  ;;  %v8181_v0 = vld [vmem:[#allocation50_spill] sm:$0xff]  ;;  %vm3436_vm9 = vcmp.eq.f32.partialorder %v3435_v59, 8.507059e+37 }
 0x685   :  { %v3444_v34 = vadd.f32 1.0, %v5057_v27 }
 0x687   :  { %v5059_v16 = vpop.eup %5058  ;;  %5060 = vrcp.f32 %v3444_v34  ;;  %v3298_v29 = vpop.f32.mrf.mxu3  ;;  %v3456_v58 = vand.u32 2147483648, %v3444_v34  ;;  %vm3450_vm5 = vweird.f32 %v3444_v34 }
 0x688   :  { %v3427_v36 = vmul.f32 %v5059_v16, %v3425_v15  ;;  %v3299_v33 = vadd.f32 %v3298_v29, %v3285_v26  ;;  %vm3432_vm2 = vweird.f32 %v5059_v16  ;;  %v3437_v26 = vand.u32 2147483648, %v3425_v15 }
 0x689   :  { %v3274_v12 = vpop.f32.mrf.mxu1  ;;  %vm7021_vm6 = vmor %vm3431_vm4, %vm3432_vm2 }
 0x68a   :  { %v7017_v38 = vpop.f32.mrf.mxu2  ;;  %v3428_v25 = vsub.f32 1.0, %v3427_v36  ;;  %v3413_v2 = vadd.f32 %v3299_v33, %v8177_v13  ;;  %v3454_v33 = vand.u32 2147483647, %v3444_v34 }
 0x68c   :  { %v3365_v62 = vpop.f32.mrf.mxu0  ;;  %v4719_v39 = vmul.f32 -1.442695, %v3413_v2  ;;  %v3429_v31 = vmul.f32 %v5059_v16, %v3428_v25  ;;  %v3457_v2 = vor.u32 1.1754944e-38, %v3456_v58  ;;  %vm3455_vm8 = vcmp.eq.f32.partialorder %v3454_v33, 8.507059e+37  ;;  %v8182_v58 = vld [vmem:[#allocation51_spill] sm:$0xff] }
 0x68d   :  { %v5061_v43 = vpop.eup %5060 }
 0x68e   :  { %v3446_v4 = vmul.f32 %v5061_v43, %v3444_v34  ;;  %5062 = vpow2.f32 %v4719_v39  ;;  %v3430_v47 = vadd.f32 %v5059_v16, %v3429_v31  ;;  %vm3451_vm3 = vweird.f32 %v5061_v43 }
 0x68f   :  { %v3300_v14 = vpop.f32.mrf.mxu3  ;;  %5064 = vtanh.f32 %v3412_v1  ;;  %vm3452_vm7 = vmor %vm3450_vm5, %vm3451_vm3  ;;  %v3438_v39 = vor.u32 1.1754944e-38, %v3437_v26 }
 0x690   :  { %v3447_v27 = vsub.f32 1.0, %v3446_v4  ;;  %v3434_v62 = vsel %vm7021_vm6, %v5059_v16, %v3430_v47 }
 0x691   :  { %v3324_v12 = vpop.f32.mrf.mxu1  ;;  %v3439_v31 = vsel %vm3436_vm9, %v3438_v39, %v3434_v62 }
 0x692   :  { %v3391_v29 = vpop.f32.mrf.mxu2  ;;  %v3448_v36 = vmul.f32 %v5061_v43, %v3447_v27  ;;  %v3325_v13 = vadd.f32 %v3324_v12, %v3311_v17 }
 0x694   :  { %v5063_v48 = vpop.eup %5062  ;;  %v3449_v14 = vadd.f32 %v5061_v43, %v3448_v36  ;;  %v3418_v4 = vadd.f32 %v3325_v13, %v8181_v0 }
 0x695   :  { %v3464_v57 = vadd.f32 1.0, %v5063_v48  ;;  %v5065_v36 = vpop.eup %5064 }
 0x696   :  { %v3453_v17 = vsel %vm3452_vm7, %v5061_v43, %v3449_v14  ;;  %v4720_v27 = vmul.f32 -1.442695, %v3418_v4  ;;  %v3481_v25 = vmul.f32 %v5065_v36, %v3439_v31 }
 0x697   :  { %v3458_v15 = vsel %vm3455_vm8, %v3457_v2, %v3453_v17  ;;  %5066 = vrcp.f32 %v3464_v57  ;;  %v3350_v34 = vpop.f32.mrf.mxu3  ;;  %v3476_v48 = vand.u32 2147483648, %v3464_v57  ;;  %vm3470_vm11 = vweird.f32 %v3464_v57 }
 0x698   :  { %v3351_v29 = vadd.f32 %v3350_v34, %v7011_v55  ;;  %v3480_v1 = vmul.f32 %v3458_v15, %v6839_v24  ;;  %5068 = vpow2.f32 %v4720_v27  ;;  %v3474_v24 = vand.u32 2147483647, %v3464_v57 }
 0x699   :  { %v3326_v12 = vpop.f32.mrf.mxu1  ;;  %v3477_v2 = vor.u32 1.1754944e-38, %v3476_v48 }
 0x69a   :  { %v3419_v13 = vadd.f32 %v3351_v29, %v8182_v58  ;;  %v7031_v43 = vadd.f32 %v3481_v25, %v3480_v1  ;;  %vm3475_vm13 = vcmp.eq.f32.partialorder %v3474_v24, 8.507059e+37 }
 0x69c   :  { %v4721_v47 = vmul.f32 -1.442695, %v3419_v13 }
 0x69d   :  { %v5067_v16 = vpop.eup %5066 }
 0x69e   :  { %v3466_v26 = vmul.f32 %v5067_v16, %v3464_v57  ;;  %5070 = vpow2.f32 %v4721_v47  ;;  %v5069_v55 = vpop.eup %5068  ;;  %vm3471_vm10 = vweird.f32 %v5067_v16 }
 0x69f   :  { %v3352_v33 = vpop.f32.mrf.mxu3  ;;  %5072 = vtanh.f32 %v7031_v43  ;;  %vm3472_vm12 = vmor %vm3470_vm11, %vm3471_vm10  ;;  %v7034_v62 = vadd.f32 1.0, %v5069_v55 }
 0x6a0   :  { %v3467_v59 = vsub.f32 1.0, %v3466_v26 }
 0x6a1   :  { %v3500_v55 = vand.u32 2147483648, %v7034_v62  ;;  %vm3494_vm2 = vweird.f32 %v7034_v62 }
 0x6a2   :  { %v3468_v14 = vmul.f32 %v5067_v16, %v3467_v59 }
 0x6a4   :  { %v5071_v0 = vpop.eup %5070  ;;  %v3469_v4 = vadd.f32 %v5067_v16, %v3468_v14  ;;  %v3498_v14 = vand.u32 2147483647, %v7034_v62 }
 0x6a5   :  { %v3507_v39 = vadd.f32 1.0, %v5071_v0  ;;  %v5073_v15 = vpop.eup %5072 }
 0x6a6   :  { %v3473_v17 = vsel %vm3472_vm12, %v5067_v16, %v3469_v4  ;;  %v8183_v16 = vld [vmem:[#allocation53_spill] sm:$0xff]  ;;  %vm3499_vm5 = vcmp.eq.f32.partialorder %v3498_v14, 8.507059e+37 }
 0x6a7   :  { %v3478_v34 = vsel %vm3475_vm13, %v3477_v2, %v3473_v17  ;;  %5074 = vrcp.f32 %v3507_v39  ;;  %vm3513_vm15 = vweird.f32 %v3507_v39 }
 0x6a8   :  { %v3484_v31 = vmul.f32 %v5073_v15, %v3478_v34  ;;  %5076 = vrcp.f32 %v7034_v62 }
 0x6aa   :  { %v7037_v27 = vpack.c.bf16 %v3484_v31, %v3484_v31 }
 0x6ac   :  { %3558 = vmatmul.bf16.vlgmr.msra.gmra.mxu0 %v7037_v27  ;;  %3584 = vmatmul.bf16.vlgmr.msra.gmra.mxu2 %v7037_v27 }
 0x6ad   :  { %v5075_v57 = vpop.eup %5074  ;;  %3654 = vmatpush.bf16.msra.mxu0 %v7758_v18  ;;  %3680 = vmatpush.bf16.msra.mxu2 %v7862_v11 }
 0x6ae   :  { %v5077_v1 = vpop.eup %5076  ;;  %v3509_v12 = vmul.f32 %v5075_v57, %v3507_v39  ;;  %vm3514_vm14 = vweird.f32 %v5075_v57 }
 0x6af   :  { %v3490_v36 = vmul.f32 %v5077_v1, %v7034_v62  ;;  %vm3495_vm0 = vweird.f32 %v5077_v1  ;;  %vm7058_vm1 = vmor %vm3513_vm15, %vm3514_vm14 }
 0x6b0   :  { %v3510_v58 = vsub.f32 1.0, %v3509_v12  ;;  %vm3496_vm3 = vmor %vm3494_vm2, %vm3495_vm0  ;;  %v8201_v12 = vld [vmem:[#allocation168_spill] sm:$0xff] }
 0x6b1   :  { %v3376_v29 = vpop.f32.mrf.mxu1  ;;  %3655 = vmatpush.bf16.msra.mxu0 %v7863_v51  ;;  %3681 = vmatpush.bf16.msra.mxu2 %v7864_v49  ;;  %v3491_v18 = vsub.f32 1.0, %v3490_v36  ;;  %v8184_v51 = vld [vmem:[#allocation56_spill] sm:$0xff]  ;;  %v8202_v36 = vld [vmem:[#allocation169_spill] sm:$0xff] }
 0x6b2   :  { %v3377_v25 = vadd.f32 %v3376_v29, %v7015_v41  ;;  %v3511_v33 = vmul.f32 %v5075_v57, %v3510_v58  ;;  %v8203_v58 = vld [vmem:[#allocation170_spill] sm:$0xff] }
 0x6b3   :  { %v3492_v48 = vmul.f32 %v5077_v1, %v3491_v18  ;;  %v8208_v18 = vld [vmem:[#allocation180_spill] sm:$0xff] }
 0x6b4   :  { %v3420_v59 = vadd.f32 %v3377_v25, %v8184_v51  ;;  %v3512_v41 = vadd.f32 %v5075_v57, %v3511_v33  ;;  %v8206_v25 = vld [vmem:[#allocation176_spill] sm:$0xff]  ;;  %v8213_v51 = vld [vmem:[#allocation189_spill] sm:$0xff] }
 0x6b5   :  { %3656 = vmatpush.bf16.msra.mxu0 %v7865_v6  ;;  %3682 = vmatpush.bf16.msra.mxu2 %v7866_v42  ;;  %v3519_v6 = vand.u32 2147483648, %v3507_v39  ;;  %v3493_v42 = vadd.f32 %v5077_v1, %v3492_v48  ;;  %v8212_v33 = vld [vmem:[#allocation188_spill] sm:$0xff]  ;;  %v8216_v48 = vld [vmem:[#allocation195_spill] sm:$0xff] }
 0x6b6   :  { %v3516_v24 = vsel %vm7058_vm1, %v5075_v57, %v3512_v41  ;;  %v8217_v41 = vld [vmem:[#allocation197_spill] sm:$0xff] }
 0x6b7   :  { %v3402_v13 = vpop.f32.mrf.mxu3  ;;  %v3520_v0 = vor.u32 1.1754944e-38, %v3519_v6 }
 0x6b8   :  { %v3403_v47 = vadd.f32 %v3402_v13, %v7017_v38  ;;  %v8204_v13 = vld [vmem:[#allocation172_spill] sm:$0xff] }
 0x6b9   :  { %v3378_v11 = vpop.f32.mrf.mxu1  ;;  %3657 = vmatpush.bf16.msra.mxu0 %v7768_v35  ;;  %3683 = vmatpush.bf16.msra.mxu2 %v7769_v56  ;;  %v3517_v35 = vand.u32 2147483647, %v3507_v39  ;;  %v3501_v39 = vor.u32 1.1754944e-38, %v3500_v55 }
 0x6ba   :  { %v3421_v26 = vadd.f32 %v3403_v47, %v8183_v16  ;;  %v8207_v47 = vld [vmem:[#allocation178_spill] sm:$0xff]  ;;  %v8210_v16 = vld [vmem:[#allocation184_spill] sm:$0xff] }
 0x6bb   :  { %vm3518_vm4 = vcmp.eq.f32.partialorder %v3517_v35, 8.507059e+37  ;;  %v8209_v11 = vld [vmem:[#allocation182_spill] sm:$0xff] }
 0x6bc   :  { %v4722_v49 = vmul.f32 -1.442695, %v3421_v26  ;;  %3610 = vmatmul.bf16.vlgmr.msrb.gmra.mxu0 %v7037_v27  ;;  %3636 = vmatmul.bf16.vlgmr.msrb.gmra.mxu2 %v7037_v27  ;;  %v3521_v17 = vsel %vm3518_vm4, %v3520_v0, %v3516_v24  ;;  %v8211_v26 = vld [vmem:[#allocation186_spill] sm:$0xff] }
 0x6bd   :  { %3658 = vmatpush.bf16.msra.mxu0 %v7770_v52  ;;  %3684 = vmatpush.bf16.msra.mxu2 %v7771_v8  ;;  %v3497_v8 = vsel %vm3496_vm3, %v5077_v1, %v3493_v42  ;;  %v3543_v62 = vmul.f32 %v3521_v17, %v6882_v60  ;;  %v8218_v17 = vld [vmem:[#allocation42_spill] sm:$0xff] }
 0x6be   :  { %5078 = vpow2.f32 %v4722_v49  ;;  %v3502_v15 = vsel %vm3499_vm5, %v3501_v39, %v3497_v8  ;;  %v8215_v49 = vld [vmem:[#allocation193_spill] sm:$0xff] }
 0x6bf   :  { %v3404_v38 = vpop.f32.mrf.mxu3  ;;  %5080 = vtanh.f32 %v3420_v59  ;;  %v8214_v59 = vld [vmem:[#allocation191_spill] sm:$0xff] }
 0x6c1   :  { %3659 = vmatpush.bf16.msra.mxu0 %v7772_v44  ;;  %3685 = vmatpush.bf16.msra.mxu2 %v7665_v20 }
 0x6c4   :  { %v5079_v52 = vpop.eup %5078 }
 0x6c5   :  { %v3527_v4 = vadd.f32 1.0, %v5079_v52  ;;  %v5081_v2 = vpop.eup %5080  ;;  %3660 = vmatpush.bf16.msra.mxu0 %v7666_v28  ;;  %3686 = vmatpush.bf16.msra.mxu2 %v5867_v46 }
 0x6c6   :  { %v3544_v34 = vmul.f32 %v5081_v2, %v3502_v15 }
 0x6c7   :  { %5082 = vrcp.f32 %v3527_v4  ;;  %v3539_v28 = vand.u32 2147483648, %v3527_v4  ;;  %vm3533_vm7 = vweird.f32 %v3527_v4 }
 0x6c8   :  { %v7074_v44 = vadd.f32 %v3544_v34, %v3543_v62 }
 0x6c9   :  { %3661 = vmatpush.bf16.msra.mxu0 %v5873_v40  ;;  %3687 = vmatpush.bf16.msra.mxu2 %v5879_v45  ;;  %v3537_v45 = vand.u32 2147483647, %v3527_v4 }
 0x6ca   :  { %5084 = vtanh.f32 %v7074_v44 }
 0x6cb   :  { %vm3538_vm9 = vcmp.eq.f32.partialorder %v3537_v45, 8.507059e+37 }
 0x6cc   :  { %3662 = vmatmul.bf16.vlgmr.msra.gmra.mxu0 %v7037_v27  ;;  %3688 = vmatmul.bf16.vlgmr.msra.gmra.mxu2 %v7037_v27 }
 0x6cd   :  { %v5083_v20 = vpop.eup %5082  ;;  %3706 = vmatpush.bf16.msrb.mxu0 %v5884_v54  ;;  %3732 = vmatpush.bf16.msrb.mxu2 %v5888_v32  ;;  %v3540_v54 = vor.u32 1.1754944e-38, %v3539_v28 }
 0x6ce   :  { %v3529_v31 = vmul.f32 %v5083_v20, %v3527_v4  ;;  %vm3534_vm6 = vweird.f32 %v5083_v20 }
 0x6cf   :  { %vm3535_vm8 = vmor %vm3533_vm7, %vm3534_vm6 }
 0x6d0   :  { %v3530_v46 = vsub.f32 1.0, %v3529_v31  ;;  %v5085_v57 = vpop.eup %5084 }
 0x6d1   :  { %3707 = vmatpush.bf16.msrb.mxu0 %v7673_v10  ;;  %3733 = vmatpush.bf16.msrb.mxu2 %v7773_v19  ;;  %v8200_v19 = vld [vmem:[#allocation167_spill] sm:$0xff] }
 0x6d2   :  { %v3531_v40 = vmul.f32 %v5083_v20, %v3530_v46  ;;  %v8219_v46 = vld [vmem:[#allocation43_spill] sm:$0xff] }
 0x6d4   :  { %v3532_v60 = vadd.f32 %v5083_v20, %v3531_v40 }
 0x6d5   :  { %3708 = vmatpush.bf16.msrb.mxu0 %v7675_v50  ;;  %3734 = vmatpush.bf16.msrb.mxu2 %v7676_v63  ;;  %v8188_v50 = vld [vmem:[#allocation190_spill] sm:$0xff]  ;;  %v8189_v63 = vld [vmem:[#allocation192_spill] sm:$0xff] }
 0x6d6   :  { %v3536_v32 = vsel %vm3535_vm8, %v5083_v20, %v3532_v60 }
 0x6d7   :  { %v3541_v29 = vsel %vm3538_vm9, %v3540_v54, %v3536_v32 }
 0x6d8   :  { %v3547_v1 = vmul.f32 %v5085_v57, %v3541_v29 }
 0x6d9   :  { %3709 = vmatpush.bf16.msrb.mxu0 %v7677_v37  ;;  %3735 = vmatpush.bf16.msrb.mxu2 %v7678_v53  ;;  %v8187_v37 = vld [vmem:[#allocation151_spill] sm:$0xff]  ;;  %v8190_v53 = vld [vmem:[#allocation153_spill] sm:$0xff] }
 0x6da   :  { %v3549_v10 = vpack.c.bf16 %v3547_v1, %v3547_v1 }
 0x6dc   :  { %3571 = vmatmul.bf16.vlgmr.msra.gmra.mxu1 %v3549_v10  ;;  %3597 = vmatmul.bf16.vlgmr.msra.gmra.mxu3 %v3549_v10 }
 0x6dd   :  { %3667 = vmatpush.bf16.msra.mxu1 %v7683_v61  ;;  %3693 = vmatpush.bf16.msra.mxu3 %v7684_v22  ;;  %v8193_v61 = vld [vmem:[#allocation196_spill] sm:$0xff]  ;;  %v8196_v22 = vld [vmem:[#allocation161_spill] sm:$0xff] }
 0x6de   :  { %3710 = vmatpush.bf16.msrb.mxu0 %v7680_v5  ;;  %3736 = vmatpush.bf16.msrb.mxu2 %v7681_v3  ;;  %v8191_v5 = vld [vmem:[#allocation155_spill] sm:$0xff]  ;;  %v8192_v3 = vld [vmem:[#allocation194_spill] sm:$0xff] }
 0x6e1   :  { %3668 = vmatpush.bf16.msra.mxu1 %v7685_v9  ;;  %3694 = vmatpush.bf16.msra.mxu3 %v7686_v7  ;;  %v8197_v9 = vld [vmem:[#allocation163_spill] sm:$0xff]  ;;  %v8198_v7 = vld [vmem:[#allocation165_spill] sm:$0xff] }
 0x6e2   :  { %3711 = vmatpush.bf16.msrb.mxu0 %v7682_v23  ;;  %3737 = vmatpush.bf16.msrb.mxu2 %v5955_v30  ;;  %v8194_v23 = vld [vmem:[#allocation157_spill] sm:$0xff]  ;;  %v8195_v30 = vld [vmem:[#allocation159_spill] sm:$0xff] }
 0x6e5   :  { %3669 = vmatpush.bf16.msra.mxu1 %v7687_v21  ;;  %3695 = vmatpush.bf16.msra.mxu3 %v8187_v37  ;;  %v8199_v21 = vld [vmem:[#allocation166_spill] sm:$0xff] }
 0x6e6   :  { %3712 = vmatpush.bf16.msrb.mxu0 %v8188_v50  ;;  %3738 = vmatpush.bf16.msrb.mxu2 %v8189_v63  ;;  %v8220_v50 = vld [vmem:[#allocation48_spill] sm:$0xff] }
 0x6e9   :  { %3670 = vmatpush.bf16.msra.mxu1 %v8190_v53  ;;  %3696 = vmatpush.bf16.msra.mxu3 %v8191_v5 }
 0x6ea   :  { %3713 = vmatpush.bf16.msrb.mxu0 %v8192_v3  ;;  %3739 = vmatpush.bf16.msrb.mxu2 %v8193_v61 }
 0x6ec   :  { %3623 = vmatmul.bf16.vlgmr.msrb.gmra.mxu1 %v3549_v10  ;;  %3649 = vmatmul.bf16.vlgmr.msrb.gmra.mxu3 %v3549_v10 }
 0x6ed   :  { %3671 = vmatpush.bf16.msra.mxu1 %v8194_v23  ;;  %3697 = vmatpush.bf16.msra.mxu3 %v8195_v30 }
 0x6ee   :  { %3714 = vmatmul.bf16.vlgmr.msrb.gmra.mxu0 %v7037_v27  ;;  %3740 = vmatmul.bf16.vlgmr.msrb.gmra.mxu2 %v7037_v27  ;;  %v8205_v27 = vld [vmem:[#allocation174_spill] sm:$0xff] }
 0x6f1   :  { %3672 = vmatpush.bf16.msra.mxu1 %v8196_v22  ;;  %3698 = vmatpush.bf16.msra.mxu3 %v8197_v9  ;;  %v8221_v22 = vld [vmem:[#allocation45_spill] sm:$0xff] }
 0x6f5   :  { %3673 = vmatpush.bf16.msra.mxu1 %v8198_v7  ;;  %3699 = vmatpush.bf16.msra.mxu3 %v8199_v21 }
 0x6f9   :  { %3674 = vmatpush.bf16.msra.mxu1 %v8200_v19  ;;  %3700 = vmatpush.bf16.msra.mxu3 %v8201_v12 }
 0x6fc   :  { %3675 = vmatmul.bf16.vlgmr.msra.gmra.mxu1 %v3549_v10  ;;  %3701 = vmatmul.bf16.vlgmr.msra.gmra.mxu3 %v3549_v10 }
 0x6fd   :  { %3719 = vmatpush.bf16.msrb.mxu1 %v8202_v36  ;;  %3745 = vmatpush.bf16.msrb.mxu3 %v8203_v58 }
 0x701   :  { %3720 = vmatpush.bf16.msrb.mxu1 %v8204_v13  ;;  %3746 = vmatpush.bf16.msrb.mxu3 %v8205_v27 }
 0x705   :  { %3721 = vmatpush.bf16.msrb.mxu1 %v8206_v25  ;;  %3747 = vmatpush.bf16.msrb.mxu3 %v8207_v47 }
 0x709   :  { %3722 = vmatpush.bf16.msrb.mxu1 %v8208_v18  ;;  %3748 = vmatpush.bf16.msrb.mxu3 %v8209_v11 }
 0x70d   :  { %3723 = vmatpush.bf16.msrb.mxu1 %v8210_v16  ;;  %3749 = vmatpush.bf16.msrb.mxu3 %v8211_v26 }
 0x711   :  { %3724 = vmatpush.bf16.msrb.mxu1 %v8212_v33  ;;  %3750 = vmatpush.bf16.msrb.mxu3 %v8213_v51 }
 0x715   :  { %3725 = vmatpush.bf16.msrb.mxu1 %v8214_v59  ;;  %3751 = vmatpush.bf16.msrb.mxu3 %v8215_v49 }
 0x719   :  { %3726 = vmatpush.bf16.msrb.mxu1 %v8216_v48  ;;  %3752 = vmatpush.bf16.msrb.mxu3 %v8217_v41 }
 0x71c   :  { %3727 = vmatmul.bf16.vlgmr.msrb.gmra.mxu1 %v3549_v10  ;;  %3753 = vmatmul.bf16.vlgmr.msrb.gmra.mxu3 %v3549_v10 }
 0x729   :  { %v3559_v38 = vpop.f32.mrf.mxu0 }
 0x72f   :  { %v3585_v6 = vpop.f32.mrf.mxu2 }
 0x731   :  { %v3561_v42 = vpop.f32.mrf.mxu0 }
 0x737   :  { %v3587_v35 = vpop.f32.mrf.mxu2 }
 0x738   :  { %v8222_v35 = vld [vmem:[#allocation46_spill] sm:$0xff] }
 0x739   :  { %v3611_v56 = vpop.f32.mrf.mxu0 }
 0x73f   :  { %v3637_v55 = vpop.f32.mrf.mxu2 }
 0x741   :  { %v3613_v14 = vpop.f32.mrf.mxu0 }
 0x747   :  { %v3639_v24 = vpop.f32.mrf.mxu2 }
 0x749   :  { %v3663_v52 = vpop.f32.mrf.mxu0 }
 0x74f   :  { %v7129_v0 = vpop.f32.mrf.mxu2 }
 0x751   :  { %v3665_v8 = vpop.f32.mrf.mxu0 }
 0x757   :  { %v3691_v39 = vpop.f32.mrf.mxu2 }
 0x759   :  { %v3572_v4 = vpop.f32.mrf.mxu1 }
 0x75a   :  { %v3573_v2 = vadd.f32 %v3572_v4, %v3559_v38 }
 0x75c   :  { %v3762_v15 = vadd.f32 %v3573_v2, %v8218_v17 }
 0x75e   :  { %v4723_v62 = vmul.f32 -1.442695, %v3762_v15 }
 0x75f   :  { %v3598_v34 = vpop.f32.mrf.mxu3 }
 0x760   :  { %5086 = vpow2.f32 %v4723_v62  ;;  %v3599_v20 = vadd.f32 %v3598_v34, %v3585_v6  ;;  %v8223_v62 = vld [vmem:[#allocation47_spill] sm:$0xff] }
 0x761   :  { %v3574_v31 = vpop.f32.mrf.mxu1 }
 0x762   :  { %v3763_v28 = vadd.f32 %v3599_v20, %v8219_v46 }
 0x764   :  { %v4724_v40 = vmul.f32 -1.442695, %v3763_v28 }
 0x766   :  { %v5087_v45 = vpop.eup %5086  ;;  %5088 = vpow2.f32 %v4724_v40 }
 0x767   :  { %v3777_v60 = vadd.f32 1.0, %v5087_v45  ;;  %v3600_v54 = vpop.f32.mrf.mxu3 }
 0x769   :  { %5090 = vrcp.f32 %v3777_v60  ;;  %v3624_v32 = vpop.f32.mrf.mxu1  ;;  %v3789_v7 = vand.u32 2147483648, %v3777_v60  ;;  %v3787_v12 = vand.u32 2147483647, %v3777_v60  ;;  %vm3783_vm11 = vweird.f32 %v3777_v60 }
 0x76a   :  { %v3625_v57 = vadd.f32 %v3624_v32, %v3611_v56 }
 0x76b   :  { %v7133_v29 = vpop.f32.mrf.mxu0  ;;  %v3790_v25 = vor.u32 1.1754944e-38, %v3789_v7  ;;  %vm3788_vm13 = vcmp.eq.f32.partialorder %v3787_v12, 8.507059e+37 }
 0x76c   :  { %v5089_v1 = vpop.eup %5088  ;;  %v3764_v63 = vadd.f32 %v3625_v57, %v8220_v50 }
 0x76d   :  { %v3796_v10 = vadd.f32 1.0, %v5089_v1 }
 0x76f   :  { %v5091_v37 = vpop.eup %5090  ;;  %5092 = vrcp.f32 %v3796_v10  ;;  %v3650_v53 = vpop.f32.mrf.mxu3  ;;  %v3808_v26 = vand.u32 2147483648, %v3796_v10  ;;  %v3806_v51 = vand.u32 2147483647, %v3796_v10  ;;  %vm3802_vm15 = vweird.f32 %v3796_v10 }
 0x770   :  { %v3779_v5 = vmul.f32 %v5091_v37, %v3777_v60  ;;  %v3651_v3 = vadd.f32 %v3650_v53, %v3637_v55  ;;  %5094 = vtanh.f32 %v3764_v63  ;;  %vm3784_vm10 = vweird.f32 %v5091_v37 }
 0x771   :  { %v7136_v61 = vpop.f32.mrf.mxu2  ;;  %v3626_v23 = vpop.f32.mrf.mxu1  ;;  %vm3785_vm12 = vmor %vm3783_vm11, %vm3784_vm10  ;;  %v3809_v55 = vor.u32 1.1754944e-38, %v3808_v26  ;;  %vm3807_vm1 = vcmp.eq.f32.partialorder %v3806_v51, 8.507059e+37 }
 0x772   :  { %v3780_v30 = vsub.f32 1.0, %v3779_v5  ;;  %v3765_v9 = vadd.f32 %v3651_v3, %v8221_v22 }
 0x773   :  { %v3717_v21 = vpop.f32.mrf.mxu0 }
 0x774   :  { %v3781_v19 = vmul.f32 %v5091_v37, %v3780_v30  ;;  %v4725_v36 = vmul.f32 -1.442695, %v3765_v9 }
 0x775   :  { %v5093_v58 = vpop.eup %5092 }
 0x776   :  { %v3798_v13 = vmul.f32 %v5093_v58, %v3796_v10  ;;  %v3782_v27 = vadd.f32 %v5091_v37, %v3781_v19  ;;  %5096 = vpow2.f32 %v4725_v36  ;;  %v5095_v16 = vpop.eup %5094  ;;  %vm3803_vm14 = vweird.f32 %v5093_v58 }
 0x777   :  { %v3652_v47 = vpop.f32.mrf.mxu3  ;;  %vm3804_vm0 = vmor %vm3802_vm15, %vm3803_vm14 }
 0x778   :  { %v3799_v18 = vsub.f32 1.0, %v3798_v13  ;;  %v3786_v11 = vsel %vm3785_vm12, %v5091_v37, %v3782_v27 }
 0x779   :  { %v3791_v33 = vsel %vm3788_vm13, %v3790_v25, %v3786_v11  ;;  %v3743_v59 = vpop.f32.mrf.mxu2  ;;  %v3676_v49 = vpop.f32.mrf.mxu1  ;;  %v8225_v25 = vld [vmem:[#allocation52_spill] sm:$0xff] }
 0x77a   :  { %v3800_v48 = vmul.f32 %v5093_v58, %v3799_v18  ;;  %v3833_v41 = vmul.f32 %v5095_v16, %v3791_v33  ;;  %v3677_v38 = vadd.f32 %v3676_v49, %v3663_v52 }
 0x77c   :  { %v5097_v6 = vpop.eup %5096  ;;  %v3801_v42 = vadd.f32 %v5093_v58, %v3800_v48  ;;  %v3770_v56 = vadd.f32 %v3677_v38, %v8222_v35 }
 0x77d   :  { %v3816_v14 = vadd.f32 1.0, %v5097_v6 }
 0x77e   :  { %v3805_v24 = vsel %vm3804_vm0, %v5093_v58, %v3801_v42  ;;  %v4726_v39 = vmul.f32 -1.442695, %v3770_v56  ;;  %v8224_v58 = vld [vmem:[#allocation49_spill] sm:$0xff] }
 0x77f   :  { %v3810_v8 = vsel %vm3807_vm1, %v3809_v55, %v3805_v24  ;;  %5098 = vrcp.f32 %v3816_v14  ;;  %v3702_v4 = vpop.f32.mrf.mxu3  ;;  %v3828_v45 = vand.u32 2147483648, %v3816_v14  ;;  %vm3822_vm3 = vweird.f32 %v3816_v14 }
 0x780   :  { %v3832_v2 = vmul.f32 %v3810_v8, %v7031_v43  ;;  %v3703_v17 = vadd.f32 %v3702_v4, %v7129_v0  ;;  %5100 = vpow2.f32 %v4726_v39  ;;  %v3826_v43 = vand.u32 2147483647, %v3816_v14 }
 0x781   :  { %v3678_v15 = vpop.f32.mrf.mxu1  ;;  %v3829_v0 = vor.u32 1.1754944e-38, %v3828_v45 }
 0x782   :  { %v3834_v52 = vadd.f32 %v3833_v41, %v3832_v2  ;;  %v3771_v34 = vadd.f32 %v3703_v17, %v8223_v62  ;;  %vm3827_vm5 = vcmp.eq.f32.partialorder %v3826_v43, 8.507059e+37 }
 0x784   :  { %v4727_v20 = vmul.f32 -1.442695, %v3771_v34 }
 0x785   :  { %v5099_v31 = vpop.eup %5098 }
 0x786   :  { %v3818_v46 = vmul.f32 %v5099_v31, %v3816_v14  ;;  %5102 = vpow2.f32 %v4727_v20  ;;  %v5101_v60 = vpop.eup %5100  ;;  %vm3823_vm2 = vweird.f32 %v5099_v31 }
 0x787   :  { %v3704_v28 = vpop.f32.mrf.mxu3  ;;  %5104 = vtanh.f32 %v3834_v52  ;;  %vm3824_vm4 = vmor %vm3822_vm3, %vm3823_vm2  ;;  %v3840_v1 = vadd.f32 1.0, %v5101_v60 }
 0x788   :  { %v3819_v40 = vsub.f32 1.0, %v3818_v46 }
 0x789   :  { %vm3846_vm10 = vweird.f32 %v3840_v1  ;;  %v3850_v59 = vand.u32 2147483647, %v3840_v1 }
 0x78a   :  { %v3820_v54 = vmul.f32 %v5099_v31, %v3819_v40 }
 0x78b   :  { %vm3851_vm13 = vcmp.eq.f32.partialorder %v3850_v59, 8.507059e+37 }
 0x78c   :  { %v5103_v32 = vpop.eup %5102  ;;  %v3821_v57 = vadd.f32 %v5099_v31, %v3820_v54 }
 0x78d   :  { %v3859_v10 = vadd.f32 1.0, %v5103_v32  ;;  %v5105_v50 = vpop.eup %5104 }
 0x78e   :  { %v3825_v37 = vsel %vm3824_vm4, %v5099_v31, %v3821_v57 }
 0x78f   :  { %v3830_v63 = vsel %vm3827_vm5, %v3829_v0, %v3825_v37  ;;  %5106 = vrcp.f32 %v3859_v10  ;;  %v3871_v33 = vand.u32 2147483648, %v3859_v10  ;;  %vm3865_vm7 = vweird.f32 %v3859_v10 }
 0x790   :  { %v7143_v53 = vmul.f32 %v5105_v50, %v3830_v63  ;;  %5108 = vrcp.f32 %v3840_v1 }
 0x791   :  { %v3872_v41 = vor.u32 1.1754944e-38, %v3871_v33 }
 0x795   :  { %v5107_v5 = vpop.eup %5106 }
 0x796   :  { %v5109_v23 = vpop.eup %5108  ;;  %v3861_v30 = vmul.f32 %v5107_v5, %v3859_v10  ;;  %vm3866_vm6 = vweird.f32 %v5107_v5 }
 0x797   :  { %v3842_v22 = vmul.f32 %v5109_v23, %v3840_v1  ;;  %vm3847_vm8 = vweird.f32 %v5109_v23  ;;  %vm3867_vm9 = vmor %vm3865_vm7, %vm3866_vm6 }
 0x798   :  { %v3862_v9 = vsub.f32 1.0, %v3861_v30  ;;  %vm3848_vm11 = vmor %vm3846_vm10, %vm3847_vm8 }
 0x799   :  { %v3728_v3 = vpop.f32.mrf.mxu1  ;;  %v3843_v12 = vsub.f32 1.0, %v3842_v22 }
 0x79a   :  { %v3729_v21 = vadd.f32 %v3728_v3, %v7133_v29  ;;  %v3863_v27 = vmul.f32 %v5107_v5, %v3862_v9  ;;  %v3869_v29 = vand.u32 2147483647, %v3859_v10 }
 0x79b   :  { %v3844_v11 = vmul.f32 %v5109_v23, %v3843_v12 }
 0x79c   :  { %v3772_v47 = vadd.f32 %v3729_v21, %v8225_v25  ;;  %v3864_v16 = vadd.f32 %v5107_v5, %v3863_v27  ;;  %vm3870_vm12 = vcmp.eq.f32.partialorder %v3869_v29, 8.507059e+37 }
 0x79d   :  { %v3845_v51 = vadd.f32 %v5109_v23, %v3844_v11 }
 0x79e   :  { %v3868_v49 = vsel %vm3867_vm9, %v5107_v5, %v3864_v16 }
 0x79f   :  { %v3754_v7 = vpop.f32.mrf.mxu3  ;;  %v3849_v38 = vsel %vm3848_vm11, %v5109_v23, %v3845_v51  ;;  %v3873_v56 = vsel %vm3870_vm12, %v3872_v41, %v3868_v49 }
 0x7a0   :  { %v3755_v19 = vadd.f32 %v3754_v7, %v7136_v61  ;;  %v3852_v61 = vand.u32 2147483648, %v3840_v1  ;;  %v3895_v14 = vmul.f32 %v3873_v56, %v7074_v44 }
 0x7a1   :  { %v3730_v36 = vpop.f32.mrf.mxu1 }
 0x7a2   :  { %v3773_v13 = vadd.f32 %v3755_v19, %v8224_v58  ;;  %v3853_v35 = vor.u32 1.1754944e-38, %v3852_v61 }
 0x7a4   :  { %v4728_v18 = vmul.f32 -1.442695, %v3773_v13  ;;  %v3854_v55 = vsel %vm3851_vm13, %v3853_v35, %v3849_v38 }
 0x7a6   :  { %5110 = vpow2.f32 %v4728_v18 }
 0x7a7   :  { %v3756_v26 = vpop.f32.mrf.mxu3  ;;  %5112 = vtanh.f32 %v3772_v47 }
 0x7ac   :  { %v5111_v48 = vpop.eup %5110 }
 0x7ad   :  { %v3879_v6 = vadd.f32 1.0, %v5111_v48  ;;  %v5113_v42 = vpop.eup %5112 }
 0x7ae   :  { %v3896_v24 = vmul.f32 %v5113_v42, %v3854_v55 }
 0x7af   :  { %5114 = vrcp.f32 %v3879_v6  ;;  %v3891_v17 = vand.u32 2147483648, %v3879_v6  ;;  %v3889_v52 = vand.u32 2147483647, %v3879_v6  ;;  %vm3885_vm15 = vweird.f32 %v3879_v6 }
 0x7b0   :  { %v3897_v4 = vadd.f32 %v3896_v24, %v3895_v14 }
 0x7b1   :  { %v3892_v34 = vor.u32 1.1754944e-38, %v3891_v17  ;;  %vm3890_vm1 = vcmp.eq.f32.partialorder %v3889_v52, 8.507059e+37 }
 0x7b2   :  { %5116 = vtanh.f32 %v3897_v4 }
 0x7b5   :  { %v5115_v8 = vpop.eup %5114 }
 0x7b6   :  { %v3881_v2 = vmul.f32 %v5115_v8, %v3879_v6  ;;  %vm3886_vm14 = vweird.f32 %v5115_v8 }
 0x7b7   :  { %vm3887_vm0 = vmor %vm3885_vm15, %vm3886_vm14 }
 0x7b8   :  { %v3882_v39 = vsub.f32 1.0, %v3881_v2  ;;  %v5117_v31 = vpop.eup %5116 }
 0x7ba   :  { %v3883_v15 = vmul.f32 %v5115_v8, %v3882_v39 }
 0x7bc   :  { %v3884_v62 = vadd.f32 %v5115_v8, %v3883_v15 }
 0x7be   :  { %v3888_v20 = vsel %vm3887_vm0, %v5115_v8, %v3884_v62 }
 0x7bf   :  { %v3893_v46 = vsel %vm3890_vm1, %v3892_v34, %v3888_v20 }
 0x7c0   :  { %v7150_v28 = vmul.f32 %v5117_v31, %v3893_v46 }
 0x7c1   :  { %5194 = dma.done.wait [#allocation6 + $0x1], 8192 }
 0x7c2   :  { %5195 = vsyncadd [#allocation6 + $0x1], 4294959104  ;;  %v3935_v44 = vld [vmem:[#allocation5 + $0xf8] sm:$0xff]  ;;  %v3933_v40 = vld [vmem:[#allocation5 + $0xe8] sm:$0xff]  ;;  %s4070_s25 = sshll.u32 %s7172_s7, 4  ;;  %s4071_s25 = int_to_ptr.hbm [resolvable:$true] %s4070_s25 }
 0x7c3   :  { %v3967_v45 = vld [vmem:[#allocation5 + $0x1f8] sm:$0xff]  ;;  %4014 = vmatpush.msra.mxu2 %v3935_v44  ;;  %v3965_v60 = vld [vmem:[#allocation5 + $0x1e8] sm:$0xff]  ;;  %v3934_v10 = vld [vmem:[#allocation5 + $0xf0] sm:$0xff] }
 0x7c4   :  { %4034 = vmatpush.msra.mxu3 %v3967_v45  ;;  %v3931_v54 = vld [vmem:[#allocation5 + $0xd8] sm:$0xff]  ;;  %v3929_v32 = vld [vmem:[#allocation5 + $0xc8] sm:$0xff]  ;;  %v3932_v37 = vld [vmem:[#allocation5 + $0xe0] sm:$0xff]  ;;  %3974 = vmatpush.msra.mxu0 %v3934_v10 }
 0x7c5   :  { %v3963_v43 = vld [vmem:[#allocation5 + $0x1d8] sm:$0xff]  ;;  %4015 = vmatpush.msra.mxu2 %v3933_v40  ;;  %v3961_v57 = vld [vmem:[#allocation5 + $0x1c8] sm:$0xff]  ;;  %v3966_v50 = vld [vmem:[#allocation5 + $0x1f0] sm:$0xff] }
 0x7c6   :  { %4035 = vmatpush.msra.mxu3 %v3965_v60  ;;  %v3927_v0 = vld [vmem:[#allocation5 + $0xb8] sm:$0xff]  ;;  %v3925_v63 = vld [vmem:[#allocation5 + $0xa8] sm:$0xff]  ;;  %3994 = vmatpush.msra.mxu1 %v3966_v50  ;;  %v3930_v3 = vld [vmem:[#allocation5 + $0xd0] sm:$0xff] }
 0x7c7   :  { %4016 = vmatpush.msra.mxu2 %v3931_v54  ;;  %v3959_v1 = vld [vmem:[#allocation5 + $0x1b8] sm:$0xff]  ;;  %v3957_v5 = vld [vmem:[#allocation5 + $0x1a8] sm:$0xff]  ;;  %v3964_v23 = vld [vmem:[#allocation5 + $0x1e0] sm:$0xff]  ;;  %3975 = vmatpush.msra.mxu0 %v3932_v37 }
 0x7c8   :  { %4036 = vmatpush.msra.mxu3 %v3963_v43  ;;  %v3923_v30 = vld [vmem:[#allocation5 + $0x98] sm:$0xff]  ;;  %3995 = vmatpush.msra.mxu1 %v3964_v23  ;;  %v3962_v9 = vld [vmem:[#allocation5 + $0x1d0] sm:$0xff]  ;;  %v3928_v7 = vld [vmem:[#allocation5 + $0xc0] sm:$0xff] }
 0x7c9   :  { %4017 = vmatpush.msra.mxu2 %v3929_v32  ;;  %v3955_v22 = vld [vmem:[#allocation5 + $0x198] sm:$0xff]  ;;  %v3960_v21 = vld [vmem:[#allocation5 + $0x1c0] sm:$0xff]  ;;  %v3921_v19 = vld [vmem:[#allocation5 + $0x88] sm:$0xff]  ;;  %3976 = vmatpush.msra.mxu0 %v3930_v3 }
 0x7ca   :  { %4037 = vmatpush.msra.mxu3 %v3961_v57  ;;  %v3953_v12 = vld [vmem:[#allocation5 + $0x188] sm:$0xff]  ;;  %3996 = vmatpush.msra.mxu1 %v3962_v9  ;;  %v3926_v36 = vld [vmem:[#allocation5 + $0xb0] sm:$0xff]  ;;  %v3919_v13 = vld [vmem:[#allocation5 + $0x78] sm:$0xff] }
 0x7cb   :  { %4018 = vmatpush.msra.mxu2 %v3927_v0  ;;  %v3958_v58 = vld [vmem:[#allocation5 + $0x1b0] sm:$0xff]  ;;  %v3951_v27 = vld [vmem:[#allocation5 + $0x178] sm:$0xff]  ;;  %3977 = vmatpush.msra.mxu0 %v3928_v7  ;;  %v3924_v25 = vld [vmem:[#allocation5 + $0xa0] sm:$0xff] }
 0x7cc   :  { %4038 = vmatpush.msra.mxu3 %v3959_v1  ;;  %3997 = vmatpush.msra.mxu1 %v3960_v21  ;;  %v3956_v47 = vld [vmem:[#allocation5 + $0x1a0] sm:$0xff]  ;;  %v3917_v18 = vld [vmem:[#allocation5 + $0x68] sm:$0xff]  ;;  %v3922_v16 = vld [vmem:[#allocation5 + $0x90] sm:$0xff] }
 0x7cd   :  { %4019 = vmatpush.msra.mxu2 %v3925_v63  ;;  %v3949_v11 = vld [vmem:[#allocation5 + $0x168] sm:$0xff]  ;;  %3978 = vmatpush.msra.mxu0 %v3926_v36  ;;  %v3954_v26 = vld [vmem:[#allocation5 + $0x190] sm:$0xff]  ;;  %v3915_v33 = vld [vmem:[#allocation5 + $0x58] sm:$0xff] }
 0x7ce   :  { %4039 = vmatpush.msra.mxu3 %v3957_v5  ;;  %3998 = vmatpush.msra.mxu1 %v3958_v58  ;;  %v3947_v51 = vld [vmem:[#allocation5 + $0x158] sm:$0xff]  ;;  %v3920_v29 = vld [vmem:[#allocation5 + $0x80] sm:$0xff]  ;;  %v3913_v59 = vld [vmem:[#allocation5 + $0x48] sm:$0xff] }
 0x7cf   :  { %4020 = vmatpush.msra.mxu2 %v3923_v30  ;;  %3979 = vmatpush.msra.mxu0 %v3924_v25  ;;  %v3952_v61 = vld [vmem:[#allocation5 + $0x180] sm:$0xff]  ;;  %v3945_v49 = vld [vmem:[#allocation5 + $0x148] sm:$0xff]  ;;  %v3918_v48 = vld [vmem:[#allocation5 + $0x70] sm:$0xff] }
 0x7d0   :  { %4040 = vmatpush.msra.mxu3 %v3955_v22  ;;  %3999 = vmatpush.msra.mxu1 %v3956_v47  ;;  %v3950_v41 = vld [vmem:[#allocation5 + $0x170] sm:$0xff]  ;;  %v3911_v38 = vld [vmem:[#allocation5 + $0x38] sm:$0xff]  ;;  %v3916_v42 = vld [vmem:[#allocation5 + $0x60] sm:$0xff] }
 0x7d1   :  { %4021 = vmatpush.msra.mxu2 %v3921_v19  ;;  %3980 = vmatpush.msra.mxu0 %v3922_v16  ;;  %v3943_v6 = vld [vmem:[#allocation5 + $0x138] sm:$0xff]  ;;  %v3948_v35 = vld [vmem:[#allocation5 + $0x160] sm:$0xff]  ;;  %v3909_v56 = vld [vmem:[#allocation5 + $0x28] sm:$0xff] }
 0x7d2   :  { %4041 = vmatpush.msra.mxu3 %v3953_v12  ;;  %4000 = vmatpush.msra.mxu1 %v3954_v26  ;;  %v3941_v55 = vld [vmem:[#allocation5 + $0x128] sm:$0xff]  ;;  %v3914_v14 = vld [vmem:[#allocation5 + $0x50] sm:$0xff]  ;;  %v3907_v8 = vld [vmem:[#allocation5 + $0x18] sm:$0xff] }
 0x7d3   :  { %4022 = vmatpush.msra.mxu2 %v3919_v13  ;;  %3981 = vmatpush.msra.mxu0 %v3920_v29  ;;  %v3946_v24 = vld [vmem:[#allocation5 + $0x150] sm:$0xff]  ;;  %v3939_v4 = vld [vmem:[#allocation5 + $0x118] sm:$0xff]  ;;  %v3912_v2 = vld [vmem:[#allocation5 + $0x40] sm:$0xff] }
 0x7d4   :  { %4042 = vmatpush.msra.mxu3 %v3951_v27  ;;  %4001 = vmatpush.msra.mxu1 %v3952_v61  ;;  %v3944_v39 = vld [vmem:[#allocation5 + $0x140] sm:$0xff]  ;;  %v3905_v17 = vld [vmem:[#allocation5 + $0x8] sm:$0xff]  ;;  %v3910_v52 = vld [vmem:[#allocation5 + $0x30] sm:$0xff] }
 0x7d5   :  { %4023 = vmatpush.msra.mxu2 %v3917_v18  ;;  %3982 = vmatpush.msra.mxu0 %v3918_v48  ;;  %v3937_v15 = vld [vmem:[#allocation5 + $0x108] sm:$0xff]  ;;  %v3942_v62 = vld [vmem:[#allocation5 + $0x130] sm:$0xff]  ;;  %v3908_v34 = vld [vmem:[#allocation5 + $0x20] sm:$0xff] }
 0x7d6   :  { %4043 = vmatpush.msra.mxu3 %v3949_v11  ;;  %4002 = vmatpush.msra.mxu1 %v3950_v41  ;;  %v3940_v20 = vld [vmem:[#allocation5 + $0x120] sm:$0xff]  ;;  %v3906_v31 = vld [vmem:[#allocation5 + $0x10] sm:$0xff] }
 0x7d7   :  { %4024 = vmatpush.msra.mxu2 %v3915_v33  ;;  %3983 = vmatpush.msra.mxu0 %v3916_v42  ;;  %v3938_v46 = vld [vmem:[#allocation5 + $0x110] sm:$0xff]  ;;  %v3904_v44 = vld [vmem:[#allocation5] sm:$0xff] }
 0x7d8   :  { %4044 = vmatpush.msra.mxu3 %v3947_v51  ;;  %4003 = vmatpush.msra.mxu1 %v3948_v35  ;;  %v3936_v40 = vld [vmem:[#allocation5 + $0x100] sm:$0xff] }
 0x7d9   :  { %4025 = vmatpush.msra.mxu2 %v3913_v59  ;;  %3984 = vmatpush.msra.mxu0 %v3914_v14  ;;  %v3968_v45 = vld [vmem:[%s7170_s5] sm:$0x3]  ;;  %s5200_s5 = smov [#allocation7]  }
 0x7da   :  { %4045 = vmatpush.msra.mxu3 %v3945_v49  ;;  %4004 = vmatpush.msra.mxu1 %v3946_v24  ;;  %v3971_v60 = vperm.slane %v3968_v45, 1  ;;  %v3970_v54 = vperm.slane %v3968_v45, 0  ;;  %s4068_s22 = sshll.u32 %s5200_s5, 4  ;;  %s4069_s22 = int_to_ptr.vmem [resolvable:$true] %s4068_s22 }
 0x7db   :  { %4026 = vmatpush.msra.mxu2 %v3911_v38  ;;  %3985 = vmatpush.msra.mxu0 %v3912_v2 }
 0x7dc   :  { %4046 = vmatpush.msra.mxu3 %v3943_v6  ;;  %4005 = vmatpush.msra.mxu1 %v3944_v39 }
 0x7dd   :  { %4027 = vmatpush.msra.mxu2 %v3909_v56  ;;  %3986 = vmatpush.msra.mxu0 %v3910_v52 }
 0x7de   :  { %4047 = vmatpush.msra.mxu3 %v3941_v55  ;;  %4006 = vmatpush.msra.mxu1 %v3942_v62 }
 0x7df   :  { %4028 = vmatpush.msra.mxu2 %v3907_v8  ;;  %3987 = vmatpush.msra.mxu0 %v3908_v34 }
 0x7e0   :  { %4048 = vmatpush.msra.mxu3 %v3939_v4  ;;  %4007 = vmatpush.msra.mxu1 %v3940_v20 }
 0x7e1   :  { %4029 = vmatpush.msra.mxu2 %v3905_v17  ;;  %3988 = vmatpush.msra.mxu0 %v3906_v31 }
 0x7e2   :  { %4049 = vmatpush.msra.mxu3 %v3937_v15  ;;  %4030 = vmatmul.f32.vlgmr.msra.gmra.mxu2 %v7143_v53 }
 0x7e3   :  { %4050 = vmatmul.f32.vlgmr.msra.gmra.mxu3 %v7150_v28  ;;  %4008 = vmatpush.msra.mxu1 %v3938_v46 }
 0x7e4   :  { %3989 = vmatpush.msra.mxu0 %v3904_v44 }
 0x7e5   :  { %4009 = vmatpush.msra.mxu1 %v3936_v40  ;;  %3990 = vmatmul.f32.vlgmr.msra.gmra.mxu0 %v7143_v53  ;;  %v4057_v53 = vld [vmem:[%s7171_s6] sm:$0xff] }
 0x7e6   :  { %4010 = vmatmul.f32.vlgmr.msra.gmra.mxu1 %v7150_v28 }
 0x862   :  { %v3991_v0 = vpop.f32.mrf.mxu0 }
 0x863   :  { %v4011_v1 = vpop.f32.mrf.mxu1  ;;  %v3992_v37 = vadd.f32 %v3991_v0, %v3970_v54 }
 0x865   :  { %v4031_v43 = vpop.f32.mrf.mxu2  ;;  %v4012_v63 = vadd.f32 %v4011_v1, %v3992_v37 }
 0x866   :  { %v4051_v32 = vpop.f32.mrf.mxu3  ;;  %v4032_v57 = vadd.f32 %v4031_v43, %v3971_v60 }
 0x867   :  { %4060 = vst [vmem:[#allocation7] sm:$0xff] %v4012_v63 }
 0x868   :  { %v4052_v10 = vadd.f32 %v4051_v32, %v4032_v57 }
 0x86a   :  { %v4054_v50 = vmul.f32 0.5, %v4052_v10  ;;  %4061 = vst [vmem:[#allocation7 + $0x8] sm:$0xff] %v4052_v10 }
 0x86c   :  { %v4055_v5 = vmul.f32 1.442695, %v4054_v50 }
 0x86e   :  { %5118 = vpow2.f32 %v4055_v5 }
 0x874   :  { %v5119_v28 = vpop.eup %5118 }
 0x875   :  { %v4058_v3 = vmul.f32 %v5119_v28, %v4057_v53 }
 0x877   :  { %v4059_v23 = vadd.f32 %v4058_v3, %v4012_v63 }
 0x879   :  { %4062 = vst [vmem:[#allocation7 + $0x10] sm:$0xff] %v4059_v23 }
 0x87a   :  { %4073 = dma.vmem_to_hbm [thread:$0]  %s4069_s22, 384, %s4071_s25, [#allocation8]  }
 0x87b   :  { %5196 = dma.done.wait [#allocation8], 384  }
 0x87c   :  { %5197 = vsyncadd [#allocation8], 4294966912 }
 0x87d   :  { %4078 = vsyncpa [#allocation8], 1 }
 0x87e   :  { %4079 = vsyncmov [#allocation6] }
 0x881   :  { %s4080_s26 = vpop.sfrf %4079 }
 0x882   :  { %p4729_p0 = scmp.ne.s32.totalorder %s4080_s26, 0 }
 0x884   :  { %4084 = shalt.err (%p4729_p0)  }
 0x885   :  { %4086 = vsyncmov [#allocation6 + $0x1] }
 0x888   :  { %s4087_s6 = vpop.sfrf %4086 }
 0x889   :  { %p4730_p1 = scmp.ne.s32.totalorder %s4087_s6, 0 }
 0x88b   :  { %4091 = shalt.err (%p4730_p1)  }

</bundles_post_ra>
